<compile_context>
chip_gen: v7x
topology: tpu7x:2x2x1
jax: 0.10.0
libtpu: 0.0.40
codegen_flags: <defaults>
</compile_context>

<pallas_src>
import functools
import math

import jax
import jax.numpy as jnp
from jax.experimental import pallas as pl
from jax.experimental.pallas import tpu as pltpu

_EPS = 1e-5


def _vmem_limit_bytes():
    """Generation-aware VMEM limit: ~3/4 of physical, capped at 100 MiB."""
    try:
        phys = pltpu.get_tpu_info().vmem_capacity_bytes
    except Exception:
        phys = 64 * 1024 * 1024          # conservative (v7x physical VMEM)
    return int(min(phys * 3 // 4, 100 * 1024 * 1024))


def _pick_tile(total, target):
    """Largest divisor of `total` that is <= target (at least 1)."""
    t = max(1, min(total, target))
    while total % t:
        t -= 1
    return t


# ----------------------------------------------------------------------------
# conv1: im2col matmul kernel (small Cin) with fused bias + channel statistics
# ----------------------------------------------------------------------------
def _im2col_matmul_kernel(p_ref, w_ref, b_ref, y_ref, ssum_ref, ssq_ref):
    """p_ref:(1,tR,K) bf16  w_ref:(K,tCo) bf16  b_ref:(1,tCo) f32
    y_ref:(1,tR,tCo) bf16 (raw, pre-norm)  ssum/ssq:(1,1,tCo) f32 per image."""
    r = pl.program_id(2)
    tCo = y_ref.shape[2]

    acc = jnp.dot(p_ref[0], w_ref[...], preferred_element_type=jnp.float32)
    acc = acc + b_ref[...]

    @pl.when(r == 0)
    def _():
        ssum_ref[...] = jnp.zeros_like(ssum_ref)
        ssq_ref[...] = jnp.zeros_like(ssq_ref)

    ssum_ref[...] += jnp.sum(acc, axis=0).reshape(1, 1, tCo)
    ssq_ref[...] += jnp.sum(acc * acc, axis=0).reshape(1, 1, tCo)
    y_ref[0] = acc.astype(y_ref.dtype)


def conv3x3_im2col(x_nhwc, w, b, *, target_rows=2048):
    """3x3 'same' conv for small Cin via wrapper-side im2col + Pallas matmul.

    x_nhwc: (N,H,W,Cin) bf16   w: (3,3,Cin,Cout) f32   b: (Cout,) f32
    Returns: y (N, H*W, Cout) bf16 (raw), ssum (N,1,Cout) f32, ssq (N,1,Cout) f32.
    """
    N, H, W, Cin = x_nhwc.shape
    Cout = w.shape[-1]
    K = 9 * Cin

    xp = jnp.pad(x_nhwc, ((0, 0), (1, 1), (1, 1), (0, 0)))
    patches = jnp.concatenate(
        [xp[:, ky:ky + H, kx:kx + W, :] for ky in range(3) for kx in range(3)],
        axis=-1).reshape(N, H * W, K)                      # cheap: Cin is tiny
    wk = w.reshape(K, Cout).astype(jnp.bfloat16)           # (ky,kx,cin) -> K
    bk = b.reshape(1, Cout).astype(jnp.float32)

    tCo = Cout if Cout <= 128 else 128
    assert Cout % tCo == 0, (Cout, tCo)
    tR = _pick_tile(H * W, target_rows)
    nR, nCo = H * W // tR, Cout // tCo

    return pl.pallas_call(
        _im2col_matmul_kernel,
        out_shape=(
            jax.ShapeDtypeStruct((N, H * W, Cout), jnp.bfloat16),
            jax.ShapeDtypeStruct((N, 1, Cout), jnp.float32),
            jax.ShapeDtypeStruct((N, 1, Cout), jnp.float32),
        ),
        grid_spec=pltpu.PrefetchScalarGridSpec(
            num_scalar_prefetch=0,
            grid=(N, nCo, nR),
            in_specs=[
                pl.BlockSpec((1, tR, K), lambda n, co, r: (n, r, 0)),
                pl.BlockSpec((K, tCo), lambda n, co, r: (0, co)),
                pl.BlockSpec((1, tCo), lambda n, co, r: (0, co)),
            ],
            out_specs=(
                pl.BlockSpec((1, tR, tCo), lambda n, co, r: (n, r, co)),
                pl.BlockSpec((1, 1, tCo), lambda n, co, r: (n, 0, co)),
                pl.BlockSpec((1, 1, tCo), lambda n, co, r: (n, 0, co)),
            )),
        compiler_params=pltpu.CompilerParams(
            dimension_semantics=("parallel", "parallel", "arbitrary"),
            vmem_limit_bytes=_vmem_limit_bytes()),
    )(patches, wk, bk)


# ----------------------------------------------------------------------------
# conv2: fused 3x3 conv with norm+ReLU prologue, in-kernel border, K-folded taps
# ----------------------------------------------------------------------------
def _conv3x3_fused_kernel(scale_ref, shift_ref, x_ref, w_ref, b_ref,
                          y_ref, ssum_ref, ssq_ref):
    """One (batch n, Cout tile, H tile) step.

    scale_ref/shift_ref: (1,1,C) f32   per-channel norm of the PREVIOUS conv
    x_ref: (1,H,W,C)  bf16  raw previous-conv output, VMEM-resident per image
    w_ref: (3,3*C,tCo) bf16 taps K-folded over kx
    b_ref: (1,tCo)    f32
    y_ref: (1,tH,W,tCo) bf16 raw conv output (pre-norm)
    ssum_ref/ssq_ref: (1,1,tCo) f32 per-image channel stats (accum over h tiles)
    """
    h = pl.program_id(2)
    n_h = pl.num_programs(2)
    _, H, W, C = x_ref.shape
    tH, tCo = y_ref.shape[1], y_ref.shape[3]

    def prologue(rows):                       # fused "norm -> ReLU" of conv1
        v = rows.astype(jnp.float32) * scale_ref[...] + shift_ref[...]
        return jnp.maximum(v, 0.0)

    r0 = pl.multiple_of(h * tH, tH)
    center = prologue(x_ref[0, pl.ds(r0, tH), :, :])                      # (tH,W,C)
    top = prologue(x_ref[0, pl.ds(jnp.maximum(r0 - 1, 0), 1), :, :])      # (1,W,C)
    bot = prologue(x_ref[0, pl.ds(jnp.minimum(r0 + tH, H - 1), 1), :, :]) # (1,W,C)
    # Halo rows on the conv zero-pad border are zeroed AFTER the prologue
    # (a raw zero would not map back to zero under scale/shift/ReLU).
    top = top * jnp.where(h > 0, 1.0, 0.0)
    bot = bot * jnp.where(h < n_h - 1, 1.0, 0.0)
    slab = jnp.concatenate([top, center, bot], axis=0).astype(jnp.bfloat16)

    # In-kernel column zero-pad + 3 column-shifted views, concatenated along the
    # channel axis so each MXU matmul contracts K = 3*C instead of C.
    zcol = jnp.zeros((tH + 2, 1, C), jnp.bfloat16)
    padded = jnp.concatenate([zcol, slab, zcol], axis=1)          # (tH+2, W+2, C)
    folded = jnp.concatenate([padded[:, kx:kx + W, :] for kx in range(3)],
                             axis=-1).reshape((tH + 2) * W, 3 * C)

    acc = jnp.zeros((tH * W, tCo), jnp.float32)
    for ky in range(3):
        off = ky * W                                  # aligned when W % 8 == 0
        acc = acc + jnp.dot(folded[off:off + tH * W, :], w_ref[ky],
                            preferred_element_type=jnp.float32)
    acc = acc + b_ref[...]                            # fused bias

    @pl.when(h == 0)
    def _():
        ssum_ref[...] = jnp.zeros_like(ssum_ref)
        ssq_ref[...] = jnp.zeros_like(ssq_ref)

    ssum_ref[...] += jnp.sum(acc, axis=0).reshape(1, 1, tCo)
    ssq_ref[...] += jnp.sum(acc * acc, axis=0).reshape(1, 1, tCo)

    y_ref[0] = acc.reshape(tH, W, tCo).astype(y_ref.dtype)


def conv3x3_fused(x, w, b, scale, shift, *, target_rows=2048):
    """3x3 'same' conv over the raw previous-conv output with the previous
    norm+ReLU fused into the input prologue, in-kernel border handling,
    fused bias and fused per-image channel statistics.

    x: (N,H,W,C) bf16   w: (3,3,C,Cout) f32   b: (Cout,) f32
    scale/shift: (N,1,C) f32
    Returns: y (N,H,W,Cout) bf16 (raw), ssum (N,1,Cout) f32, ssq (N,1,Cout) f32.
    """
    N, H, W, C = x.shape
    Cout = w.shape[-1]
    # TODO(synk): raise tCo to 256 on v6e/v7x when Cout >= 256 and cache the
    # prologue'd slab across Cout tiles; with Cout <= 128 (this model) nCo == 1.
    tCo = Cout if Cout <= 128 else 128
    assert Cout % tCo == 0, (Cout, tCo)
    tH = _pick_tile(H, max(1, target_rows // max(W, 1)))
    nH, nCo = H // tH, Cout // tCo

    wk = w.reshape(3, 3 * C, Cout).astype(jnp.bfloat16)   # K-folded over kx
    bk = b.reshape(1, Cout).astype(jnp.float32)

    return pl.pallas_call(
        _conv3x3_fused_kernel,
        out_shape=(
            jax.ShapeDtypeStruct((N, H, W, Cout), jnp.bfloat16),
            jax.ShapeDtypeStruct((N, 1, Cout), jnp.float32),
            jax.ShapeDtypeStruct((N, 1, Cout), jnp.float32),
        ),
        grid_spec=pltpu.PrefetchScalarGridSpec(
            num_scalar_prefetch=0,
            # (batch, Cout tile, H tile): weights change slowest; the image
            # stays VMEM-resident across all (co, h) steps of one batch element.
            grid=(N, nCo, nH),
            in_specs=[
                pl.BlockSpec((1, 1, C), lambda n, co, h: (n, 0, 0)),        # scale
                pl.BlockSpec((1, 1, C), lambda n, co, h: (n, 0, 0)),        # shift
                # TODO(synk): for very large images on v7x (64 MiB VMEM) switch to
                # a manual double-buffered halo DMA (memory_space=pl.ANY, P4).
                pl.BlockSpec((1, H, W, C), lambda n, co, h: (n, 0, 0, 0)),  # image
                pl.BlockSpec((3, 3 * C, tCo), lambda n, co, h: (0, 0, co)),
                pl.BlockSpec((1, tCo), lambda n, co, h: (0, co)),
            ],
            out_specs=(
                pl.BlockSpec((1, tH, W, tCo), lambda n, co, h: (n, h, 0, co)),
                pl.BlockSpec((1, 1, tCo), lambda n, co, h: (n, 0, co)),
                pl.BlockSpec((1, 1, tCo), lambda n, co, h: (n, 0, co)),
            )),
        compiler_params=pltpu.CompilerParams(
            dimension_semantics=("parallel", "parallel", "arbitrary"),
            vmem_limit_bytes=_vmem_limit_bytes()),
    )(scale, shift, x, wk, bk)


# ----------------------------------------------------------------------------
# Norm statistics -> per-channel (scale, shift) so that norm(x) == x*scale+shift
# ----------------------------------------------------------------------------
def _norm_scale_shift(ssum, ssq, hw, norm, gamma, beta, eps=_EPS):
    N, _, C = ssum.shape
    if norm == 'batchnorm':            # nn.BatchNorm2d(affine=True), batch stats
        cnt = float(N * hw)
        mean = jnp.sum(ssum, axis=0, keepdims=True) / cnt               # (1,1,C)
        var = jnp.maximum(jnp.sum(ssq, axis=0, keepdims=True) / cnt
                          - mean * mean, 0.0)
        scale = gamma.reshape(1, 1, C) * jax.lax.rsqrt(var + eps)
        shift = beta.reshape(1, 1, C) - mean * scale
        return (jnp.broadcast_to(scale, (N, 1, C)),
                jnp.broadcast_to(shift, (N, 1, C)))
    if norm == 'instancenorm':         # nn.InstanceNorm2d(affine=False)
        mean = ssum / float(hw)
        var = jnp.maximum(ssq / float(hw) - mean * mean, 0.0)
        scale = jax.lax.rsqrt(var + eps)
        return scale, -mean * scale
    if norm == 'none':
        return (jnp.ones((N, 1, C), jnp.float32),
                jnp.zeros((N, 1, C), jnp.float32))
    raise ValueError(norm)


# ----------------------------------------------------------------------------
# inconv forward
# ----------------------------------------------------------------------------
def inconv_forward(params, x_nchw, norm='batchnorm'):
    """x_nchw: (N, Cin, H, W) f32 -> (N, Cout, H, W) f32."""
    N, Cin, H, W = x_nchw.shape
    Cout = params['w1'].shape[-1]

    # NCHW -> NHWC + bf16 cast (fused by XLA with the im2col pad/concat).
    x = jnp.transpose(x_nchw, (0, 2, 3, 1)).astype(jnp.bfloat16)

    # conv1 (+bias) via im2col matmul; emits channel stats for the first norm.
    y1, s1, q1 = conv3x3_im2col(x, params['w1'], params['b1'])
    scale1, shift1 = _norm_scale_shift(s1, q1, H * W, norm,
                                       params['g1'], params['be1'])
    y1 = y1.reshape(N, H, W, Cout)                 # free on contiguous layout

    # conv2 with norm1 + ReLU fused into its input prologue; no HBM re-pad of y1.
    y2, s2, q2 = conv3x3_fused(y1, params['w2'], params['b2'], scale1, shift1)
    scale2, shift2 = _norm_scale_shift(s2, q2, H * W, norm,
                                       params['g2'], params['be2'])

    # Final norm + ReLU (needs global stats of y2) + NHWC->NCHW; XLA fuses these.
    out = jnp.maximum(y2.astype(jnp.float32) * scale2[:, None] + shift2[:, None],
                      0.0)
    return jnp.transpose(out, (0, 3, 1, 2))


# ----------------------------------------------------------------------------
# Parameter init (PyTorch-like: Conv2d uniform(+-1/sqrt(fan_in)), BN gamma=1/beta=0)
# ----------------------------------------------------------------------------
def init_inconv(key, in_ch, out_ch):
    k1, k2, k3, k4 = jax.random.split(key, 4)

    def conv_init(kw, kb, cin, cout):
        bound = 1.0 / math.sqrt(9 * cin)
        w = jax.random.uniform(kw, (3, 3, cin, cout), jnp.float32, -bound, bound)
        b = jax.random.uniform(kb, (cout,), jnp.float32, -bound, bound)
        return w, b

    w1, b1 = conv_init(k1, k2, in_ch, out_ch)
    w2, b2 = conv_init(k3, k4, out_ch, out_ch)
    return dict(w1=w1, b1=b1, g1=jnp.ones((out_ch,), jnp.float32),
                be1=jnp.zeros((out_ch,), jnp.float32),
                w2=w2, b2=b2, g2=jnp.ones((out_ch,), jnp.float32),
                be2=jnp.zeros((out_ch,), jnp.float32))


# ----------------------------------------------------------------------------
# Pure-JAX f32 reference (mirrors the PyTorch module, training-mode BN stats)
# ----------------------------------------------------------------------------
def _reference_inconv(params, x_nchw, norm='batchnorm'):
    x = jnp.transpose(x_nchw, (0, 2, 3, 1)).astype(jnp.float32)

    def conv(x, w, b):
        y = jax.lax.conv_general_dilated(
            x, w, window_strides=(1, 1), padding='SAME',
            dimension_numbers=('NHWC', 'HWIO', 'NHWC'),
            precision=jax.lax.Precision.HIGHEST)
        return y + b[None, None, None, :]

    def norm_relu(y, gamma, beta):
        if norm == 'batchnorm':
            m = jnp.mean(y, axis=(0, 1, 2), keepdims=True)
            v = jnp.var(y, axis=(0, 1, 2), keepdims=True)
            y = (y - m) * jax.lax.rsqrt(v + _EPS) * gamma + beta
        elif norm == 'instancenorm':
            m = jnp.mean(y, axis=(1, 2), keepdims=True)
            v = jnp.var(y, axis=(1, 2), keepdims=True)
            y = (y - m) * jax.lax.rsqrt(v + _EPS)
        return jnp.maximum(y, 0.0)

    y = norm_relu(conv(x, params['w1'], params['b1']), params['g1'], params['be1'])
    y = norm_relu(conv(y, params['w2'], params['b2']), params['g2'], params['be2'])
    return jnp.transpose(y, (0, 3, 1, 2))


# ----------------------------------------------------------------------------
if __name__ == "__main__":
    key = jax.random.PRNGKey(0)
    kp, kx = jax.random.split(key)

    in_ch, out_ch = 3, 64
    params = init_inconv(kp, in_ch, out_ch)
    x = jax.random.normal(kx, (2, in_ch, 32, 32), jnp.float32)   # NCHW like PyTorch

    fwd = jax.jit(functools.partial(inconv_forward, norm='batchnorm'))
    y = fwd(params, x)
    jax.block_until_ready(y)

    assert y.shape == (2, out_ch, 32, 32), y.shape
    assert bool(jnp.all(jnp.isfinite(y)))

    # Numerical check vs the pure-JAX f32 reference (bf16 MXU inputs -> loose tol).
    y_ref = _reference_inconv(params, x, norm='batchnorm')
    err = float(jnp.max(jnp.abs(y - y_ref)))
    assert err < 0.25, f"max abs err {err}"

    print("KERNEL_OK")
</pallas_src>

<mosaic_0001>
module attributes {stable_mosaic.version = 11 : i64} {
  func.func @_im2col_matmul_kernel(%arg0: i32, %arg1: i32, %arg2: i32, %arg3: memref<1x1024x27xbf16, #tpu.memory_space<vmem>>, %arg4: memref<27x64xbf16, #tpu.memory_space<vmem>>, %arg5: memref<1x64xf32, #tpu.memory_space<vmem>>, %arg6: memref<1x1024x64xbf16, #tpu.memory_space<vmem>>, %arg7: memref<1x1x64xf32, #tpu.memory_space<vmem>>, %arg8: memref<1x1x64xf32, #tpu.memory_space<vmem>>) attributes {dimension_semantics = [#tpu.dimension_semantics<parallel>, #tpu.dimension_semantics<parallel>, #tpu.dimension_semantics<arbitrary>], iteration_bounds = array<i64: 2, 1, 1>, scalar_prefetch = 0 : i64, scratch_operands = 0 : i64, tpu.core_type = #tpu.core_type<tc>, window_params = [{transform_indices = @transform_0, window_bounds = array<i64: 1, 1024, 27>}, {transform_indices = @transform_1, window_bounds = array<i64: 27, 64>}, {transform_indices = @transform_2, window_bounds = array<i64: 1, 64>}, {transform_indices = @transform_3, window_bounds = array<i64: 1, 1024, 64>}, {transform_indices = @transform_4, window_bounds = array<i64: 1, 1, 64>}, {transform_indices = @transform_5, window_bounds = array<i64: 1, 1, 64>}]} {
    %c0 = arith.constant 0 : index
    %c0_0 = arith.constant 0 : index
    %c0_1 = arith.constant 0 : index
    %0 = vector.load %arg3[%c0, %c0_0, %c0_1] : memref<1x1024x27xbf16, #tpu.memory_space<vmem>>, vector<1x1024x27xbf16>
    %1 = vector.shape_cast %0 : vector<1x1024x27xbf16> to vector<1024x27xbf16>
    %c0_2 = arith.constant 0 : index
    %c0_3 = arith.constant 0 : index
    %2 = vector.load %arg4[%c0_2, %c0_3] : memref<27x64xbf16, #tpu.memory_space<vmem>>, vector<27x64xbf16>
    %cst = arith.constant dense<0.000000e+00> : vector<1024x64xf32>
    %3 = tpu.matmul %1, %2, %cst {dimension_numbers = #tpu.dot_dimension_numbers<[1], [0], [0], [1], [0, 0, 1, 1], [], []>} : vector<1024x27xbf16>, vector<27x64xbf16>, vector<1024x64xf32> -> vector<1024x64xf32>
    %c0_4 = arith.constant 0 : index
    %c0_5 = arith.constant 0 : index
    %4 = vector.load %arg5[%c0_4, %c0_5] : memref<1x64xf32, #tpu.memory_space<vmem>>, vector<1x64xf32>
    %5 = vector.broadcast %4 : vector<1x64xf32> to vector<1024x64xf32>
    %6 = arith.addf %3, %5 : vector<1024x64xf32>
    %c0_i32 = arith.constant 0 : i32
    %7 = arith.cmpi eq, %arg2, %c0_i32 : i32
    %8 = arith.extui %7 : i1 to i32
    %c0_i32_6 = arith.constant 0 : i32
    %9 = arith.cmpi ne, %8, %c0_i32_6 : i32
    scf.if %9 {
      %cst_24 = arith.constant 0.000000e+00 : f32
      %25 = vector.broadcast %cst_24 : f32 to vector<1x1x64xf32>
      %c0_25 = arith.constant 0 : index
      %c0_26 = arith.constant 0 : index
      %c0_27 = arith.constant 0 : index
      %26 = vector.load %arg7[%c0_25, %c0_26, %c0_27] : memref<1x1x64xf32, #tpu.memory_space<vmem>>, vector<1x1x64xf32>
      tpu.vector_store %arg7[%c0_25, %c0_26, %c0_27], %25 {strides = array<i32>} : memref<1x1x64xf32, #tpu.memory_space<vmem>>, vector<1x1x64xf32>,
      %cst_28 = arith.constant 0.000000e+00 : f32
      %27 = vector.broadcast %cst_28 : f32 to vector<1x1x64xf32>
      %c0_29 = arith.constant 0 : index
      %c0_30 = arith.constant 0 : index
      %c0_31 = arith.constant 0 : index
      %28 = vector.load %arg8[%c0_29, %c0_30, %c0_31] : memref<1x1x64xf32, #tpu.memory_space<vmem>>, vector<1x1x64xf32>
      tpu.vector_store %arg8[%c0_29, %c0_30, %c0_31], %27 {strides = array<i32>} : memref<1x1x64xf32, #tpu.memory_space<vmem>>, vector<1x1x64xf32>,
    } else {
    }
    %c0_7 = arith.constant 0 : index
    %c0_8 = arith.constant 0 : index
    %c0_9 = arith.constant 0 : index
    %10 = vector.load %arg7[%c0_7, %c0_8, %c0_9] : memref<1x1x64xf32, #tpu.memory_space<vmem>>, vector<1x1x64xf32>
    %cst_10 = arith.constant dense<0.000000e+00> : vector<64xf32>
    %11 = vector.multi_reduction <add>, %6, %cst_10 [0] : vector<1024x64xf32> to vector<64xf32>
    %12 = vector.shape_cast %11 : vector<64xf32> to vector<1x1x64xf32>
    %13 = arith.addf %10, %12 : vector<1x1x64xf32>
    %c0_11 = arith.constant 0 : index
    %c0_12 = arith.constant 0 : index
    %c0_13 = arith.constant 0 : index
    %14 = vector.load %arg7[%c0_11, %c0_12, %c0_13] : memref<1x1x64xf32, #tpu.memory_space<vmem>>, vector<1x1x64xf32>
    tpu.vector_store %arg7[%c0_11, %c0_12, %c0_13], %13 {strides = array<i32>} : memref<1x1x64xf32, #tpu.memory_space<vmem>>, vector<1x1x64xf32>,
    %c0_14 = arith.constant 0 : index
    %c0_15 = arith.constant 0 : index
    %c0_16 = arith.constant 0 : index
    %15 = vector.load %arg8[%c0_14, %c0_15, %c0_16] : memref<1x1x64xf32, #tpu.memory_space<vmem>>, vector<1x1x64xf32>
    %16 = arith.mulf %6, %6 : vector<1024x64xf32>
    %cst_17 = arith.constant dense<0.000000e+00> : vector<64xf32>
    %17 = vector.multi_reduction <add>, %16, %cst_17 [0] : vector<1024x64xf32> to vector<64xf32>
    %18 = vector.shape_cast %17 : vector<64xf32> to vector<1x1x64xf32>
    %19 = arith.addf %15, %18 : vector<1x1x64xf32>
    %c0_18 = arith.constant 0 : index
    %c0_19 = arith.constant 0 : index
    %c0_20 = arith.constant 0 : index
    %20 = vector.load %arg8[%c0_18, %c0_19, %c0_20] : memref<1x1x64xf32, #tpu.memory_space<vmem>>, vector<1x1x64xf32>
    tpu.vector_store %arg8[%c0_18, %c0_19, %c0_20], %19 {strides = array<i32>} : memref<1x1x64xf32, #tpu.memory_space<vmem>>, vector<1x1x64xf32>,
    %21 = arith.truncf %6 : vector<1024x64xf32> to vector<1024x64xbf16>
    %c0_21 = arith.constant 0 : index
    %c0_22 = arith.constant 0 : index
    %c0_23 = arith.constant 0 : index
    %22 = vector.load %arg6[%c0_21, %c0_22, %c0_23] : memref<1x1024x64xbf16, #tpu.memory_space<vmem>>, vector<1x1024x64xbf16>
    %23 = vector.shape_cast %22 : vector<1x1024x64xbf16> to vector<1024x64xbf16>
    %24 = vector.shape_cast %21 : vector<1024x64xbf16> to vector<1x1024x64xbf16>
    tpu.vector_store %arg6[%c0_21, %c0_22, %c0_23], %24 {strides = array<i32>} : memref<1x1024x64xbf16, #tpu.memory_space<vmem>>, vector<1x1024x64xbf16>,
    return
  }
  func.func @transform_0(%arg0: i32, %arg1: i32, %arg2: i32) -> (i32, i32, i32) {
    %c0_i32 = arith.constant 0 : i32
    %c0_i32_0 = arith.constant 0 : i32
    return %arg0, %arg2, %c0_i32 : i32, i32, i32
  }
  func.func @transform_1(%arg0: i32, %arg1: i32, %arg2: i32) -> (i32, i32) {
    %c0_i32 = arith.constant 0 : i32
    %c0_i32_0 = arith.constant 0 : i32
    return %c0_i32, %arg1 : i32, i32
  }
  func.func @transform_2(%arg0: i32, %arg1: i32, %arg2: i32) -> (i32, i32) {
    %c0_i32 = arith.constant 0 : i32
    %c0_i32_0 = arith.constant 0 : i32
    return %c0_i32, %arg1 : i32, i32
  }
  func.func @transform_3(%arg0: i32, %arg1: i32, %arg2: i32) -> (i32, i32, i32) {
    %c0_i32 = arith.constant 0 : i32
    return %arg0, %arg2, %arg1 : i32, i32, i32
  }
  func.func @transform_4(%arg0: i32, %arg1: i32, %arg2: i32) -> (i32, i32, i32) {
    %c0_i32 = arith.constant 0 : i32
    %c0_i32_0 = arith.constant 0 : i32
    return %arg0, %c0_i32, %arg1 : i32, i32, i32
  }
  func.func @transform_5(%arg0: i32, %arg1: i32, %arg2: i32) -> (i32, i32, i32) {
    %c0_i32 = arith.constant 0 : i32
    %c0_i32_0 = arith.constant 0 : i32
    return %arg0, %c0_i32, %arg1 : i32, i32, i32
  }
}

module attributes {stable_mosaic.version = 11 : i64} {
  func.func @_conv3x3_fused_kernel(%arg0: i32, %arg1: i32, %arg2: i32, %arg3: memref<1x1x64xf32, #tpu.memory_space<vmem>>, %arg4: memref<1x1x64xf32, #tpu.memory_space<vmem>>, %arg5: memref<1x32x32x64xbf16, #tpu.memory_space<vmem>>, %arg6: memref<3x192x64xbf16, #tpu.memory_space<vmem>>, %arg7: memref<1x64xf32, #tpu.memory_space<vmem>>, %arg8: memref<1x32x32x64xbf16, #tpu.memory_space<vmem>>, %arg9: memref<1x1x64xf32, #tpu.memory_space<vmem>>, %arg10: memref<1x1x64xf32, #tpu.memory_space<vmem>>) attributes {dimension_semantics = [#tpu.dimension_semantics<parallel>, #tpu.dimension_semantics<parallel>, #tpu.dimension_semantics<arbitrary>], iteration_bounds = array<i64: 2, 1, 1>, scalar_prefetch = 0 : i64, scratch_operands = 0 : i64, tpu.core_type = #tpu.core_type<tc>, window_params = [{transform_indices = @transform_0, window_bounds = array<i64: 1, 1, 64>}, {transform_indices = @transform_1, window_bounds = array<i64: 1, 1, 64>}, {transform_indices = @transform_2, window_bounds = array<i64: 1, 32, 32, 64>}, {transform_indices = @transform_3, window_bounds = array<i64: 3, 192, 64>}, {transform_indices = @transform_4, window_bounds = array<i64: 1, 64>}, {transform_indices = @transform_5, window_bounds = array<i64: 1, 32, 32, 64>}, {transform_indices = @transform_6, window_bounds = array<i64: 1, 1, 64>}, {transform_indices = @transform_7, window_bounds = array<i64: 1, 1, 64>}]} {
    %c32_i32 = arith.constant 32 : i32
    %0 = arith.muli %arg2, %c32_i32 : i32
    %1 = tpu.assume_multiple %0, 32 : i32
    %c0 = arith.constant 0 : index
    %2 = arith.index_cast %1 : i32 to index
    %c0_0 = arith.constant 0 : index
    %c0_1 = arith.constant 0 : index
    %3 = vector.load %arg5[%c0, %2, %c0_0, %c0_1] : memref<1x32x32x64xbf16, #tpu.memory_space<vmem>>, vector<1x32x32x64xbf16>
    %4 = vector.shape_cast %3 : vector<1x32x32x64xbf16> to vector<32x32x64xbf16>
    %5 = arith.extf %4 : vector<32x32x64xbf16> to vector<32x32x64xf32>
    %c0_2 = arith.constant 0 : index
    %c0_3 = arith.constant 0 : index
    %c0_4 = arith.constant 0 : index
    %6 = vector.load %arg3[%c0_2, %c0_3, %c0_4] : memref<1x1x64xf32, #tpu.memory_space<vmem>>, vector<1x1x64xf32>
    %7 = vector.broadcast %6 : vector<1x1x64xf32> to vector<32x32x64xf32>
    %8 = arith.mulf %5, %7 : vector<32x32x64xf32>
    %c0_5 = arith.constant 0 : index
    %c0_6 = arith.constant 0 : index
    %c0_7 = arith.constant 0 : index
    %9 = vector.load %arg4[%c0_5, %c0_6, %c0_7] : memref<1x1x64xf32, #tpu.memory_space<vmem>>, vector<1x1x64xf32>
    %10 = vector.broadcast %9 : vector<1x1x64xf32> to vector<32x32x64xf32>
    %11 = arith.addf %8, %10 : vector<32x32x64xf32>
    %cst = arith.constant 0.000000e+00 : f32
    %12 = vector.broadcast %cst : f32 to vector<32x32x64xf32>
    %13 = arith.maximumf %11, %12 : vector<32x32x64xf32>
    %c1_i32 = arith.constant 1 : i32
    %14 = arith.subi %1, %c1_i32 : i32
    %c0_i32 = arith.constant 0 : i32
    %15 = arith.maxsi %14, %c0_i32 : i32
    %c0_8 = arith.constant 0 : index
    %16 = arith.index_cast %15 : i32 to index
    %c0_9 = arith.constant 0 : index
    %c0_10 = arith.constant 0 : index
    %17 = vector.load %arg5[%c0_8, %16, %c0_9, %c0_10] : memref<1x32x32x64xbf16, #tpu.memory_space<vmem>>, vector<1x1x32x64xbf16>
    %18 = vector.shape_cast %17 : vector<1x1x32x64xbf16> to vector<1x32x64xbf16>
    %19 = arith.extf %18 : vector<1x32x64xbf16> to vector<1x32x64xf32>
    %c0_11 = arith.constant 0 : index
    %c0_12 = arith.constant 0 : index
    %c0_13 = arith.constant 0 : index
    %20 = vector.load %arg3[%c0_11, %c0_12, %c0_13] : memref<1x1x64xf32, #tpu.memory_space<vmem>>, vector<1x1x64xf32>
    %21 = vector.broadcast %20 : vector<1x1x64xf32> to vector<1x32x64xf32>
    %22 = arith.mulf %19, %21 : vector<1x32x64xf32>
    %c0_14 = arith.constant 0 : index
    %c0_15 = arith.constant 0 : index
    %c0_16 = arith.constant 0 : index
    %23 = vector.load %arg4[%c0_14, %c0_15, %c0_16] : memref<1x1x64xf32, #tpu.memory_space<vmem>>, vector<1x1x64xf32>
    %24 = vector.broadcast %23 : vector<1x1x64xf32> to vector<1x32x64xf32>
    %25 = arith.addf %22, %24 : vector<1x32x64xf32>
    %cst_17 = arith.constant 0.000000e+00 : f32
    %26 = vector.broadcast %cst_17 : f32 to vector<1x32x64xf32>
    %27 = arith.maximumf %25, %26 : vector<1x32x64xf32>
    %c32_i32_18 = arith.constant 32 : i32
    %28 = arith.addi %1, %c32_i32_18 : i32
    %c31_i32 = arith.constant 31 : i32
    %29 = arith.minsi %28, %c31_i32 : i32
    %c0_19 = arith.constant 0 : index
    %30 = arith.index_cast %29 : i32 to index
    %c0_20 = arith.constant 0 : index
    %c0_21 = arith.constant 0 : index
    %31 = vector.load %arg5[%c0_19, %30, %c0_20, %c0_21] : memref<1x32x32x64xbf16, #tpu.memory_space<vmem>>, vector<1x1x32x64xbf16>
    %32 = vector.shape_cast %31 : vector<1x1x32x64xbf16> to vector<1x32x64xbf16>
    %33 = arith.extf %32 : vector<1x32x64xbf16> to vector<1x32x64xf32>
    %c0_22 = arith.constant 0 : index
    %c0_23 = arith.constant 0 : index
    %c0_24 = arith.constant 0 : index
    %34 = vector.load %arg3[%c0_22, %c0_23, %c0_24] : memref<1x1x64xf32, #tpu.memory_space<vmem>>, vector<1x1x64xf32>
    %35 = vector.broadcast %34 : vector<1x1x64xf32> to vector<1x32x64xf32>
    %36 = arith.mulf %33, %35 : vector<1x32x64xf32>
    %c0_25 = arith.constant 0 : index
    %c0_26 = arith.constant 0 : index
    %c0_27 = arith.constant 0 : index
    %37 = vector.load %arg4[%c0_25, %c0_26, %c0_27] : memref<1x1x64xf32, #tpu.memory_space<vmem>>, vector<1x1x64xf32>
    %38 = vector.broadcast %37 : vector<1x1x64xf32> to vector<1x32x64xf32>
    %39 = arith.addf %36, %38 : vector<1x32x64xf32>
    %cst_28 = arith.constant 0.000000e+00 : f32
    %40 = vector.broadcast %cst_28 : f32 to vector<1x32x64xf32>
    %41 = arith.maximumf %39, %40 : vector<1x32x64xf32>
    %c0_i32_29 = arith.constant 0 : i32
    %42 = arith.cmpi sgt, %arg2, %c0_i32_29 : i32
    %cst_30 = arith.constant 1.000000e+00 : f32
    %cst_31 = arith.constant 0.000000e+00 : f32
    %43 = arith.select %42, %cst_30, %cst_31 : f32
    %44 = vector.broadcast %43 : f32 to vector<1x32x64xf32>
    %45 = arith.mulf %27, %44 : vector<1x32x64xf32>
    %c0_i32_32 = arith.constant 0 : i32
    %46 = arith.cmpi slt, %arg2, %c0_i32_32 : i32
    %cst_33 = arith.constant 1.000000e+00 : f32
    %cst_34 = arith.constant 0.000000e+00 : f32
    %47 = arith.select %46, %cst_33, %cst_34 : f32
    %48 = vector.broadcast %47 : f32 to vector<1x32x64xf32>
    %49 = arith.mulf %41, %48 : vector<1x32x64xf32>
    %50 = tpu.concatenate %45, %13, %49 in 0 : vector<1x32x64xf32>, vector<32x32x64xf32>, vector<1x32x64xf32> -> vector<34x32x64xf32>
    %51 = arith.truncf %50 : vector<34x32x64xf32> to vector<34x32x64xbf16>
    %cst_35 = arith.constant 0.000000e+00 : bf16
    %52 = vector.broadcast %cst_35 : bf16 to vector<34x1x64xbf16>
    %53 = tpu.concatenate %52, %51, %52 in 1 : vector<34x1x64xbf16>, vector<34x32x64xbf16>, vector<34x1x64xbf16> -> vector<34x34x64xbf16>
    %54 = vector.extract_strided_slice %53 {offsets = [0, 0, 0], sizes = [34, 32, 64], strides = [1, 1, 1]} : vector<34x34x64xbf16> to vector<34x32x64xbf16>
    %55 = vector.extract_strided_slice %53 {offsets = [0, 1, 0], sizes = [34, 32, 64], strides = [1, 1, 1]} : vector<34x34x64xbf16> to vector<34x32x64xbf16>
    %56 = vector.extract_strided_slice %53 {offsets = [0, 2, 0], sizes = [34, 32, 64], strides = [1, 1, 1]} : vector<34x34x64xbf16> to vector<34x32x64xbf16>
    %57 = tpu.concatenate %54, %55, %56 in 2 : vector<34x32x64xbf16>, vector<34x32x64xbf16>, vector<34x32x64xbf16> -> vector<34x32x192xbf16>
    %58 = vector.shape_cast %57 : vector<34x32x192xbf16> to vector<1088x192xbf16>
    %cst_36 = arith.constant 0.000000e+00 : f32
    %59 = vector.broadcast %cst_36 : f32 to vector<1024x64xf32>
    %60 = vector.extract_strided_slice %58 {offsets = [0, 0], sizes = [1024, 192], strides = [1, 1]} : vector<1088x192xbf16> to vector<1024x192xbf16>
    %c0_37 = arith.constant 0 : index
    %c0_38 = arith.constant 0 : index
    %c0_39 = arith.constant 0 : index
    %61 = vector.load %arg6[%c0_37, %c0_38, %c0_39] : memref<3x192x64xbf16, #tpu.memory_space<vmem>>, vector<1x192x64xbf16>
    %62 = vector.shape_cast %61 : vector<1x192x64xbf16> to vector<192x64xbf16>
    %cst_40 = arith.constant dense<0.000000e+00> : vector<1024x64xf32>
    %63 = tpu.matmul %60, %62, %cst_40 {dimension_numbers = #tpu.dot_dimension_numbers<[1], [0], [0], [1], [0, 0, 1, 1], [], []>} : vector<1024x192xbf16>, vector<192x64xbf16>, vector<1024x64xf32> -> vector<1024x64xf32>
    %64 = arith.addf %59, %63 : vector<1024x64xf32>
    %65 = vector.extract_strided_slice %58 {offsets = [32, 0], sizes = [1024, 192], strides = [1, 1]} : vector<1088x192xbf16> to vector<1024x192xbf16>
    %c1 = arith.constant 1 : index
    %c0_41 = arith.constant 0 : index
    %c0_42 = arith.constant 0 : index
    %66 = vector.load %arg6[%c1, %c0_41, %c0_42] : memref<3x192x64xbf16, #tpu.memory_space<vmem>>, vector<1x192x64xbf16>
    %67 = vector.shape_cast %66 : vector<1x192x64xbf16> to vector<192x64xbf16>
    %cst_43 = arith.constant dense<0.000000e+00> : vector<1024x64xf32>
    %68 = tpu.matmul %65, %67, %cst_43 {dimension_numbers = #tpu.dot_dimension_numbers<[1], [0], [0], [1], [0, 0, 1, 1], [], []>} : vector<1024x192xbf16>, vector<192x64xbf16>, vector<1024x64xf32> -> vector<1024x64xf32>
    %69 = arith.addf %64, %68 : vector<1024x64xf32>
    %70 = vector.extract_strided_slice %58 {offsets = [64, 0], sizes = [1024, 192], strides = [1, 1]} : vector<1088x192xbf16> to vector<1024x192xbf16>
    %c2 = arith.constant 2 : index
    %c0_44 = arith.constant 0 : index
    %c0_45 = arith.constant 0 : index
    %71 = vector.load %arg6[%c2, %c0_44, %c0_45] : memref<3x192x64xbf16, #tpu.memory_space<vmem>>, vector<1x192x64xbf16>
    %72 = vector.shape_cast %71 : vector<1x192x64xbf16> to vector<192x64xbf16>
    %cst_46 = arith.constant dense<0.000000e+00> : vector<1024x64xf32>
    %73 = tpu.matmul %70, %72, %cst_46 {dimension_numbers = #tpu.dot_dimension_numbers<[1], [0], [0], [1], [0, 0, 1, 1], [], []>} : vector<1024x192xbf16>, vector<192x64xbf16>, vector<1024x64xf32> -> vector<1024x64xf32>
    %74 = arith.addf %69, %73 : vector<1024x64xf32>
    %c0_47 = arith.constant 0 : index
    %c0_48 = arith.constant 0 : index
    %75 = vector.load %arg7[%c0_47, %c0_48] : memref<1x64xf32, #tpu.memory_space<vmem>>, vector<1x64xf32>
    %76 = vector.broadcast %75 : vector<1x64xf32> to vector<1024x64xf32>
    %77 = arith.addf %74, %76 : vector<1024x64xf32>
    %c0_i32_49 = arith.constant 0 : i32
    %78 = arith.cmpi eq, %arg2, %c0_i32_49 : i32
    %79 = arith.extui %78 : i1 to i32
    %c0_i32_50 = arith.constant 0 : i32
    %80 = arith.cmpi ne, %79, %c0_i32_50 : i32
    scf.if %80 {
      %cst_69 = arith.constant 0.000000e+00 : f32
      %97 = vector.broadcast %cst_69 : f32 to vector<1x1x64xf32>
      %c0_70 = arith.constant 0 : index
      %c0_71 = arith.constant 0 : index
      %c0_72 = arith.constant 0 : index
      %98 = vector.load %arg9[%c0_70, %c0_71, %c0_72] : memref<1x1x64xf32, #tpu.memory_space<vmem>>, vector<1x1x64xf32>
      tpu.vector_store %arg9[%c0_70, %c0_71, %c0_72], %97 {strides = array<i32>} : memref<1x1x64xf32, #tpu.memory_space<vmem>>, vector<1x1x64xf32>,
      %cst_73 = arith.constant 0.000000e+00 : f32
      %99 = vector.broadcast %cst_73 : f32 to vector<1x1x64xf32>
      %c0_74 = arith.constant 0 : index
      %c0_75 = arith.constant 0 : index
      %c0_76 = arith.constant 0 : index
      %100 = vector.load %arg10[%c0_74, %c0_75, %c0_76] : memref<1x1x64xf32, #tpu.memory_space<vmem>>, vector<1x1x64xf32>
      tpu.vector_store %arg10[%c0_74, %c0_75, %c0_76], %99 {strides = array<i32>} : memref<1x1x64xf32, #tpu.memory_space<vmem>>, vector<1x1x64xf32>,
    } else {
    }
    %c0_51 = arith.constant 0 : index
    %c0_52 = arith.constant 0 : index
    %c0_53 = arith.constant 0 : index
    %81 = vector.load %arg9[%c0_51, %c0_52, %c0_53] : memref<1x1x64xf32, #tpu.memory_space<vmem>>, vector<1x1x64xf32>
    %cst_54 = arith.constant dense<0.000000e+00> : vector<64xf32>
    %82 = vector.multi_reduction <add>, %77, %cst_54 [0] : vector<1024x64xf32> to vector<64xf32>
    %83 = vector.shape_cast %82 : vector<64xf32> to vector<1x1x64xf32>
    %84 = arith.addf %81, %83 : vector<1x1x64xf32>
    %c0_55 = arith.constant 0 : index
    %c0_56 = arith.constant 0 : index
    %c0_57 = arith.constant 0 : index
    %85 = vector.load %arg9[%c0_55, %c0_56, %c0_57] : memref<1x1x64xf32, #tpu.memory_space<vmem>>, vector<1x1x64xf32>
    tpu.vector_store %arg9[%c0_55, %c0_56, %c0_57], %84 {strides = array<i32>} : memref<1x1x64xf32, #tpu.memory_space<vmem>>, vector<1x1x64xf32>,
    %c0_58 = arith.constant 0 : index
    %c0_59 = arith.constant 0 : index
    %c0_60 = arith.constant 0 : index
    %86 = vector.load %arg10[%c0_58, %c0_59, %c0_60] : memref<1x1x64xf32, #tpu.memory_space<vmem>>, vector<1x1x64xf32>
    %87 = arith.mulf %77, %77 : vector<1024x64xf32>
    %cst_61 = arith.constant dense<0.000000e+00> : vector<64xf32>
    %88 = vector.multi_reduction <add>, %87, %cst_61 [0] : vector<1024x64xf32> to vector<64xf32>
    %89 = vector.shape_cast %88 : vector<64xf32> to vector<1x1x64xf32>
    %90 = arith.addf %86, %89 : vector<1x1x64xf32>
    %c0_62 = arith.constant 0 : index
    %c0_63 = arith.constant 0 : index
    %c0_64 = arith.constant 0 : index
    %91 = vector.load %arg10[%c0_62, %c0_63, %c0_64] : memref<1x1x64xf32, #tpu.memory_space<vmem>>, vector<1x1x64xf32>
    tpu.vector_store %arg10[%c0_62, %c0_63, %c0_64], %90 {strides = array<i32>} : memref<1x1x64xf32, #tpu.memory_space<vmem>>, vector<1x1x64xf32>,
    %92 = vector.shape_cast %77 : vector<1024x64xf32> to vector<32x32x64xf32>
    %93 = arith.truncf %92 : vector<32x32x64xf32> to vector<32x32x64xbf16>
    %c0_65 = arith.constant 0 : index
    %c0_66 = arith.constant 0 : index
    %c0_67 = arith.constant 0 : index
    %c0_68 = arith.constant 0 : index
    %94 = vector.load %arg8[%c0_65, %c0_66, %c0_67, %c0_68] : memref<1x32x32x64xbf16, #tpu.memory_space<vmem>>, vector<1x32x32x64xbf16>
    %95 = vector.shape_cast %94 : vector<1x32x32x64xbf16> to vector<32x32x64xbf16>
    %96 = vector.shape_cast %93 : vector<32x32x64xbf16> to vector<1x32x32x64xbf16>
    tpu.vector_store %arg8[%c0_65, %c0_66, %c0_67, %c0_68], %96 {strides = array<i32>} : memref<1x32x32x64xbf16, #tpu.memory_space<vmem>>, vector<1x32x32x64xbf16>,
    return
  }
  func.func @transform_0(%arg0: i32, %arg1: i32, %arg2: i32) -> (i32, i32, i32) {
    %c0_i32 = arith.constant 0 : i32
    %c0_i32_0 = arith.constant 0 : i32
    %c0_i32_1 = arith.constant 0 : i32
    return %arg0, %c0_i32, %c0_i32_0 : i32, i32, i32
  }
  func.func @transform_1(%arg0: i32, %arg1: i32, %arg2: i32) -> (i32, i32, i32) {
    %c0_i32 = arith.constant 0 : i32
    %c0_i32_0 = arith.constant 0 : i32
    %c0_i32_1 = arith.constant 0 : i32
    return %arg0, %c0_i32, %c0_i32_0 : i32, i32, i32
  }
  func.func @transform_2(%arg0: i32, %arg1: i32, %arg2: i32) -> (i32, i32, i32, i32) {
    %c0_i32 = arith.constant 0 : i32
    %c0_i32_0 = arith.constant 0 : i32
    %c0_i32_1 = arith.constant 0 : i32
    %c0_i32_2 = arith.constant 0 : i32
    return %arg0, %c0_i32, %c0_i32_0, %c0_i32_1 : i32, i32, i32, i32
  }
  func.func @transform_3(%arg0: i32, %arg1: i32, %arg2: i32) -> (i32, i32, i32) {
    %c0_i32 = arith.constant 0 : i32
    %c0_i32_0 = arith.constant 0 : i32
    %c0_i32_1 = arith.constant 0 : i32
    return %c0_i32, %c0_i32_0, %arg1 : i32, i32, i32
  }
  func.func @transform_4(%arg0: i32, %arg1: i32, %arg2: i32) -> (i32, i32) {
    %c0_i32 = arith.constant 0 : i32
    %c0_i32_0 = arith.constant 0 : i32
    return %c0_i32, %arg1 : i32, i32
  }
  func.func @transform_5(%arg0: i32, %arg1: i32, %arg2: i32) -> (i32, i32, i32, i32) {
    %c0_i32 = arith.constant 0 : i32
    %c0_i32_0 = arith.constant 0 : i32
    return %arg0, %arg2, %c0_i32, %arg1 : i32, i32, i32, i32
  }
  func.func @transform_6(%arg0: i32, %arg1: i32, %arg2: i32) -> (i32, i32, i32) {
    %c0_i32 = arith.constant 0 : i32
    %c0_i32_0 = arith.constant 0 : i32
    return %arg0, %c0_i32, %arg1 : i32, i32, i32
  }
  func.func @transform_7(%arg0: i32, %arg1: i32, %arg2: i32) -> (i32, i32, i32) {
    %c0_i32 = arith.constant 0 : i32
    %c0_i32_0 = arith.constant 0 : i32
    return %arg0, %c0_i32, %arg1 : i32, i32, i32
  }
}

</mosaic_0001>

<bundles_post_ra>
// kernel: inconv_forward.2
= control target key start
LH: loop header
LB: loop body
LE: loop exit
PB: predicated region body
PF: predicated region fallthrough
CT: control target
= control target key end

     0   :  { %s3816_s18 = smov 0   ;;  %s3818_s19 = smov 0   ;;  %s5304_s0 = inlined_call_operand.vmem [shape: bf16[2,1024,27], index: 0, kind: input, shape index: {}]   ;;  %s5305_s1 = inlined_call_operand.vmem [shape: bf16[27,64], index: 1, kind: input, shape index: {}]   ;;  %s5306_s2 = inlined_call_operand.vmem [shape: f32[1,64], index: 2, kind: input, shape index: {}]   ;;  %s5307_s3 = inlined_call_operand.vmem [shape: bf16[2,1024,64], index: 3, kind: output, shape index: {0}]   ;;  %s5308_s4 = inlined_call_operand.vmem [shape: f32[2,1,64], index: 4, kind: output, shape index: {1}]   ;;  %s5309_s5 = inlined_call_operand.vmem [shape: f32[2,1,64], index: 5, kind: output, shape index: {2}]  }
   0x1   :  { %s3820_s20 = smov 0  }
   0x2 LB: > { %s35_s21 = sadd.s32 1, %s3778_s19  ;;  %p3068_p0 = scmp.ge.s32.totalorder %s3782_s20, 1  ;;  %s3782_s20 = sphi %s3820_s20, %s16_s20   ;;  %s3778_s19 = sphi %s3818_s19, %s5327_s19   ;;  %s3774_s18 = sphi %s3816_s18, %s5326_s18  }
   0x3   : > { %p37_p1 = scmp.ge.s32.totalorder %s35_s21, 2  ;;  %p243_p2 = scmp.lt.s32.totalorder %s3782_s20, 3 }
   0x5   : > { %s5329_s21 = smov (%p37_p1, %s35_s21), 0  ;;  %p244_p3 = pnand %p3068_p0, %p243_p2 }
   0x7   : > { %247 = sbr.rel (%p244_p3) target bundleno = 513 (0x201), region = 32 }
   0xe   : > { %v3692_v0 = vld [vmem:[%s5305_s1] sm:$0xff]   ;;  %vm1007_vm0 = vcmask 1044480   ;;  %v3693_v1 = vld [vmem:[%s5305_s1 + $0x8] sm:$0x3f]   ;;  %vm1008_vm1 = vcmask 1045504   ;;  %p302_p4 = scmp.lt.s32.totalorder %s3774_s18, 1 }
   0xf   : > { %3530 = vmatprep.subr.bf16.mxu0 %v3692_v0  ;;  %3662 = vmatprep.subr.bf16.mxu1 %v3692_v0  ;;  %v3784_v2 = vmov 65535   ;;  %vm814_vm2 = vcmask 220160   ;;  %vm2736_vm3 = vcmask 519168   ;;  %vm1567_vm4 = vcmask 523264  }
  0x10   : > { %3531 = vmatpush3.bf16.msra.mxu0 %v3692_v0  ;;  %v1009_v3 = vsel %vm1007_vm0, 4294967295, %v3784_v2  ;;  %3664 = vmatpush3.bf16.msra.mxu1 %v3692_v0  ;;  %s5331_s18 = smov (!%p302_p4, %s3774_s18), 1  ;;  %vm1563_vm5 = vcmask 516096  }
  0x11   : > { %v1010_v4 = vsel %vm1008_vm1, %v1009_v3, 0  ;;  %s3334_s26 = sshll.u32 %s5331_s18, 9  ;;  %s5157_s16 = scalar_lea.vmem %s5308_s4, %s5331_s18 }
  0x12   : > { %v1012_v5 = vand.u32 %v3693_v1, %v1010_v4  ;;  %s3848_s29 = scalar_lea.vmem %s5304_s0, %s3334_s26  ;;  %s3989_s9 = scalar_lea.vmem %s5307_s3, %s3334_s26 }
  0x13   : > { %v3694_v6 = vld [vmem:[%s3848_s29] sm:$0xff]   ;;  %v3695_v7 = vld [vmem:[%s3848_s29 + $0x8] sm:$0xff]   ;;  %v3696_v8 = vld [vmem:[%s3848_s29 + $0x10] sm:$0xff]   ;;  %s5163_s23 = scalar_lea.vmem %s5309_s5, %s5331_s18 }
  0x14   : > { %3532 = vmatprep.subr.bf16.mxu0 %v1012_v5  ;;  %3663 = vmatprep.subr.bf16.mxu1 %v1012_v5  ;;  %v3697_v9 = vld [vmem:[%s3848_s29 + $0x18] sm:$0xff]   ;;  %v3698_v10 = vld [vmem:[%s3848_s29 + $0x20] sm:$0xff]   ;;  %v3699_v11 = vld [vmem:[%s3848_s29 + $0x28] sm:$0xff]  }
  0x15   : > { %3533 = vmatpush3.bf16.msra.mxu0 %v1012_v5  ;;  %3665 = vmatpush3.bf16.msra.mxu1 %v1012_v5  ;;  %v3700_v12 = vld [vmem:[%s3848_s29 + $0x30] sm:$0xff]   ;;  %v3701_v13 = vld [vmem:[%s3848_s29 + $0x38] sm:$0xff]   ;;  %v3702_v14 = vld [vmem:[%s3848_s29 + $0x40] sm:$0xff]  }
  0x16   : > { %3534 = vmatprep.mubr.msk.bf16.mxu0 %vm814_vm2, %v3694_v6  ;;  %v3703_v15 = vld [vmem:[%s3848_s29 + $0x48] sm:$0xff]   ;;  %v3704_v16 = vld [vmem:[%s3848_s29 + $0x50] sm:$0xff]   ;;  %v3726_v17 = vld [vmem:[%s3848_s29 + $0x100] sm:$0xff]  }
  0x17   : > { %v3727_v18 = vld [vmem:[%s3848_s29 + $0x108] sm:$0xff]   ;;  %3598 = vmatprep.mubr.msk.bf16.mxu1 %vm814_vm2, %v3726_v17  ;;  %v3728_v19 = vld [vmem:[%s3848_s29 + $0x110] sm:$0xff]   ;;  %v3705_v20 = vld [vmem:[%s3848_s29 + $0x58] sm:$0xff]  }
  0x18   : > { %3535 = vmatmul.mubr.msk.bf16.vlgmr.msra.gmra.mrb[0].mxu0 %vm814_vm2, %v3695_v7  ;;  %3599 = vmatmul.mubr.msk.bf16.vlgmr.msra.gmra.mrb[0].mxu1 %vm814_vm2, %v3727_v18  ;;  %v3706_v21 = vld [vmem:[%s3848_s29 + $0x60] sm:$0xff]   ;;  %v3729_v22 = vld [vmem:[%s3848_s29 + $0x118] sm:$0xff]   ;;  %v3707_v24 = vld [vmem:[%s3848_s29 + $0x68] sm:$0xff]  }
  0x19   : > { %3538 = vmatprep.mubr.msk.bf16.mxu0 %vm814_vm2, %v3696_v8  ;;  %3602 = vmatprep.mubr.msk.bf16.mxu1 %vm814_vm2, %v3728_v19  ;;  %v3730_v23 = vld [vmem:[%s3848_s29 + $0x120] sm:$0xff]   ;;  %v3708_v25 = vld [vmem:[%s3848_s29 + $0x70] sm:$0xff]   ;;  %v3731_v26 = vld [vmem:[%s3848_s29 + $0x128] sm:$0xff]  }
  0x1a   : > { %v3732_v27 = vld [vmem:[%s3848_s29 + $0x130] sm:$0xff]   ;;  %v3709_v28 = vld [vmem:[%s3848_s29 + $0x78] sm:$0xff]   ;;  %v3710_v30 = vld [vmem:[%s3848_s29 + $0x80] sm:$0xff]  }
  0x1b   : > { %v3733_v29 = vld [vmem:[%s3848_s29 + $0x138] sm:$0xff]   ;;  %v3734_v31 = vld [vmem:[%s3848_s29 + $0x140] sm:$0xff]   ;;  %v3711_v32 = vld [vmem:[%s3848_s29 + $0x88] sm:$0xff]  }
  0x1c   : > { %v3735_v33 = vld [vmem:[%s3848_s29 + $0x148] sm:$0xff]   ;;  %v3712_v34 = vld [vmem:[%s3848_s29 + $0x90] sm:$0xff]   ;;  %v3713_v36 = vld [vmem:[%s3848_s29 + $0x98] sm:$0xff]  }
  0x1d   : > { %v3736_v35 = vld [vmem:[%s3848_s29 + $0x150] sm:$0xff]   ;;  %v3737_v37 = vld [vmem:[%s3848_s29 + $0x158] sm:$0xff]   ;;  %v3714_v38 = vld [vmem:[%s3848_s29 + $0xa0] sm:$0xff]  }
  0x1e   : > { %v3738_v39 = vld [vmem:[%s3848_s29 + $0x160] sm:$0xff]   ;;  %v3715_v40 = vld [vmem:[%s3848_s29 + $0xa8] sm:$0xff]   ;;  %v3716_v42 = vld [vmem:[%s3848_s29 + $0xb0] sm:$0xff]  }
  0x1f   : > { %v3739_v41 = vld [vmem:[%s3848_s29 + $0x168] sm:$0xff]   ;;  %v3740_v43 = vld [vmem:[%s3848_s29 + $0x170] sm:$0xff]   ;;  %v3717_v44 = vld [vmem:[%s3848_s29 + $0xb8] sm:$0xff]  }
  0x20   : > { %3539 = vmatmul.mubr.msk.bf16.gmra.mrb[4].mxu0 %vm814_vm2, %v3697_v9  ;;  %3603 = vmatmul.mubr.msk.bf16.gmra.mrb[4].mxu1 %vm814_vm2, %v3729_v22  ;;  %v3741_v45 = vld [vmem:[%s3848_s29 + $0x178] sm:$0xff]   ;;  %v3718_v46 = vld [vmem:[%s3848_s29 + $0xc0] sm:$0xff]   ;;  %v3719_v48 = vld [vmem:[%s3848_s29 + $0xc8] sm:$0xff]  }
  0x21   : > { %3542 = vmatprep.mubr.msk.bf16.mxu0 %vm814_vm2, %v3698_v10  ;;  %3606 = vmatprep.mubr.msk.bf16.mxu1 %vm814_vm2, %v3730_v23  ;;  %v3742_v47 = vld [vmem:[%s3848_s29 + $0x180] sm:$0xff]   ;;  %v3743_v49 = vld [vmem:[%s3848_s29 + $0x188] sm:$0xff]   ;;  %v3720_v50 = vld [vmem:[%s3848_s29 + $0xd0] sm:$0xff]  }
  0x22   : > { %v3744_v51 = vld [vmem:[%s3848_s29 + $0x190] sm:$0xff]   ;;  %v3721_v52 = vld [vmem:[%s3848_s29 + $0xd8] sm:$0xff]   ;;  %v3722_v54 = vld [vmem:[%s3848_s29 + $0xe0] sm:$0xff]  }
  0x23   : > { %v3745_v53 = vld [vmem:[%s3848_s29 + $0x198] sm:$0xff]   ;;  %v3746_v55 = vld [vmem:[%s3848_s29 + $0x1a0] sm:$0xff]   ;;  %v3723_v56 = vld [vmem:[%s3848_s29 + $0xe8] sm:$0xff]  }
  0x24   : > { %v3747_v57 = vld [vmem:[%s3848_s29 + $0x1a8] sm:$0xff]   ;;  %v3724_v58 = vld [vmem:[%s3848_s29 + $0xf0] sm:$0xff]   ;;  %v3725_v60 = vld [vmem:[%s3848_s29 + $0xf8] sm:$0xff]  }
  0x25   : > { %v3748_v59 = vld [vmem:[%s3848_s29 + $0x1b0] sm:$0xff]   ;;  %v3749_v61 = vld [vmem:[%s3848_s29 + $0x1b8] sm:$0xff]   ;;  %v3750_v62 = vld [vmem:[%s3848_s29 + $0x1c0] sm:$0xff]  }
  0x26   : > { %v3751_v63 = vld [vmem:[%s3848_s29 + $0x1c8] sm:$0xff]   ;;  %v3752_v0 = vld [vmem:[%s3848_s29 + $0x1d0] sm:$0xff]   ;;  %v3753_v1 = vld [vmem:[%s3848_s29 + $0x1d8] sm:$0xff]  }
  0x27   : > { %v3754_v2 = vld [vmem:[%s3848_s29 + $0x1e0] sm:$0xff]   ;;  %v3755_v3 = vld [vmem:[%s3848_s29 + $0x1e8] sm:$0xff]   ;;  %v3756_v4 = vld [vmem:[%s3848_s29 + $0x1f0] sm:$0xff]  }
  0x28   : > { %3543 = vmatmul.mubr.msk.bf16.gmra.mrb[8].mxu0 %vm814_vm2, %v3699_v11  ;;  %3607 = vmatmul.mubr.msk.bf16.gmra.mrb[8].mxu1 %vm814_vm2, %v3731_v26  ;;  %v3757_v5 = vld [vmem:[%s3848_s29 + $0x1f8] sm:$0xff]   ;;  %v3981_v6 = vld [vmem:[%s5306_s2] ss:$0 sm:$0xff] }
  0x29   : > { %3546 = vmatprep.mubr.msk.bf16.mxu0 %vm814_vm2, %v3700_v12  ;;  %3610 = vmatprep.mubr.msk.bf16.mxu1 %vm814_vm2, %v3732_v27 }
  0x30   : > { %3547 = vmatmul.mubr.msk.bf16.gmra.mrb[12].mxu0 %vm814_vm2, %v3701_v13  ;;  %3611 = vmatmul.mubr.msk.bf16.gmra.mrb[12].mxu1 %vm814_vm2, %v3733_v29 }
  0x31   : > { %3550 = vmatprep.mubr.msk.bf16.mxu0 %vm814_vm2, %v3702_v14  ;;  %3614 = vmatprep.mubr.msk.bf16.mxu1 %vm814_vm2, %v3734_v31 }
  0x38   : > { %3551 = vmatmul.mubr.msk.bf16.gmra.mrb[16].mxu0 %vm814_vm2, %v3703_v15  ;;  %3615 = vmatmul.mubr.msk.bf16.gmra.mrb[16].mxu1 %vm814_vm2, %v3735_v33 }
  0x39   : > { %3554 = vmatprep.mubr.msk.bf16.mxu0 %vm814_vm2, %v3704_v16  ;;  %3618 = vmatprep.mubr.msk.bf16.mxu1 %vm814_vm2, %v3736_v35 }
  0x40   : > { %3555 = vmatmul.mubr.msk.bf16.gmra.mrb[20].mxu0 %vm814_vm2, %v3705_v20  ;;  %3619 = vmatmul.mubr.msk.bf16.gmra.mrb[20].mxu1 %vm814_vm2, %v3737_v37 }
  0x41   : > { %3558 = vmatprep.mubr.msk.bf16.mxu0 %vm814_vm2, %v3706_v21  ;;  %3622 = vmatprep.mubr.msk.bf16.mxu1 %vm814_vm2, %v3738_v39 }
  0x48   : > { %3559 = vmatmul.mubr.msk.bf16.gmra.mrb[24].mxu0 %vm814_vm2, %v3707_v24  ;;  %3623 = vmatmul.mubr.msk.bf16.gmra.mrb[24].mxu1 %vm814_vm2, %v3739_v41 }
  0x49   : > { %3562 = vmatprep.mubr.msk.bf16.mxu0 %vm814_vm2, %v3708_v25  ;;  %3626 = vmatprep.mubr.msk.bf16.mxu1 %vm814_vm2, %v3740_v43 }
  0x50   : > { %3563 = vmatmul.mubr.msk.bf16.gmra.mrb[28].mxu0 %vm814_vm2, %v3709_v28  ;;  %3627 = vmatmul.mubr.msk.bf16.gmra.mrb[28].mxu1 %vm814_vm2, %v3741_v45 }
  0x51   : > { %3566 = vmatprep.mubr.msk.bf16.mxu0 %vm814_vm2, %v3710_v30  ;;  %3630 = vmatprep.mubr.msk.bf16.mxu1 %vm814_vm2, %v3742_v47 }
  0x58   : > { %3567 = vmatmul.mubr.msk.bf16.gmra.mrb[32].mxu0 %vm814_vm2, %v3711_v32  ;;  %3631 = vmatmul.mubr.msk.bf16.gmra.mrb[32].mxu1 %vm814_vm2, %v3743_v49 }
  0x59   : > { %3570 = vmatprep.mubr.msk.bf16.mxu0 %vm814_vm2, %v3712_v34  ;;  %3634 = vmatprep.mubr.msk.bf16.mxu1 %vm814_vm2, %v3744_v51 }
  0x60   : > { %3571 = vmatmul.mubr.msk.bf16.gmra.mrb[36].mxu0 %vm814_vm2, %v3713_v36  ;;  %3635 = vmatmul.mubr.msk.bf16.gmra.mrb[36].mxu1 %vm814_vm2, %v3745_v53 }
  0x61   : > { %3574 = vmatprep.mubr.msk.bf16.mxu0 %vm814_vm2, %v3714_v38  ;;  %3638 = vmatprep.mubr.msk.bf16.mxu1 %vm814_vm2, %v3746_v55 }
  0x68   : > { %3575 = vmatmul.mubr.msk.bf16.gmra.mrb[40].mxu0 %vm814_vm2, %v3715_v40  ;;  %3639 = vmatmul.mubr.msk.bf16.gmra.mrb[40].mxu1 %vm814_vm2, %v3747_v57 }
  0x69   : > { %3578 = vmatprep.mubr.msk.bf16.mxu0 %vm814_vm2, %v3716_v42  ;;  %3642 = vmatprep.mubr.msk.bf16.mxu1 %vm814_vm2, %v3748_v59 }
  0x70   : > { %3579 = vmatmul.mubr.msk.bf16.gmra.mrb[44].mxu0 %vm814_vm2, %v3717_v44  ;;  %3643 = vmatmul.mubr.msk.bf16.gmra.mrb[44].mxu1 %vm814_vm2, %v3749_v61 }
  0x71   : > { %3582 = vmatprep.mubr.msk.bf16.mxu0 %vm814_vm2, %v3718_v46  ;;  %3646 = vmatprep.mubr.msk.bf16.mxu1 %vm814_vm2, %v3750_v62 }
  0x78   : > { %3583 = vmatmul.mubr.msk.bf16.gmra.mrb[48].mxu0 %vm814_vm2, %v3719_v48  ;;  %3647 = vmatmul.mubr.msk.bf16.gmra.mrb[48].mxu1 %vm814_vm2, %v3751_v63 }
  0x79   : > { %3586 = vmatprep.mubr.msk.bf16.mxu0 %vm814_vm2, %v3720_v50  ;;  %3650 = vmatprep.mubr.msk.bf16.mxu1 %vm814_vm2, %v3752_v0 }
  0x80   : > { %3587 = vmatmul.mubr.msk.bf16.gmra.mrb[52].mxu0 %vm814_vm2, %v3721_v52  ;;  %3651 = vmatmul.mubr.msk.bf16.gmra.mrb[52].mxu1 %vm814_vm2, %v3753_v1 }
  0x81   : > { %3590 = vmatprep.mubr.msk.bf16.mxu0 %vm814_vm2, %v3722_v54  ;;  %3654 = vmatprep.mubr.msk.bf16.mxu1 %vm814_vm2, %v3754_v2 }
  0x88   : > { %3591 = vmatmul.mubr.msk.bf16.gmra.mrb[56].mxu0 %vm814_vm2, %v3723_v56  ;;  %3655 = vmatmul.mubr.msk.bf16.gmra.mrb[56].mxu1 %vm814_vm2, %v3755_v3 }
  0x89   : > { %3594 = vmatprep.mubr.msk.bf16.mxu0 %vm814_vm2, %v3724_v58  ;;  %3658 = vmatprep.mubr.msk.bf16.mxu1 %vm814_vm2, %v3756_v4 }
  0x90   : > { %3595 = vmatmul.mubr.msk.bf16.gmra.mrb[60].mxu0 %vm814_vm2, %v3725_v60  ;;  %3659 = vmatmul.mubr.msk.bf16.gmra.mrb[60].mxu1 %vm814_vm2, %v3757_v5 }
  0xeb   : > { %v3536_v7 = vpop.f32.mrb[0].mxu0 }
  0xec   : > { %v1057_v8 = vadd.f32 %v3536_v7, %v3981_v6  ;;  %v1048_v9 = vpop.f32.mrb[1].mxu0 }
  0xed   : > { %v1049_v10 = vadd.f32 %v3981_v6, %v1048_v9  ;;  %v3537_v11 = vpop.f32.mrb[2].mxu0 }
  0xee   : > { %v3338_v12 = vpack.c.bf16 %v1057_v8, %v1057_v8  ;;  %v1060_v13 = vadd.f32 %v3537_v11, %v3981_v6  ;;  %v1051_v14 = vpop.f32.mrb[3].mxu0  ;;  %v1835_v18 = vmul.f32 %v1057_v8, %v1057_v8  ;;  %v1571_v26 = vsel %vm1567_vm4, %v1057_v8, 0.0 }
  0xef   : > { %v1833_v15 = vmul.f32 %v1049_v10, %v1049_v10  ;;  %v3336_v16 = vpack.c.bf16 %v1049_v10, %v1049_v10  ;;  %v1052_v17 = vadd.f32 %v3981_v6, %v1051_v14  ;;  %v1568_v20 = vsel %vm1567_vm4, %v1049_v10, 0.0 }
  0xf0   : > { %2739 = vst.msk [vmem:[%s3989_s9 + $0x8] sm:$0xf] %vm2736_vm3, %v3338_v12  ;;  %v3339_v19 = vpack.c.bf16 %v1060_v13, %v1060_v13  ;;  %v1836_v24 = vmul.f32 %v1060_v13, %v1060_v13  ;;  %v1964_v34 = vsel %vm1567_vm4, %v1835_v18, 0.0  ;;  %v1573_v35 = vsel %vm1567_vm4, %v1060_v13, 0.0 }
  0xf1   : > { %2737 = vst.msk [vmem:[%s3989_s9] sm:$0xf] %vm2736_vm3, %v3336_v16  ;;  %v1569_v21 = vsel %vm1567_vm4, %v1052_v17, 0.0  ;;  %v1834_v22 = vmul.f32 %v1052_v17, %v1052_v17  ;;  %v3337_v23 = vpack.c.bf16 %v1052_v17, %v1052_v17  ;;  %v1961_v27 = vsel %vm1567_vm4, %v1833_v15, 0.0 }
  0xf2   : > { %2740 = vst.msk [vmem:[%s3989_s9 + $0xc] sm:$0xf] %vm2736_vm3, %v3339_v19  ;;  %v1570_v25 = vadd.f32 %v1569_v21, %v1568_v20  ;;  %v1966_v38 = vsel %vm1567_vm4, %v1836_v24, 0.0 }
  0xf3   : > { %v1962_v28 = vsel %vm1567_vm4, %v1834_v22, 0.0  ;;  %2738 = vst.msk [vmem:[%s3989_s9 + $0x4] sm:$0xf] %vm2736_vm3, %v3337_v23  ;;  %v3540_v29 = vpop.f32.mrb[4].mxu0 }
  0xf4   : > { %v1572_v30 = vadd.f32 %v1571_v26, %v1570_v25  ;;  %v1963_v31 = vadd.f32 %v1962_v28, %v1961_v27  ;;  %v1073_v32 = vadd.f32 %v3540_v29, %v3981_v6  ;;  %v1064_v33 = vpop.f32.mrb[5].mxu0 }
  0xf5   : > { %v1065_v36 = vadd.f32 %v3981_v6, %v1064_v33  ;;  %v3541_v37 = vpop.f32.mrb[6].mxu0 }
  0xf6   : > { %v1574_v39 = vadd.f32 %v1573_v35, %v1572_v30  ;;  %v1965_v40 = vadd.f32 %v1964_v34, %v1963_v31  ;;  %v1067_v41 = vpop.f32.mrb[7].mxu0  ;;  %v3342_v42 = vpack.c.bf16 %v1073_v32, %v1073_v32  ;;  %v1076_v48 = vadd.f32 %v3541_v37, %v3981_v6 }
  0xf7   : > { %v1575_v43 = vsel %vm1567_vm4, %v1065_v36, 0.0  ;;  %v1837_v44 = vmul.f32 %v1065_v36, %v1065_v36  ;;  %v3340_v45 = vpack.c.bf16 %v1065_v36, %v1065_v36  ;;  %v1068_v50 = vadd.f32 %v3981_v6, %v1067_v41 }
  0xf8   : > { %v1967_v46 = vadd.f32 %v1966_v38, %v1965_v40  ;;  %v1576_v47 = vadd.f32 %v1575_v43, %v1574_v39  ;;  %2743 = vst.msk [vmem:[%s3989_s9 + $0x18] sm:$0xf] %vm2736_vm3, %v3342_v42  ;;  %v1839_v51 = vmul.f32 %v1073_v32, %v1073_v32  ;;  %v3343_v53 = vpack.c.bf16 %v1076_v48, %v1076_v48 }
  0xf9   : > { %v1968_v49 = vsel %vm1567_vm4, %v1837_v44, 0.0  ;;  %2741 = vst.msk [vmem:[%s3989_s9 + $0x10] sm:$0xf] %vm2736_vm3, %v3340_v45  ;;  %v1577_v54 = vsel %vm1567_vm4, %v1068_v50, 0.0  ;;  %v1838_v55 = vmul.f32 %v1068_v50, %v1068_v50  ;;  %v3341_v56 = vpack.c.bf16 %v1068_v50, %v1068_v50 }
  0xfa   : > { %v1969_v52 = vadd.f32 %v1968_v49, %v1967_v46  ;;  %2744 = vst.msk [vmem:[%s3989_s9 + $0x1c] sm:$0xf] %vm2736_vm3, %v3343_v53  ;;  %v1578_v58 = vadd.f32 %v1577_v54, %v1576_v47  ;;  %v1579_v61 = vsel %vm1567_vm4, %v1073_v32, 0.0  ;;  %v1840_v62 = vmul.f32 %v1076_v48, %v1076_v48 }
  0xfb   : > { %v3544_v57 = vpop.f32.mrb[8].mxu0  ;;  %v1970_v63 = vsel %vm1567_vm4, %v1838_v55, 0.0  ;;  %2742 = vst.msk [vmem:[%s3989_s9 + $0x14] sm:$0xf] %vm2736_vm3, %v3341_v56  ;;  %v1972_v2 = vsel %vm1567_vm4, %v1839_v51, 0.0  ;;  %v1581_v3 = vsel %vm1567_vm4, %v1076_v48, 0.0 }
  0xfc   : > { %v1089_v59 = vadd.f32 %v3544_v57, %v3981_v6  ;;  %v1080_v60 = vpop.f32.mrb[9].mxu0  ;;  %v1580_v4 = vadd.f32 %v1579_v61, %v1578_v58  ;;  %v1971_v5 = vadd.f32 %v1970_v63, %v1969_v52  ;;  %v1974_v15 = vsel %vm1567_vm4, %v1840_v62, 0.0  ;;  %v3600_v58 = vpop.f32.mrb[0].mxu1 }
  0xfd   : > { %v1081_v0 = vadd.f32 %v3981_v6, %v1080_v60  ;;  %v3545_v1 = vpop.f32.mrb[10].mxu0  ;;  %v4062_v63 = vpop.f32.mrb[1].mxu1 }
  0xfe   : > { %v1083_v7 = vpop.f32.mrb[11].mxu0  ;;  %v3346_v8 = vpack.c.bf16 %v1089_v59, %v1089_v59  ;;  %v1582_v12 = vadd.f32 %v1581_v3, %v1580_v4  ;;  %v1973_v13 = vadd.f32 %v1972_v2, %v1971_v5  ;;  %v1092_v14 = vadd.f32 %v3545_v1, %v3981_v6  ;;  %v4071_v5 = vpop.f32.mrb[2].mxu1 }
  0xff   : > { %v1583_v9 = vsel %vm1567_vm4, %v1081_v0, 0.0  ;;  %v1841_v10 = vmul.f32 %v1081_v0, %v1081_v0  ;;  %v3344_v11 = vpack.c.bf16 %v1081_v0, %v1081_v0  ;;  %v1084_v17 = vadd.f32 %v3981_v6, %v1083_v7 }
 0x100   : > { %2747 = vst.msk [vmem:[%s3989_s9 + $0x28] sm:$0xf] %vm2736_vm3, %v3346_v8  ;;  %v1975_v18 = vadd.f32 %v1974_v15, %v1973_v13  ;;  %v1843_v19 = vmul.f32 %v1089_v59, %v1089_v59  ;;  %v1584_v20 = vadd.f32 %v1583_v9, %v1582_v12  ;;  %v3347_v21 = vpack.c.bf16 %v1092_v14, %v1092_v14  ;;  %v4075_v12 = vpop.f32.mrb[3].mxu1 }
 0x101   : > { %v1976_v16 = vsel %vm1567_vm4, %v1841_v10, 0.0  ;;  %2745 = vst.msk [vmem:[%s3989_s9 + $0x20] sm:$0xf] %vm2736_vm3, %v3344_v11  ;;  %v1585_v22 = vsel %vm1567_vm4, %v1084_v17, 0.0  ;;  %v1842_v23 = vmul.f32 %v1084_v17, %v1084_v17  ;;  %v3345_v24 = vpack.c.bf16 %v1084_v17, %v1084_v17 }
 0x102   : > { %v1977_v26 = vadd.f32 %v1976_v16, %v1975_v18  ;;  %v1586_v27 = vadd.f32 %v1585_v22, %v1584_v20  ;;  %v1587_v30 = vsel %vm1567_vm4, %v1089_v59, 0.0  ;;  %v1844_v31 = vmul.f32 %v1092_v14, %v1092_v14  ;;  %2748 = vst.msk [vmem:[%s3989_s9 + $0x2c] sm:$0xf] %vm2736_vm3, %v3347_v21 }
 0x103   : > { %v3548_v25 = vpop.f32.mrb[12].mxu0  ;;  %v1978_v32 = vsel %vm1567_vm4, %v1842_v23, 0.0  ;;  %2746 = vst.msk [vmem:[%s3989_s9 + $0x24] sm:$0xf] %vm2736_vm3, %v3345_v24  ;;  %v1980_v35 = vsel %vm1567_vm4, %v1843_v19, 0.0  ;;  %v1589_v36 = vsel %vm1567_vm4, %v1092_v14, 0.0  ;;  %v4087_v23 = vadd.f32 %v3600_v58, %v3981_v6 }
 0x104   : > { %v1105_v28 = vadd.f32 %v3548_v25, %v3981_v6  ;;  %v1096_v29 = vpop.f32.mrb[13].mxu0  ;;  %v1588_v37 = vadd.f32 %v1587_v30, %v1586_v27  ;;  %v1979_v38 = vadd.f32 %v1978_v32, %v1977_v26  ;;  %v1982_v47 = vsel %vm1567_vm4, %v1844_v31, 0.0  ;;  %v4090_v32 = vpop.f32.mrb[4].mxu1 }
 0x105   : > { %v1097_v33 = vadd.f32 %v3981_v6, %v1096_v29  ;;  %v3549_v34 = vpop.f32.mrb[14].mxu0 }
 0x106   : > { %v1099_v39 = vpop.f32.mrb[15].mxu0  ;;  %v3350_v40 = vpack.c.bf16 %v1105_v28, %v1105_v28  ;;  %v1590_v44 = vadd.f32 %v1589_v36, %v1588_v37  ;;  %v1981_v45 = vadd.f32 %v1980_v35, %v1979_v38  ;;  %v1108_v46 = vadd.f32 %v3549_v34, %v3981_v6  ;;  %v4094_v38 = vpop.f32.mrb[5].mxu1 }
 0x107   : > { %v1591_v41 = vsel %vm1567_vm4, %v1097_v33, 0.0  ;;  %v1845_v42 = vmul.f32 %v1097_v33, %v1097_v33  ;;  %v3348_v43 = vpack.c.bf16 %v1097_v33, %v1097_v33  ;;  %v1100_v49 = vadd.f32 %v3981_v6, %v1099_v39 }
 0x108   : > { %2751 = vst.msk [vmem:[%s3989_s9 + $0x38] sm:$0xf] %vm2736_vm3, %v3350_v40  ;;  %v1983_v50 = vadd.f32 %v1982_v47, %v1981_v45  ;;  %v1847_v51 = vmul.f32 %v1105_v28, %v1105_v28  ;;  %v1592_v52 = vadd.f32 %v1591_v41, %v1590_v44  ;;  %v3351_v53 = vpack.c.bf16 %v1108_v46, %v1108_v46  ;;  %v4104_v44 = vpop.f32.mrb[6].mxu1 }
 0x109   : > { %v1984_v48 = vsel %vm1567_vm4, %v1845_v42, 0.0  ;;  %2749 = vst.msk [vmem:[%s3989_s9 + $0x30] sm:$0xf] %vm2736_vm3, %v3348_v43  ;;  %v1593_v54 = vsel %vm1567_vm4, %v1100_v49, 0.0  ;;  %v1846_v55 = vmul.f32 %v1100_v49, %v1100_v49  ;;  %v3349_v56 = vpack.c.bf16 %v1100_v49, %v1100_v49 }
 0x10a   : > { %v1985_v59 = vadd.f32 %v1984_v48, %v1983_v50  ;;  %v1594_v60 = vadd.f32 %v1593_v54, %v1592_v52  ;;  %v1595_v0 = vsel %vm1567_vm4, %v1105_v28, 0.0  ;;  %v1848_v1 = vmul.f32 %v1108_v46, %v1108_v46  ;;  %2752 = vst.msk [vmem:[%s3989_s9 + $0x3c] sm:$0xf] %vm2736_vm3, %v3351_v53  ;;  %v4108_v50 = vpop.f32.mrb[7].mxu1 }
 0x10b   : > { %v3552_v57 = vpop.f32.mrb[16].mxu0  ;;  %v1986_v2 = vsel %vm1567_vm4, %v1846_v55, 0.0  ;;  %2750 = vst.msk [vmem:[%s3989_s9 + $0x34] sm:$0xf] %vm2736_vm3, %v3349_v56  ;;  %v1988_v7 = vsel %vm1567_vm4, %v1847_v51, 0.0  ;;  %v1597_v8 = vsel %vm1567_vm4, %v1108_v46, 0.0  ;;  %v3402_v43 = vpack.c.bf16 %v4087_v23, %v4087_v23 }
 0x10c   : > { %v1121_v61 = vadd.f32 %v3552_v57, %v3981_v6  ;;  %v1112_v62 = vpop.f32.mrb[17].mxu0  ;;  %v1596_v9 = vadd.f32 %v1595_v0, %v1594_v60  ;;  %v1987_v10 = vadd.f32 %v1986_v2, %v1985_v59  ;;  %v1990_v20 = vsel %vm1567_vm4, %v1848_v1, 0.0 }
 0x10d   : > { %v1113_v3 = vadd.f32 %v3981_v6, %v1112_v62  ;;  %v3553_v4 = vpop.f32.mrb[18].mxu0  ;;  %2803 = vst.msk [vmem:[%s3989_s9 + $0x108] sm:$0xf] %vm2736_vm3, %v3402_v43 }
 0x10e   : > { %v1115_v11 = vpop.f32.mrb[19].mxu0  ;;  %v3354_v13 = vpack.c.bf16 %v1121_v61, %v1121_v61  ;;  %v1598_v17 = vadd.f32 %v1597_v8, %v1596_v9  ;;  %v1989_v18 = vadd.f32 %v1988_v7, %v1987_v10  ;;  %v1124_v19 = vadd.f32 %v3553_v4, %v3981_v6  ;;  %v4126_v9 = vpop.f32.mrb[8].mxu1 }
 0x10f   : > { %v1599_v14 = vsel %vm1567_vm4, %v1113_v3, 0.0  ;;  %v1849_v15 = vmul.f32 %v1113_v3, %v1113_v3  ;;  %v3352_v16 = vpack.c.bf16 %v1113_v3, %v1113_v3  ;;  %v1116_v22 = vadd.f32 %v3981_v6, %v1115_v11 }
 0x110   : > { %2755 = vst.msk [vmem:[%s3989_s9 + $0x48] sm:$0xf] %vm2736_vm3, %v3354_v13  ;;  %v1991_v24 = vadd.f32 %v1990_v20, %v1989_v18  ;;  %v1851_v25 = vmul.f32 %v1121_v61, %v1121_v61  ;;  %v1600_v26 = vadd.f32 %v1599_v14, %v1598_v17  ;;  %v3355_v27 = vpack.c.bf16 %v1124_v19, %v1124_v19 }
 0x111   : > { %v1992_v21 = vsel %vm1567_vm4, %v1849_v15, 0.0  ;;  %2753 = vst.msk [vmem:[%s3989_s9 + $0x40] sm:$0xf] %vm2736_vm3, %v3352_v16  ;;  %v1601_v28 = vsel %vm1567_vm4, %v1116_v22, 0.0  ;;  %v1850_v29 = vmul.f32 %v1116_v22, %v1116_v22  ;;  %v3353_v30 = vpack.c.bf16 %v1116_v22, %v1116_v22  ;;  %v4130_v15 = vpop.f32.mrb[9].mxu1 }
 0x112   : > { %v1603_v33 = vsel %vm1567_vm4, %v1121_v61, 0.0  ;;  %v1993_v34 = vadd.f32 %v1992_v21, %v1991_v24  ;;  %v1602_v35 = vadd.f32 %v1601_v28, %v1600_v26  ;;  %v1852_v39 = vmul.f32 %v1124_v19, %v1124_v19  ;;  %2756 = vst.msk [vmem:[%s3989_s9 + $0x4c] sm:$0xf] %vm2736_vm3, %v3355_v27  ;;  %v4140_v21 = vpop.f32.mrb[10].mxu1 }
 0x113   : > { %v3556_v31 = vpop.f32.mrb[20].mxu0  ;;  %v1994_v40 = vsel %vm1567_vm4, %v1850_v29, 0.0  ;;  %2754 = vst.msk [vmem:[%s3989_s9 + $0x44] sm:$0xf] %vm2736_vm3, %v3353_v30  ;;  %v1996_v45 = vsel %vm1567_vm4, %v1851_v25, 0.0  ;;  %v1605_v46 = vsel %vm1567_vm4, %v1124_v19, 0.0  ;;  %v4123_v61 = vadd.f32 %v3981_v6, %v4062_v63 }
 0x114   : > { %v1137_v36 = vadd.f32 %v3556_v31, %v3981_v6  ;;  %v1128_v37 = vpop.f32.mrb[21].mxu0  ;;  %v1604_v47 = vadd.f32 %v1603_v33, %v1602_v35  ;;  %v1995_v48 = vadd.f32 %v1994_v40, %v1993_v34  ;;  %v1998_v58 = vsel %vm1567_vm4, %v1852_v39, 0.0  ;;  %v4144_v28 = vpop.f32.mrb[11].mxu1 }
 0x115   : > { %v1129_v41 = vadd.f32 %v3981_v6, %v1128_v37  ;;  %v3557_v42 = vpop.f32.mrb[22].mxu0  ;;  %v3400_v20 = vpack.c.bf16 %v4123_v61, %v4123_v61 }
 0x116   : > { %v1131_v49 = vpop.f32.mrb[23].mxu0  ;;  %v3358_v51 = vpack.c.bf16 %v1137_v36, %v1137_v36  ;;  %v1606_v55 = vadd.f32 %v1605_v46, %v1604_v47  ;;  %v1997_v56 = vadd.f32 %v1996_v45, %v1995_v48  ;;  %v1140_v57 = vadd.f32 %v3557_v42, %v3981_v6 }
 0x117   : > { %v1607_v52 = vsel %vm1567_vm4, %v1129_v41, 0.0  ;;  %v1853_v53 = vmul.f32 %v1129_v41, %v1129_v41  ;;  %v3356_v54 = vpack.c.bf16 %v1129_v41, %v1129_v41  ;;  %v1132_v60 = vadd.f32 %v3981_v6, %v1131_v49  ;;  %2801 = vst.msk [vmem:[%s3989_s9 + $0x100] sm:$0xf] %vm2736_vm3, %v3400_v20 }
 0x118   : > { %2759 = vst.msk [vmem:[%s3989_s9 + $0x58] sm:$0xf] %vm2736_vm3, %v3358_v51  ;;  %v1999_v62 = vadd.f32 %v1998_v58, %v1997_v56  ;;  %v1855_v0 = vmul.f32 %v1137_v36, %v1137_v36  ;;  %v1608_v1 = vadd.f32 %v1607_v52, %v1606_v55  ;;  %v3359_v2 = vpack.c.bf16 %v1140_v57, %v1140_v57  ;;  %v4158_v51 = vpop.f32.mrb[12].mxu1 }
 0x119   : > { %v2000_v59 = vsel %vm1567_vm4, %v1853_v53, 0.0  ;;  %2757 = vst.msk [vmem:[%s3989_s9 + $0x50] sm:$0xf] %vm2736_vm3, %v3356_v54  ;;  %v1609_v3 = vsel %vm1567_vm4, %v1132_v60, 0.0  ;;  %v1854_v4 = vmul.f32 %v1132_v60, %v1132_v60  ;;  %v3357_v7 = vpack.c.bf16 %v1132_v60, %v1132_v60 }
 0x11a   : > { %v1611_v10 = vsel %vm1567_vm4, %v1137_v36, 0.0  ;;  %v2001_v11 = vadd.f32 %v2000_v59, %v1999_v62  ;;  %v1610_v13 = vadd.f32 %v1609_v3, %v1608_v1  ;;  %v1856_v16 = vmul.f32 %v1140_v57, %v1140_v57  ;;  %2760 = vst.msk [vmem:[%s3989_s9 + $0x5c] sm:$0xf] %vm2736_vm3, %v3359_v2 }
 0x11b   : > { %v3560_v8 = vpop.f32.mrb[24].mxu0  ;;  %v2002_v17 = vsel %vm1567_vm4, %v1854_v4, 0.0  ;;  %2758 = vst.msk [vmem:[%s3989_s9 + $0x54] sm:$0xf] %vm2736_vm3, %v3357_v7  ;;  %v2004_v22 = vsel %vm1567_vm4, %v1855_v0, 0.0  ;;  %v1613_v24 = vsel %vm1567_vm4, %v1140_v57, 0.0  ;;  %v4172_v0 = vadd.f32 %v4071_v5, %v3981_v6 }
 0x11c   : > { %v1153_v63 = vadd.f32 %v3560_v8, %v3981_v6  ;;  %v1144_v14 = vpop.f32.mrb[25].mxu0  ;;  %v1612_v25 = vadd.f32 %v1611_v10, %v1610_v13  ;;  %v2003_v26 = vadd.f32 %v2002_v17, %v2001_v11  ;;  %v2006_v37 = vsel %vm1567_vm4, %v1856_v16, 0.0  ;;  %v4162_v57 = vpop.f32.mrb[13].mxu1 }
 0x11d   : > { %v1145_v18 = vadd.f32 %v3981_v6, %v1144_v14  ;;  %v3561_v19 = vpop.f32.mrb[26].mxu0  ;;  %v4174_v1 = vpop.f32.mrb[14].mxu1 }
 0x11e   : > { %v1147_v27 = vpop.f32.mrb[27].mxu0  ;;  %v3362_v29 = vpack.c.bf16 %v1153_v63, %v1153_v63  ;;  %v1614_v34 = vadd.f32 %v1613_v24, %v1612_v25  ;;  %v2005_v35 = vadd.f32 %v2004_v22, %v2003_v26  ;;  %v1156_v36 = vadd.f32 %v3561_v19, %v3981_v6  ;;  %v4178_v10 = vpop.f32.mrb[15].mxu1 }
 0x11f   : > { %v1615_v30 = vsel %vm1567_vm4, %v1145_v18, 0.0  ;;  %v1857_v31 = vmul.f32 %v1145_v18, %v1145_v18  ;;  %v3360_v33 = vpack.c.bf16 %v1145_v18, %v1145_v18  ;;  %v1148_v40 = vadd.f32 %v3981_v6, %v1147_v27 }
 0x120   : > { %2763 = vst.msk [vmem:[%s3989_s9 + $0x68] sm:$0xf] %vm2736_vm3, %v3362_v29  ;;  %v2007_v41 = vadd.f32 %v2006_v37, %v2005_v35  ;;  %v1859_v42 = vmul.f32 %v1153_v63, %v1153_v63  ;;  %v1616_v43 = vadd.f32 %v1615_v30, %v1614_v34  ;;  %v3363_v45 = vpack.c.bf16 %v1156_v36, %v1156_v36  ;;  %v4194_v34 = vpop.f32.mrb[16].mxu1 }
 0x121   : > { %v2008_v39 = vsel %vm1567_vm4, %v1857_v31, 0.0  ;;  %2761 = vst.msk [vmem:[%s3989_s9 + $0x60] sm:$0xf] %vm2736_vm3, %v3360_v33  ;;  %v1617_v46 = vsel %vm1567_vm4, %v1148_v40, 0.0  ;;  %v1858_v47 = vmul.f32 %v1148_v40, %v1148_v40  ;;  %v3361_v48 = vpack.c.bf16 %v1148_v40, %v1148_v40 }
 0x122   : > { %v1619_v52 = vsel %vm1567_vm4, %v1153_v63, 0.0  ;;  %v2009_v53 = vadd.f32 %v2008_v39, %v2007_v41  ;;  %v1618_v54 = vadd.f32 %v1617_v46, %v1616_v43  ;;  %v1860_v58 = vmul.f32 %v1156_v36, %v1156_v36  ;;  %2764 = vst.msk [vmem:[%s3989_s9 + $0x6c] sm:$0xf] %vm2736_vm3, %v3363_v45  ;;  %v4201_v41 = vpop.f32.mrb[17].mxu1 }
 0x123   : > { %v3564_v49 = vpop.f32.mrb[28].mxu0  ;;  %v2010_v59 = vsel %vm1567_vm4, %v1858_v47, 0.0  ;;  %2762 = vst.msk [vmem:[%s3989_s9 + $0x64] sm:$0xf] %vm2736_vm3, %v3361_v48  ;;  %v2012_v2 = vsel %vm1567_vm4, %v1859_v42, 0.0  ;;  %v1621_v3 = vsel %vm1567_vm4, %v1156_v36, 0.0  ;;  %v3403_v22 = vpack.c.bf16 %v4172_v0, %v4172_v0 }
 0x124   : > { %v1169_v55 = vadd.f32 %v3564_v49, %v3981_v6  ;;  %v1160_v56 = vpop.f32.mrb[29].mxu0  ;;  %v1620_v4 = vadd.f32 %v1619_v52, %v1618_v54  ;;  %v2011_v7 = vadd.f32 %v2010_v59, %v2009_v53  ;;  %v2014_v18 = vsel %vm1567_vm4, %v1860_v58, 0.0  ;;  %v4210_v48 = vpop.f32.mrb[18].mxu1 }
 0x125   : > { %v1161_v60 = vadd.f32 %v3981_v6, %v1160_v56  ;;  %v3565_v62 = vpop.f32.mrb[30].mxu0  ;;  %2804 = vst.msk [vmem:[%s3989_s9 + $0x10c] sm:$0xf] %vm2736_vm3, %v3403_v22  ;;  %v4199_v40 = vadd.f32 %v3981_v6, %v4075_v12 }
 0x126   : > { %v1163_v8 = vpop.f32.mrb[31].mxu0  ;;  %v3366_v11 = vpack.c.bf16 %v1169_v55, %v1169_v55  ;;  %v1622_v5 = vadd.f32 %v1621_v3, %v1620_v4  ;;  %v2013_v16 = vadd.f32 %v2012_v2, %v2011_v7  ;;  %v1172_v17 = vadd.f32 %v3565_v62, %v3981_v6 }
 0x127   : > { %v1623_v13 = vsel %vm1567_vm4, %v1161_v60, 0.0  ;;  %v1861_v63 = vmul.f32 %v1161_v60, %v1161_v60  ;;  %v3364_v14 = vpack.c.bf16 %v1161_v60, %v1161_v60  ;;  %v1164_v20 = vadd.f32 %v3981_v6, %v1163_v8 }
 0x128   : > { %2767 = vst.msk [vmem:[%s3989_s9 + $0x78] sm:$0xf] %vm2736_vm3, %v3366_v11  ;;  %v2015_v24 = vadd.f32 %v2014_v18, %v2013_v16  ;;  %v1863_v25 = vmul.f32 %v1169_v55, %v1169_v55  ;;  %v1624_v26 = vadd.f32 %v1623_v13, %v1622_v5  ;;  %v3367_v27 = vpack.c.bf16 %v1172_v17, %v1172_v17 }
 0x129   : > { %v2016_v19 = vsel %vm1567_vm4, %v1861_v63, 0.0  ;;  %2765 = vst.msk [vmem:[%s3989_s9 + $0x70] sm:$0xf] %vm2736_vm3, %v3364_v14  ;;  %v1625_v29 = vsel %vm1567_vm4, %v1164_v20, 0.0  ;;  %v1862_v30 = vmul.f32 %v1164_v20, %v1164_v20  ;;  %v3365_v31 = vpack.c.bf16 %v1164_v20, %v1164_v20 }
 0x12a   : > { %v2017_v35 = vadd.f32 %v2016_v19, %v2015_v24  ;;  %v1626_v36 = vadd.f32 %v1625_v29, %v1624_v26  ;;  %v1627_v42 = vsel %vm1567_vm4, %v1169_v55, 0.0  ;;  %v1864_v43 = vmul.f32 %v1172_v17, %v1172_v17  ;;  %2768 = vst.msk [vmem:[%s3989_s9 + $0x7c] sm:$0xf] %vm2736_vm3, %v3367_v27  ;;  %v4214_v55 = vpop.f32.mrb[19].mxu1 }
 0x12b   : > { %v3568_v33 = vpop.f32.mrb[32].mxu0  ;;  %v2018_v45 = vsel %vm1567_vm4, %v1862_v30, 0.0  ;;  %2766 = vst.msk [vmem:[%s3989_s9 + $0x74] sm:$0xf] %vm2736_vm3, %v3365_v31  ;;  %v2020_v12 = vsel %vm1567_vm4, %v1863_v25, 0.0  ;;  %v1629_v49 = vsel %vm1567_vm4, %v1172_v17, 0.0  ;;  %v3401_v11 = vpack.c.bf16 %v4199_v40, %v4199_v40 }
 0x12c   : > { %v1185_v37 = vadd.f32 %v3568_v33, %v3981_v6  ;;  %v1176_v39 = vpop.f32.mrb[33].mxu0  ;;  %v1628_v52 = vadd.f32 %v1627_v42, %v1626_v36  ;;  %v2019_v53 = vadd.f32 %v2018_v45, %v2017_v35  ;;  %v2022_v4 = vsel %vm1567_vm4, %v1864_v43, 0.0  ;;  %v4230_v20 = vpop.f32.mrb[20].mxu1 }
 0x12d   : > { %v1177_v46 = vadd.f32 %v3981_v6, %v1176_v39  ;;  %v3569_v47 = vpop.f32.mrb[34].mxu0  ;;  %2802 = vst.msk [vmem:[%s3989_s9 + $0x104] sm:$0xf] %vm2736_vm3, %v3401_v11  ;;  %v4233_v27 = vpop.f32.mrb[21].mxu1 }
 0x12e   : > { %v1179_v54 = vpop.f32.mrb[35].mxu0  ;;  %v3370_v56 = vpack.c.bf16 %v1185_v37, %v1185_v37  ;;  %v1630_v62 = vadd.f32 %v1629_v49, %v1628_v52  ;;  %v2021_v2 = vadd.f32 %v2020_v12, %v2019_v53  ;;  %v1188_v3 = vadd.f32 %v3569_v47, %v3981_v6  ;;  %v4242_v36 = vpop.f32.mrb[22].mxu1 }
 0x12f   : > { %v1631_v58 = vsel %vm1567_vm4, %v1177_v46, 0.0  ;;  %v1865_v59 = vmul.f32 %v1177_v46, %v1177_v46  ;;  %v3368_v60 = vpack.c.bf16 %v1177_v46, %v1177_v46  ;;  %v1180_v8 = vadd.f32 %v3981_v6, %v1179_v54  ;;  %v4246_v46 = vpop.f32.mrb[23].mxu1 }
 0x130   : > { %2771 = vst.msk [vmem:[%s3989_s9 + $0x88] sm:$0xf] %vm2736_vm3, %v3370_v56  ;;  %v2023_v13 = vadd.f32 %v2022_v4, %v2021_v2  ;;  %v1867_v63 = vmul.f32 %v1185_v37, %v1185_v37  ;;  %v1632_v14 = vadd.f32 %v1631_v58, %v1630_v62  ;;  %v3371_v5 = vpack.c.bf16 %v1188_v3, %v1188_v3 }
 0x131   : > { %v2024_v7 = vsel %vm1567_vm4, %v1865_v59, 0.0  ;;  %2769 = vst.msk [vmem:[%s3989_s9 + $0x80] sm:$0xf] %vm2736_vm3, %v3368_v60  ;;  %v1633_v16 = vsel %vm1567_vm4, %v1180_v8, 0.0  ;;  %v1866_v17 = vmul.f32 %v1180_v8, %v1180_v8  ;;  %v3369_v18 = vpack.c.bf16 %v1180_v8, %v1180_v8 }
 0x132   : > { %v2025_v22 = vadd.f32 %v2024_v7, %v2023_v13  ;;  %v1634_v24 = vadd.f32 %v1633_v16, %v1632_v14  ;;  %v1635_v29 = vsel %vm1567_vm4, %v1185_v37, 0.0  ;;  %v1868_v30 = vmul.f32 %v1188_v3, %v1188_v3  ;;  %2772 = vst.msk [vmem:[%s3989_s9 + $0x8c] sm:$0xf] %vm2736_vm3, %v3371_v5  ;;  %v4262_v14 = vpop.f32.mrb[24].mxu1 }
 0x133   : > { %v3572_v19 = vpop.f32.mrb[36].mxu0  ;;  %v2026_v31 = vsel %vm1567_vm4, %v1866_v17, 0.0  ;;  %2770 = vst.msk [vmem:[%s3989_s9 + $0x84] sm:$0xf] %vm2736_vm3, %v3369_v18  ;;  %v2028_v39 = vsel %vm1567_vm4, %v1867_v63, 0.0  ;;  %v1637_v42 = vsel %vm1567_vm4, %v1188_v3, 0.0  ;;  %v4259_v62 = vadd.f32 %v4090_v32, %v3981_v6 }
 0x134   : > { %v1201_v25 = vadd.f32 %v3572_v19, %v3981_v6  ;;  %v1192_v26 = vpop.f32.mrb[37].mxu0  ;;  %v1636_v43 = vadd.f32 %v1635_v29, %v1634_v24  ;;  %v2027_v37 = vadd.f32 %v2026_v31, %v2025_v22  ;;  %v2030_v58 = vsel %vm1567_vm4, %v1868_v30, 0.0  ;;  %v4266_v19 = vpop.f32.mrb[25].mxu1 }
 0x135   : > { %v1193_v33 = vadd.f32 %v3981_v6, %v1192_v26  ;;  %v3573_v35 = vpop.f32.mrb[38].mxu0  ;;  %v4276_v30 = vpop.f32.mrb[26].mxu1 }
 0x136   : > { %v1195_v45 = vpop.f32.mrb[39].mxu0  ;;  %v3374_v47 = vpack.c.bf16 %v1201_v25, %v1201_v25  ;;  %v1638_v53 = vadd.f32 %v1637_v42, %v1636_v43  ;;  %v2029_v54 = vadd.f32 %v2028_v39, %v2027_v37  ;;  %v1204_v56 = vadd.f32 %v3573_v35, %v3981_v6  ;;  %v4280_v43 = vpop.f32.mrb[27].mxu1 }
 0x137   : > { %v1639_v12 = vsel %vm1567_vm4, %v1193_v33, 0.0  ;;  %v1869_v49 = vmul.f32 %v1193_v33, %v1193_v33  ;;  %v3372_v52 = vpack.c.bf16 %v1193_v33, %v1193_v33  ;;  %v1196_v60 = vadd.f32 %v3981_v6, %v1195_v45 }
 0x138   : > { %2775 = vst.msk [vmem:[%s3989_s9 + $0x98] sm:$0xf] %vm2736_vm3, %v3374_v47  ;;  %v2031_v2 = vadd.f32 %v2030_v58, %v2029_v54  ;;  %v1871_v3 = vmul.f32 %v1201_v25, %v1201_v25  ;;  %v1640_v4 = vadd.f32 %v1639_v12, %v1638_v53  ;;  %v3375_v7 = vpack.c.bf16 %v1204_v56, %v1204_v56 }
 0x139   : > { %v2032_v59 = vsel %vm1567_vm4, %v1869_v49, 0.0  ;;  %2773 = vst.msk [vmem:[%s3989_s9 + $0x90] sm:$0xf] %vm2736_vm3, %v3372_v52  ;;  %v1641_v8 = vsel %vm1567_vm4, %v1196_v60, 0.0  ;;  %v1870_v11 = vmul.f32 %v1196_v60, %v1196_v60  ;;  %v3373_v13 = vpack.c.bf16 %v1196_v60, %v1196_v60 }
 0x13a   : > { %v1643_v5 = vsel %vm1567_vm4, %v1201_v25, 0.0  ;;  %v2033_v16 = vadd.f32 %v2032_v59, %v2031_v2  ;;  %v1642_v17 = vadd.f32 %v1641_v8, %v1640_v4  ;;  %v1872_v22 = vmul.f32 %v1204_v56, %v1204_v56  ;;  %2776 = vst.msk [vmem:[%s3989_s9 + $0x9c] sm:$0xf] %vm2736_vm3, %v3375_v7 }
 0x13b   : > { %v3576_v63 = vpop.f32.mrb[40].mxu0  ;;  %v2034_v24 = vsel %vm1567_vm4, %v1870_v11, 0.0  ;;  %2774 = vst.msk [vmem:[%s3989_s9 + $0x94] sm:$0xf] %vm2736_vm3, %v3373_v13  ;;  %v3406_v25 = vpack.c.bf16 %v4259_v62, %v4259_v62  ;;  %v2036_v31 = vsel %vm1567_vm4, %v1871_v3, 0.0  ;;  %v1645_v33 = vsel %vm1567_vm4, %v1204_v56, 0.0 }
 0x13c   : > { %v1217_v32 = vadd.f32 %v3576_v63, %v3981_v6  ;;  %v1208_v18 = vpop.f32.mrb[41].mxu0  ;;  %v1644_v35 = vadd.f32 %v1643_v5, %v1642_v17  ;;  %v2035_v39 = vadd.f32 %v2034_v24, %v2033_v16  ;;  %v2038_v54 = vsel %vm1567_vm4, %v1872_v22, 0.0  ;;  %v4298_v63 = vpop.f32.mrb[28].mxu1 }
 0x13d   : > { %v1209_v26 = vadd.f32 %v3981_v6, %v1208_v18  ;;  %v3577_v29 = vpop.f32.mrb[42].mxu0  ;;  %2807 = vst.msk [vmem:[%s3989_s9 + $0x118] sm:$0xf] %vm2736_vm3, %v3406_v25  ;;  %v4295_v59 = vadd.f32 %v3981_v6, %v4094_v38  ;;  %v4302_v22 = vpop.f32.mrb[29].mxu1 }
 0x13e   : > { %v1211_v42 = vpop.f32.mrb[43].mxu0  ;;  %v3378_v37 = vpack.c.bf16 %v1217_v32, %v1217_v32  ;;  %v1646_v49 = vadd.f32 %v1645_v33, %v1644_v35  ;;  %v2037_v52 = vadd.f32 %v2036_v31, %v2035_v39  ;;  %v1220_v53 = vadd.f32 %v3577_v29, %v3981_v6  ;;  %v4312_v31 = vpop.f32.mrb[30].mxu1 }
 0x13f   : > { %v1647_v45 = vsel %vm1567_vm4, %v1209_v26, 0.0  ;;  %v1873_v47 = vmul.f32 %v1209_v26, %v1209_v26  ;;  %v3376_v12 = vpack.c.bf16 %v1209_v26, %v1209_v26  ;;  %v1212_v58 = vadd.f32 %v3981_v6, %v1211_v42 }
 0x140   : > { %2779 = vst.msk [vmem:[%s3989_s9 + $0xa8] sm:$0xf] %vm2736_vm3, %v3378_v37  ;;  %v2039_v60 = vadd.f32 %v2038_v54, %v2037_v52  ;;  %v1875_v2 = vmul.f32 %v1217_v32, %v1217_v32  ;;  %v1648_v3 = vadd.f32 %v1647_v45, %v1646_v49  ;;  %v3379_v4 = vpack.c.bf16 %v1220_v53, %v1220_v53  ;;  %v4316_v45 = vpop.f32.mrb[31].mxu1 }
 0x141   : > { %v2040_v56 = vsel %vm1567_vm4, %v1873_v47, 0.0  ;;  %2777 = vst.msk [vmem:[%s3989_s9 + $0xa0] sm:$0xf] %vm2736_vm3, %v3376_v12  ;;  %v1649_v7 = vsel %vm1567_vm4, %v1212_v58, 0.0  ;;  %v1874_v8 = vmul.f32 %v1212_v58, %v1212_v58  ;;  %v3377_v11 = vpack.c.bf16 %v1212_v58, %v1212_v58 }
 0x142   : > { %v1651_v5 = vsel %vm1567_vm4, %v1217_v32, 0.0  ;;  %v2041_v16 = vadd.f32 %v2040_v56, %v2039_v60  ;;  %v1650_v17 = vadd.f32 %v1649_v7, %v1648_v3  ;;  %v1876_v24 = vmul.f32 %v1220_v53, %v1220_v53  ;;  %2780 = vst.msk [vmem:[%s3989_s9 + $0xac] sm:$0xf] %vm2736_vm3, %v3379_v4 }
 0x143   : > { %v3580_v13 = vpop.f32.mrb[44].mxu0  ;;  %v2042_v26 = vsel %vm1567_vm4, %v1874_v8, 0.0  ;;  %2778 = vst.msk [vmem:[%s3989_s9 + $0xa4] sm:$0xf] %vm2736_vm3, %v3377_v11  ;;  %v3404_v32 = vpack.c.bf16 %v4295_v59, %v4295_v59  ;;  %v2044_v33 = vsel %vm1567_vm4, %v1875_v2, 0.0  ;;  %v1653_v35 = vsel %vm1567_vm4, %v1220_v53, 0.0 }
 0x144   : > { %v1233_v38 = vadd.f32 %v3580_v13, %v3981_v6  ;;  %v1224_v18 = vpop.f32.mrb[45].mxu0  ;;  %v1652_v39 = vadd.f32 %v1651_v5, %v1650_v17  ;;  %v2043_v42 = vadd.f32 %v2042_v26, %v2041_v16  ;;  %v2046_v60 = vsel %vm1567_vm4, %v1876_v24, 0.0  ;;  %v4330_v17 = vpop.f32.mrb[32].mxu1 }
 0x145   : > { %v1225_v29 = vadd.f32 %v3981_v6, %v1224_v18  ;;  %v3581_v25 = vpop.f32.mrb[46].mxu0  ;;  %2805 = vst.msk [vmem:[%s3989_s9 + $0x110] sm:$0xf] %vm2736_vm3, %v3404_v32  ;;  %v4334_v32 = vpop.f32.mrb[33].mxu1 }
 0x146   : > { %v1227_v37 = vpop.f32.mrb[47].mxu0  ;;  %v3382_v47 = vpack.c.bf16 %v1233_v38, %v1233_v38  ;;  %v1654_v54 = vadd.f32 %v1653_v35, %v1652_v39  ;;  %v2045_v56 = vadd.f32 %v2044_v33, %v2043_v42  ;;  %v1236_v58 = vadd.f32 %v3581_v25, %v3981_v6 }
 0x147   : > { %v1655_v12 = vsel %vm1567_vm4, %v1225_v29, 0.0  ;;  %v1877_v49 = vmul.f32 %v1225_v29, %v1225_v29  ;;  %v3380_v52 = vpack.c.bf16 %v1225_v29, %v1225_v29  ;;  %v1228_v2 = vadd.f32 %v3981_v6, %v1227_v37  ;;  %v4346_v37 = vpop.f32.mrb[34].mxu1 }
 0x148   : > { %2783 = vst.msk [vmem:[%s3989_s9 + $0xb8] sm:$0xf] %vm2736_vm3, %v3382_v47  ;;  %v2047_v3 = vadd.f32 %v2046_v60, %v2045_v56  ;;  %v1879_v4 = vmul.f32 %v1233_v38, %v1233_v38  ;;  %v1656_v7 = vadd.f32 %v1655_v12, %v1654_v54  ;;  %v3383_v8 = vpack.c.bf16 %v1236_v58, %v1236_v58  ;;  %v4350_v56 = vpop.f32.mrb[35].mxu1 }
 0x149   : > { %v2048_v53 = vsel %vm1567_vm4, %v1877_v49, 0.0  ;;  %2781 = vst.msk [vmem:[%s3989_s9 + $0xb0] sm:$0xf] %vm2736_vm3, %v3380_v52  ;;  %v1657_v11 = vsel %vm1567_vm4, %v1228_v2, 0.0  ;;  %v1878_v13 = vmul.f32 %v1228_v2, %v1228_v2  ;;  %v3381_v5 = vpack.c.bf16 %v1228_v2, %v1228_v2 }
 0x14a   : > { %v1659_v18 = vsel %vm1567_vm4, %v1233_v38, 0.0  ;;  %v2049_v24 = vadd.f32 %v2048_v53, %v2047_v3  ;;  %v1658_v26 = vadd.f32 %v1657_v11, %v1656_v7  ;;  %v1880_v33 = vmul.f32 %v1236_v58, %v1236_v58  ;;  %2784 = vst.msk [vmem:[%s3989_s9 + $0xbc] sm:$0xf] %vm2736_vm3, %v3383_v8 }
 0x14b   : > { %v3584_v16 = vpop.f32.mrb[48].mxu0  ;;  %v2050_v35 = vsel %vm1567_vm4, %v1878_v13, 0.0  ;;  %2782 = vst.msk [vmem:[%s3989_s9 + $0xb4] sm:$0xf] %vm2736_vm3, %v3381_v5  ;;  %v4344_v38 = vadd.f32 %v4104_v44, %v3981_v6  ;;  %v2052_v47 = vsel %vm1567_vm4, %v1879_v4, 0.0  ;;  %v1661_v12 = vsel %vm1567_vm4, %v1236_v58, 0.0 }
 0x14c   : > { %v1249_v29 = vadd.f32 %v3584_v16, %v3981_v6  ;;  %v1240_v25 = vpop.f32.mrb[49].mxu0  ;;  %v1660_v49 = vadd.f32 %v1659_v18, %v1658_v26  ;;  %v2051_v52 = vadd.f32 %v2050_v35, %v2049_v24  ;;  %v2054_v4 = vsel %vm1567_vm4, %v1880_v33, 0.0 }
 0x14d   : > { %v1241_v39 = vadd.f32 %v3981_v6, %v1240_v25  ;;  %v3585_v42 = vpop.f32.mrb[50].mxu0  ;;  %v3407_v13 = vpack.c.bf16 %v4344_v38, %v4344_v38 }
 0x14e   : > { %v1243_v54 = vpop.f32.mrb[51].mxu0  ;;  %v3386_v60 = vpack.c.bf16 %v1249_v29, %v1249_v29  ;;  %v1662_v44 = vadd.f32 %v1661_v12, %v1660_v49  ;;  %v2053_v7 = vadd.f32 %v2052_v47, %v2051_v52  ;;  %v1252_v8 = vadd.f32 %v3585_v42, %v3981_v6  ;;  %v4371_v47 = vld [vmem:[%s5306_s2] ss:$0 sm:$0xff] }
 0x14f   : > { %v1663_v53 = vsel %vm1567_vm4, %v1241_v39, 0.0  ;;  %v1881_v2 = vmul.f32 %v1241_v39, %v1241_v39  ;;  %v3384_v3 = vpack.c.bf16 %v1241_v39, %v1241_v39  ;;  %v1244_v11 = vadd.f32 %v3981_v6, %v1243_v54  ;;  %2808 = vst.msk [vmem:[%s3989_s9 + $0x11c] sm:$0xf] %vm2736_vm3, %v3407_v13  ;;  %v4366_v39 = vpop.f32.mrb[36].mxu1 }
 0x150   : > { %2787 = vst.msk [vmem:[%s3989_s9 + $0xc8] sm:$0xf] %vm2736_vm3, %v3386_v60  ;;  %v2055_v5 = vadd.f32 %v2054_v4, %v2053_v7  ;;  %v1883_v16 = vmul.f32 %v1249_v29, %v1249_v29  ;;  %v1664_v18 = vadd.f32 %v1663_v53, %v1662_v44  ;;  %v3387_v24 = vpack.c.bf16 %v1252_v8, %v1252_v8  ;;  %v4378_v54 = vpop.f32.mrb[37].mxu1 }
 0x151   : > { %v2056_v58 = vsel %vm1567_vm4, %v1881_v2, 0.0  ;;  %2785 = vst.msk [vmem:[%s3989_s9 + $0xc0] sm:$0xf] %vm2736_vm3, %v3384_v3  ;;  %v1665_v26 = vsel %vm1567_vm4, %v1244_v11, 0.0  ;;  %v1882_v25 = vmul.f32 %v1244_v11, %v1244_v11  ;;  %v3385_v33 = vpack.c.bf16 %v1244_v11, %v1244_v11  ;;  %v4387_v7 = vpop.f32.mrb[38].mxu1 }
 0x152   : > { %v2057_v42 = vadd.f32 %v2056_v58, %v2055_v5  ;;  %v1666_v6 = vadd.f32 %v1665_v26, %v1664_v18  ;;  %v4376_v52 = vadd.f32 %v4371_v47, %v4108_v50  ;;  %v1667_v60 = vsel %vm1567_vm4, %v1249_v29, 0.0  ;;  %2788 = vst.msk [vmem:[%s3989_s9 + $0xcc] sm:$0xf] %vm2736_vm3, %v3387_v24  ;;  %v4391_v13 = vpop.f32.mrb[39].mxu1 }
 0x153   : > { %v3588_v35 = vpop.f32.mrb[52].mxu0  ;;  %v1884_v53 = vmul.f32 %v1252_v8, %v1252_v8  ;;  %v2058_v2 = vsel %vm1567_vm4, %v1882_v25, 0.0  ;;  %2786 = vst.msk [vmem:[%s3989_s9 + $0xc4] sm:$0xf] %vm2736_vm3, %v3385_v33  ;;  %v2060_v50 = vsel %vm1567_vm4, %v1883_v16, 0.0  ;;  %v1669_v4 = vsel %vm1567_vm4, %v1252_v8, 0.0 }
 0x154   : > { %v1265_v12 = vadd.f32 %v4371_v47, %v3588_v35  ;;  %v1256_v49 = vpop.f32.mrb[53].mxu0  ;;  %v1668_v58 = vadd.f32 %v1667_v60, %v1666_v6  ;;  %v2059_v29 = vadd.f32 %v2058_v2, %v2057_v42  ;;  %5310 = vst [vmem:[#allocation2_spill] sm:$0xff] %v4391_v13  ;;  %v3405_v6 = vpack.c.bf16 %v4376_v52, %v4376_v52 }
 0x155   : > { %v1257_v3 = vadd.f32 %v4371_v47, %v1256_v49  ;;  %v3589_v44 = vpop.f32.mrb[54].mxu0  ;;  %v2062_v16 = vsel %vm1567_vm4, %v1884_v53, 0.0 }
 0x156   : > { %v1259_v11 = vpop.f32.mrb[55].mxu0  ;;  %v3390_v5 = vpack.c.bf16 %v1265_v12, %v1265_v12  ;;  %v1670_v25 = vadd.f32 %v1669_v4, %v1668_v58  ;;  %v2061_v33 = vadd.f32 %v2060_v50, %v2059_v29  ;;  %v1268_v35 = vadd.f32 %v4371_v47, %v3589_v44  ;;  %2806 = vst.msk [vmem:[%s3989_s9 + $0x114] sm:$0xf] %vm2736_vm3, %v3405_v6  ;;  %v4407_v58 = vpop.f32.mrb[40].mxu1 }
 0x157   : > { %v1671_v18 = vsel %vm1567_vm4, %v1257_v3, 0.0  ;;  %v1885_v24 = vmul.f32 %v1257_v3, %v1257_v3  ;;  %v3388_v26 = vpack.c.bf16 %v1257_v3, %v1257_v3  ;;  %v1260_v42 = vadd.f32 %v4371_v47, %v1259_v11  ;;  %5311 = vst [vmem:[#allocation3_spill] sm:$0xff] %v4407_v58 }
 0x158   : > { %2791 = vst.msk [vmem:[%s3989_s9 + $0xd8] sm:$0xf] %vm2736_vm3, %v3390_v5  ;;  %v2063_v49 = vadd.f32 %v2062_v16, %v2061_v33  ;;  %v1887_v60 = vmul.f32 %v1265_v12, %v1265_v12  ;;  %v1672_v2 = vadd.f32 %v1671_v18, %v1670_v25  ;;  %v3391_v3 = vpack.c.bf16 %v1268_v35, %v1268_v35 }
 0x159   : > { %v2064_v8 = vsel %vm1567_vm4, %v1885_v24, 0.0  ;;  %2789 = vst.msk [vmem:[%s3989_s9 + $0xd0] sm:$0xf] %vm2736_vm3, %v3388_v26  ;;  %v1673_v44 = vsel %vm1567_vm4, %v1260_v42, 0.0  ;;  %v1886_v53 = vmul.f32 %v1260_v42, %v1260_v42  ;;  %v3389_v50 = vpack.c.bf16 %v1260_v42, %v1260_v42  ;;  %v4410_v26 = vpop.f32.mrb[41].mxu1 }
 0x15a   : > { %v2065_v29 = vadd.f32 %v2064_v8, %v2063_v49  ;;  %v1674_v11 = vadd.f32 %v1673_v44, %v1672_v2  ;;  %5312 = vst [vmem:[#allocation4_spill] sm:$0xff] %v4410_v26  ;;  %v1675_v18 = vsel %vm1567_vm4, %v1265_v12, 0.0  ;;  %v1888_v25 = vmul.f32 %v1268_v35, %v1268_v35  ;;  %2792 = vst.msk [vmem:[%s3989_s9 + $0xdc] sm:$0xf] %vm2736_vm3, %v3391_v3  ;;  %v4419_v8 = vpop.f32.mrb[42].mxu1 }
 0x15b   : > { %v3592_v4 = vpop.f32.mrb[56].mxu0  ;;  %v2066_v33 = vsel %vm1567_vm4, %v1886_v53, 0.0  ;;  %2790 = vst.msk [vmem:[%s3989_s9 + $0xd4] sm:$0xf] %vm2736_vm3, %v3389_v50  ;;  %5313 = vst [vmem:[#allocation5_spill] sm:$0xff] %v4419_v8  ;;  %v2068_v6 = vsel %vm1567_vm4, %v1887_v60, 0.0 }
 0x15c   : > { %v1281_v5 = vadd.f32 %v4371_v47, %v3592_v4  ;;  %v1272_v24 = vpop.f32.mrb[57].mxu0  ;;  %v1677_v49 = vsel %vm1567_vm4, %v1268_v35, 0.0  ;;  %v1676_v2 = vadd.f32 %v1675_v18, %v1674_v11  ;;  %v2067_v12 = vadd.f32 %v2066_v33, %v2065_v29  ;;  %v4423_v4 = vpop.f32.mrb[43].mxu1 }
 0x15d   : > { %v1273_v16 = vadd.f32 %v4371_v47, %v1272_v24  ;;  %v3593_v42 = vpop.f32.mrb[58].mxu0  ;;  %5314 = vst [vmem:[#allocation6_spill] sm:$0xff] %v4423_v4  ;;  %v2070_v8 = vsel %vm1567_vm4, %v1888_v25, 0.0  ;;  %v4436_v29 = vadd.f32 %v4371_v47, %v4126_v9 }
 0x15e   : > { %v1275_v44 = vpop.f32.mrb[59].mxu0  ;;  %v3394_v3 = vpack.c.bf16 %v1281_v5, %v1281_v5  ;;  %v1678_v24 = vadd.f32 %v1677_v49, %v1676_v2  ;;  %v2069_v58 = vadd.f32 %v2068_v6, %v2067_v12  ;;  %v1284_v13 = vadd.f32 %v4371_v47, %v3593_v42  ;;  %v4439_v2 = vpop.f32.mrb[44].mxu1 }
 0x15f   : > { %v1679_v53 = vsel %vm1567_vm4, %v1273_v16, 0.0  ;;  %v1889_v50 = vmul.f32 %v1273_v16, %v1273_v16  ;;  %v3392_v26 = vpack.c.bf16 %v1273_v16, %v1273_v16  ;;  %v1276_v60 = vadd.f32 %v4371_v47, %v1275_v44  ;;  %5315 = vst [vmem:[#allocation7_spill] sm:$0xff] %v4439_v2 }
 0x160   : > { %2795 = vst.msk [vmem:[%s3989_s9 + $0xe8] sm:$0xf] %vm2736_vm3, %v3394_v3  ;;  %v2071_v11 = vadd.f32 %v2070_v8, %v2069_v58  ;;  %v1891_v18 = vmul.f32 %v1281_v5, %v1281_v5  ;;  %v1680_v33 = vadd.f32 %v1679_v53, %v1678_v24  ;;  %v3395_v16 = vpack.c.bf16 %v1284_v13, %v1284_v13  ;;  %v4443_v58 = vpop.f32.mrb[45].mxu1 }
 0x161   : > { %v2072_v35 = vsel %vm1567_vm4, %v1889_v50, 0.0  ;;  %2793 = vst.msk [vmem:[%s3989_s9 + $0xe0] sm:$0xf] %vm2736_vm3, %v3392_v26  ;;  %v1681_v25 = vsel %vm1567_vm4, %v1276_v60, 0.0  ;;  %v1890_v42 = vmul.f32 %v1276_v60, %v1276_v60  ;;  %v3393_v6 = vpack.c.bf16 %v1276_v60, %v1276_v60  ;;  %5316 = vst [vmem:[#allocation8_spill] sm:$0xff] %v4443_v58 }
 0x162   : > { %v1683_v26 = vsel %vm1567_vm4, %v1281_v5, 0.0  ;;  %v2073_v12 = vadd.f32 %v2072_v35, %v2071_v11  ;;  %v1682_v44 = vadd.f32 %v1681_v25, %v1680_v33  ;;  %v1892_v8 = vmul.f32 %v1284_v13, %v1284_v13  ;;  %2796 = vst.msk [vmem:[%s3989_s9 + $0xec] sm:$0xf] %vm2736_vm3, %v3395_v16  ;;  %v4453_v35 = vpop.f32.mrb[46].mxu1 }
 0x163   : > { %v3596_v49 = vpop.f32.mrb[60].mxu0  ;;  %v2074_v53 = vsel %vm1567_vm4, %v1890_v42, 0.0  ;;  %2794 = vst.msk [vmem:[%s3989_s9 + $0xe4] sm:$0xf] %vm2736_vm3, %v3393_v6  ;;  %v3410_v5 = vpack.c.bf16 %v4436_v29, %v4436_v29  ;;  %5317 = vst [vmem:[#allocation9_spill] sm:$0xff] %v4453_v35  ;;  %v2076_v60 = vsel %vm1567_vm4, %v1891_v18, 0.0 }
 0x164   : > { %v1297_v9 = vadd.f32 %v4371_v47, %v3596_v49  ;;  %v1288_v3 = vpop.f32.mrb[61].mxu0  ;;  %v1685_v11 = vsel %vm1567_vm4, %v1284_v13, 0.0  ;;  %v1684_v33 = vadd.f32 %v1683_v26, %v1682_v44  ;;  %v2075_v16 = vadd.f32 %v2074_v53, %v2073_v12  ;;  %v4457_v42 = vpop.f32.mrb[47].mxu1 }
 0x165   : > { %v1289_v50 = vadd.f32 %v4371_v47, %v1288_v3  ;;  %v3597_v24 = vpop.f32.mrb[62].mxu0  ;;  %2811 = vst.msk [vmem:[%s3989_s9 + $0x128] sm:$0xf] %vm2736_vm3, %v3410_v5  ;;  %v2078_v18 = vsel %vm1567_vm4, %v1892_v8, 0.0  ;;  %v4472_v12 = vadd.f32 %v4371_v47, %v4130_v15  ;;  %v1897_v8 = vmul.f32 %v4123_v61, %v4123_v61 }
 0x166   : > { %v1291_v25 = vpop.f32.mrb[63].mxu0  ;;  %v3398_v6 = vpack.c.bf16 %v1297_v9, %v1297_v9  ;;  %v1686_v2 = vadd.f32 %v1685_v11, %v1684_v33  ;;  %v2077_v35 = vadd.f32 %v2076_v60, %v2075_v16  ;;  %v1300_v4 = vadd.f32 %v4371_v47, %v3597_v24 }
 0x167   : > { %v1687_v49 = vsel %vm1567_vm4, %v1289_v50, 0.0  ;;  %v1893_v3 = vmul.f32 %v1289_v50, %v1289_v50  ;;  %v3396_v58 = vpack.c.bf16 %v1289_v50, %v1289_v50  ;;  %v1292_v26 = vadd.f32 %v4371_v47, %v1291_v25 }
 0x168   : > { %2799 = vst.msk [vmem:[%s3989_s9 + $0xf8] sm:$0xf] %vm2736_vm3, %v3398_v6  ;;  %v2079_v44 = vadd.f32 %v2078_v18, %v2077_v35  ;;  %v1895_v53 = vmul.f32 %v1297_v9, %v1297_v9  ;;  %v1688_v50 = vadd.f32 %v1687_v49, %v1686_v2  ;;  %v3399_v24 = vpack.c.bf16 %v1300_v4, %v1300_v4 }
 0x169   : > { %v2080_v13 = vsel %vm1567_vm4, %v1893_v3, 0.0  ;;  %2797 = vst.msk [vmem:[%s3989_s9 + $0xf0] sm:$0xf] %vm2736_vm3, %v3396_v58  ;;  %v1689_v5 = vsel %vm1567_vm4, %v1292_v26, 0.0  ;;  %v1894_v60 = vmul.f32 %v1292_v26, %v1292_v26  ;;  %v3397_v11 = vpack.c.bf16 %v1292_v26, %v1292_v26  ;;  %v4477_v58 = vpop.f32.mrb[48].mxu1 }
 0x16a   : > { %v1691_v33 = vsel %vm1567_vm4, %v1297_v9, 0.0  ;;  %v2081_v16 = vadd.f32 %v2080_v13, %v2079_v44  ;;  %v1896_v25 = vmul.f32 %v1300_v4, %v1300_v4  ;;  %v1690_v15 = vadd.f32 %v1689_v5, %v1688_v50  ;;  %v4480_v35 = vpop.f32.mrb[49].mxu1  ;;  %2800 = vst.msk [vmem:[%s3989_s9 + $0xfc] sm:$0xf] %vm2736_vm3, %v3399_v24 }
 0x16b   : > { %v2082_v2 = vsel %vm1567_vm4, %v1894_v60, 0.0  ;;  %2798 = vst.msk [vmem:[%s3989_s9 + $0xf4] sm:$0xf] %vm2736_vm3, %v3397_v11  ;;  %v3408_v6 = vpack.c.bf16 %v4472_v12, %v4472_v12  ;;  %v4491_v49 = vadd.f32 %v4371_v47, %v4140_v21  ;;  %v4495_v9 = vadd.f32 %v4371_v47, %v4144_v28  ;;  %v4497_v3 = vpop.f32.mrb[50].mxu1 }
 0x16c   : > { %v1692_v18 = vadd.f32 %v1691_v33, %v1690_v15  ;;  %v2083_v13 = vadd.f32 %v2082_v2, %v2081_v16  ;;  %v1695_v26 = vsel %vm1567_vm4, %v4123_v61, 0.0  ;;  %v4503_v44 = vadd.f32 %v4371_v47, %v4158_v51  ;;  %v4505_v50 = vpop.f32.mrb[51].mxu1 }
 0x16d   : > { %v2084_v21 = vsel %vm1567_vm4, %v1895_v53, 0.0  ;;  %v1693_v24 = vsel %vm1567_vm4, %v1300_v4, 0.0  ;;  %2809 = vst.msk [vmem:[%s3989_s9 + $0x120] sm:$0xf] %vm2736_vm3, %v3408_v6  ;;  %v3411_v28 = vpack.c.bf16 %v4491_v49, %v4491_v49  ;;  %v4515_v5 = vadd.f32 %v4371_v47, %v4162_v57 }
 0x16e   : > { %v1694_v61 = vadd.f32 %v1693_v24, %v1692_v18  ;;  %v2085_v51 = vadd.f32 %v2084_v21, %v2083_v13  ;;  %v3409_v60 = vpack.c.bf16 %v4495_v9, %v4495_v9  ;;  %v2086_v53 = vsel %vm1567_vm4, %v1896_v25, 0.0  ;;  %v4545_v13 = vpop.f32.mrb[52].mxu1 }
 0x16f   : > { %v2088_v4 = vsel %vm1567_vm4, %v1897_v8, 0.0  ;;  %v1898_v11 = vmul.f32 %v4199_v40, %v4199_v40  ;;  %2812 = vst.msk [vmem:[%s3989_s9 + $0x12c] sm:$0xf] %vm2736_vm3, %v3411_v28  ;;  %v3414_v33 = vpack.c.bf16 %v4503_v44, %v4503_v44  ;;  %v1899_v16 = vmul.f32 %v4087_v23, %v4087_v23  ;;  %v4555_v28 = vpop.f32.mrb[53].mxu1 }
 0x170   : > { %v2087_v57 = vadd.f32 %v2086_v53, %v2085_v51  ;;  %v1696_v15 = vadd.f32 %v1695_v26, %v1694_v61  ;;  %v1900_v2 = vmul.f32 %v4172_v0, %v4172_v0  ;;  %2810 = vst.msk [vmem:[%s3989_s9 + $0x124] sm:$0xf] %vm2736_vm3, %v3409_v60  ;;  %v1697_v8 = vsel %vm1567_vm4, %v4199_v40, 0.0  ;;  %v4564_v60 = vpop.f32.mrb[54].mxu1 }
 0x171   : > { %v1901_v25 = vmul.f32 %v4295_v59, %v4295_v59  ;;  %2815 = vst.msk [vmem:[%s3989_s9 + $0x138] sm:$0xf] %vm2736_vm3, %v3414_v33  ;;  %v3412_v6 = vpack.c.bf16 %v4515_v5, %v4515_v5  ;;  %v4543_v18 = vadd.f32 %v4371_v47, %v4174_v1  ;;  %v4549_v40 = vadd.f32 %v4371_v47, %v4178_v10 }
 0x172   : > { %v2089_v26 = vadd.f32 %v2088_v4, %v2087_v57  ;;  %v1698_v21 = vadd.f32 %v1697_v8, %v1696_v15  ;;  %v4553_v24 = vadd.f32 %v4371_v47, %v4194_v34  ;;  %v1699_v61 = vsel %vm1567_vm4, %v4087_v23, 0.0  ;;  %v4567_v4 = vpop.f32.mrb[55].mxu1 }
 0x173   : > { %v2090_v1 = vsel %vm1567_vm4, %v1898_v11, 0.0  ;;  %2813 = vst.msk [vmem:[%s3989_s9 + $0x130] sm:$0xf] %vm2736_vm3, %v3412_v6  ;;  %v3415_v51 = vpack.c.bf16 %v4543_v18, %v4543_v18  ;;  %v2092_v10 = vsel %vm1567_vm4, %v1899_v16, 0.0  ;;  %v1701_v33 = vsel %vm1567_vm4, %v4172_v0, 0.0 }
 0x174   : > { %v1700_v53 = vadd.f32 %v1699_v61, %v1698_v21  ;;  %v2091_v34 = vadd.f32 %v2090_v1, %v2089_v26  ;;  %v2094_v23 = vsel %vm1567_vm4, %v1900_v2, 0.0  ;;  %v1703_v11 = vsel %vm1567_vm4, %v4295_v59, 0.0 }
 0x175   : > { %2816 = vst.msk [vmem:[%s3989_s9 + $0x13c] sm:$0xf] %vm2736_vm3, %v3415_v51  ;;  %v3413_v57 = vpack.c.bf16 %v4549_v40, %v4549_v40  ;;  %v2096_v8 = vsel %vm1567_vm4, %v1901_v25, 0.0  ;;  %v3418_v6 = vpack.c.bf16 %v4553_v24, %v4553_v24  ;;  %v1902_v0 = vmul.f32 %v4376_v52, %v4376_v52 }
 0x176   : > { %v2093_v15 = vadd.f32 %v2092_v10, %v2091_v34  ;;  %v1702_v16 = vadd.f32 %v1701_v33, %v1700_v53  ;;  %v4587_v59 = vadd.f32 %v4371_v47, %v4201_v41  ;;  %v4591_v2 = vadd.f32 %v4371_v47, %v4210_v48  ;;  %v4613_v10 = vpop.f32.mrb[56].mxu1 }
 0x177   : > { %2814 = vst.msk [vmem:[%s3989_s9 + $0x134] sm:$0xf] %vm2736_vm3, %v3413_v57  ;;  %v4595_v26 = vadd.f32 %v4371_v47, %v4214_v55  ;;  %v1903_v25 = vmul.f32 %v4259_v62, %v4259_v62  ;;  %v1904_v1 = vmul.f32 %v4344_v38, %v4344_v38  ;;  %2819 = vst.msk [vmem:[%s3989_s9 + $0x148] sm:$0xf] %vm2736_vm3, %v3418_v6  ;;  %v1705_v41 = vsel %vm1567_vm4, %v4376_v52, 0.0 }
 0x178   : > { %v1704_v21 = vadd.f32 %v1703_v11, %v1702_v16  ;;  %v2095_v61 = vadd.f32 %v2094_v23, %v2093_v15  ;;  %v1905_v48 = vmul.f32 %v4472_v12, %v4472_v12  ;;  %v3416_v55 = vpack.c.bf16 %v4587_v59, %v4587_v59  ;;  %v4621_v23 = vpop.f32.mrb[57].mxu1 }
 0x179   : > { %v4611_v51 = vadd.f32 %v4371_v47, %v4230_v20  ;;  %v3419_v33 = vpack.c.bf16 %v4591_v2, %v4591_v2  ;;  %v4619_v52 = vadd.f32 %v4371_v47, %v4233_v27  ;;  %v1707_v11 = vsel %vm1567_vm4, %v4259_v62, 0.0  ;;  %v4630_v15 = vpop.f32.mrb[58].mxu1 }
 0x17a   : > { %v2097_v53 = vadd.f32 %v2096_v8, %v2095_v61  ;;  %v1706_v34 = vadd.f32 %v1705_v41, %v1704_v21  ;;  %v2098_v20 = vsel %vm1567_vm4, %v1902_v0, 0.0  ;;  %2817 = vst.msk [vmem:[%s3989_s9 + $0x140] sm:$0xf] %vm2736_vm3, %v3416_v55  ;;  %v3417_v57 = vpack.c.bf16 %v4595_v26, %v4595_v26  ;;  %v4635_v6 = vpop.f32.mrb[59].mxu1 }
 0x17b   : > { %v2100_v16 = vsel %vm1567_vm4, %v1903_v25, 0.0  ;;  %2820 = vst.msk [vmem:[%s3989_s9 + $0x14c] sm:$0xf] %vm2736_vm3, %v3419_v33  ;;  %v1709_v62 = vsel %vm1567_vm4, %v4344_v38, 0.0  ;;  %v2102_v0 = vsel %vm1567_vm4, %v1904_v1, 0.0  ;;  %v1711_v21 = vsel %vm1567_vm4, %v4472_v12, 0.0 }
 0x17c   : > { %v1708_v8 = vadd.f32 %v1707_v11, %v1706_v34  ;;  %v2099_v27 = vadd.f32 %v2098_v20, %v2097_v53  ;;  %2818 = vst.msk [vmem:[%s3989_s9 + $0x144] sm:$0xf] %vm2736_vm3, %v3417_v57  ;;  %v3422_v25 = vpack.c.bf16 %v4611_v51, %v4611_v51  ;;  %v2104_v55 = vsel %vm1567_vm4, %v1905_v48, 0.0 }
 0x17d   : > { %v3420_v53 = vpack.c.bf16 %v4619_v52, %v4619_v52  ;;  %v1906_v38 = vmul.f32 %v4495_v9, %v4495_v9  ;;  %v4655_v12 = vadd.f32 %v4371_v47, %v4242_v36  ;;  %v4659_v1 = vadd.f32 %v4371_v47, %v4246_v46 }
 0x17e   : > { %v2101_v61 = vadd.f32 %v2100_v16, %v2099_v27  ;;  %v1710_v41 = vadd.f32 %v1709_v62, %v1708_v8  ;;  %2823 = vst.msk [vmem:[%s3989_s9 + $0x158] sm:$0xf] %vm2736_vm3, %v3422_v25  ;;  %v4663_v34 = vadd.f32 %v4371_v47, %v4262_v14  ;;  %v1907_v48 = vmul.f32 %v4436_v29, %v4436_v29  ;;  %v4677_v14 = vpop.f32.mrb[60].mxu1 }
 0x17f   : > { %2821 = vst.msk [vmem:[%s3989_s9 + $0x150] sm:$0xf] %vm2736_vm3, %v3420_v53  ;;  %v1713_v36 = vsel %vm1567_vm4, %v4495_v9, 0.0  ;;  %v3423_v20 = vpack.c.bf16 %v4655_v12, %v4655_v12  ;;  %v4675_v46 = vadd.f32 %v4371_v47, %v4266_v19  ;;  %v1715_v57 = vsel %vm1567_vm4, %v4436_v29, 0.0  ;;  %v4683_v9 = vpop.f32.mrb[61].mxu1 }
 0x180   : > { %v1712_v33 = vadd.f32 %v1711_v21, %v1710_v41  ;;  %v2103_v11 = vadd.f32 %v2102_v0, %v2101_v61  ;;  %v3421_v27 = vpack.c.bf16 %v4659_v1, %v4659_v1  ;;  %v1908_v62 = vmul.f32 %v4491_v49, %v4491_v49  ;;  %v4694_v21 = vpop.f32.mrb[62].mxu1 }
 0x181   : > { %v2106_v19 = vsel %vm1567_vm4, %v1906_v38, 0.0  ;;  %v1909_v0 = vmul.f32 %v4515_v5, %v4515_v5  ;;  %2824 = vst.msk [vmem:[%s3989_s9 + $0x15c] sm:$0xf] %vm2736_vm3, %v3423_v20  ;;  %v3426_v29 = vpack.c.bf16 %v4663_v34, %v4663_v34  ;;  %v2108_v25 = vsel %vm1567_vm4, %v1907_v48, 0.0  ;;  %v4701_v53 = vpop.f32.mrb[63].mxu1 }
 0x182   : > { %v2105_v16 = vadd.f32 %v2104_v55, %v2103_v11  ;;  %v1714_v8 = vadd.f32 %v1713_v36, %v1712_v33  ;;  %v1717_v61 = vsel %vm1567_vm4, %v4491_v49, 0.0  ;;  %2822 = vst.msk [vmem:[%s3989_s9 + $0x154] sm:$0xf] %vm2736_vm3, %v3421_v27  ;;  %v1719_v38 = vsel %vm1567_vm4, %v4515_v5, 0.0 }
 0x183   : > { %v1910_v33 = vmul.f32 %v4549_v40, %v4549_v40  ;;  %2827 = vst.msk [vmem:[%s3989_s9 + $0x168] sm:$0xf] %vm2736_vm3, %v3426_v29  ;;  %v3424_v48 = vpack.c.bf16 %v4675_v46, %v4675_v46  ;;  %v4713_v49 = vadd.f32 %v4371_v47, %v4276_v30  ;;  %v4717_v20 = vadd.f32 %v4371_v47, %v4280_v43 }
 0x184   : > { %v1716_v41 = vadd.f32 %v1715_v57, %v1714_v8  ;;  %v2107_v55 = vadd.f32 %v2106_v19, %v2105_v16  ;;  %v4721_v5 = vadd.f32 %v4371_v47, %v4298_v63  ;;  %v2110_v57 = vsel %vm1567_vm4, %v1908_v62, 0.0 }
 0x185   : > { %v2112_v16 = vsel %vm1567_vm4, %v1909_v0, 0.0  ;;  %2825 = vst.msk [vmem:[%s3989_s9 + $0x160] sm:$0xf] %vm2736_vm3, %v3424_v48  ;;  %v3427_v30 = vpack.c.bf16 %v4713_v49, %v4713_v49  ;;  %v1911_v8 = vmul.f32 %v4503_v44, %v4503_v44  ;;  %v1723_v19 = vsel %vm1567_vm4, %v4503_v44, 0.0 }
 0x186   : > { %v2109_v11 = vadd.f32 %v2108_v25, %v2107_v55  ;;  %v1718_v36 = vadd.f32 %v1717_v61, %v1716_v41  ;;  %v1912_v63 = vmul.f32 %v4543_v18, %v4543_v18  ;;  %v1721_v62 = vsel %vm1567_vm4, %v4549_v40, 0.0 }
 0x187   : > { %2828 = vst.msk [vmem:[%s3989_s9 + $0x16c] sm:$0xf] %vm2736_vm3, %v3427_v30  ;;  %v3425_v0 = vpack.c.bf16 %v4717_v20, %v4717_v20  ;;  %v2114_v61 = vsel %vm1567_vm4, %v1910_v33, 0.0  ;;  %v3430_v41 = vpack.c.bf16 %v4721_v5, %v4721_v5  ;;  %v1913_v44 = vmul.f32 %v4587_v59, %v4587_v59 }
 0x188   : > { %v1720_v27 = vadd.f32 %v1719_v38, %v1718_v36  ;;  %v2111_v43 = vadd.f32 %v2110_v57, %v2109_v11  ;;  %v4750_v40 = vadd.f32 %v4371_v47, %v4302_v22  ;;  %v4754_v55 = vadd.f32 %v4371_v47, %v4312_v31 }
 0x189   : > { %2826 = vst.msk [vmem:[%s3989_s9 + $0x164] sm:$0xf] %vm2736_vm3, %v3425_v0  ;;  %v4758_v38 = vadd.f32 %v4371_v47, %v4316_v45  ;;  %v2116_v33 = vsel %vm1567_vm4, %v1911_v8, 0.0  ;;  %v1725_v48 = vsel %vm1567_vm4, %v4543_v18, 0.0  ;;  %2831 = vst.msk [vmem:[%s3989_s9 + $0x178] sm:$0xf] %vm2736_vm3, %v3430_v41  ;;  %v1914_v31 = vmul.f32 %v4595_v26, %v4595_v26 }
 0x18a   : > { %v2113_v29 = vadd.f32 %v2112_v16, %v2111_v43  ;;  %v1722_v25 = vadd.f32 %v1721_v62, %v1720_v27  ;;  %v1727_v22 = vsel %vm1567_vm4, %v4587_v59, 0.0  ;;  %v3428_v45 = vpack.c.bf16 %v4750_v40, %v4750_v40 }
 0x18b   : > { %v4773_v57 = vadd.f32 %v4371_v47, %v4330_v17  ;;  %v3431_v30 = vpack.c.bf16 %v4754_v55, %v4754_v55  ;;  %v4779_v8 = vadd.f32 %v4371_v47, %v4334_v32  ;;  %v2118_v59 = vsel %vm1567_vm4, %v1912_v63, 0.0 }
 0x18c   : > { %v1724_v11 = vadd.f32 %v1723_v19, %v1722_v25  ;;  %v2115_v36 = vadd.f32 %v2114_v61, %v2113_v29  ;;  %v2120_v27 = vsel %vm1567_vm4, %v1913_v44, 0.0  ;;  %2829 = vst.msk [vmem:[%s3989_s9 + $0x170] sm:$0xf] %vm2736_vm3, %v3428_v45  ;;  %v3429_v17 = vpack.c.bf16 %v4758_v38, %v4758_v38 }
 0x18d   : > { %v1915_v43 = vmul.f32 %v4553_v24, %v4553_v24  ;;  %2832 = vst.msk [vmem:[%s3989_s9 + $0x17c] sm:$0xf] %vm2736_vm3, %v3431_v30  ;;  %v1731_v32 = vsel %vm1567_vm4, %v4553_v24, 0.0  ;;  %v1916_v63 = vmul.f32 %v4591_v2, %v4591_v2  ;;  %v1729_v0 = vsel %vm1567_vm4, %v4595_v26, 0.0 }
 0x18e   : > { %v2117_v18 = vadd.f32 %v2116_v33, %v2115_v36  ;;  %v1726_v16 = vadd.f32 %v1725_v48, %v1724_v11  ;;  %2830 = vst.msk [vmem:[%s3989_s9 + $0x174] sm:$0xf] %vm2736_vm3, %v3429_v17  ;;  %v3434_v29 = vpack.c.bf16 %v4773_v57, %v4773_v57  ;;  %v2122_v41 = vsel %vm1567_vm4, %v1914_v31, 0.0 }
 0x18f   : > { %v3432_v44 = vpack.c.bf16 %v4779_v8, %v4779_v8  ;;  %v1917_v24 = vmul.f32 %v4619_v52, %v4619_v52  ;;  %v4810_v26 = vadd.f32 %v4371_v47, %v4346_v37  ;;  %v4814_v33 = vadd.f32 %v4371_v47, %v4350_v56 }
 0x190   : > { %v1728_v19 = vadd.f32 %v1727_v22, %v1726_v16  ;;  %v2119_v62 = vadd.f32 %v2118_v59, %v2117_v18  ;;  %2835 = vst.msk [vmem:[%s3989_s9 + $0x188] sm:$0xf] %vm2736_vm3, %v3434_v29  ;;  %v4818_v48 = vadd.f32 %v4371_v47, %v4366_v39  ;;  %v2124_v11 = vsel %vm1567_vm4, %v1915_v43, 0.0 }
 0x191   : > { %2833 = vst.msk [vmem:[%s3989_s9 + $0x180] sm:$0xf] %vm2736_vm3, %v3432_v44  ;;  %v1733_v31 = vsel %vm1567_vm4, %v4591_v2, 0.0  ;;  %v1735_v37 = vsel %vm1567_vm4, %v4619_v52, 0.0  ;;  %v3435_v56 = vpack.c.bf16 %v4810_v26, %v4810_v26  ;;  %v4831_v39 = vadd.f32 %v4371_v47, %v4378_v54 }
 0x192   : > { %v2121_v25 = vadd.f32 %v2120_v27, %v2119_v62  ;;  %v1730_v61 = vadd.f32 %v1729_v0, %v1728_v19  ;;  %v3433_v16 = vpack.c.bf16 %v4814_v33, %v4814_v33  ;;  %v2126_v30 = vsel %vm1567_vm4, %v1916_v63, 0.0 }
 0x193   : > { %v2128_v2 = vsel %vm1567_vm4, %v1917_v24, 0.0  ;;  %v1918_v52 = vmul.f32 %v4659_v1, %v4659_v1  ;;  %2836 = vst.msk [vmem:[%s3989_s9 + $0x18c] sm:$0xf] %vm2736_vm3, %v3435_v56  ;;  %v3438_v59 = vpack.c.bf16 %v4818_v48, %v4818_v48  ;;  %v1919_v54 = vmul.f32 %v4611_v51, %v4611_v51 }
 0x194   : > { %v1732_v36 = vadd.f32 %v1731_v32, %v1730_v61  ;;  %v2123_v22 = vadd.f32 %v2122_v41, %v2121_v25  ;;  %v1920_v43 = vmul.f32 %v4655_v12, %v4655_v12  ;;  %2834 = vst.msk [vmem:[%s3989_s9 + $0x184] sm:$0xf] %vm2736_vm3, %v3433_v16  ;;  %v1737_v19 = vsel %vm1567_vm4, %v4659_v1, 0.0  ;;  %v5318_v25 = vld [vmem:[#allocation2_spill] sm:$0xff]  ;;  %v5319_v1 = vld [vmem:[#allocation3_spill] sm:$0xff] }
 0x195   : > { %v1921_v62 = vmul.f32 %v4675_v46, %v4675_v46  ;;  %2839 = vst.msk [vmem:[%s3989_s9 + $0x198] sm:$0xf] %vm2736_vm3, %v3438_v59  ;;  %v3436_v32 = vpack.c.bf16 %v4831_v39, %v4831_v39  ;;  %v4859_v63 = vadd.f32 %v4371_v47, %v4387_v7  ;;  %v4863_v61 = vadd.f32 %v4371_v47, %v5318_v25  ;;  %v5323_v25 = vld [vmem:[#allocation7_spill] sm:$0xff] }
 0x196   : > { %v2125_v45 = vadd.f32 %v2124_v11, %v2123_v22  ;;  %v1734_v18 = vadd.f32 %v1733_v31, %v1732_v36  ;;  %v4867_v41 = vadd.f32 %v4371_v47, %v5319_v1  ;;  %v1739_v44 = vsel %vm1567_vm4, %v4611_v51, 0.0 }
 0x197   : > { %v2130_v24 = vsel %vm1567_vm4, %v1918_v52, 0.0  ;;  %2837 = vst.msk [vmem:[%s3989_s9 + $0x190] sm:$0xf] %vm2736_vm3, %v3436_v32  ;;  %v3439_v7 = vpack.c.bf16 %v4859_v63, %v4859_v63  ;;  %v2132_v11 = vsel %vm1567_vm4, %v1919_v54, 0.0  ;;  %v1741_v31 = vsel %vm1567_vm4, %v4655_v12, 0.0  ;;  %v5321_v52 = vld [vmem:[#allocation5_spill] sm:$0xff] }
 0x198   : > { %v1736_v27 = vadd.f32 %v1735_v37, %v1734_v18  ;;  %v2127_v17 = vadd.f32 %v2126_v30, %v2125_v45  ;;  %v2134_v37 = vsel %vm1567_vm4, %v1920_v43, 0.0  ;;  %v1743_v51 = vsel %vm1567_vm4, %v4675_v46, 0.0  ;;  %v5322_v54 = vld [vmem:[#allocation6_spill] sm:$0xff] }
 0x199   : > { %2840 = vst.msk [vmem:[%s3989_s9 + $0x19c] sm:$0xf] %vm2736_vm3, %v3439_v7  ;;  %v3437_v56 = vpack.c.bf16 %v4863_v61, %v4863_v61  ;;  %v2136_v16 = vsel %vm1567_vm4, %v1921_v62, 0.0  ;;  %v3442_v30 = vpack.c.bf16 %v4867_v41, %v4867_v41  ;;  %v1922_v12 = vmul.f32 %v4717_v20, %v4717_v20 }
 0x19a   : > { %v2129_v0 = vadd.f32 %v2128_v2, %v2127_v17  ;;  %v1738_v29 = vadd.f32 %v1737_v19, %v1736_v27  ;;  %v5320_v2 = vld [vmem:[#allocation4_spill] sm:$0xff]  ;;  %v4899_v59 = vadd.f32 %v4371_v47, %v5321_v52  ;;  %v4903_v27 = vadd.f32 %v4371_v47, %v5322_v54  ;;  %v5325_v54 = vld [vmem:[#allocation9_spill] sm:$0xff] }
 0x19b   : > { %2838 = vst.msk [vmem:[%s3989_s9 + $0x194] sm:$0xf] %vm2736_vm3, %v3437_v56  ;;  %v4895_v46 = vadd.f32 %v4371_v47, %v5320_v2  ;;  %v1923_v17 = vmul.f32 %v4663_v34, %v4663_v34  ;;  %v1924_v62 = vmul.f32 %v4713_v49, %v4713_v49  ;;  %2843 = vst.msk [vmem:[%s3989_s9 + $0x1a8] sm:$0xf] %vm2736_vm3, %v3442_v30  ;;  %v1745_v32 = vsel %vm1567_vm4, %v4717_v20, 0.0 }
 0x19c   : > { %v1740_v36 = vadd.f32 %v1739_v44, %v1738_v29  ;;  %v2131_v22 = vadd.f32 %v2130_v24, %v2129_v0  ;;  %v1925_v0 = vmul.f32 %v4750_v40, %v4750_v40  ;;  %v4919_v1 = vadd.f32 %v4371_v47, %v5323_v25 }
 0x19d   : > { %v3440_v29 = vpack.c.bf16 %v4895_v46, %v4895_v46  ;;  %v3443_v7 = vpack.c.bf16 %v4899_v59, %v4899_v59  ;;  %v1747_v20 = vsel %vm1567_vm4, %v4663_v34, 0.0  ;;  %v1751_v34 = vsel %vm1567_vm4, %v4750_v40, 0.0 }
 0x19e   : > { %v2133_v45 = vadd.f32 %v2132_v11, %v2131_v22  ;;  %v1742_v18 = vadd.f32 %v1741_v31, %v1740_v36  ;;  %v5324_v11 = vld [vmem:[#allocation8_spill] sm:$0xff]  ;;  %v2138_v22 = vsel %vm1567_vm4, %v1922_v12, 0.0  ;;  %v3441_v31 = vpack.c.bf16 %v4903_v27, %v4903_v27 }
 0x19f   : > { %v4925_v36 = vadd.f32 %v4371_v47, %v5324_v11  ;;  %2841 = vst.msk [vmem:[%s3989_s9 + $0x1a0] sm:$0xf] %vm2736_vm3, %v3440_v29  ;;  %2844 = vst.msk [vmem:[%s3989_s9 + $0x1ac] sm:$0xf] %vm2736_vm3, %v3443_v7  ;;  %v2144_v2 = vsel %vm1567_vm4, %v1925_v0, 0.0  ;;  %v4955_v40 = vadd.f32 %v4371_v47, %v5325_v54  ;;  %v1753_v0 = vsel %vm1567_vm4, %v4758_v38, 0.0 }
 0x1a0   : > { %v1744_v43 = vadd.f32 %v1743_v51, %v1742_v18  ;;  %v2135_v19 = vadd.f32 %v2134_v37, %v2133_v45  ;;  %v2140_v37 = vsel %vm1567_vm4, %v1923_v17, 0.0  ;;  %v1749_v45 = vsel %vm1567_vm4, %v4713_v49, 0.0  ;;  %2842 = vst.msk [vmem:[%s3989_s9 + $0x1a4] sm:$0xf] %vm2736_vm3, %v3441_v31 }
 0x1a1   : > { %v2142_v18 = vsel %vm1567_vm4, %v1924_v62, 0.0  ;;  %v3444_v52 = vpack.c.bf16 %v4925_v36, %v4925_v36  ;;  %v1926_v49 = vmul.f32 %v4758_v38, %v4758_v38  ;;  %v4959_v17 = vadd.f32 %v4371_v47, %v4457_v42 }
 0x1a2   : > { %v2137_v44 = vadd.f32 %v2136_v16, %v2135_v19  ;;  %v1746_v24 = vadd.f32 %v1745_v32, %v1744_v43  ;;  %v3446_v16 = vpack.c.bf16 %v4919_v1, %v4919_v1  ;;  %v4963_v43 = vadd.f32 %v4371_v47, %v4477_v58 }
 0x1a3   : > { %v1927_v19 = vmul.f32 %v4721_v5, %v4721_v5  ;;  %2845 = vst.msk [vmem:[%s3989_s9 + $0x1b0] sm:$0xf] %vm2736_vm3, %v3444_v52  ;;  %v3447_v42 = vpack.c.bf16 %v4955_v40, %v4955_v40  ;;  %v4975_v29 = vadd.f32 %v4371_v47, %v4480_v35  ;;  %v1755_v58 = vsel %vm1567_vm4, %v4721_v5, 0.0 }
 0x1a4   : > { %v1748_v51 = vadd.f32 %v1747_v20, %v1746_v24  ;;  %v2139_v56 = vadd.f32 %v2138_v22, %v2137_v44  ;;  %2847 = vst.msk [vmem:[%s3989_s9 + $0x1b8] sm:$0xf] %vm2736_vm3, %v3446_v16  ;;  %v3445_v24 = vpack.c.bf16 %v4959_v17, %v4959_v17  ;;  %v1928_v38 = vmul.f32 %v4754_v55, %v4754_v55 }
 0x1a5   : > { %v2146_v7 = vsel %vm1567_vm4, %v1926_v49, 0.0  ;;  %v1929_v11 = vmul.f32 %v4779_v8, %v4779_v8  ;;  %2848 = vst.msk [vmem:[%s3989_s9 + $0x1bc] sm:$0xf] %vm2736_vm3, %v3447_v42  ;;  %v3450_v35 = vpack.c.bf16 %v4963_v43, %v4963_v43  ;;  %v2148_v5 = vsel %vm1567_vm4, %v1927_v19, 0.0 }
 0x1a6   : > { %v2141_v30 = vadd.f32 %v2140_v37, %v2139_v56  ;;  %v1750_v12 = vadd.f32 %v1749_v45, %v1748_v51  ;;  %v1757_v20 = vsel %vm1567_vm4, %v4754_v55, 0.0  ;;  %2846 = vst.msk [vmem:[%s3989_s9 + $0x1b4] sm:$0xf] %vm2736_vm3, %v3445_v24  ;;  %v1759_v37 = vsel %vm1567_vm4, %v4779_v8, 0.0 }
 0x1a7   : > { %v1930_v51 = vmul.f32 %v4814_v33, %v4814_v33  ;;  %2851 = vst.msk [vmem:[%s3989_s9 + $0x1c8] sm:$0xf] %vm2736_vm3, %v3450_v35  ;;  %v3448_v56 = vpack.c.bf16 %v4975_v29, %v4975_v29  ;;  %v5005_v45 = vadd.f32 %v4371_v47, %v4497_v3  ;;  %v5013_v8 = vadd.f32 %v4371_v47, %v4545_v13 }
 0x1a8   : > { %v1752_v62 = vadd.f32 %v1751_v34, %v1750_v12  ;;  %v2143_v32 = vadd.f32 %v2142_v18, %v2141_v30  ;;  %v5009_v34 = vadd.f32 %v4371_v47, %v4505_v50  ;;  %v2150_v16 = vsel %vm1567_vm4, %v1928_v38, 0.0 }
 0x1a9   : > { %v2152_v30 = vsel %vm1567_vm4, %v1929_v11, 0.0  ;;  %2849 = vst.msk [vmem:[%s3989_s9 + $0x1c0] sm:$0xf] %vm2736_vm3, %v3448_v56  ;;  %v3451_v3 = vpack.c.bf16 %v5005_v45, %v5005_v45  ;;  %v1931_v12 = vmul.f32 %v4773_v57, %v4773_v57  ;;  %v1763_v52 = vsel %vm1567_vm4, %v4773_v57, 0.0 }
 0x1aa   : > { %v2145_v25 = vadd.f32 %v2144_v2, %v2143_v32  ;;  %v1754_v44 = vadd.f32 %v1753_v0, %v1752_v62  ;;  %v1932_v13 = vmul.f32 %v4810_v26, %v4810_v26  ;;  %v1761_v49 = vsel %vm1567_vm4, %v4814_v33, 0.0 }
 0x1ab   : > { %2852 = vst.msk [vmem:[%s3989_s9 + $0x1cc] sm:$0xf] %vm2736_vm3, %v3451_v3  ;;  %v3449_v54 = vpack.c.bf16 %v5009_v34, %v5009_v34  ;;  %v2154_v32 = vsel %vm1567_vm4, %v1930_v51, 0.0  ;;  %v3454_v0 = vpack.c.bf16 %v5013_v8, %v5013_v8  ;;  %v1933_v57 = vmul.f32 %v4831_v39, %v4831_v39 }
 0x1ac   : > { %v1756_v22 = vadd.f32 %v1755_v58, %v1754_v44  ;;  %v2147_v31 = vadd.f32 %v2146_v7, %v2145_v25  ;;  %v5042_v33 = vadd.f32 %v4371_v47, %v4555_v28  ;;  %v5046_v42 = vadd.f32 %v4371_v47, %v4564_v60 }
 0x1ad   : > { %2850 = vst.msk [vmem:[%s3989_s9 + $0x1c4] sm:$0xf] %vm2736_vm3, %v3449_v54  ;;  %v5050_v58 = vadd.f32 %v4371_v47, %v4567_v4  ;;  %v2156_v25 = vsel %vm1567_vm4, %v1931_v12, 0.0  ;;  %v1765_v44 = vsel %vm1567_vm4, %v4810_v26, 0.0  ;;  %2855 = vst.msk [vmem:[%s3989_s9 + $0x1d8] sm:$0xf] %vm2736_vm3, %v3454_v0  ;;  %v1934_v60 = vmul.f32 %v4863_v61, %v4863_v61 }
 0x1ae   : > { %v2149_v55 = vadd.f32 %v2148_v5, %v2147_v31  ;;  %v1758_v18 = vadd.f32 %v1757_v20, %v1756_v22  ;;  %v1767_v28 = vsel %vm1567_vm4, %v4831_v39, 0.0  ;;  %v3452_v4 = vpack.c.bf16 %v5042_v33, %v5042_v33 }
 0x1af   : > { %v5065_v7 = vadd.f32 %v4371_v47, %v4613_v10  ;;  %v3455_v35 = vpack.c.bf16 %v5046_v42, %v5046_v42  ;;  %v5071_v5 = vadd.f32 %v4371_v47, %v4621_v23  ;;  %v2158_v39 = vsel %vm1567_vm4, %v1932_v13, 0.0 }
 0x1b0   : > { %v1760_v2 = vadd.f32 %v1759_v37, %v1758_v18  ;;  %v2151_v50 = vadd.f32 %v2150_v16, %v2149_v55  ;;  %v2160_v20 = vsel %vm1567_vm4, %v1933_v57, 0.0  ;;  %2853 = vst.msk [vmem:[%s3989_s9 + $0x1d0] sm:$0xf] %vm2736_vm3, %v3452_v4  ;;  %v3453_v10 = vpack.c.bf16 %v5050_v58, %v5050_v58 }
 0x1b1   : > { %v1935_v22 = vmul.f32 %v4818_v48, %v4818_v48  ;;  %2856 = vst.msk [vmem:[%s3989_s9 + $0x1dc] sm:$0xf] %vm2736_vm3, %v3455_v35  ;;  %v1771_v23 = vsel %vm1567_vm4, %v4818_v48, 0.0  ;;  %v1936_v51 = vmul.f32 %v4859_v63, %v4859_v63  ;;  %v1769_v56 = vsel %vm1567_vm4, %v4863_v61, 0.0 }
 0x1b2   : > { %v2153_v19 = vadd.f32 %v2152_v30, %v2151_v50  ;;  %v1762_v62 = vadd.f32 %v1761_v49, %v1760_v2  ;;  %2854 = vst.msk [vmem:[%s3989_s9 + $0x1d4] sm:$0xf] %vm2736_vm3, %v3453_v10  ;;  %v3458_v55 = vpack.c.bf16 %v5065_v7, %v5065_v7  ;;  %v2162_v30 = vsel %vm1567_vm4, %v1934_v60, 0.0 }
 0x1b3   : > { %v3456_v3 = vpack.c.bf16 %v5071_v5, %v5071_v5  ;;  %v1937_v48 = vmul.f32 %v4895_v46, %v4895_v46  ;;  %v5102_v61 = vadd.f32 %v4371_v47, %v4630_v15  ;;  %v5106_v12 = vadd.f32 %v4371_v47, %v4635_v6 }
 0x1b4   : > { %v1764_v24 = vadd.f32 %v1763_v52, %v1762_v62  ;;  %v2155_v38 = vadd.f32 %v2154_v32, %v2153_v19  ;;  %2859 = vst.msk [vmem:[%s3989_s9 + $0x1e8] sm:$0xf] %vm2736_vm3, %v3458_v55  ;;  %v5110_v2 = vadd.f32 %v4371_v47, %v4677_v14  ;;  %v2164_v50 = vsel %vm1567_vm4, %v1935_v22, 0.0 }
 0x1b5   : > { %2857 = vst.msk [vmem:[%s3989_s9 + $0x1e0] sm:$0xf] %vm2736_vm3, %v3456_v3  ;;  %v1773_v15 = vsel %vm1567_vm4, %v4859_v63, 0.0  ;;  %v1775_v49 = vsel %vm1567_vm4, %v4895_v46, 0.0  ;;  %v3459_v6 = vpack.c.bf16 %v5102_v61, %v5102_v61  ;;  %v5123_v14 = vadd.f32 %v4371_v47, %v4683_v9 }
 0x1b6   : > { %v2157_v26 = vadd.f32 %v2156_v25, %v2155_v38  ;;  %v1766_v11 = vadd.f32 %v1765_v44, %v1764_v24  ;;  %v3457_v62 = vpack.c.bf16 %v5106_v12, %v5106_v12  ;;  %v2166_v32 = vsel %vm1567_vm4, %v1936_v51, 0.0  ;;  %v3759_v38 = vld [vmem:[%s5306_s2] ss:$0 sm:$0xff] }
 0x1b7   : > { %v2168_v63 = vsel %vm1567_vm4, %v1937_v48, 0.0  ;;  %v1938_v46 = vmul.f32 %v4903_v27, %v4903_v27  ;;  %2860 = vst.msk [vmem:[%s3989_s9 + $0x1ec] sm:$0xf] %vm2736_vm3, %v3459_v6  ;;  %v3462_v47 = vpack.c.bf16 %v5110_v2, %v5110_v2  ;;  %v1779_v9 = vsel %vm1567_vm4, %v4867_v41, 0.0 }
 0x1b8   : > { %v1768_v31 = vadd.f32 %v1767_v28, %v1766_v11  ;;  %v2159_v37 = vadd.f32 %v2158_v39, %v2157_v26  ;;  %2858 = vst.msk [vmem:[%s3989_s9 + $0x1e4] sm:$0xf] %vm2736_vm3, %v3457_v62  ;;  %v1939_v25 = vmul.f32 %v4867_v41, %v4867_v41  ;;  %v1777_v44 = vsel %vm1567_vm4, %v4903_v27, 0.0 }
 0x1b9   : > { %2863 = vst.msk [vmem:[%s3989_s9 + $0x1f8] sm:$0xf] %vm2736_vm3, %v3462_v47  ;;  %v3460_v24 = vpack.c.bf16 %v5123_v14, %v5123_v14  ;;  %v5151_v28 = vadd.f32 %v3759_v38, %v4694_v21  ;;  %v5166_v41 = vadd.f32 %v3759_v38, %v4701_v53  ;;  %v1940_v21 = vmul.f32 %v4899_v59, %v4899_v59 }
 0x1ba   : > { %v2161_v18 = vadd.f32 %v2160_v20, %v2159_v37  ;;  %v1770_v16 = vadd.f32 %v1769_v56, %v1768_v31  ;;  %v2170_v27 = vsel %vm1567_vm4, %v1938_v46, 0.0  ;;  %v1941_v26 = vmul.f32 %v4925_v36, %v4925_v36 }
 0x1bb   : > { %2861 = vst.msk [vmem:[%s3989_s9 + $0x1f0] sm:$0xf] %vm2736_vm3, %v3460_v24  ;;  %v3463_v11 = vpack.c.bf16 %v5151_v28, %v5151_v28  ;;  %v2172_v53 = vsel %vm1567_vm4, %v1939_v25, 0.0  ;;  %v1781_v20 = vsel %vm1567_vm4, %v4899_v59, 0.0  ;;  %v1783_v10 = vsel %vm1567_vm4, %v4925_v36, 0.0 }
 0x1bc   : > { %v1772_v52 = vadd.f32 %v1771_v23, %v1770_v16  ;;  %v2163_v13 = vadd.f32 %v2162_v30, %v2161_v18  ;;  %v3785_v22 = vmov 0.0   ;;  %v3461_v31 = vpack.c.bf16 %v5166_v41, %v5166_v41 }
 0x1bd   : > { %2864 = vst.msk [vmem:[%s3989_s9 + $0x1fc] sm:$0xf] %vm2736_vm3, %v3463_v11  ;;  %v2174_v51 = vsel %vm1567_vm4, %v1940_v21, 0.0  ;;  %v2176_v56 = vsel %vm1567_vm4, %v1941_v26, 0.0  ;;  %v1942_v59 = vmul.f32 %v4959_v17, %v4959_v17  ;;  %v1943_v18 = vmul.f32 %v4919_v1, %v4919_v1 }
 0x1be   : > { %v2165_v54 = vadd.f32 %v2164_v50, %v2163_v13  ;;  %v1774_v19 = vadd.f32 %v1773_v15, %v1772_v52  ;;  %1564 = vst.msk [vmem:[%s5157_s16] sm:$0x1] %vm1563_vm5, %v3785_v22  ;;  %1565 = vst.msk [vmem:[%s5163_s23] sm:$0x1] %vm1563_vm5, %v3785_v22  ;;  %v1785_v16 = vsel %vm1567_vm4, %v4959_v17, 0.0  ;;  %v1787_v48 = vsel %vm1567_vm4, %v4919_v1, 0.0 }
 0x1bf   : > { %2862 = vst.msk [vmem:[%s3989_s9 + $0x1f4] sm:$0xf] %vm2736_vm3, %v3461_v31  ;;  %v1944_v50 = vmul.f32 %v4955_v40, %v4955_v40  ;;  %v2178_v52 = vsel %vm1567_vm4, %v1942_v59, 0.0  ;;  %v1945_v13 = vmul.f32 %v4975_v29, %v4975_v29  ;;  %v2180_v6 = vsel %vm1567_vm4, %v1943_v18, 0.0 }
 0x1c0   : > { %v1776_v0 = vadd.f32 %v1775_v49, %v1774_v19  ;;  %v2167_v57 = vadd.f32 %v2166_v32, %v2165_v54  ;;  %v1789_v17 = vsel %vm1567_vm4, %v4955_v40, 0.0  ;;  %v1791_v54 = vsel %vm1567_vm4, %v4975_v29, 0.0 }
 0x1c1   : > { %v2182_v62 = vsel %vm1567_vm4, %v1944_v50, 0.0  ;;  %v2184_v32 = vsel %vm1567_vm4, %v1945_v13, 0.0  ;;  %v1793_v40 = vsel %vm1567_vm4, %v5009_v34, 0.0  ;;  %v1795_v29 = vsel %vm1567_vm4, %v4963_v43, 0.0 }
 0x1c2   : > { %v2169_v60 = vadd.f32 %v2168_v63, %v2167_v57  ;;  %v1778_v4 = vadd.f32 %v1777_v44, %v1776_v0  ;;  %v1946_v63 = vmul.f32 %v5009_v34, %v5009_v34  ;;  %v1948_v25 = vmul.f32 %v5005_v45, %v5005_v45 }
 0x1c3   : > { %v1949_v24 = vmul.f32 %v5042_v33, %v5042_v33  ;;  %v1797_v34 = vsel %vm1567_vm4, %v5005_v45, 0.0  ;;  %v1799_v21 = vsel %vm1567_vm4, %v5042_v33, 0.0  ;;  %v1801_v45 = vsel %vm1567_vm4, %v5050_v58, 0.0 }
 0x1c4   : > { %v1780_v35 = vadd.f32 %v1779_v9, %v1778_v4  ;;  %v2171_v39 = vadd.f32 %v2170_v27, %v2169_v60  ;;  %v1947_v9 = vmul.f32 %v4963_v43, %v4963_v43  ;;  %v2186_v44 = vsel %vm1567_vm4, %v1946_v63, 0.0 }
 0x1c5   : > { %v2190_v26 = vsel %vm1567_vm4, %v1948_v25, 0.0  ;;  %v2192_v11 = vsel %vm1567_vm4, %v1949_v24, 0.0  ;;  %v1803_v33 = vsel %vm1567_vm4, %v5013_v8, 0.0  ;;  %v1952_v31 = vmul.f32 %v5046_v42, %v5046_v42 }
 0x1c6   : > { %v2173_v37 = vadd.f32 %v2172_v53, %v2171_v39  ;;  %v1782_v23 = vadd.f32 %v1781_v20, %v1780_v35  ;;  %v2188_v4 = vsel %vm1567_vm4, %v1947_v9, 0.0  ;;  %v1950_v35 = vmul.f32 %v5050_v58, %v5050_v58 }
 0x1c7   : > { %v1951_v20 = vmul.f32 %v5013_v8, %v5013_v8  ;;  %v1805_v58 = vsel %vm1567_vm4, %v5046_v42, 0.0  ;;  %v2198_v18 = vsel %vm1567_vm4, %v1952_v31, 0.0  ;;  %v1955_v50 = vmul.f32 %v5065_v7, %v5065_v7 }
 0x1c8   : > { %v1784_v36 = vadd.f32 %v1783_v10, %v1782_v23  ;;  %v2175_v55 = vadd.f32 %v2174_v51, %v2173_v37  ;;  %v2194_v37 = vsel %vm1567_vm4, %v1950_v35, 0.0  ;;  %v1953_v23 = vmul.f32 %v5071_v5, %v5071_v5 }
 0x1c9   : > { %v2196_v59 = vsel %vm1567_vm4, %v1951_v20, 0.0  ;;  %v1809_v42 = vsel %vm1567_vm4, %v5106_v12, 0.0 }
 0x1ca   : > { %v2177_v30 = vadd.f32 %v2176_v56, %v2175_v55  ;;  %v1786_v3 = vadd.f32 %v1785_v16, %v1784_v36  ;;  %v1807_v36 = vsel %vm1567_vm4, %v5071_v5, 0.0  ;;  %v2200_v16 = vsel %vm1567_vm4, %v1953_v23, 0.0 }
 0x1cb   : > { %v1811_v5 = vsel %vm1567_vm4, %v5065_v7, 0.0 }
 0x1cc   : > { %v1788_v15 = vadd.f32 %v1787_v48, %v1786_v3  ;;  %v2179_v49 = vadd.f32 %v2178_v52, %v2177_v30  ;;  %v1954_v30 = vmul.f32 %v5106_v12, %v5106_v12  ;;  %v1813_v12 = vsel %vm1567_vm4, %v5102_v61, 0.0 }
 0x1ce   : > { %v2181_v19 = vadd.f32 %v2180_v6, %v2179_v49  ;;  %v1790_v1 = vadd.f32 %v1789_v17, %v1788_v15  ;;  %v1956_v15 = vmul.f32 %v5102_v61, %v5102_v61  ;;  %v2202_v49 = vsel %vm1567_vm4, %v1954_v30, 0.0 }
 0x1cf   : > { %v1957_v6 = vmul.f32 %v5123_v14, %v5123_v14  ;;  %v1817_v61 = vsel %vm1567_vm4, %v5166_v41, 0.0 }
 0x1d0   : > { %v1792_v46 = vadd.f32 %v1791_v54, %v1790_v1  ;;  %v2183_v47 = vadd.f32 %v2182_v62, %v2181_v19  ;;  %v2204_v19 = vsel %vm1567_vm4, %v1955_v50, 0.0  ;;  %v1815_v1 = vsel %vm1567_vm4, %v5123_v14, 0.0 }
 0x1d1   : > { %v2208_v63 = vsel %vm1567_vm4, %v1957_v6, 0.0  ;;  %v1819_v14 = vsel %vm1567_vm4, %v5110_v2, 0.0 }
 0x1d2   : > { %v2185_v0 = vadd.f32 %v2184_v32, %v2183_v47  ;;  %v1794_v57 = vadd.f32 %v1793_v40, %v1792_v46  ;;  %v2206_v32 = vsel %vm1567_vm4, %v1956_v15, 0.0  ;;  %v1958_v46 = vmul.f32 %v5166_v41, %v5166_v41 }
 0x1d3   : > { %v1959_v40 = vmul.f32 %v5110_v2, %v5110_v2 }
 0x1d4   : > { %v1796_v38 = vadd.f32 %v1795_v29, %v1794_v57  ;;  %v2187_v60 = vadd.f32 %v2186_v44, %v2185_v0  ;;  %v1960_v29 = vmul.f32 %v5151_v28, %v5151_v28  ;;  %v2210_v25 = vsel %vm1567_vm4, %v1958_v46, 0.0 }
 0x1d6   : > { %v2189_v27 = vadd.f32 %v2188_v4, %v2187_v60  ;;  %v1798_v43 = vadd.f32 %v1797_v34, %v1796_v38  ;;  %v2212_v38 = vsel %vm1567_vm4, %v1959_v40, 0.0  ;;  %v1821_v60 = vsel %vm1567_vm4, %v5151_v28, 0.0 }
 0x1d7   : > { %v2214_v34 = vsel %vm1567_vm4, %v1960_v29, 0.0 }
 0x1d8   : > { %v1800_v39 = vadd.f32 %v1799_v21, %v1798_v43  ;;  %v2191_v53 = vadd.f32 %v2190_v26, %v2189_v27 }
 0x1da   : > { %v2193_v10 = vadd.f32 %v2192_v11, %v2191_v53  ;;  %v1802_v22 = vadd.f32 %v1801_v45, %v1800_v39  ;;  %v1566_v45 = vld [vmem:[%s5157_s16] sm:$0x1] }
 0x1dc   : > { %v1804_v51 = vadd.f32 %v1803_v33, %v1802_v22  ;;  %v2195_v56 = vadd.f32 %v2194_v37, %v2193_v10  ;;  %v1832_v22 = vld [vmem:[%s5163_s23] sm:$0x1] }
 0x1de   : > { %v2197_v55 = vadd.f32 %v2196_v59, %v2195_v56  ;;  %v1806_v8 = vadd.f32 %v1805_v58, %v1804_v51 }
 0x1e0   : > { %v1808_v3 = vadd.f32 %v1807_v36, %v1806_v8  ;;  %v2199_v48 = vadd.f32 %v2198_v18, %v2197_v55 }
 0x1e2   : > { %v2201_v52 = vadd.f32 %v2200_v16, %v2199_v48  ;;  %v1810_v13 = vadd.f32 %v1809_v42, %v1808_v3 }
 0x1e4   : > { %v1812_v17 = vadd.f32 %v1811_v5, %v1810_v13  ;;  %v2203_v54 = vadd.f32 %v2202_v49, %v2201_v52 }
 0x1e6   : > { %v2205_v62 = vadd.f32 %v2204_v19, %v2203_v54  ;;  %v1814_v7 = vadd.f32 %v1813_v12, %v1812_v17 }
 0x1e8   : > { %v1816_v47 = vadd.f32 %v1815_v1, %v1814_v7  ;;  %v2207_v9 = vadd.f32 %v2206_v32, %v2205_v62 }
 0x1ea   : > { %v2209_v0 = vadd.f32 %v2208_v63, %v2207_v9  ;;  %v1818_v57 = vadd.f32 %v1817_v61, %v1816_v47 }
 0x1ec   : > { %v1820_v44 = vadd.f32 %v1819_v14, %v1818_v57  ;;  %v2211_v24 = vadd.f32 %v2210_v25, %v2209_v0 }
 0x1ee   : > { %v1822_v4 = vadd.f32 %v1821_v60, %v1820_v44  ;;  %v2213_v41 = vadd.f32 %v2212_v38, %v2211_v24 }
 0x1f0   : > { %v1823_v21 = vrot.slane %v1822_v4, 4  ;;  %v2215_v2 = vadd.f32 %v2214_v34, %v2213_v41 }
 0x1f2   : > { %v1824_v27 = vadd.f32 %v1823_v21, %v1822_v4  ;;  %v2216_v43 = vrot.slane %v2215_v2, 4 }
 0x1f4   : > { %v1825_v26 = vrot.slane %v1824_v27, 2  ;;  %v2217_v11 = vadd.f32 %v2216_v43, %v2215_v2 }
 0x1f6   : > { %v1826_v35 = vadd.f32 %v1825_v26, %v1824_v27  ;;  %v2218_v39 = vrot.slane %v2217_v11, 2 }
 0x1f8   : > { %v1827_v53 = vrot.slane %v1826_v35, 1  ;;  %v2219_v20 = vadd.f32 %v2218_v39, %v2217_v11 }
 0x1fa   : > { %v1828_v10 = vadd.f32 %v1827_v53, %v1826_v35  ;;  %v2220_v28 = vrot.slane %v2219_v20, 1 }
 0x1fc   : > { %v1829_v33 = vadd.f32 %v1828_v10, %v1566_v45  ;;  %v2221_v31 = vadd.f32 %v2220_v28, %v2219_v20 }
 0x1fe   : > { %1831 = vst.msk [vmem:[%s5157_s16] sm:$0x1] %vm1563_vm5, %v1829_v33  ;;  %v2222_v37 = vadd.f32 %v2221_v31, %v1832_v22 }
 0x200   : > { %2223 = vst.msk [vmem:[%s5163_s23] sm:$0x1] %vm1563_vm5, %v2222_v37 }
 0x201 PF: > { %s16_s20 = sadd.s32 1, %s3782_s20   ;;  %s5326_s18 = smov %s3778_s19 }
 0x202   : > { %p13_p5 = scmp.ge.s32.totalorder %s16_s20, 4   ;;  %s5327_s19 = smov %s5329_s21 }
 0x204   :  { %15 = sbr.rel (!%p13_p5) target bundleno = 2 (0x2), region = 96 }

// kernel: inconv_forward.3
= control target key start
LH: loop header
LB: loop body
LE: loop exit
PB: predicated region body
PF: predicated region fallthrough
CT: control target
= control target key end

     0   :  { %s8089_s24 = smov 0   ;;  %s8091_s25 = smov 0   ;;  %s11583_s0 = inlined_call_operand.vmem [shape: f32[2,1,64], index: 0, kind: input, shape index: {}]   ;;  %s11584_s1 = inlined_call_operand.vmem [shape: f32[2,1,64], index: 1, kind: input, shape index: {}]   ;;  %s11585_s2 = inlined_call_operand.vmem [shape: bf16[2,32,32,64], index: 2, kind: input, shape index: {}]   ;;  %s11586_s3 = inlined_call_operand.vmem [shape: bf16[3,192,64], index: 3, kind: input, shape index: {}]   ;;  %s11587_s4 = inlined_call_operand.vmem [shape: f32[1,64], index: 4, kind: input, shape index: {}]   ;;  %s11588_s5 = inlined_call_operand.vmem [shape: bf16[2,32,32,64], index: 5, kind: output, shape index: {0}]   ;;  %s11589_s6 = inlined_call_operand.vmem [shape: f32[2,1,64], index: 6, kind: output, shape index: {1}]   ;;  %s11590_s7 = inlined_call_operand.vmem [shape: f32[2,1,64], index: 7, kind: output, shape index: {2}]  }
   0x1   :  { %s8093_s26 = smov 0  }
   0x2 LB: > { %s37_s27 = sadd.s32 1, %s8040_s25  ;;  %p7038_p0 = scmp.ge.s32.totalorder %s8044_s26, 1  ;;  %s8044_s26 = sphi %s8093_s26, %s18_s26   ;;  %s8040_s25 = sphi %s8091_s25, %s12250_s25   ;;  %s8036_s24 = sphi %s8089_s24, %s12249_s24  }
   0x3   : > { %p39_p1 = scmp.ge.s32.totalorder %s37_s27, 2  ;;  %p302_p2 = scmp.lt.s32.totalorder %s8044_s26, 3 }
   0x5   : > { %s12252_s27 = smov (%p39_p1, %s37_s27), 0  ;;  %p303_p3 = pnand %p7038_p0, %p302_p2 }
   0x7   : > { %306 = sbr.rel (%p303_p3) target bundleno = 1266 (0x4f2), region = 40 }
   0xe   : > { %p367_p4 = scmp.lt.s32.totalorder %s8036_s24, 1  ;;  %v11591_v0 = vmov 0   ;;  %v7975_v1 = vld [vmem:[%s11586_s3 + $0x60] sm:$0xff]   ;;  %v7976_v2 = vld [vmem:[%s11586_s3 + $0x68] sm:$0xff]   ;;  %v7977_v12 = vld [vmem:[%s11586_s3 + $0x70] sm:$0xff]   ;;  %vm1783_vm1 = vcmask 1040384  }
   0xf   : > { %7924 = vmatprep.subr.bf16.mxu1 %v11591_v0  ;;  %3427 = vmatprep.subr.bf16.mxu0 %v11591_v0  ;;  %vm1204_vm0 = vsmask.f32 256  ;;  %v7978_v30 = vld [vmem:[%s11586_s3 + $0x78] sm:$0xff]   ;;  %v7979_v49 = vld [vmem:[%s11586_s3 + $0x80] sm:$0xff]   ;;  %vm1853_vm2 = vsmask.f32 7424 }
  0x10   : > { %s12254_s24 = smov (!%p367_p4, %s8036_s24), 1  ;;  %7936 = vmatpush1.bf16.msra.mxu1 %v7975_v1  ;;  %3428 = vmatpush1.bf16.msra.mxu0 %v7975_v1  ;;  %vm8189_vm3 = vmand %vm1783_vm1, %vm1204_vm0  ;;  %s8047_s14 = smov 64   ;;  %vm2738_vm4 = vcmask 1046528   ;;  %vm2909_vm5 = vcmask 523264   ;;  %vm6682_vm6 = vcmask 519168   ;;  %vm5510_vm7 = vcmask 516096  }
  0x11   : > { %s8118_s9 = scalar_lea.vmem %s11583_s0, %s12254_s24  ;;  %s7456_s12 = sshll.u32 %s12254_s24, 9  ;;  %7925 = vmatprep.subr.bf16.mxu1 %v11591_v0  ;;  %3429 = vmatprep.subr.bf16.mxu0 %v11591_v0 }
  0x12   : > { %v8125_v3 = vld [vmem:[%s8118_s9] ss:$0 sm:$0xff]  ;;  %s8133_s15 = scalar_lea.vmem %s11584_s1, %s12254_s24  ;;  %s8140_s18 = scalar_lea.vmem %s11585_s2, %s7456_s12 }
  0x13   : > { %v7889_v4 = vld [vmem:[%s8140_s18 + $0x100] sm:$0xff]   ;;  %v7890_v5 = vld [vmem:[%s8140_s18 + $0x108] sm:$0xff]   ;;  %v7891_v35 = vld [vmem:[%s8140_s18 + $0x110] sm:$0xff]   ;;  %s10527_s21 = scalar_lea.vmem %s11588_s5, %s7456_s12  ;;  %s11361_s23 = scalar_lea.vmem %s11589_s6, %s12254_s24 }
  0x14   : > { %v7587_v6 = vld [vmem:[%s8140_s18] sm:$0xff]   ;;  %v7716_v7 = vunpack.c.l.bf16 %v7889_v4  ;;  %v7717_v8 = vunpack.c.h.bf16 %v7889_v4  ;;  %v7720_v9 = vunpack.c.l.bf16 %v7890_v5  ;;  %v7721_v10 = vunpack.c.h.bf16 %v7890_v5  ;;  %v7858_v11 = vld [vmem:[%s8140_s18 + $0x8] sm:$0xff]   ;;  %7937 = vmatpush1.bf16.msra.mxu1 %v7976_v2  ;;  %3430 = vmatpush1.bf16.msra.mxu0 %v7976_v2  ;;  %v7892_v40 = vld [vmem:[%s8140_s18 + $0x118] sm:$0xff]   ;;  %s11367_s30 = scalar_lea.vmem %s11590_s7, %s12254_s24 }
  0x15   : > { %v8150_v13 = vld [vmem:[%s8133_s15] ss:$0 sm:$0xff]  ;;  %v7588_v14 = vunpack.c.l.bf16 %v7587_v6  ;;  %v7589_v15 = vunpack.c.h.bf16 %v7587_v6  ;;  %v7592_v16 = vunpack.c.l.bf16 %v7858_v11  ;;  %v7593_v17 = vunpack.c.h.bf16 %v7858_v11  ;;  %7926 = vmatprep.subr.bf16.mxu1 %v11591_v0  ;;  %3431 = vmatprep.subr.bf16.mxu0 %v11591_v0  ;;  %v7980_v4 = vld [vmem:[%s11586_s3 + $0x88] sm:$0xff]  }
  0x16   : > { %v743_v18 = vmul.f32 %v7716_v7, %v8125_v3  ;;  %v744_v19 = vmul.f32 %v7717_v8, %v8125_v3  ;;  %v745_v20 = vmul.f32 %v7720_v9, %v8125_v3  ;;  %v746_v21 = vmul.f32 %v7721_v10, %v8125_v3 }
  0x17   : > { %v679_v22 = vmul.f32 %v7588_v14, %v8125_v3  ;;  %v680_v23 = vmul.f32 %v7589_v15, %v8125_v3  ;;  %v681_v24 = vmul.f32 %v7592_v16, %v8125_v3  ;;  %v682_v25 = vmul.f32 %v7593_v17, %v8125_v3  ;;  %v7981_v15 = vld [vmem:[%s11586_s3 + $0x90] sm:$0xff]  }
  0x18   : > { %v878_v26 = vadd.f32 %v8150_v13, %v743_v18  ;;  %v879_v27 = vadd.f32 %v8150_v13, %v744_v19  ;;  %v880_v28 = vadd.f32 %v8150_v13, %v745_v20  ;;  %v881_v29 = vadd.f32 %v8150_v13, %v746_v21  ;;  %7938 = vmatpush1.bf16.msra.mxu1 %v7977_v12 }
  0x19   : > { %v814_v31 = vadd.f32 %v8150_v13, %v679_v22  ;;  %v815_v32 = vadd.f32 %v8150_v13, %v680_v23  ;;  %v816_v33 = vadd.f32 %v8150_v13, %v681_v24  ;;  %v817_v34 = vadd.f32 %v8150_v13, %v682_v25  ;;  %3432 = vmatpush1.bf16.msra.mxu0 %v7977_v12 }
  0x1a   : > { %v1006_v36 = vmax.f32 %v878_v26, 0.0  ;;  %v1007_v37 = vmax.f32 %v879_v27, 0.0  ;;  %v1008_v38 = vmax.f32 %v880_v28, 0.0  ;;  %v1009_v39 = vmax.f32 %v881_v29, 0.0  ;;  %7927 = vmatprep.subr.bf16.mxu1 %v11591_v0  ;;  %3433 = vmatprep.subr.bf16.mxu0 %v11591_v0 }
  0x1b   : > { %v942_v41 = vmax.f32 %v814_v31, 0.0  ;;  %v943_v42 = vmax.f32 %v815_v32, 0.0  ;;  %v944_v43 = vmax.f32 %v816_v33, 0.0  ;;  %v945_v44 = vmax.f32 %v817_v34, 0.0 }
  0x1c   : > { %v1170_v45 = vpack.c.bf16 %v1007_v37, %v1006_v36  ;;  %v1171_v46 = vpack.c.bf16 %v1009_v39, %v1008_v38  ;;  %v7724_v47 = vunpack.c.l.bf16 %v7891_v35  ;;  %v7725_v48 = vunpack.c.h.bf16 %v7891_v35  ;;  %7939 = vmatpush1.bf16.msra.mxu1 %v7978_v30 }
  0x1d   : > { %v1138_v50 = vpack.c.bf16 %v943_v42, %v942_v41  ;;  %v1139_v51 = vpack.c.bf16 %v945_v44, %v944_v43  ;;  %v7728_v52 = vunpack.c.l.bf16 %v7892_v40  ;;  %v7729_v53 = vunpack.c.h.bf16 %v7892_v40  ;;  %3434 = vmatpush1.bf16.msra.mxu0 %v7978_v30  ;;  %7928 = vmatprep.subr.bf16.mxu1 %v11591_v0  ;;  %v7859_v40 = vld [vmem:[%s8140_s18 + $0x10] sm:$0xff]  }
  0x1e   : > { %v1461_v54 = vshrl.u32 %v1170_v45, 16  ;;  %v1464_v55 = vshll.u32 %v1170_v45, 16  ;;  %v1468_v56 = vshrl.u32 %v1171_v46, 16  ;;  %v1471_v57 = vshll.u32 %v1171_v46, 16  ;;  %3435 = vmatprep.subr.bf16.mxu0 %v11591_v0  ;;  %v7982_v45 = vld [vmem:[%s11586_s3 + $0x98] sm:$0xff]  }
  0x1f   : > { %v1221_v58 = vshrl.u32 %v1138_v50, 16  ;;  %v1224_v59 = vshll.u32 %v1138_v50, 16  ;;  %v1228_v60 = vshrl.u32 %v1139_v51, 16  ;;  %v1231_v61 = vshll.u32 %v1139_v51, 16  ;;  %v7860_v50 = vld [vmem:[%s8140_s18 + $0x18] sm:$0xff]  }
  0x20   : > { %v1463_v62 = vrot.slane %v1461_v54, 7  ;;  %v1470_v63 = vrot.slane %v1468_v56, 7  ;;  %v747_v1 = vmul.f32 %v7724_v47, %v8125_v3  ;;  %v748_v2 = vmul.f32 %v7725_v48, %v8125_v3  ;;  %7940 = vmatpush1.bf16.msra.mxu1 %v7979_v49 }
  0x21   : > { %v1223_v6 = vrot.slane %v1221_v58, 7  ;;  %v1230_v7 = vrot.slane %v1228_v60, 7  ;;  %v749_v8 = vmul.f32 %v7728_v52, %v8125_v3  ;;  %v750_v9 = vmul.f32 %v7729_v53, %v8125_v3  ;;  %3436 = vmatpush1.bf16.msra.mxu0 %v7979_v49  ;;  %7929 = vmatprep.subr.bf16.mxu1 %v11591_v0  ;;  %v7983_v60 = vld [vmem:[%s11586_s3 + $0xa0] sm:$0xff]  }
  0x22   : > { %v1466_v10 = vor.u32 %v1464_v55, %v1463_v62  ;;  %v1473_v11 = vor.u32 %v1471_v57, %v1470_v63  ;;  %v8198_v12 = vsel %vm8189_vm3, %v1470_v63, 0  ;;  %v882_v14 = vadd.f32 %v8150_v13, %v747_v1  ;;  %3437 = vmatprep.subr.bf16.mxu0 %v11591_v0  ;;  %v8249_v55 = vld [vmem:[%s8140_s18 + $0x120] sm:$0xff]  }
  0x23   : > { %v1226_v16 = vor.u32 %v1224_v59, %v1223_v6  ;;  %v1233_v17 = vor.u32 %v1231_v61, %v1230_v7  ;;  %v2210_v18 = vshll.u32 %v8198_v12, 16  ;;  %v8216_v22 = vsel %vm8189_vm3, %v1230_v7, 0 }
  0x24   : > { %v8208_v20 = vsel %vm1204_vm0, %v1463_v62, %v1473_v11  ;;  %v8212_v21 = vsel %vm8189_vm3, 0, %v1466_v10  ;;  %v883_v23 = vadd.f32 %v8150_v13, %v748_v2  ;;  %7941 = vmatpush1.bf16.msra.mxu1 %v7980_v4  ;;  %v1890_v38 = vshll.u32 %v8216_v22, 16 }
  0x25   : > { %v2195_v24 = vshrl.u32 %v8212_v21, 16  ;;  %v2197_v25 = vshll.u32 %v8212_v21, 16  ;;  %v2202_v26 = vshll.u32 %v8208_v20, 16  ;;  %v8223_v27 = vsel %vm1204_vm0, %v1223_v6, %v1233_v17  ;;  %3438 = vmatpush1.bf16.msra.mxu0 %v7980_v4  ;;  %7930 = vmatprep.subr.bf16.mxu1 %v11591_v0 }
  0x26   : > { %v8228_v28 = vsel %vm8189_vm3, 0, %v1226_v16  ;;  %v1882_v29 = vshll.u32 %v8223_v27, 16  ;;  %v2206_v30 = vshrl.u32 %v8208_v20, 16  ;;  %v2212_v31 = vrot.slane %v2210_v18, 1  ;;  %3439 = vmatprep.subr.bf16.mxu0 %v11591_v0 }
  0x27   : > { %v2199_v32 = vrot.slane %v2197_v25, 1  ;;  %v2204_v33 = vrot.slane %v2202_v26, 1  ;;  %v1875_v34 = vshrl.u32 %v8228_v28, 16  ;;  %v1877_v35 = vshll.u32 %v8228_v28, 16 }
  0x28   : > { %v1884_v36 = vrot.slane %v1882_v29, 1  ;;  %v1886_v37 = vshrl.u32 %v8223_v27, 16  ;;  %v884_v39 = vadd.f32 %v8150_v13, %v749_v8  ;;  %7942 = vmatpush1.bf16.msra.mxu1 %v7981_v15  ;;  %v885_v44 = vadd.f32 %v8150_v13, %v750_v9 }
  0x29   : > { %v2200_v41 = vor.u32 %v2199_v32, %v2195_v24  ;;  %v1879_v42 = vrot.slane %v1877_v35, 1  ;;  %v2208_v43 = vor.u32 %v2206_v30, %v2204_v33  ;;  %3440 = vmatpush1.bf16.msra.mxu0 %v7981_v15  ;;  %7931 = vmatprep.subr.bf16.mxu1 %v11591_v0  ;;  %v1892_v47 = vrot.slane %v1890_v38, 1  ;;  %v7985_v38 = vld [vmem:[%s11586_s3 + $0xb0] sm:$0xff]  }
  0x2a   : > { %v1888_v46 = vor.u32 %v1886_v37, %v1884_v36  ;;  %v1010_v48 = vmax.f32 %v882_v14, 0.0  ;;  %v1011_v49 = vmax.f32 %v883_v23, 0.0  ;;  %3441 = vmatprep.subr.bf16.mxu0 %v11591_v0  ;;  %v1012_v54 = vmax.f32 %v884_v39, 0.0  ;;  %v7894_v14 = vld [vmem:[%s8140_s18 + $0x128] sm:$0xff]  }
  0x2b   : > { %v2205_v51 = vsel %vm1853_vm2, %v2200_v41, %v2204_v33  ;;  %v1880_v52 = vor.u32 %v1879_v42, %v1875_v34  ;;  %v2213_v53 = vsel %vm1853_vm2, %v2208_v43, %v2212_v31  ;;  %v1013_v57 = vmax.f32 %v885_v44, 0.0  ;;  %v7984_v23 = vld [vmem:[%s11586_s3 + $0xa8] sm:$0xff]  }
  0x2c   : > { %2602 = vrot.lane.b32.xlu0 %v2205_v51, %s8047_s14  ;;  %2604 = vrot.lane.b32.xlu1 %v2213_v53, %s8047_s14  ;;  %v1893_v56 = vsel %vm1853_vm2, %v1888_v46, %v1892_v47  ;;  %v1172_v58 = vpack.c.bf16 %v1011_v49, %v1010_v48  ;;  %v7596_v59 = vunpack.c.l.bf16 %v7859_v40  ;;  %v7597_v62 = vunpack.c.h.bf16 %v7859_v40 }
  0x2d   : > { %v1885_v61 = vsel %vm1853_vm2, %v1880_v52, %v1884_v36  ;;  %v7600_v63 = vunpack.c.l.bf16 %v7860_v50  ;;  %v7601_v1 = vunpack.c.h.bf16 %v7860_v50  ;;  %7943 = vmatpush1.bf16.msra.mxu1 %v7982_v45  ;;  %3442 = vmatpush1.bf16.msra.mxu0 %v7982_v45  ;;  %v1173_v2 = vpack.c.bf16 %v1013_v57, %v1012_v54 }
  0x2e   : > { %v1476_v4 = vshrl.u32 %v1172_v58, 16  ;;  %v1479_v6 = vshll.u32 %v1172_v58, 16  ;;  %v683_v7 = vmul.f32 %v7596_v59, %v8125_v3  ;;  %7932 = vmatprep.subr.bf16.mxu1 %v11591_v0  ;;  %3443 = vmatprep.subr.bf16.mxu0 %v11591_v0  ;;  %v684_v8 = vmul.f32 %v7597_v62, %v8125_v3  ;;  %v7986_v59 = vld [vmem:[%s11586_s3 + $0xb8] sm:$0xff]  }
  0x2f   : > { %v685_v9 = vmul.f32 %v7600_v63, %v8125_v3  ;;  %v686_v10 = vmul.f32 %v7601_v1, %v8125_v3  ;;  %v7732_v11 = vunpack.c.l.bf16 %v8249_v55  ;;  %v1483_v16 = vshrl.u32 %v1173_v2, 16 }
  0x30   : > { %2538 = vrot.lane.b32.xlu0 %v1885_v61, %s8047_s14  ;;  %2540 = vrot.lane.b32.xlu1 %v1893_v56, %s8047_s14  ;;  %v1478_v15 = vrot.slane %v1476_v4, 7  ;;  %v1486_v17 = vshll.u32 %v1173_v2, 16  ;;  %v818_v18 = vadd.f32 %v8150_v13, %v683_v7  ;;  %v819_v24 = vadd.f32 %v8150_v13, %v684_v8 }
  0x31   : > { %v820_v25 = vadd.f32 %v8150_v13, %v685_v9  ;;  %v821_v26 = vadd.f32 %v8150_v13, %v686_v10  ;;  %v7733_v29 = vunpack.c.h.bf16 %v8249_v55  ;;  %7944 = vmatpush1.bf16.msra.mxu1 %v7983_v60  ;;  %3444 = vmatpush1.bf16.msra.mxu0 %v7983_v60  ;;  %v1485_v31 = vrot.slane %v1483_v16, 7 }
  0x32   : > { %v1481_v30 = vor.u32 %v1479_v6, %v1478_v15  ;;  %v946_v32 = vmax.f32 %v818_v18, 0.0  ;;  %v7736_v33 = vunpack.c.l.bf16 %v7894_v14  ;;  %7933 = vmatprep.subr.bf16.mxu1 %v11591_v0  ;;  %3445 = vmatprep.subr.bf16.mxu0 %v11591_v0  ;;  %v947_v34 = vmax.f32 %v819_v24, 0.0 }
  0x33   : > { %v948_v35 = vmax.f32 %v820_v25, 0.0  ;;  %v949_v36 = vmax.f32 %v821_v26, 0.0  ;;  %v7737_v37 = vunpack.c.h.bf16 %v7894_v14  ;;  %v1488_v39 = vor.u32 %v1486_v17, %v1485_v31  ;;  %v7861_v25 = vld [vmem:[%s8140_s18 + $0x20] sm:$0xff]  }
  0x34   : > { %v8283_v40 = vsel %vm8189_vm3, 0, %v1481_v30  ;;  %v8287_v41 = vsel %vm8189_vm3, %v1485_v31, 0  ;;  %v751_v42 = vmul.f32 %v7732_v11, %v8125_v3  ;;  %v1140_v45 = vpack.c.bf16 %v947_v34, %v946_v32  ;;  %v7862_v32 = vld [vmem:[%s8140_s18 + $0x28] sm:$0xff]  }
  0x35   : > { %v2215_v43 = vshrl.u32 %v8283_v40, 16  ;;  %v2217_v44 = vshll.u32 %v8283_v40, 16  ;;  %v1141_v46 = vpack.c.bf16 %v949_v36, %v948_v35  ;;  %7945 = vmatpush1.bf16.msra.mxu1 %v7984_v23  ;;  %3446 = vmatpush1.bf16.msra.mxu0 %v7984_v23  ;;  %v8293_v47 = vsel %vm1204_vm0, %v1478_v15, %v1488_v39 }
  0x36   : > { %v2230_v48 = vshll.u32 %v8287_v41, 16  ;;  %v752_v49 = vmul.f32 %v7733_v29, %v8125_v3  ;;  %v753_v50 = vmul.f32 %v7736_v33, %v8125_v3  ;;  %7934 = vmatprep.subr.bf16.mxu1 %v11591_v0  ;;  %3447 = vmatprep.subr.bf16.mxu0 %v11591_v0  ;;  %v2222_v52 = vshll.u32 %v8293_v47, 16 }
  0x37   : > { %v2219_v51 = vrot.slane %v2217_v44, 1  ;;  %v1236_v53 = vshrl.u32 %v1140_v45, 16  ;;  %v1239_v54 = vshll.u32 %v1140_v45, 16  ;;  %v1243_v55 = vshrl.u32 %v1141_v46, 16 }
  0x38   : > { %v1246_v56 = vshll.u32 %v1141_v46, 16  ;;  %v2226_v57 = vshrl.u32 %v8293_v47, 16  ;;  %v2232_v58 = vrot.slane %v2230_v48, 1  ;;  %v2224_v61 = vrot.slane %v2222_v52, 1 }
  0x39   : > { %v2220_v60 = vor.u32 %v2219_v51, %v2215_v43  ;;  %v1238_v62 = vrot.slane %v1236_v53, 7  ;;  %v754_v63 = vmul.f32 %v7737_v37, %v8125_v3  ;;  %7946 = vmatpush1.bf16.msra.mxu1 %v7985_v38  ;;  %3448 = vmatpush1.bf16.msra.mxu0 %v7985_v38  ;;  %v1245_v1 = vrot.slane %v1243_v55, 7 }
  0x3a   : > { %v886_v2 = vadd.f32 %v8150_v13, %v751_v42  ;;  %v887_v4 = vadd.f32 %v8150_v13, %v752_v49  ;;  %v888_v6 = vadd.f32 %v8150_v13, %v753_v50  ;;  %7935 = vmatprep.subr.bf16.mxu1 %v11591_v0  ;;  %3449 = vmatprep.subr.bf16.mxu0 %v11591_v0  ;;  %v7604_v39 = vunpack.c.l.bf16 %v7861_v25 }
  0x3b   : > { %v2225_v7 = vsel %vm1853_vm2, %v2220_v60, %v2224_v61  ;;  %v1241_v8 = vor.u32 %v1239_v54, %v1238_v62  ;;  %v2228_v9 = vor.u32 %v2226_v57, %v2224_v61  ;;  %v889_v10 = vadd.f32 %v8150_v13, %v754_v63 }
  0x3c   : > { %2606 = vrot.lane.b32.xlu0 %v2225_v7, %s8047_s14  ;;  %v1248_v11 = vor.u32 %v1246_v56, %v1245_v1  ;;  %v8316_v14 = vsel %vm8189_vm3, %v1245_v1, 0  ;;  %v1014_v15 = vmax.f32 %v886_v2, 0.0  ;;  %v1015_v16 = vmax.f32 %v887_v4, 0.0 }
  0x3d   : > { %v8320_v17 = vsel %vm8189_vm3, 0, %v1241_v8  ;;  %v2233_v18 = vsel %vm1853_vm2, %v2228_v9, %v2232_v58  ;;  %v1910_v23 = vshll.u32 %v8316_v14, 16  ;;  %v1016_v24 = vmax.f32 %v888_v6, 0.0  ;;  %7947 = vmatpush1.bf16.msra.mxu1 %v7986_v59  ;;  %3450 = vmatpush1.bf16.msra.mxu0 %v7986_v59 }
  0x3e   : > { %v8326_v26 = vsel %vm1204_vm0, %v1238_v62, %v1248_v11  ;;  %v1895_v29 = vshrl.u32 %v8320_v17, 16  ;;  %v1897_v30 = vshll.u32 %v8320_v17, 16  ;;  %v1017_v31 = vmax.f32 %v889_v10, 0.0  ;;  %4050 = vmatprep.subr.bf16.mxu1 %v11591_v0  ;;  %4698 = vmatprep.subr.bf16.mxu0 %v11591_v0  ;;  %v7895_v11 = vld [vmem:[%s8140_s18 + $0x130] sm:$0xff]  }
  0x3f   : > { %v1902_v33 = vshll.u32 %v8326_v26, 16  ;;  %v1906_v34 = vshrl.u32 %v8326_v26, 16  ;;  %v1912_v35 = vrot.slane %v1910_v23, 1  ;;  %v1174_v36 = vpack.c.bf16 %v1015_v16, %v1014_v15 }
  0x40   : > { %v1899_v37 = vrot.slane %v1897_v30, 1  ;;  %2608 = vrot.lane.b32.xlu0 %v2233_v18, %s8047_s14  ;;  %v1175_v38 = vpack.c.bf16 %v1017_v31, %v1016_v24  ;;  %v7605_v42 = vunpack.c.h.bf16 %v7861_v25  ;;  %v7608_v46 = vunpack.c.l.bf16 %v7862_v32  ;;  %v7896_v31 = vld [vmem:[%s8140_s18 + $0x138] sm:$0xff]  }
  0x41   : > { %v1904_v43 = vrot.slane %v1902_v33, 1  ;;  %v1491_v44 = vshrl.u32 %v1174_v36, 16  ;;  %v1494_v45 = vshll.u32 %v1174_v36, 16  ;;  %v7609_v51 = vunpack.c.h.bf16 %v7862_v32 }
  0x42   : > { %v1900_v48 = vor.u32 %v1899_v37, %v1895_v29  ;;  %v1498_v49 = vshrl.u32 %v1175_v38, 16  ;;  %v1501_v50 = vshll.u32 %v1175_v38, 16  ;;  %v687_v54 = vmul.f32 %v7604_v39, %v8125_v3 }
  0x43   : > { %v1908_v52 = vor.u32 %v1906_v34, %v1904_v43  ;;  %v1493_v53 = vrot.slane %v1491_v44, 7  ;;  %v688_v55 = vmul.f32 %v7605_v42, %v8125_v3  ;;  %v689_v58 = vmul.f32 %v7608_v46, %v8125_v3 }
  0x44   : > { %v1905_v56 = vsel %vm1853_vm2, %v1900_v48, %v1904_v43  ;;  %v1500_v57 = vrot.slane %v1498_v49, 7  ;;  %v690_v59 = vmul.f32 %v7609_v51, %v8125_v3  ;;  %v822_v62 = vadd.f32 %v8150_v13, %v687_v54  ;;  %v7863_v51 = vld [vmem:[%s8140_s18 + $0x30] sm:$0xff]  }
  0x45   : > { %2542 = vrot.lane.b32.xlu1 %v1905_v56, %s8047_s14  ;;  %v1913_v60 = vsel %vm1853_vm2, %v1908_v52, %v1912_v35  ;;  %v1496_v61 = vor.u32 %v1494_v45, %v1493_v53  ;;  %v823_v63 = vadd.f32 %v8150_v13, %v688_v55  ;;  %v824_v2 = vadd.f32 %v8150_v13, %v689_v58 }
  0x46   : > { %v1503_v1 = vor.u32 %v1501_v50, %v1500_v57  ;;  %v825_v4 = vadd.f32 %v8150_v13, %v690_v59  ;;  %v8349_v6 = vsel %vm8189_vm3, %v1500_v57, 0  ;;  %v950_v8 = vmax.f32 %v822_v62, 0.0 }
  0x47   : > { %v8353_v7 = vsel %vm8189_vm3, 0, %v1496_v61  ;;  %v951_v9 = vmax.f32 %v823_v63, 0.0  ;;  %v2250_v10 = vshll.u32 %v8349_v6, 16  ;;  %v952_v23 = vmax.f32 %v824_v2, 0.0 }
  0x48   : > { %v8358_v15 = vsel %vm1204_vm0, %v1493_v53, %v1503_v1  ;;  %v2235_v16 = vshrl.u32 %v8353_v7, 16  ;;  %v2237_v18 = vshll.u32 %v8353_v7, 16  ;;  %v953_v25 = vmax.f32 %v825_v4, 0.0 }
  0x49   : > { %2544 = vrot.lane.b32.xlu1 %v1913_v60, %s8047_s14  ;;  %v2242_v24 = vshll.u32 %v8358_v15, 16  ;;  %v1142_v29 = vpack.c.bf16 %v951_v9, %v950_v8  ;;  %v2246_v30 = vshrl.u32 %v8358_v15, 16  ;;  %v2252_v33 = vrot.slane %v2250_v10, 1 }
  0x4a   : > { %v2239_v32 = vrot.slane %v2237_v18, 1  ;;  %v7740_v34 = vunpack.c.l.bf16 %v7895_v11  ;;  %v7741_v35 = vunpack.c.h.bf16 %v7895_v11  ;;  %v1143_v37 = vpack.c.bf16 %v953_v25, %v952_v23  ;;  %v7864_v18 = vld [vmem:[%s8140_s18 + $0x38] sm:$0xff]  }
  0x4b   : > { %v2244_v36 = vrot.slane %v2242_v24, 1  ;;  %v1251_v38 = vshrl.u32 %v1142_v29, 16  ;;  %v1254_v39 = vshll.u32 %v1142_v29, 16  ;;  %v7744_v43 = vunpack.c.l.bf16 %v7896_v31 }
  0x4c   : > { %v2240_v42 = vor.u32 %v2239_v32, %v2235_v16  ;;  %v7745_v44 = vunpack.c.h.bf16 %v7896_v31  ;;  %v755_v45 = vmul.f32 %v7740_v34, %v8125_v3  ;;  %v1258_v48 = vshrl.u32 %v1143_v37, 16 }
  0x4d   : > { %v1253_v46 = vrot.slane %v1251_v38, 7  ;;  %v1261_v49 = vshll.u32 %v1143_v37, 16  ;;  %v2248_v50 = vor.u32 %v2246_v30, %v2244_v36  ;;  %v756_v53 = vmul.f32 %v7741_v35, %v8125_v3 }
  0x4e   : > { %v2245_v52 = vsel %vm1853_vm2, %v2240_v42, %v2244_v36  ;;  %v757_v54 = vmul.f32 %v7744_v43, %v8125_v3  ;;  %v758_v55 = vmul.f32 %v7745_v44, %v8125_v3  ;;  %v1260_v57 = vrot.slane %v1258_v48, 7 }
  0x4f   : > { %2610 = vrot.lane.b32.xlu0 %v2245_v52, %s8047_s14  ;;  %v1256_v56 = vor.u32 %v1254_v39, %v1253_v46  ;;  %v2253_v58 = vsel %vm1853_vm2, %v2248_v50, %v2252_v33  ;;  %v890_v59 = vadd.f32 %v8150_v13, %v755_v45  ;;  %v891_v60 = vadd.f32 %v8150_v13, %v756_v53 }
  0x50   : > { %v892_v61 = vadd.f32 %v8150_v13, %v757_v54  ;;  %v893_v62 = vadd.f32 %v8150_v13, %v758_v55  ;;  %v7612_v63 = vunpack.c.l.bf16 %v7863_v51  ;;  %v1263_v1 = vor.u32 %v1261_v49, %v1260_v57  ;;  %v7897_v49 = vld [vmem:[%s8140_s18 + $0x140] sm:$0xff]  }
  0x51   : > { %v8380_v2 = vsel %vm8189_vm3, 0, %v1256_v56  ;;  %v8384_v4 = vsel %vm8189_vm3, %v1260_v57, 0  ;;  %v1018_v8 = vmax.f32 %v890_v59, 0.0  ;;  %v1019_v16 = vmax.f32 %v891_v60, 0.0 }
  0x52   : > { %v1915_v9 = vshrl.u32 %v8380_v2, 16  ;;  %v1917_v10 = vshll.u32 %v8380_v2, 16  ;;  %v1930_v11 = vshll.u32 %v8384_v4, 16  ;;  %v8391_v23 = vsel %vm1204_vm0, %v1253_v46, %v1263_v1 }
  0x53   : > { %2612 = vrot.lane.b32.xlu0 %v2253_v58, %s8047_s14  ;;  %v1020_v24 = vmax.f32 %v892_v61, 0.0  ;;  %v1021_v25 = vmax.f32 %v893_v62, 0.0  ;;  %v7613_v29 = vunpack.c.h.bf16 %v7863_v51  ;;  %v1922_v31 = vshll.u32 %v8391_v23, 16 }
  0x54   : > { %v1919_v30 = vrot.slane %v1917_v10, 1  ;;  %v1926_v32 = vshrl.u32 %v8391_v23, 16  ;;  %v1932_v33 = vrot.slane %v1930_v11, 1  ;;  %v1176_v34 = vpack.c.bf16 %v1019_v16, %v1018_v8 }
  0x55   : > { %v1177_v35 = vpack.c.bf16 %v1021_v25, %v1020_v24  ;;  %v7616_v36 = vunpack.c.l.bf16 %v7864_v18  ;;  %v7617_v37 = vunpack.c.h.bf16 %v7864_v18  ;;  %v1924_v39 = vrot.slane %v1922_v31, 1 }
  0x56   : > { %v1920_v38 = vor.u32 %v1919_v30, %v1915_v9  ;;  %v691_v42 = vmul.f32 %v7612_v63, %v8125_v3  ;;  %v692_v43 = vmul.f32 %v7613_v29, %v8125_v3  ;;  %v1506_v44 = vshrl.u32 %v1176_v34, 16 }
  0x57   : > { %v1509_v45 = vshll.u32 %v1176_v34, 16  ;;  %v1513_v46 = vshrl.u32 %v1177_v35, 16  ;;  %v1516_v48 = vshll.u32 %v1177_v35, 16  ;;  %v1928_v51 = vor.u32 %v1926_v32, %v1924_v39  ;;  %v7898_v34 = vld [vmem:[%s8140_s18 + $0x148] sm:$0xff]  }
  0x58   : > { %v1925_v50 = vsel %vm1853_vm2, %v1920_v38, %v1924_v39  ;;  %v693_v52 = vmul.f32 %v7616_v36, %v8125_v3  ;;  %v694_v53 = vmul.f32 %v7617_v37, %v8125_v3  ;;  %v1508_v54 = vrot.slane %v1506_v44, 7 }
  0x59   : > { %2546 = vrot.lane.b32.xlu1 %v1925_v50, %s8047_s14  ;;  %v1515_v55 = vrot.slane %v1513_v46, 7  ;;  %v826_v56 = vadd.f32 %v8150_v13, %v691_v42  ;;  %v827_v57 = vadd.f32 %v8150_v13, %v692_v43  ;;  %v1933_v58 = vsel %vm1853_vm2, %v1928_v51, %v1932_v33 }
  0x5a   : > { %v828_v59 = vadd.f32 %v8150_v13, %v693_v52  ;;  %v829_v60 = vadd.f32 %v8150_v13, %v694_v53  ;;  %v7748_v61 = vunpack.c.l.bf16 %v7897_v49  ;;  %v1511_v62 = vor.u32 %v1509_v45, %v1508_v54 }
  0x5b   : > { %v1518_v63 = vor.u32 %v1516_v48, %v1515_v55  ;;  %v954_v1 = vmax.f32 %v826_v56, 0.0  ;;  %v955_v8 = vmax.f32 %v827_v57, 0.0  ;;  %v8410_v11 = vsel %vm8189_vm3, %v1515_v55, 0 }
  0x5c   : > { %v956_v9 = vmax.f32 %v828_v59, 0.0  ;;  %v957_v10 = vmax.f32 %v829_v60, 0.0  ;;  %v7749_v16 = vunpack.c.h.bf16 %v7897_v49  ;;  %v8418_v24 = vsel %vm8189_vm3, 0, %v1511_v62 }
  0x5d   : > { %2548 = vrot.lane.b32.xlu1 %v1933_v58, %s8047_s14  ;;  %v8414_v18 = vsel %vm1204_vm0, %v1508_v54, %v1518_v63  ;;  %v1144_v25 = vpack.c.bf16 %v955_v8, %v954_v1  ;;  %v2270_v29 = vshll.u32 %v8410_v11, 16  ;;  %v2255_v30 = vshrl.u32 %v8418_v24, 16 }
  0x5e   : > { %v2257_v31 = vshll.u32 %v8418_v24, 16  ;;  %v2262_v32 = vshll.u32 %v8414_v18, 16  ;;  %v1145_v33 = vpack.c.bf16 %v957_v10, %v956_v9  ;;  %v2266_v37 = vshrl.u32 %v8414_v18, 16 }
  0x5f   : > { %v1266_v35 = vshrl.u32 %v1144_v25, 16  ;;  %v1269_v36 = vshll.u32 %v1144_v25, 16  ;;  %v2272_v38 = vrot.slane %v2270_v29, 1  ;;  %v7752_v46 = vunpack.c.l.bf16 %v7898_v34  ;;  %v7865_v25 = vld [vmem:[%s8140_s18 + $0x40] sm:$0xff]   ;;  %v7866_v29 = vld [vmem:[%s8140_s18 + $0x48] sm:$0xff]  }
  0x60   : > { %v2259_v39 = vrot.slane %v2257_v31, 1  ;;  %v2264_v42 = vrot.slane %v2262_v32, 1  ;;  %v1273_v43 = vshrl.u32 %v1145_v33, 16  ;;  %v1276_v44 = vshll.u32 %v1145_v33, 16 }
  0x61   : > { %v1268_v45 = vrot.slane %v1266_v35, 7  ;;  %v7753_v48 = vunpack.c.h.bf16 %v7898_v34  ;;  %v759_v49 = vmul.f32 %v7748_v61, %v8125_v3  ;;  %v760_v53 = vmul.f32 %v7749_v16, %v8125_v3 }
  0x62   : > { %v2260_v50 = vor.u32 %v2259_v39, %v2255_v30  ;;  %v1275_v51 = vrot.slane %v1273_v43, 7  ;;  %v2268_v52 = vor.u32 %v2266_v37, %v2264_v42  ;;  %v761_v55 = vmul.f32 %v7752_v46, %v8125_v3 }
  0x63   : > { %v1271_v54 = vor.u32 %v1269_v36, %v1268_v45  ;;  %v762_v56 = vmul.f32 %v7753_v48, %v8125_v3  ;;  %v894_v57 = vadd.f32 %v8150_v13, %v759_v49  ;;  %v895_v63 = vadd.f32 %v8150_v13, %v760_v53 }
  0x64   : > { %v2265_v58 = vsel %vm1853_vm2, %v2260_v50, %v2264_v42  ;;  %v1278_v59 = vor.u32 %v1276_v44, %v1275_v51  ;;  %v2273_v60 = vsel %vm1853_vm2, %v2268_v52, %v2272_v38  ;;  %v8435_v61 = vsel %vm8189_vm3, %v1275_v51, 0  ;;  %v8457_v50 = vld [vmem:[%s8118_s9] ss:$0 sm:$0xff] }
  0x65   : > { %2614 = vrot.lane.b32.xlu0 %v2265_v58, %s8047_s14  ;;  %v8440_v62 = vsel %vm8189_vm3, 0, %v1271_v54  ;;  %v1950_v3 = vshll.u32 %v8435_v61, 16  ;;  %v896_v1 = vadd.f32 %v8150_v13, %v761_v55  ;;  %v897_v16 = vadd.f32 %v8150_v13, %v762_v56  ;;  %v7899_v58 = vld [vmem:[%s8140_s18 + $0x150] sm:$0xff]  }
  0x66   : > { %v8446_v8 = vsel %vm1204_vm0, %v1268_v45, %v1278_v59  ;;  %v1935_v9 = vshrl.u32 %v8440_v62, 16  ;;  %v1937_v10 = vshll.u32 %v8440_v62, 16  ;;  %v1022_v33 = vmax.f32 %v894_v57, 0.0 }
  0x67   : > { %v1942_v30 = vshll.u32 %v8446_v8, 16  ;;  %v1946_v31 = vshrl.u32 %v8446_v8, 16  ;;  %v1952_v32 = vrot.slane %v1950_v3, 1  ;;  %v1023_v35 = vmax.f32 %v895_v63, 0.0 }
  0x68   : > { %v1939_v34 = vrot.slane %v1937_v10, 1  ;;  %v1024_v36 = vmax.f32 %v896_v1, 0.0  ;;  %v1025_v37 = vmax.f32 %v897_v16, 0.0  ;;  %v7620_v39 = vunpack.c.l.bf16 %v7865_v25 }
  0x69   : > { %v1944_v38 = vrot.slane %v1942_v30, 1  ;;  %2616 = vrot.lane.b32.xlu0 %v2273_v60, %s8047_s14  ;;  %v7621_v42 = vunpack.c.h.bf16 %v7865_v25  ;;  %v7624_v43 = vunpack.c.l.bf16 %v7866_v29  ;;  %v1178_v45 = vpack.c.bf16 %v1023_v35, %v1022_v33  ;;  %v7900_v25 = vld [vmem:[%s8140_s18 + $0x158] sm:$0xff]  }
  0x6a   : > { %v1940_v44 = vor.u32 %v1939_v34, %v1935_v9  ;;  %v1179_v46 = vpack.c.bf16 %v1025_v37, %v1024_v36  ;;  %v7625_v48 = vunpack.c.h.bf16 %v7866_v29  ;;  %v695_v51 = vmul.f32 %v8457_v50, %v7620_v39 }
  0x6b   : > { %v1948_v49 = vor.u32 %v1946_v31, %v1944_v38  ;;  %v696_v52 = vmul.f32 %v8457_v50, %v7621_v42  ;;  %v697_v53 = vmul.f32 %v8457_v50, %v7624_v43  ;;  %v1521_v55 = vshrl.u32 %v1178_v45, 16 }
  0x6c   : > { %v1945_v54 = vsel %vm1853_vm2, %v1940_v44, %v1944_v38  ;;  %v1524_v56 = vshll.u32 %v1178_v45, 16  ;;  %v1528_v57 = vshrl.u32 %v1179_v46, 16  ;;  %v1531_v60 = vshll.u32 %v1179_v46, 16 }
  0x6d   : > { %2550 = vrot.lane.b32.xlu1 %v1945_v54, %s8047_s14  ;;  %v1953_v59 = vsel %vm1853_vm2, %v1948_v49, %v1952_v32  ;;  %v698_v3 = vmul.f32 %v8457_v50, %v7625_v48  ;;  %v830_v63 = vadd.f32 %v8150_v13, %v695_v51  ;;  %v1523_v1 = vrot.slane %v1521_v55, 7 }
  0x6e   : > { %v1530_v9 = vrot.slane %v1528_v57, 7  ;;  %v831_v10 = vadd.f32 %v8150_v13, %v696_v52  ;;  %v832_v16 = vadd.f32 %v8150_v13, %v697_v53  ;;  %v7756_v31 = vunpack.c.l.bf16 %v7899_v58 }
  0x6f   : > { %v833_v29 = vadd.f32 %v8150_v13, %v698_v3  ;;  %v958_v30 = vmax.f32 %v830_v63, 0.0  ;;  %v7757_v33 = vunpack.c.h.bf16 %v7899_v58  ;;  %v1526_v34 = vor.u32 %v1524_v56, %v1523_v1 }
  0x70   : > { %v1533_v35 = vor.u32 %v1531_v60, %v1530_v9  ;;  %v959_v32 = vmax.f32 %v831_v10, 0.0  ;;  %v960_v36 = vmax.f32 %v832_v16, 0.0  ;;  %v8475_v38 = vsel %vm8189_vm3, %v1530_v9, 0 }
  0x71   : > { %2552 = vrot.lane.b32.xlu1 %v1953_v59, %s8047_s14  ;;  %v961_v37 = vmax.f32 %v833_v29, 0.0  ;;  %v7760_v39 = vunpack.c.l.bf16 %v7900_v25  ;;  %v7761_v42 = vunpack.c.h.bf16 %v7900_v25  ;;  %v8482_v13 = vsel %vm8189_vm3, 0, %v1526_v34 }
  0x72   : > { %v8478_v43 = vsel %vm1204_vm0, %v1523_v1, %v1533_v35  ;;  %v1146_v44 = vpack.c.bf16 %v959_v32, %v958_v30  ;;  %v2290_v45 = vshll.u32 %v8475_v38, 16  ;;  %v2275_v46 = vshrl.u32 %v8482_v13, 16  ;;  %v8494_v30 = vld [vmem:[%s8133_s15] ss:$0 sm:$0xff] }
  0x73   : > { %v2277_v48 = vshll.u32 %v8482_v13, 16  ;;  %v2282_v49 = vshll.u32 %v8478_v43, 16  ;;  %v1147_v51 = vpack.c.bf16 %v961_v37, %v960_v36  ;;  %v2286_v54 = vshrl.u32 %v8478_v43, 16 }
  0x74   : > { %v1281_v52 = vshrl.u32 %v1146_v44, 16  ;;  %v1284_v53 = vshll.u32 %v1146_v44, 16  ;;  %v2292_v55 = vrot.slane %v2290_v45, 1  ;;  %v763_v3 = vmul.f32 %v8457_v50, %v7756_v31 }
  0x75   : > { %v2279_v56 = vrot.slane %v2277_v48, 1  ;;  %v2284_v57 = vrot.slane %v2282_v49, 1  ;;  %v1288_v58 = vshrl.u32 %v1147_v51, 16  ;;  %v1291_v59 = vshll.u32 %v1147_v51, 16 }
  0x76   : > { %v1283_v60 = vrot.slane %v1281_v52, 7  ;;  %v764_v63 = vmul.f32 %v8457_v50, %v7757_v33  ;;  %v765_v1 = vmul.f32 %v8457_v50, %v7760_v39  ;;  %v766_v25 = vmul.f32 %v8457_v50, %v7761_v42 }
  0x77   : > { %v2280_v9 = vor.u32 %v2279_v56, %v2275_v46  ;;  %v1290_v10 = vrot.slane %v1288_v58, 7  ;;  %v2288_v16 = vor.u32 %v2286_v54, %v2284_v57  ;;  %v898_v34 = vadd.f32 %v8494_v30, %v763_v3  ;;  %v7867_v46 = vld [vmem:[%s8140_s18 + $0x50] sm:$0xff]  }
  0x78   : > { %v1286_v29 = vor.u32 %v1284_v53, %v1283_v60  ;;  %v899_v35 = vadd.f32 %v8494_v30, %v764_v63  ;;  %v900_v31 = vadd.f32 %v8494_v30, %v765_v1  ;;  %v901_v44 = vadd.f32 %v8494_v30, %v766_v25  ;;  %v7868_v53 = vld [vmem:[%s8140_s18 + $0x58] sm:$0xff]  }
  0x79   : > { %v2285_v33 = vsel %vm1853_vm2, %v2280_v9, %v2284_v57  ;;  %v1293_v32 = vor.u32 %v1291_v59, %v1290_v10  ;;  %v2293_v36 = vsel %vm1853_vm2, %v2288_v16, %v2292_v55  ;;  %v8503_v37 = vsel %vm8189_vm3, %v1290_v10, 0 }
  0x7a   : > { %2618 = vrot.lane.b32.xlu0 %v2285_v33, %s8047_s14  ;;  %v8508_v39 = vsel %vm8189_vm3, 0, %v1286_v29  ;;  %v1970_v42 = vshll.u32 %v8503_v37, 16  ;;  %v1026_v45 = vmax.f32 %v898_v34, 0.0  ;;  %v1027_v52 = vmax.f32 %v899_v35, 0.0 }
  0x7b   : > { %v8514_v48 = vsel %vm1204_vm0, %v1283_v60, %v1293_v32  ;;  %v1955_v49 = vshrl.u32 %v8508_v39, 16  ;;  %v1957_v51 = vshll.u32 %v8508_v39, 16  ;;  %v1028_v57 = vmax.f32 %v900_v31, 0.0 }
  0x7c   : > { %v1962_v54 = vshll.u32 %v8514_v48, 16  ;;  %v1966_v55 = vshrl.u32 %v8514_v48, 16  ;;  %v1972_v56 = vrot.slane %v1970_v42, 1  ;;  %v1029_v59 = vmax.f32 %v901_v44, 0.0  ;;  %v7901_v42 = vld [vmem:[%s8140_s18 + $0x160] sm:$0xff]  }
  0x7d   : > { %v1959_v58 = vrot.slane %v1957_v51, 1  ;;  %v1180_v3 = vpack.c.bf16 %v1027_v52, %v1026_v45  ;;  %v7628_v63 = vunpack.c.l.bf16 %v7867_v46  ;;  %v7629_v60 = vunpack.c.h.bf16 %v7867_v46 }
  0x7e   : > { %v1964_v1 = vrot.slane %v1962_v54, 1  ;;  %2620 = vrot.lane.b32.xlu0 %v2293_v36, %s8047_s14  ;;  %v7632_v9 = vunpack.c.l.bf16 %v7868_v53  ;;  %v7633_v10 = vunpack.c.h.bf16 %v7868_v53  ;;  %v1181_v25 = vpack.c.bf16 %v1029_v59, %v1028_v57 }
  0x7f   : > { %v1960_v16 = vor.u32 %v1959_v58, %v1955_v49  ;;  %v1536_v29 = vshrl.u32 %v1180_v3, 16  ;;  %v1539_v34 = vshll.u32 %v1180_v3, 16  ;;  %v699_v33 = vmul.f32 %v8457_v50, %v7628_v63 }
  0x80   : > { %v1968_v35 = vor.u32 %v1966_v55, %v1964_v1  ;;  %v700_v31 = vmul.f32 %v8457_v50, %v7629_v60  ;;  %v701_v32 = vmul.f32 %v8457_v50, %v7632_v9  ;;  %v1543_v36 = vshrl.u32 %v1181_v25, 16  ;;  %v7902_v60 = vld [vmem:[%s8140_s18 + $0x168] sm:$0xff]  }
  0x81   : > { %v1965_v44 = vsel %vm1853_vm2, %v1960_v16, %v1964_v1  ;;  %v1538_v45 = vrot.slane %v1536_v29, 7  ;;  %v1546_v46 = vshll.u32 %v1181_v25, 16  ;;  %v702_v51 = vmul.f32 %v8457_v50, %v7633_v10 }
  0x82   : > { %2554 = vrot.lane.b32.xlu1 %v1965_v44, %s8047_s14  ;;  %v1973_v49 = vsel %vm1853_vm2, %v1968_v35, %v1972_v56  ;;  %v834_v52 = vadd.f32 %v8494_v30, %v699_v33  ;;  %v835_v53 = vadd.f32 %v8494_v30, %v700_v31  ;;  %v1545_v55 = vrot.slane %v1543_v36, 7 }
  0x83   : > { %v1541_v54 = vor.u32 %v1539_v34, %v1538_v45  ;;  %v836_v57 = vadd.f32 %v8494_v30, %v701_v32  ;;  %v7764_v58 = vunpack.c.l.bf16 %v7901_v42  ;;  %v837_v59 = vadd.f32 %v8494_v30, %v702_v51 }
  0x84   : > { %v962_v3 = vmax.f32 %v834_v52, 0.0  ;;  %v963_v63 = vmax.f32 %v835_v53, 0.0  ;;  %v7765_v1 = vunpack.c.h.bf16 %v7901_v42  ;;  %v1548_v9 = vor.u32 %v1546_v46, %v1545_v55 }
  0x85   : > { %v8537_v56 = vsel %vm8189_vm3, 0, %v1541_v54  ;;  %v964_v10 = vmax.f32 %v836_v57, 0.0  ;;  %v8541_v16 = vsel %vm8189_vm3, %v1545_v55, 0  ;;  %v965_v34 = vmax.f32 %v837_v59, 0.0 }
  0x86   : > { %11816 = vst [vmem:[#allocation2_spill] sm:$0xff] %v8541_v16  ;;  %2556 = vrot.lane.b32.xlu1 %v1973_v49, %s8047_s14  ;;  %v2295_v25 = vshrl.u32 %v8537_v56, 16  ;;  %v2297_v29 = vshll.u32 %v8537_v56, 16  ;;  %v1148_v35 = vpack.c.bf16 %v963_v63, %v962_v3  ;;  %v8547_v33 = vsel %vm1204_vm0, %v1538_v45, %v1548_v9 }
  0x87   : > { %v2310_v31 = vshll.u32 %v8541_v16, 16  ;;  %v7768_v32 = vunpack.c.l.bf16 %v7902_v60  ;;  %v7769_v42 = vunpack.c.h.bf16 %v7902_v60  ;;  %v2302_v36 = vshll.u32 %v8547_v33, 16 }
  0x88   : > { %v2299_v44 = vrot.slane %v2297_v29, 1  ;;  %v1149_v46 = vpack.c.bf16 %v965_v34, %v964_v10  ;;  %v1296_v51 = vshrl.u32 %v1148_v35, 16  ;;  %v1299_v52 = vshll.u32 %v1148_v35, 16 }
  0x89   : > { %v2306_v49 = vshrl.u32 %v8547_v33, 16  ;;  %v2312_v53 = vrot.slane %v2310_v31, 1  ;;  %v767_v54 = vmul.f32 %v8457_v50, %v7764_v58  ;;  %v2304_v57 = vrot.slane %v2302_v36, 1 }
  0x8a   : > { %v2300_v55 = vor.u32 %v2299_v44, %v2295_v25  ;;  %v1298_v59 = vrot.slane %v1296_v51, 7  ;;  %v1303_v45 = vshrl.u32 %v1149_v46, 16  ;;  %v1306_v3 = vshll.u32 %v1149_v46, 16 }
  0x8b   : > { %v768_v63 = vmul.f32 %v8457_v50, %v7765_v1  ;;  %v769_v60 = vmul.f32 %v8457_v50, %v7768_v32  ;;  %v770_v9 = vmul.f32 %v8457_v50, %v7769_v42  ;;  %v2308_v35 = vor.u32 %v2306_v49, %v2304_v57 }
  0x8c   : > { %v2305_v10 = vsel %vm1853_vm2, %v2300_v55, %v2304_v57  ;;  %v1301_v29 = vor.u32 %v1299_v52, %v1298_v59  ;;  %v1305_v34 = vrot.slane %v1303_v45, 7  ;;  %v902_v58 = vadd.f32 %v8494_v30, %v767_v54  ;;  %v7869_v54 = vld [vmem:[%s8140_s18 + $0x60] sm:$0xff]  }
  0x8d   : > { %2622 = vrot.lane.b32.xlu0 %v2305_v10, %s8047_s14  ;;  %v903_v25 = vadd.f32 %v8494_v30, %v768_v63  ;;  %v904_v31 = vadd.f32 %v8494_v30, %v769_v60  ;;  %v905_v1 = vadd.f32 %v8494_v30, %v770_v9  ;;  %v2313_v44 = vsel %vm1853_vm2, %v2308_v35, %v2312_v53  ;;  %v7870_v63 = vld [vmem:[%s8140_s18 + $0x68] sm:$0xff]  }
  0x8e   : > { %v1308_v32 = vor.u32 %v1306_v3, %v1305_v34  ;;  %v8564_v42 = vsel %vm8189_vm3, 0, %v1301_v29  ;;  %v8569_v36 = vsel %vm8189_vm3, %v1305_v34, 0  ;;  %v1030_v49 = vmax.f32 %v902_v58, 0.0 }
  0x8f   : > { %11817 = vst [vmem:[#allocation3_spill] sm:$0xff] %v8564_v42  ;;  %11818 = vst [vmem:[#allocation4_spill] sm:$0xff] %v8569_v36  ;;  %v1975_v46 = vshrl.u32 %v8564_v42, 16  ;;  %v1977_v51 = vshll.u32 %v8564_v42, 16  ;;  %v1990_v52 = vshll.u32 %v8569_v36, 16  ;;  %v1031_v57 = vmax.f32 %v903_v25, 0.0 }
  0x90   : > { %v8576_v55 = vsel %vm1204_vm0, %v1298_v59, %v1308_v32  ;;  %v1032_v45 = vmax.f32 %v904_v31, 0.0  ;;  %v1033_v3 = vmax.f32 %v905_v1, 0.0  ;;  %v7636_v35 = vunpack.c.l.bf16 %v7869_v54  ;;  %v7903_v36 = vld [vmem:[%s8140_s18 + $0x170] sm:$0xff]  }
  0x91   : > { %11819 = vst [vmem:[#allocation5_spill] sm:$0xff] %v8576_v55  ;;  %v1979_v53 = vrot.slane %v1977_v51, 1  ;;  %v1982_v60 = vshll.u32 %v8576_v55, 16  ;;  %2624 = vrot.lane.b32.xlu0 %v2313_v44, %s8047_s14  ;;  %v1986_v9 = vshrl.u32 %v8576_v55, 16  ;;  %v1992_v10 = vrot.slane %v1990_v52, 1 }
  0x92   : > { %v1182_v29 = vpack.c.bf16 %v1031_v57, %v1030_v49  ;;  %v1183_v34 = vpack.c.bf16 %v1033_v3, %v1032_v45  ;;  %v7637_v58 = vunpack.c.h.bf16 %v7869_v54  ;;  %v7640_v32 = vunpack.c.l.bf16 %v7870_v63 }
  0x93   : > { %v1980_v19 = vor.u32 %v1979_v53, %v1975_v46  ;;  %v1984_v59 = vrot.slane %v1982_v60, 1  ;;  %v7641_v25 = vunpack.c.h.bf16 %v7870_v63  ;;  %v703_v44 = vmul.f32 %v8457_v50, %v7636_v35 }
  0x94   : > { %v1551_v31 = vshrl.u32 %v1182_v29, 16  ;;  %v1554_v1 = vshll.u32 %v1182_v29, 16  ;;  %v1558_v0 = vshrl.u32 %v1183_v34, 16  ;;  %v1561_v51 = vshll.u32 %v1183_v34, 16 }
  0x95   : > { %v1985_v16 = vsel %vm1853_vm2, %v1980_v19, %v1984_v59  ;;  %v1988_v42 = vor.u32 %v1986_v9, %v1984_v59  ;;  %v704_v52 = vmul.f32 %v8457_v50, %v7637_v58  ;;  %v705_v54 = vmul.f32 %v8457_v50, %v7640_v32  ;;  %v7904_v58 = vld [vmem:[%s8140_s18 + $0x178] sm:$0xff]  }
  0x96   : > { %2558 = vrot.lane.b32.xlu1 %v1985_v16, %s8047_s14  ;;  %v1553_v49 = vrot.slane %v1551_v31, 7  ;;  %v1560_v46 = vrot.slane %v1558_v0, 7  ;;  %v706_v57 = vmul.f32 %v8457_v50, %v7641_v25  ;;  %v838_v3 = vadd.f32 %v8494_v30, %v703_v44 }
  0x97   : > { %v1993_v45 = vsel %vm1853_vm2, %v1988_v42, %v1992_v10  ;;  %v839_v19 = vadd.f32 %v8494_v30, %v704_v52  ;;  %v7772_v63 = vunpack.c.l.bf16 %v7903_v36  ;;  %v840_v9 = vadd.f32 %v8494_v30, %v705_v54 }
  0x98   : > { %v1556_v53 = vor.u32 %v1554_v1, %v1553_v49  ;;  %v1563_v60 = vor.u32 %v1561_v51, %v1560_v46  ;;  %v841_v16 = vadd.f32 %v8494_v30, %v706_v57  ;;  %v966_v29 = vmax.f32 %v838_v3, 0.0 }
  0x99   : > { %v967_v34 = vmax.f32 %v839_v19, 0.0  ;;  %v8596_v0 = vsel %vm8189_vm3, %v1560_v46, 0  ;;  %v7773_v35 = vunpack.c.h.bf16 %v7903_v36  ;;  %v968_v59 = vmax.f32 %v840_v9, 0.0 }
  0x9a   : > { %2560 = vrot.lane.b32.xlu1 %v1993_v45, %s8047_s14  ;;  %v8601_v42 = vsel %vm1204_vm0, %v1553_v49, %v1563_v60  ;;  %v8605_v10 = vsel %vm8189_vm3, 0, %v1556_v53  ;;  %v969_v32 = vmax.f32 %v841_v16, 0.0  ;;  %v2330_v52 = vshll.u32 %v8596_v0, 16 }
  0x9b   : > { %11820 = vst [vmem:[#allocation6_spill] sm:$0xff] %v8605_v10  ;;  %v2315_v25 = vshrl.u32 %v8605_v10, 16  ;;  %v2317_v31 = vshll.u32 %v8605_v10, 16  ;;  %v2322_v1 = vshll.u32 %v8601_v42, 16  ;;  %v1150_v51 = vpack.c.bf16 %v967_v34, %v966_v29 }
  0x9c   : > { %v1151_v36 = vpack.c.bf16 %v969_v32, %v968_v59  ;;  %v2326_v44 = vshrl.u32 %v8601_v42, 16  ;;  %v7776_v49 = vunpack.c.l.bf16 %v7904_v58  ;;  %v2332_v53 = vrot.slane %v2330_v52, 1 }
  0x9d   : > { %v2319_v46 = vrot.slane %v2317_v31, 1  ;;  %v2324_v54 = vrot.slane %v2322_v1, 1  ;;  %v1311_v57 = vshrl.u32 %v1150_v51, 16  ;;  %v1314_v45 = vshll.u32 %v1150_v51, 16 }
  0x9e   : > { %v1318_v3 = vshrl.u32 %v1151_v36, 16  ;;  %v1321_v19 = vshll.u32 %v1151_v36, 16  ;;  %v7777_v60 = vunpack.c.h.bf16 %v7904_v58  ;;  %v771_v55 = vmul.f32 %v8457_v50, %v7772_v63 }
  0x9f   : > { %v2320_v9 = vor.u32 %v2319_v46, %v2315_v25  ;;  %v1313_v16 = vrot.slane %v1311_v57, 7  ;;  %v2328_v10 = vor.u32 %v2326_v44, %v2324_v54  ;;  %v772_v34 = vmul.f32 %v8457_v50, %v7773_v35 }
  0xa0   : > { %v1320_v29 = vrot.slane %v1318_v3, 7  ;;  %v773_v59 = vmul.f32 %v8457_v50, %v7776_v49  ;;  %v774_v32 = vmul.f32 %v8457_v50, %v7777_v60  ;;  %v906_v36 = vadd.f32 %v8494_v30, %v771_v55 }
  0xa1   : > { %v2325_v31 = vsel %vm1853_vm2, %v2320_v9, %v2324_v54  ;;  %v1316_v1 = vor.u32 %v1314_v45, %v1313_v16  ;;  %v2333_v51 = vsel %vm1853_vm2, %v2328_v10, %v2332_v53  ;;  %v907_v35 = vadd.f32 %v8494_v30, %v772_v34  ;;  %v2603_v34 = vpop.permute.xlu0 %2602 }
  0xa2   : > { %2626 = vrot.lane.b32.xlu0 %v2325_v31, %s8047_s14  ;;  %v1323_v58 = vor.u32 %v1321_v19, %v1320_v29  ;;  %v8622_v63 = vsel %vm8189_vm3, %v1320_v29, 0  ;;  %v908_v25 = vadd.f32 %v8494_v30, %v773_v59  ;;  %v909_v10 = vadd.f32 %v8494_v30, %v774_v32 }
  0xa3   : > { %v8628_v44 = vsel %vm8189_vm3, 0, %v1316_v1  ;;  %v2010_v52 = vshll.u32 %v8622_v63, 16  ;;  %v1034_v55 = vmax.f32 %v906_v36, 0.0  ;;  %v1035_v57 = vmax.f32 %v907_v35, 0.0 }
  0xa4   : > { %v8633_v49 = vsel %vm1204_vm0, %v1313_v16, %v1323_v58  ;;  %v1995_v46 = vshrl.u32 %v8628_v44, 16  ;;  %v1997_v54 = vshll.u32 %v8628_v44, 16  ;;  %v1036_v53 = vmax.f32 %v908_v25, 0.0  ;;  %v7871_v16 = vld [vmem:[%s8140_s18 + $0x70] sm:$0xff]   ;;  %v7872_v25 = vld [vmem:[%s8140_s18 + $0x78] sm:$0xff]  }
  0xa5   : > { %v2002_v45 = vshll.u32 %v8633_v49, 16  ;;  %v2006_v3 = vshrl.u32 %v8633_v49, 16  ;;  %v2012_v19 = vrot.slane %v2010_v52, 1  ;;  %v1037_v9 = vmax.f32 %v909_v10, 0.0 }
  0xa6   : > { %v1999_v60 = vrot.slane %v1997_v54, 1  ;;  %2628 = vrot.lane.b32.xlu0 %v2333_v51, %s8047_s14  ;;  %v1184_v29 = vpack.c.bf16 %v1035_v57, %v1034_v55  ;;  %v2824_v32 = vrot.slane %v8212_v21, 1  ;;  %v11601_v31 = vrot.slane %v8208_v20, 1  ;;  %v7987_v51 = vld [vmem:[%s11586_s3] sm:$0xff]  }
  0xa7   : > { %v2004_v59 = vrot.slane %v2002_v45, 1  ;;  %v1185_v36 = vpack.c.bf16 %v1037_v9, %v1036_v53  ;;  %v8654_v55 = vsel %vm2909_vm5, %v8212_v21, %v2603_v34  ;;  %v7644_v54 = vunpack.c.l.bf16 %v7871_v16 }
  0xa8   : > { %v2000_v1 = vor.u32 %v1999_v60, %v1995_v46  ;;  %v1566_v58 = vshrl.u32 %v1184_v29, 16  ;;  %v1569_v35 = vshll.u32 %v1184_v29, 16  ;;  %v8650_v10 = vsel %vm2738_vm4, %v2824_v32, %v11601_v31  ;;  %11822 = vst [vmem:[#allocation8_spill] sm:$0xff] %v8654_v55 }
  0xa9   : > { %v2008_v52 = vor.u32 %v2006_v3, %v2004_v59  ;;  %11821 = vst [vmem:[#allocation7_spill] sm:$0xff] %v8650_v10  ;;  %v1573_v45 = vshrl.u32 %v1185_v36, 16  ;;  %v1576_v53 = vshll.u32 %v1185_v36, 16  ;;  %7117 = vmatprep.mubr.msk.bf16.mxu1 %vm2909_vm5, %v8650_v10  ;;  %v7645_v60 = vunpack.c.h.bf16 %v7871_v16 }
  0xaa   : > { %v2005_v46 = vsel %vm1853_vm2, %v2000_v1, %v2004_v59  ;;  %v1568_v57 = vrot.slane %v1566_v58, 7  ;;  %3716 = vmatmul.mubr.bf16.vlgmr.msra.gmra.mrb[0].mxu1 %v8654_v55  ;;  %v7648_v9 = vunpack.c.l.bf16 %v7872_v25  ;;  %v7649_v29 = vunpack.c.h.bf16 %v7872_v25  ;;  %v7989_v1 = vld [vmem:[%s11586_s3 + $0x8] sm:$0xff]  }
  0xab   : > { %2562 = vrot.lane.b32.xlu1 %v2005_v46, %s8047_s14  ;;  %v2013_v3 = vsel %vm1853_vm2, %v2008_v52, %v2012_v19  ;;  %v1575_v34 = vrot.slane %v1573_v45, 7  ;;  %v707_v32 = vmul.f32 %v8457_v50, %v7644_v54  ;;  %4051 = vmatpush1.bf16.msra.mxu1 %v7987_v51  ;;  %v2744_v59 = vrot.slane %v8228_v28, 1 }
  0xac   : > { %v1571_v21 = vor.u32 %v1569_v35, %v1568_v57  ;;  %v708_v36 = vmul.f32 %v8457_v50, %v7645_v60  ;;  %v709_v19 = vmul.f32 %v8457_v50, %v7648_v9  ;;  %v710_v58 = vmul.f32 %v8457_v50, %v7649_v29  ;;  %v2539_v9 = vpop.permute.xlu0 %2538  ;;  %v2605_v29 = vpop.permute.xlu1 %2604 }
  0xad   : > { %v2745_v16 = vrot.slane %v8223_v27, 1  ;;  %v11823_v25 = vmov 0   ;;  %v1578_v35 = vor.u32 %v1576_v53, %v1575_v34  ;;  %v842_v52 = vadd.f32 %v8494_v30, %v707_v32 }
  0xae   : > { %4052 = vmatprep.subr.bf16.mxu1 %v11823_v25  ;;  %v8674_v51 = vsel %vm8189_vm3, 0, %v1571_v21  ;;  %v8679_v54 = vsel %vm8189_vm3, %v1575_v34, 0  ;;  %v843_v60 = vadd.f32 %v8494_v30, %v708_v36  ;;  %v844_v53 = vadd.f32 %v8494_v30, %v709_v19 }
  0xaf   : > { %11824 = vst [vmem:[#allocation9_spill] sm:$0xff] %v8679_v54  ;;  %2564 = vrot.lane.b32.xlu1 %v2013_v3, %s8047_s14  ;;  %v2335_v46 = vshrl.u32 %v8674_v51, 16  ;;  %v2337_v45 = vshll.u32 %v8674_v51, 16  ;;  %v8687_v21 = vsel %vm1204_vm0, %v1568_v57, %v1578_v35  ;;  %v845_v32 = vadd.f32 %v8494_v30, %v710_v58  ;;  %v7988_v3 = vld [vmem:[%s11586_s3 + $0xc0] sm:$0xff]   ;;  %4053 = vmatpush1.bf16.msra.mxu1 %v7989_v1  ;;  %v7991_v35 = vld [vmem:[%s11586_s3 + $0x10] sm:$0xff]  }
  0xb0   : > { %11825 = vst [vmem:[#allocation10_spill] sm:$0xff] %v8687_v21  ;;  %v970_v31 = vmax.f32 %v842_v52, 0.0  ;;  %v8691_v34 = vsel %vm2738_vm4, %v2744_v59, %v2745_v16  ;;  %v2342_v36 = vshll.u32 %v8687_v21, 16  ;;  %v971_v19 = vmax.f32 %v843_v60, 0.0  ;;  %4054 = vmatprep.subr.bf16.mxu1 %v11823_v25 }
  0xb1   : > { %11826 = vst [vmem:[#allocation11_spill] sm:$0xff] %v8691_v34  ;;  %v2339_v55 = vrot.slane %v2337_v45, 1  ;;  %v972_v10 = vmax.f32 %v844_v53, 0.0  ;;  %7085 = vmatprep.mubr.msk.bf16.mxu0 %vm2909_vm5, %v8691_v34  ;;  %v973_v57 = vmax.f32 %v845_v32, 0.0  ;;  %v2346_v59 = vshrl.u32 %v8687_v21, 16 }
  0xb2   : > { %v2350_v58 = vshll.u32 %v8679_v54, 16  ;;  %v8704_v1 = vsel %vm2909_vm5, %v8228_v28, %v2539_v9  ;;  %v2344_v45 = vrot.slane %v2342_v36, 1  ;;  %v1152_v60 = vpack.c.bf16 %v971_v19, %v970_v31  ;;  %v7905_v54 = vld [vmem:[%s8140_s18 + $0x180] sm:$0xff]  }
  0xb3   : > { %11827 = vst [vmem:[#allocation12_spill] sm:$0xff] %v8704_v1  ;;  %v2340_v52 = vor.u32 %v2339_v55, %v2335_v46  ;;  %3460 = vmatmul.mubr.bf16.vlgmr.msra.gmra.mrb[0].mxu0 %v8704_v1  ;;  %v11828_v53 = vrot.slane %v8198_v12, 1  ;;  %v11829_v32 = vrot.slane %v8208_v20, 1  ;;  %v1153_v21 = vpack.c.bf16 %v973_v57, %v972_v10  ;;  %v7906_v46 = vld [vmem:[%s8140_s18 + $0x188] sm:$0xff]   ;;  %4055 = vmatpush1.bf16.msra.mxu1 %v7991_v35 }
  0xb4   : > { %v2352_v28 = vrot.slane %v2350_v58, 1  ;;  %4699 = vmatpush1.bf16.msra.mxu0 %v7988_v3  ;;  %v8722_v55 = vsel %vm2909_vm5, %v8208_v20, %v2605_v29  ;;  %v2747_v31 = vrot.slane %v8216_v22, 1  ;;  %v7990_v12 = vld [vmem:[%s11586_s3 + $0xc8] sm:$0xff]   ;;  %v1326_v36 = vshrl.u32 %v1152_v60, 16  ;;  %v2541_v3 = vpop.permute.xlu1 %2540  ;;  %v7993_v58 = vld [vmem:[%s11586_s3 + $0x18] sm:$0xff]   ;;  %4056 = vmatprep.subr.bf16.mxu1 %v11823_v25 }
  0xb5   : > { %v8715_v34 = vsel %vm2738_vm4, %v11829_v32, %v11828_v53  ;;  %11831 = vst [vmem:[#allocation14_spill] sm:$0xff] %v8722_v55  ;;  %v2345_v9 = vsel %vm1853_vm2, %v2340_v52, %v2344_v45  ;;  %v1329_v10 = vshll.u32 %v1152_v60, 16  ;;  %v2348_v19 = vor.u32 %v2346_v59, %v2344_v45  ;;  %4700 = vmatprep.subr.bf16.mxu0 %v11823_v25  ;;  %v7992_v32 = vld [vmem:[%s11586_s3 + $0xd0] sm:$0xff]  }
  0xb6   : > { %11830 = vst [vmem:[#allocation13_spill] sm:$0xff] %v8715_v34  ;;  %7118 = vmatprep.mubr.msk.bf16.mxu1 %vm2909_vm5, %v8715_v34  ;;  %2630 = vrot.lane.b32.xlu0 %v2345_v9, %s8047_s14  ;;  %v1333_v20 = vshrl.u32 %v1153_v21, 16  ;;  %v1336_v29 = vshll.u32 %v1153_v21, 16  ;;  %v8734_v22 = vsel %vm2738_vm4, %v2745_v16, %v2747_v31  ;;  %v7780_v57 = vunpack.c.l.bf16 %v7905_v54 }
  0xb7   : > { %3724 = vmatmul.mubr.bf16.gmra.mrb[4].mxu1 %v8722_v55  ;;  %11832 = vst [vmem:[#allocation15_spill] sm:$0xff] %v8734_v22  ;;  %v1328_v52 = vrot.slane %v1326_v36, 7  ;;  %v2353_v59 = vsel %vm1853_vm2, %v2348_v19, %v2352_v28  ;;  %7086 = vmatprep.mubr.msk.bf16.mxu0 %vm2909_vm5, %v8734_v22  ;;  %v7781_v45 = vunpack.c.h.bf16 %v7905_v54  ;;  %v7784_v60 = vunpack.c.l.bf16 %v7906_v46 }
  0xb8   : > { %v1335_v21 = vrot.slane %v1333_v20, 7  ;;  %v7785_v53 = vunpack.c.h.bf16 %v7906_v46  ;;  %v775_v16 = vmul.f32 %v8457_v50, %v7780_v57  ;;  %v8746_v35 = vsel %vm2909_vm5, %v8223_v27, %v2541_v3  ;;  %4701 = vmatpush1.bf16.msra.mxu0 %v7990_v12  ;;  %4057 = vmatpush1.bf16.msra.mxu1 %v7993_v58 }
  0xb9   : > { %11833 = vst [vmem:[#allocation16_spill] sm:$0xff] %v8746_v35  ;;  %v1331_v28 = vor.u32 %v1329_v10, %v1328_v52  ;;  %v776_v31 = vmul.f32 %v8457_v50, %v7781_v45  ;;  %v777_v54 = vmul.f32 %v8457_v50, %v7784_v60  ;;  %v2829_v9 = vrot.slane %v8283_v40, 1  ;;  %4702 = vmatprep.subr.bf16.mxu0 %v11823_v25  ;;  %v7995_v10 = vld [vmem:[%s11586_s3 + $0x20] sm:$0xff]  }
  0xba   : > { %v1338_v46 = vor.u32 %v1336_v29, %v1335_v21  ;;  %2632 = vrot.lane.b32.xlu0 %v2353_v59, %s8047_s14  ;;  %v8758_v27 = vsel %vm8189_vm3, %v1335_v21, 0  ;;  %v778_v12 = vmul.f32 %v8457_v50, %v7785_v53  ;;  %v910_v36 = vadd.f32 %v8494_v30, %v775_v16  ;;  %4058 = vmatprep.subr.bf16.mxu1 %v11823_v25  ;;  %v7873_v60 = vld [vmem:[%s8140_s18 + $0x80] sm:$0xff]   ;;  %v7994_v21 = vld [vmem:[%s11586_s3 + $0xd8] sm:$0xff]  }
  0xbb   : > { %11834 = vst [vmem:[#allocation17_spill] sm:$0xff] %v8758_v27  ;;  %v8767_v19 = vsel %vm8189_vm3, 0, %v1331_v28  ;;  %v2030_v3 = vshll.u32 %v8758_v27, 16  ;;  %v911_v20 = vadd.f32 %v8494_v30, %v776_v31  ;;  %v912_v29 = vadd.f32 %v8494_v30, %v777_v54  ;;  %3468 = vmatmul.mubr.bf16.gmra.mrb[4].mxu0 %v8746_v35 }
  0xbc   : > { %v8775_v57 = vsel %vm1204_vm0, %v1328_v52, %v1338_v46  ;;  %v2015_v58 = vshrl.u32 %v8767_v19, 16  ;;  %v2017_v59 = vshll.u32 %v8767_v19, 16  ;;  %v913_v45 = vadd.f32 %v8494_v30, %v778_v12  ;;  %4703 = vmatpush1.bf16.msra.mxu0 %v7992_v32  ;;  %v7874_v52 = vld [vmem:[%s8140_s18 + $0x88] sm:$0xff]   ;;  %4059 = vmatpush1.bf16.msra.mxu1 %v7995_v10 }
  0xbd   : > { %11835 = vst [vmem:[#allocation18_spill] sm:$0xff] %v8775_v57  ;;  %v2022_v53 = vshll.u32 %v8775_v57, 16  ;;  %v2026_v16 = vshrl.u32 %v8775_v57, 16  ;;  %v2032_v28 = vrot.slane %v2030_v3, 1  ;;  %v1038_v31 = vmax.f32 %v910_v36, 0.0  ;;  %4704 = vmatprep.subr.bf16.mxu0 %v11823_v25  ;;  %4060 = vmatprep.subr.bf16.mxu1 %v11823_v25  ;;  %v7996_v36 = vld [vmem:[%s11586_s3 + $0xe0] sm:$0xff]  }
  0xbe   : > { %v2019_v54 = vrot.slane %v2017_v59, 1  ;;  %v1039_v46 = vmax.f32 %v911_v20, 0.0  ;;  %v1040_v55 = vmax.f32 %v912_v29, 0.0  ;;  %v1041_v34 = vmax.f32 %v913_v45, 0.0 }
  0xbf   : > { %v2024_v12 = vrot.slane %v2022_v53, 1  ;;  %v11620_v32 = vrot.slane %v8293_v47, 1  ;;  %v7652_v35 = vunpack.c.l.bf16 %v7873_v60  ;;  %v7653_v22 = vunpack.c.h.bf16 %v7873_v60  ;;  %v2607_v60 = vpop.permute.xlu0 %2606 }
  0xc0   : > { %v2020_v1 = vor.u32 %v2019_v54, %v2015_v58  ;;  %v1186_v27 = vpack.c.bf16 %v1039_v46, %v1038_v31  ;;  %v1187_v57 = vpack.c.bf16 %v1041_v34, %v1040_v55  ;;  %v7656_v3 = vunpack.c.l.bf16 %v7874_v52  ;;  %4705 = vmatpush1.bf16.msra.mxu0 %v7994_v21 }
  0xc1   : > { %v2028_v20 = vor.u32 %v2026_v16, %v2024_v12  ;;  %v8796_v10 = vsel %vm2738_vm4, %v2829_v9, %v11620_v32  ;;  %v7657_v29 = vunpack.c.h.bf16 %v7874_v52  ;;  %v711_v59 = vmul.f32 %v8457_v50, %v7652_v35  ;;  %4706 = vmatprep.subr.bf16.mxu0 %v11823_v25 }
  0xc2   : > { %11836 = vst [vmem:[#allocation19_spill] sm:$0xff] %v8796_v10  ;;  %v2025_v58 = vsel %vm1853_vm2, %v2020_v1, %v2024_v12  ;;  %v1581_v34 = vshrl.u32 %v1186_v27, 16  ;;  %v1584_v55 = vshll.u32 %v1186_v27, 16  ;;  %v1588_v45 = vshrl.u32 %v1187_v57, 16  ;;  %7119 = vmatprep.mubr.msk.bf16.mxu1 %vm2909_vm5, %v8796_v10 }
  0xc3   : > { %2566 = vrot.lane.b32.xlu1 %v2025_v58, %s8047_s14  ;;  %v2033_v21 = vsel %vm1853_vm2, %v2028_v20, %v2032_v28  ;;  %v1591_v9 = vshll.u32 %v1187_v57, 16  ;;  %v712_v53 = vmul.f32 %v8457_v50, %v7653_v22  ;;  %v713_v35 = vmul.f32 %v8457_v50, %v7656_v3 }
  0xc4   : > { %v1583_v16 = vrot.slane %v1581_v34, 7  ;;  %v1590_v31 = vrot.slane %v1588_v45, 7  ;;  %v714_v1 = vmul.f32 %v8457_v50, %v7657_v29  ;;  %v846_v27 = vadd.f32 %v8494_v30, %v711_v59  ;;  %4707 = vmatpush1.bf16.msra.mxu0 %v7996_v36 }
  0xc5   : > { %v847_v52 = vadd.f32 %v8494_v30, %v712_v53  ;;  %v848_v54 = vadd.f32 %v8494_v30, %v713_v35  ;;  %v8813_v46 = vsel %vm2909_vm5, %v8283_v40, %v2607_v60  ;;  %v2749_v57 = vrot.slane %v8320_v17, 1  ;;  %4708 = vmatprep.subr.bf16.mxu0 %v11823_v25  ;;  %v2543_v53 = vpop.permute.xlu1 %2542 }
  0xc6   : > { %11837 = vst [vmem:[#allocation20_spill] sm:$0xff] %v8813_v46  ;;  %v1586_v22 = vor.u32 %v1584_v55, %v1583_v16  ;;  %v1593_v28 = vor.u32 %v1591_v9, %v1590_v31  ;;  %v849_v12 = vadd.f32 %v8494_v30, %v714_v1  ;;  %v974_v3 = vmax.f32 %v846_v27, 0.0  ;;  %3732 = vmatmul.mubr.bf16.gmra.mrb[8].mxu1 %v8813_v46  ;;  %v2609_v27 = vpop.permute.xlu0 %2608 }
  0xc7   : > { %2568 = vrot.lane.b32.xlu1 %v2033_v21, %s8047_s14  ;;  %v975_v36 = vmax.f32 %v847_v52, 0.0  ;;  %v976_v20 = vmax.f32 %v848_v54, 0.0  ;;  %v2750_v29 = vrot.slane %v8326_v26, 1  ;;  %v8823_v40 = vsel %vm8189_vm3, %v1590_v31, 0 }
  0xc8   : > { %v8826_v59 = vsel %vm1204_vm0, %v1583_v16, %v1593_v28  ;;  %v8830_v58 = vsel %vm8189_vm3, 0, %v1586_v22  ;;  %v977_v34 = vmax.f32 %v849_v12, 0.0  ;;  %v2370_v55 = vshll.u32 %v8823_v40, 16  ;;  %v7907_v12 = vld [vmem:[%s8140_s18 + $0x190] sm:$0xff]  }
  0xc9   : > { %v2355_v45 = vshrl.u32 %v8830_v58, 16  ;;  %v2357_v60 = vshll.u32 %v8830_v58, 16  ;;  %v2362_v21 = vshll.u32 %v8826_v59, 16  ;;  %v1154_v9 = vpack.c.bf16 %v975_v36, %v974_v3 }
  0xca   : > { %v1155_v35 = vpack.c.bf16 %v977_v34, %v976_v20  ;;  %v8837_v16 = vsel %vm2738_vm4, %v2749_v57, %v2750_v29  ;;  %v2366_v31 = vshrl.u32 %v8826_v59, 16  ;;  %v2372_v1 = vrot.slane %v2370_v55, 1  ;;  %v2611_v10 = vpop.permute.xlu0 %2610 }
  0xcb   : > { %11838 = vst [vmem:[#allocation21_spill] sm:$0xff] %v8837_v16  ;;  %v2359_v52 = vrot.slane %v2357_v60, 1  ;;  %v2364_v54 = vrot.slane %v2362_v21, 1  ;;  %v1341_v22 = vshrl.u32 %v1154_v9, 16  ;;  %v1344_v28 = vshll.u32 %v1154_v9, 16  ;;  %7087 = vmatprep.mubr.msk.bf16.mxu0 %vm2909_vm5, %v8837_v16  ;;  %v7908_v21 = vld [vmem:[%s8140_s18 + $0x198] sm:$0xff]  }
  0xcc   : > { %v1348_v32 = vshrl.u32 %v1155_v35, 16  ;;  %v1351_v3 = vshll.u32 %v1155_v35, 16  ;;  %v8845_v36 = vsel %vm2909_vm5, %v8320_v17, %v2543_v53  ;;  %v2832_v57 = vrot.slane %v8287_v41, 1 }
  0xcd   : > { %11839 = vst [vmem:[#allocation22_spill] sm:$0xff] %v8845_v36  ;;  %v2360_v20 = vor.u32 %v2359_v52, %v2355_v45  ;;  %v1343_v34 = vrot.slane %v1341_v22, 7  ;;  %v2368_v55 = vor.u32 %v2366_v31, %v2364_v54  ;;  %3476 = vmatmul.mubr.bf16.gmra.mrb[8].mxu0 %v8845_v36  ;;  %v8851_v60 = vsel %vm2909_vm5, %v8293_v47, %v2609_v27 }
  0xce   : > { %11840 = vst [vmem:[#allocation23_spill] sm:$0xff] %v8851_v60  ;;  %v1350_v9 = vrot.slane %v1348_v32, 7  ;;  %v11841_v46 = vrot.slane %v8293_v47, 1  ;;  %v2752_v17 = vrot.slane %v8316_v14, 1  ;;  %v7788_v53 = vunpack.c.l.bf16 %v7907_v12 }
  0xcf   : > { %v2365_v41 = vsel %vm1853_vm2, %v2360_v20, %v2364_v54  ;;  %v1346_v45 = vor.u32 %v1344_v28, %v1343_v34  ;;  %v2373_v31 = vsel %vm1853_vm2, %v2368_v55, %v2372_v1  ;;  %v7789_v27 = vunpack.c.h.bf16 %v7907_v12 }
  0xd0   : > { %v8857_v35 = vsel %vm2738_vm4, %v11841_v46, %v2832_v57  ;;  %2634 = vrot.lane.b32.xlu0 %v2365_v41, %s8047_s14  ;;  %v1353_v32 = vor.u32 %v1351_v3, %v1350_v9  ;;  %v8867_v47 = vsel %vm8189_vm3, %v1350_v9, 0  ;;  %v8871_v14 = vsel %vm2738_vm4, %v2750_v29, %v2752_v17  ;;  %v2545_v3 = vpop.permute.xlu1 %2544 }
  0xd1   : > { %11842 = vst [vmem:[#allocation24_spill] sm:$0xff] %v8857_v35  ;;  %7120 = vmatprep.mubr.msk.bf16.mxu1 %vm2909_vm5, %v8857_v35  ;;  %11843 = vst [vmem:[#allocation25_spill] sm:$0xff] %v8871_v14  ;;  %v7792_v46 = vunpack.c.l.bf16 %v7908_v21  ;;  %v8875_v1 = vsel %vm8189_vm3, 0, %v1346_v45  ;;  %v2050_v52 = vshll.u32 %v8867_v47, 16  ;;  %7088 = vmatprep.mubr.msk.bf16.mxu0 %vm2909_vm5, %v8871_v14  ;;  %v7793_v54 = vunpack.c.h.bf16 %v7908_v21  ;;  %v7875_v45 = vld [vmem:[%s8140_s18 + $0x90] sm:$0xff]  }
  0xd2   : > { %3740 = vmatmul.mubr.bf16.gmra.mrb[12].mxu1 %v8851_v60  ;;  %v779_v22 = vmul.f32 %v8457_v50, %v7788_v53  ;;  %v8882_v28 = vsel %vm1204_vm0, %v1343_v34, %v1353_v32  ;;  %v2035_v29 = vshrl.u32 %v8875_v1, 16  ;;  %v2037_v12 = vshll.u32 %v8875_v1, 16 }
  0xd3   : > { %v780_v57 = vmul.f32 %v8457_v50, %v7789_v27  ;;  %v2042_v20 = vshll.u32 %v8882_v28, 16  ;;  %v2046_v55 = vshrl.u32 %v8882_v28, 16  ;;  %v2052_v9 = vrot.slane %v2050_v52, 1 }
  0xd4   : > { %v781_v21 = vmul.f32 %v8457_v50, %v7792_v46  ;;  %v2039_v17 = vrot.slane %v2037_v12, 1  ;;  %2636 = vrot.lane.b32.xlu0 %v2373_v31, %s8047_s14  ;;  %v782_v34 = vmul.f32 %v8457_v50, %v7793_v54  ;;  %v914_v53 = vadd.f32 %v8494_v30, %v779_v22  ;;  %v7876_v50 = vld [vmem:[%s8140_s18 + $0x98] sm:$0xff]  }
  0xd5   : > { %v915_v41 = vadd.f32 %v8494_v30, %v780_v57  ;;  %v2044_v32 = vrot.slane %v2042_v20, 1  ;;  %v8898_v60 = vsel %vm2909_vm5, %v8326_v26, %v2545_v3  ;;  %v2834_v46 = vrot.slane %v8353_v7, 1 }
  0xd6   : > { %v916_v27 = vadd.f32 %v8494_v30, %v781_v21  ;;  %11844 = vst [vmem:[#allocation26_spill] sm:$0xff] %v8898_v60  ;;  %v2040_v52 = vor.u32 %v2039_v17, %v2035_v29  ;;  %v917_v12 = vadd.f32 %v8494_v30, %v782_v34  ;;  %v1042_v31 = vmax.f32 %v914_v53, 0.0  ;;  %3484 = vmatmul.mubr.bf16.gmra.mrb[12].mxu0 %v8898_v60 }
  0xd7   : > { %v1043_v35 = vmax.f32 %v915_v41, 0.0  ;;  %v2048_v54 = vor.u32 %v2046_v55, %v2044_v32  ;;  %v11631_v57 = vrot.slane %v8358_v15, 1  ;;  %v7660_v20 = vunpack.c.l.bf16 %v7875_v45 }
  0xd8   : > { %v1044_v22 = vmax.f32 %v916_v27, 0.0  ;;  %v2045_v21 = vsel %vm1853_vm2, %v2040_v52, %v2044_v32  ;;  %v1045_v26 = vmax.f32 %v917_v12, 0.0  ;;  %v7661_v14 = vunpack.c.h.bf16 %v7875_v45 }
  0xd9   : > { %v1188_v3 = vpack.c.bf16 %v1043_v35, %v1042_v31  ;;  %2570 = vrot.lane.b32.xlu1 %v2045_v21, %s8047_s14  ;;  %v2053_v29 = vsel %vm1853_vm2, %v2048_v54, %v2052_v9  ;;  %v8911_v17 = vsel %vm2738_vm4, %v2834_v46, %v11631_v57  ;;  %v7664_v55 = vunpack.c.l.bf16 %v7876_v50  ;;  %v8916_v35 = vld [vmem:[%s8118_s9] ss:$0 sm:$0xff] }
  0xda   : > { %11845 = vst [vmem:[#allocation27_spill] sm:$0xff] %v8911_v17  ;;  %v7665_v34 = vunpack.c.h.bf16 %v7876_v50  ;;  %v1189_v53 = vpack.c.bf16 %v1045_v26, %v1044_v22  ;;  %7121 = vmatprep.mubr.msk.bf16.mxu1 %vm2909_vm5, %v8911_v17  ;;  %v715_v45 = vmul.f32 %v8916_v35, %v7660_v20  ;;  %v716_v32 = vmul.f32 %v8916_v35, %v7661_v14  ;;  %v2547_v22 = vpop.permute.xlu1 %2546 }
  0xdb   : > { %v1596_v41 = vshrl.u32 %v1188_v3, 16  ;;  %v1599_v27 = vshll.u32 %v1188_v3, 16  ;;  %v717_v9 = vmul.f32 %v8916_v35, %v7664_v55  ;;  %v8924_v46 = vsel %vm2909_vm5, %v8353_v7, %v2611_v10 }
  0xdc   : > { %v718_v52 = vmul.f32 %v8916_v35, %v7665_v34  ;;  %11846 = vst [vmem:[#allocation28_spill] sm:$0xff] %v8924_v46  ;;  %v1603_v31 = vshrl.u32 %v1189_v53, 16  ;;  %v1606_v50 = vshll.u32 %v1189_v53, 16  ;;  %v850_v54 = vadd.f32 %v8494_v30, %v715_v45  ;;  %3748 = vmatmul.mubr.bf16.gmra.mrb[16].mxu1 %v8924_v46 }
  0xdd   : > { %v1598_v12 = vrot.slane %v1596_v41, 7  ;;  %2572 = vrot.lane.b32.xlu1 %v2053_v29, %s8047_s14  ;;  %v851_v14 = vadd.f32 %v8494_v30, %v716_v32  ;;  %v852_v20 = vadd.f32 %v8494_v30, %v717_v9  ;;  %v2754_v26 = vrot.slane %v8380_v2, 1  ;;  %v2613_v29 = vpop.permute.xlu0 %2612 }
  0xde   : > { %v853_v21 = vadd.f32 %v8494_v30, %v718_v52  ;;  %v1605_v10 = vrot.slane %v1603_v31, 7  ;;  %v978_v3 = vmax.f32 %v850_v54, 0.0  ;;  %v2755_v55 = vrot.slane %v8391_v23, 1  ;;  %v7997_v52 = vld [vmem:[%s11586_s3 + $0x28] sm:$0xff]  }
  0xdf   : > { %v1601_v7 = vor.u32 %v1599_v27, %v1598_v12  ;;  %v979_v34 = vmax.f32 %v851_v14, 0.0  ;;  %v980_v53 = vmax.f32 %v852_v20, 0.0  ;;  %v8936_v45 = vsel %vm2909_vm5, %v8380_v2, %v2547_v22  ;;  %v7998_v2 = vld [vmem:[%s11586_s3 + $0xe8] sm:$0xff]   ;;  %4061 = vmatpush1.bf16.msra.mxu1 %v7997_v52 }
  0xe0   : > { %v981_v41 = vmax.f32 %v853_v21, 0.0  ;;  %11847 = vst [vmem:[#allocation29_spill] sm:$0xff] %v8936_v45  ;;  %v1608_v32 = vor.u32 %v1606_v50, %v1605_v10  ;;  %v8943_v30 = vsel %vm2738_vm4, %v2754_v26, %v2755_v55  ;;  %v8947_v27 = vsel %vm8189_vm3, %v1605_v10, 0  ;;  %4709 = vmatpush1.bf16.msra.mxu0 %v7998_v2  ;;  %4062 = vmatprep.subr.bf16.mxu1 %v11823_v25 }
  0xe1   : > { %v8940_v9 = vsel %vm8189_vm3, 0, %v1601_v7  ;;  %11848 = vst [vmem:[#allocation30_spill] sm:$0xff] %v8943_v30  ;;  %v1156_v54 = vpack.c.bf16 %v979_v34, %v978_v3  ;;  %7089 = vmatprep.mubr.msk.bf16.mxu0 %vm2909_vm5, %v8943_v30  ;;  %v2390_v20 = vshll.u32 %v8947_v27, 16  ;;  %v2837_v21 = vrot.slane %v8349_v6, 1  ;;  %v7910_v6 = vld [vmem:[%s8140_s18 + $0x1a8] sm:$0xff]   ;;  %4710 = vmatprep.subr.bf16.mxu0 %v11823_v25 }
  0xe2   : > { %v2375_v31 = vshrl.u32 %v8940_v9, 16  ;;  %v2377_v50 = vshll.u32 %v8940_v9, 16  ;;  %v1157_v22 = vpack.c.bf16 %v981_v41, %v980_v53  ;;  %v8960_v14 = vsel %vm1204_vm0, %v1598_v12, %v1608_v32  ;;  %3492 = vmatmul.mubr.bf16.gmra.mrb[16].mxu0 %v8936_v45  ;;  %v7909_v53 = vld [vmem:[%s8140_s18 + $0x1a0] sm:$0xff]  }
  0xe3   : > { %v8967_v26 = vsel %vm2909_vm5, %v8358_v15, %v2613_v29  ;;  %v2382_v10 = vshll.u32 %v8960_v14, 16  ;;  %v1356_v3 = vshrl.u32 %v1156_v54, 16  ;;  %v1359_v34 = vshll.u32 %v1156_v54, 16 }
  0xe4   : > { %11849 = vst [vmem:[#allocation31_spill] sm:$0xff] %v8967_v26  ;;  %v2379_v7 = vrot.slane %v2377_v50, 1  ;;  %v1363_v12 = vshrl.u32 %v1157_v22, 16  ;;  %v1366_v41 = vshll.u32 %v1157_v22, 16  ;;  %v2386_v32 = vshrl.u32 %v8960_v14, 16 }
  0xe5   : > { %v2392_v57 = vrot.slane %v2390_v20, 1  ;;  %v2384_v46 = vrot.slane %v2382_v10, 1  ;;  %v1358_v52 = vrot.slane %v1356_v3, 7  ;;  %v11850_v50 = vrot.slane %v8358_v15, 1 }
  0xe6   : > { %v2380_v29 = vor.u32 %v2379_v7, %v2375_v31  ;;  %v1365_v54 = vrot.slane %v1363_v12, 7  ;;  %v2757_v2 = vrot.slane %v8384_v4, 1  ;;  %v7796_v22 = vunpack.c.l.bf16 %v7909_v53 }
  0xe7   : > { %v8978_v17 = vsel %vm2738_vm4, %v11850_v50, %v2837_v21  ;;  %v7797_v45 = vunpack.c.h.bf16 %v7909_v53  ;;  %v1361_v30 = vor.u32 %v1359_v34, %v1358_v52  ;;  %v2388_v60 = vor.u32 %v2386_v32, %v2384_v46  ;;  %v9014_v50 = vld [vmem:[%s8133_s15] ss:$0 sm:$0xff] }
  0xe8   : > { %11851 = vst [vmem:[#allocation32_spill] sm:$0xff] %v8978_v17  ;;  %7122 = vmatprep.mubr.msk.bf16.mxu1 %vm2909_vm5, %v8978_v17  ;;  %v2385_v20 = vsel %vm1853_vm2, %v2380_v29, %v2384_v46  ;;  %v7800_v31 = vunpack.c.l.bf16 %v7910_v6  ;;  %v1368_v15 = vor.u32 %v1366_v41, %v1365_v54  ;;  %v8988_v21 = vsel %vm8189_vm3, %v1365_v54, 0 }
  0xe9   : > { %3756 = vmatmul.mubr.bf16.gmra.mrb[20].mxu1 %v8967_v26  ;;  %2638 = vrot.lane.b32.xlu0 %v2385_v20, %s8047_s14  ;;  %v8991_v7 = vsel %vm2738_vm4, %v2755_v55, %v2757_v2  ;;  %v7801_v4 = vunpack.c.h.bf16 %v7910_v6  ;;  %v8995_v10 = vsel %vm8189_vm3, 0, %v1361_v30  ;;  %v2393_v46 = vsel %vm1853_vm2, %v2388_v60, %v2392_v57  ;;  %v2549_v30 = vpop.permute.xlu1 %2548 }
  0xea   : > { %11852 = vst [vmem:[#allocation33_spill] sm:$0xff] %v8991_v7  ;;  %v2070_v3 = vshll.u32 %v8988_v21, 16  ;;  %7090 = vmatprep.mubr.msk.bf16.mxu0 %vm2909_vm5, %v8991_v7  ;;  %v783_v34 = vmul.f32 %v8916_v35, %v7796_v22  ;;  %v9003_v53 = vsel %vm1204_vm0, %v1358_v52, %v1368_v15  ;;  %v2055_v55 = vshrl.u32 %v8995_v10, 16 }
  0xeb   : > { %v2057_v12 = vshll.u32 %v8995_v10, 16  ;;  %v784_v41 = vmul.f32 %v8916_v35, %v7797_v45  ;;  %v2062_v60 = vshll.u32 %v9003_v53, 16  ;;  %v2066_v57 = vshrl.u32 %v9003_v53, 16  ;;  %v7877_v45 = vld [vmem:[%s8140_s18 + $0xa0] sm:$0xff]  }
  0xec   : > { %v2072_v32 = vrot.slane %v2070_v3, 1  ;;  %v785_v6 = vmul.f32 %v8916_v35, %v7800_v31  ;;  %v786_v52 = vmul.f32 %v8916_v35, %v7801_v4  ;;  %v918_v54 = vadd.f32 %v9014_v50, %v783_v34  ;;  %v7878_v34 = vld [vmem:[%s8140_s18 + $0xa8] sm:$0xff]  }
  0xed   : > { %v2059_v29 = vrot.slane %v2057_v12, 1  ;;  %2640 = vrot.lane.b32.xlu0 %v2393_v46, %s8047_s14  ;;  %v919_v2 = vadd.f32 %v9014_v50, %v784_v41  ;;  %v2064_v22 = vrot.slane %v2062_v60, 1  ;;  %v9022_v15 = vsel %vm2909_vm5, %v8391_v23, %v2549_v30  ;;  %v2615_v30 = vpop.permute.xlu0 %2614 }
  0xee   : > { %v920_v20 = vadd.f32 %v9014_v50, %v785_v6  ;;  %11853 = vst [vmem:[#allocation34_spill] sm:$0xff] %v9022_v15  ;;  %v2839_v31 = vrot.slane %v8418_v24, 1  ;;  %v921_v46 = vadd.f32 %v9014_v50, %v786_v52  ;;  %v1046_v4 = vmax.f32 %v918_v54, 0.0  ;;  %3500 = vmatmul.mubr.bf16.gmra.mrb[20].mxu0 %v9022_v15 }
  0xef   : > { %v2060_v3 = vor.u32 %v2059_v29, %v2055_v55  ;;  %v1047_v12 = vmax.f32 %v919_v2, 0.0  ;;  %v2068_v26 = vor.u32 %v2066_v57, %v2064_v22  ;;  %v11650_v60 = vrot.slane %v8414_v18, 1 }
  0xf0   : > { %v1048_v41 = vmax.f32 %v920_v20, 0.0  ;;  %v7668_v17 = vunpack.c.l.bf16 %v7877_v45  ;;  %v1049_v7 = vmax.f32 %v921_v46, 0.0  ;;  %v7669_v36 = vunpack.c.h.bf16 %v7877_v45 }
  0xf1   : > { %v2065_v6 = vsel %vm1853_vm2, %v2060_v3, %v2064_v22  ;;  %v1190_v23 = vpack.c.bf16 %v1047_v12, %v1046_v4  ;;  %v2073_v55 = vsel %vm1853_vm2, %v2068_v26, %v2072_v32  ;;  %v9035_v29 = vsel %vm2738_vm4, %v2839_v31, %v11650_v60  ;;  %v2551_v12 = vpop.permute.xlu1 %2550 }
  0xf2   : > { %2574 = vrot.lane.b32.xlu1 %v2065_v6, %s8047_s14  ;;  %11854 = vst [vmem:[#allocation35_spill] sm:$0xff] %v9035_v29  ;;  %v7672_v57 = vunpack.c.l.bf16 %v7878_v34  ;;  %v7673_v52 = vunpack.c.h.bf16 %v7878_v34  ;;  %v1191_v54 = vpack.c.bf16 %v1049_v7, %v1048_v41  ;;  %7123 = vmatprep.mubr.msk.bf16.mxu1 %vm2909_vm5, %v9035_v29  ;;  %v719_v22 = vmul.f32 %v8916_v35, %v7668_v17 }
  0xf3   : > { %v1611_v2 = vshrl.u32 %v1190_v23, 16  ;;  %v1614_v20 = vshll.u32 %v1190_v23, 16  ;;  %v720_v45 = vmul.f32 %v8916_v35, %v7669_v36  ;;  %v9045_v32 = vsel %vm2909_vm5, %v8418_v24, %v2615_v30 }
  0xf4   : > { %v721_v3 = vmul.f32 %v8916_v35, %v7672_v57  ;;  %v722_v26 = vmul.f32 %v8916_v35, %v7673_v52  ;;  %11855 = vst [vmem:[#allocation36_spill] sm:$0xff] %v9045_v32  ;;  %v1618_v46 = vshrl.u32 %v1191_v54, 16  ;;  %v1621_v7 = vshll.u32 %v1191_v54, 16  ;;  %3764 = vmatmul.mubr.bf16.gmra.mrb[24].mxu1 %v9045_v32 }
  0xf5   : > { %v1613_v31 = vrot.slane %v1611_v2, 7  ;;  %v854_v4 = vadd.f32 %v9014_v50, %v719_v22  ;;  %v855_v36 = vadd.f32 %v9014_v50, %v720_v45  ;;  %v2759_v41 = vrot.slane %v8440_v62, 1 }
  0xf6   : > { %2576 = vrot.lane.b32.xlu1 %v2073_v55, %s8047_s14  ;;  %v856_v17 = vadd.f32 %v9014_v50, %v721_v3  ;;  %v857_v34 = vadd.f32 %v9014_v50, %v722_v26  ;;  %v1620_v6 = vrot.slane %v1618_v46, 7  ;;  %v2760_v30 = vrot.slane %v8446_v8, 1  ;;  %v2617_v55 = vpop.permute.xlu0 %2616 }
  0xf7   : > { %v1616_v24 = vor.u32 %v1614_v20, %v1613_v31  ;;  %v982_v23 = vmax.f32 %v854_v4, 0.0  ;;  %v983_v57 = vmax.f32 %v855_v36, 0.0  ;;  %v9057_v2 = vsel %vm2909_vm5, %v8440_v62, %v2551_v12 }
  0xf8   : > { %v984_v52 = vmax.f32 %v856_v17, 0.0  ;;  %v985_v54 = vmax.f32 %v857_v34, 0.0  ;;  %11856 = vst [vmem:[#allocation37_spill] sm:$0xff] %v9057_v2  ;;  %v1623_v22 = vor.u32 %v1621_v7, %v1620_v6  ;;  %v9064_v3 = vsel %vm2738_vm4, %v2759_v41, %v2760_v30 }
  0xf9   : > { %v9061_v45 = vsel %vm8189_vm3, 0, %v1616_v24  ;;  %11857 = vst [vmem:[#allocation38_spill] sm:$0xff] %v9064_v3  ;;  %v9068_v20 = vsel %vm8189_vm3, %v1620_v6, 0  ;;  %v1158_v62 = vpack.c.bf16 %v983_v57, %v982_v23  ;;  %7091 = vmatprep.mubr.msk.bf16.mxu0 %vm2909_vm5, %v9064_v3  ;;  %v2842_v36 = vrot.slane %v8410_v11, 1  ;;  %v7911_v23 = vld [vmem:[%s8140_s18 + $0x1b0] sm:$0xff]  }
  0xfa   : > { %v2395_v26 = vshrl.u32 %v9061_v45, 16  ;;  %v2397_v46 = vshll.u32 %v9061_v45, 16  ;;  %v1159_v4 = vpack.c.bf16 %v985_v54, %v984_v52  ;;  %v9075_v7 = vsel %vm1204_vm0, %v1613_v31, %v1623_v22  ;;  %3508 = vmatmul.mubr.bf16.gmra.mrb[24].mxu0 %v9057_v2  ;;  %v7912_v22 = vld [vmem:[%s8140_s18 + $0x1b8] sm:$0xff]  }
  0xfb   : > { %v2410_v12 = vshll.u32 %v9068_v20, 16  ;;  %v9082_v17 = vsel %vm2909_vm5, %v8414_v18, %v2617_v55  ;;  %v2402_v41 = vshll.u32 %v9075_v7, 16  ;;  %v1371_v24 = vshrl.u32 %v1158_v62, 16 }
  0xfc   : > { %11858 = vst [vmem:[#allocation39_spill] sm:$0xff] %v9082_v17  ;;  %v2399_v34 = vrot.slane %v2397_v46, 1  ;;  %v1374_v6 = vshll.u32 %v1158_v62, 16  ;;  %v1378_v57 = vshrl.u32 %v1159_v4, 16  ;;  %v1381_v52 = vshll.u32 %v1159_v4, 16 }
  0xfd   : > { %v2406_v31 = vshrl.u32 %v9075_v7, 16  ;;  %v2412_v54 = vrot.slane %v2410_v12, 1  ;;  %v2404_v32 = vrot.slane %v2402_v41, 1  ;;  %v1373_v29 = vrot.slane %v1371_v24, 7  ;;  %v7999_v24 = vld [vmem:[%s11586_s3 + $0x30] sm:$0xff]  }
  0xfe   : > { %v2400_v60 = vor.u32 %v2399_v34, %v2395_v26  ;;  %v11859_v11 = vrot.slane %v8414_v18, 1  ;;  %v1380_v46 = vrot.slane %v1378_v57, 7  ;;  %v2762_v62 = vrot.slane %v8435_v61, 1  ;;  %v2553_v57 = vpop.permute.xlu1 %2552  ;;  %4063 = vmatpush1.bf16.msra.mxu1 %v7999_v24 }
  0xff   : > { %v7804_v2 = vunpack.c.l.bf16 %v7911_v23  ;;  %v7805_v4 = vunpack.c.h.bf16 %v7911_v23  ;;  %v1376_v12 = vor.u32 %v1374_v6, %v1373_v29  ;;  %v2408_v15 = vor.u32 %v2406_v31, %v2404_v32  ;;  %4064 = vmatprep.subr.bf16.mxu1 %v11823_v25 }
 0x100   : > { %v9091_v55 = vsel %vm2738_vm4, %v11859_v11, %v2842_v36  ;;  %v2405_v3 = vsel %vm1853_vm2, %v2400_v60, %v2404_v32  ;;  %v7808_v26 = vunpack.c.l.bf16 %v7912_v22  ;;  %v1383_v18 = vor.u32 %v1381_v52, %v1380_v46 }
 0x101   : > { %11860 = vst [vmem:[#allocation40_spill] sm:$0xff] %v9091_v55  ;;  %7124 = vmatprep.mubr.msk.bf16.mxu1 %vm2909_vm5, %v9091_v55  ;;  %2642 = vrot.lane.b32.xlu0 %v2405_v3, %s8047_s14  ;;  %v9101_v36 = vsel %vm8189_vm3, %v1380_v46, 0  ;;  %v9104_v34 = vsel %vm2738_vm4, %v2760_v30, %v2762_v62  ;;  %v7809_v61 = vunpack.c.h.bf16 %v7912_v22  ;;  %v9108_v41 = vsel %vm8189_vm3, 0, %v1376_v12  ;;  %v8000_v30 = vld [vmem:[%s11586_s3 + $0xf0] sm:$0xff]   ;;  %v2619_v55 = vpop.permute.xlu0 %2618 }
 0x102   : > { %3772 = vmatmul.mubr.bf16.gmra.mrb[28].mxu1 %v9082_v17  ;;  %11861 = vst [vmem:[#allocation41_spill] sm:$0xff] %v9104_v34  ;;  %v2413_v60 = vsel %vm1853_vm2, %v2408_v15, %v2412_v54  ;;  %v2090_v32 = vshll.u32 %v9101_v36, 16  ;;  %7092 = vmatprep.mubr.msk.bf16.mxu0 %vm2909_vm5, %v9104_v34  ;;  %v787_v3 = vmul.f32 %v8916_v35, %v7804_v2  ;;  %v2075_v15 = vshrl.u32 %v9108_v41, 16 }
 0x103   : > { %v9122_v6 = vsel %vm1204_vm0, %v1373_v29, %v1383_v18  ;;  %v2077_v23 = vshll.u32 %v9108_v41, 16  ;;  %v788_v52 = vmul.f32 %v8916_v35, %v7805_v4  ;;  %v789_v22 = vmul.f32 %v8916_v35, %v7808_v26  ;;  %4711 = vmatpush1.bf16.msra.mxu0 %v8000_v30  ;;  %v7879_v4 = vld [vmem:[%s8140_s18 + $0xb0] sm:$0xff]   ;;  %v7880_v30 = vld [vmem:[%s8140_s18 + $0xb8] sm:$0xff]  }
 0x104   : > { %v2082_v2 = vshll.u32 %v9122_v6, 16  ;;  %v2086_v31 = vshrl.u32 %v9122_v6, 16  ;;  %v2092_v54 = vrot.slane %v2090_v32, 1  ;;  %v790_v29 = vmul.f32 %v8916_v35, %v7809_v61  ;;  %4712 = vmatprep.subr.bf16.mxu0 %v11823_v25 }
 0x105   : > { %v2079_v11 = vrot.slane %v2077_v23, 1  ;;  %2644 = vrot.lane.b32.xlu0 %v2413_v60, %s8047_s14  ;;  %v922_v46 = vadd.f32 %v9014_v50, %v787_v3  ;;  %v923_v62 = vadd.f32 %v9014_v50, %v788_v52  ;;  %v924_v18 = vadd.f32 %v9014_v50, %v789_v22 }
 0x106   : > { %v2084_v12 = vrot.slane %v2082_v2, 1  ;;  %v9139_v26 = vsel %vm2909_vm5, %v8446_v8, %v2553_v57  ;;  %v2844_v32 = vrot.slane %v8482_v13, 1  ;;  %v925_v61 = vadd.f32 %v9014_v50, %v790_v29 }
 0x107   : > { %11862 = vst [vmem:[#allocation42_spill] sm:$0xff] %v9139_v26  ;;  %v2080_v60 = vor.u32 %v2079_v11, %v2075_v15  ;;  %v1050_v3 = vmax.f32 %v922_v46, 0.0  ;;  %v1051_v24 = vmax.f32 %v923_v62, 0.0  ;;  %3516 = vmatmul.mubr.bf16.gmra.mrb[28].mxu0 %v9139_v26  ;;  %v1052_v52 = vmax.f32 %v924_v18, 0.0 }
 0x108   : > { %v2088_v23 = vor.u32 %v2086_v31, %v2084_v12  ;;  %v11667_v2 = vrot.slane %v8478_v43, 1  ;;  %v7676_v22 = vunpack.c.l.bf16 %v7879_v4  ;;  %v1053_v57 = vmax.f32 %v925_v61, 0.0 }
 0x109   : > { %v2085_v8 = vsel %vm1853_vm2, %v2080_v60, %v2084_v12  ;;  %v1192_v17 = vpack.c.bf16 %v1051_v24, %v1050_v3  ;;  %v7677_v34 = vunpack.c.h.bf16 %v7879_v4  ;;  %v7680_v31 = vunpack.c.l.bf16 %v7880_v30 }
 0x10a   : > { %2578 = vrot.lane.b32.xlu1 %v2085_v8, %s8047_s14  ;;  %v2093_v15 = vsel %vm1853_vm2, %v2088_v23, %v2092_v54  ;;  %v9153_v11 = vsel %vm2738_vm4, %v2844_v32, %v11667_v2  ;;  %v7681_v29 = vunpack.c.h.bf16 %v7880_v30  ;;  %v1193_v46 = vpack.c.bf16 %v1053_v57, %v1052_v52  ;;  %v2555_v30 = vpop.permute.xlu1 %2554 }
 0x10b   : > { %11863 = vst [vmem:[#allocation43_spill] sm:$0xff] %v9153_v11  ;;  %v1626_v62 = vshrl.u32 %v1192_v17, 16  ;;  %v1629_v18 = vshll.u32 %v1192_v17, 16  ;;  %7125 = vmatprep.mubr.msk.bf16.mxu1 %vm2909_vm5, %v9153_v11  ;;  %v723_v12 = vmul.f32 %v8916_v35, %v7676_v22  ;;  %v724_v4 = vmul.f32 %v8916_v35, %v7677_v34 }
 0x10c   : > { %v725_v60 = vmul.f32 %v8916_v35, %v7680_v31  ;;  %v726_v54 = vmul.f32 %v8916_v35, %v7681_v29  ;;  %v9163_v32 = vsel %vm2909_vm5, %v8482_v13, %v2619_v55  ;;  %v1633_v3 = vshrl.u32 %v1193_v46, 16 }
 0x10d   : > { %11864 = vst [vmem:[#allocation44_spill] sm:$0xff] %v9163_v32  ;;  %v1628_v61 = vrot.slane %v1626_v62, 7  ;;  %v1636_v24 = vshll.u32 %v1193_v46, 16  ;;  %v858_v17 = vadd.f32 %v9014_v50, %v723_v12  ;;  %3780 = vmatmul.mubr.bf16.gmra.mrb[32].mxu1 %v9163_v32  ;;  %v859_v34 = vadd.f32 %v9014_v50, %v724_v4 }
 0x10e   : > { %2580 = vrot.lane.b32.xlu1 %v2093_v15, %s8047_s14  ;;  %v860_v23 = vadd.f32 %v9014_v50, %v725_v60  ;;  %v861_v52 = vadd.f32 %v9014_v50, %v726_v54  ;;  %v2764_v22 = vrot.slane %v8508_v39, 1  ;;  %v1635_v55 = vrot.slane %v1633_v3, 7  ;;  %v2621_v15 = vpop.permute.xlu0 %2620 }
 0x10f   : > { %v1631_v13 = vor.u32 %v1629_v18, %v1628_v61  ;;  %v986_v8 = vmax.f32 %v858_v17, 0.0  ;;  %v2765_v57 = vrot.slane %v8514_v48, 1  ;;  %v987_v31 = vmax.f32 %v859_v34, 0.0 }
 0x110   : > { %v988_v29 = vmax.f32 %v860_v23, 0.0  ;;  %v989_v46 = vmax.f32 %v861_v52, 0.0  ;;  %v9175_v62 = vsel %vm2909_vm5, %v8508_v39, %v2555_v30  ;;  %v1638_v12 = vor.u32 %v1636_v24, %v1635_v55 }
 0x111   : > { %11865 = vst [vmem:[#allocation45_spill] sm:$0xff] %v9175_v62  ;;  %v9179_v4 = vsel %vm8189_vm3, 0, %v1631_v13  ;;  %v9182_v60 = vsel %vm2738_vm4, %v2764_v22, %v2765_v57  ;;  %v9186_v18 = vsel %vm8189_vm3, %v1635_v55, 0  ;;  %v1160_v3 = vpack.c.bf16 %v987_v31, %v986_v8  ;;  %v7913_v8 = vld [vmem:[%s8140_s18 + $0x1c0] sm:$0xff]   ;;  %v7914_v31 = vld [vmem:[%s8140_s18 + $0x1c8] sm:$0xff]  }
 0x112   : > { %11866 = vst [vmem:[#allocation46_spill] sm:$0xff] %v9182_v60  ;;  %v2415_v54 = vshrl.u32 %v9179_v4, 16  ;;  %v2417_v39 = vshll.u32 %v9179_v4, 16  ;;  %v1161_v17 = vpack.c.bf16 %v989_v46, %v988_v29  ;;  %7093 = vmatprep.mubr.msk.bf16.mxu0 %vm2909_vm5, %v9182_v60  ;;  %v9193_v24 = vsel %vm1204_vm0, %v1628_v61, %v1638_v12 }
 0x113   : > { %v2430_v30 = vshll.u32 %v9186_v18, 16  ;;  %3524 = vmatmul.mubr.bf16.gmra.mrb[32].mxu0 %v9175_v62  ;;  %v2847_v34 = vrot.slane %v8475_v38, 1  ;;  %v9200_v23 = vsel %vm2909_vm5, %v8478_v43, %v2621_v15  ;;  %v2422_v22 = vshll.u32 %v9193_v24, 16  ;;  %v8001_v38 = vld [vmem:[%s11586_s3 + $0x38] sm:$0xff]  }
 0x114   : > { %11867 = vst [vmem:[#allocation47_spill] sm:$0xff] %v9200_v23  ;;  %v2419_v52 = vrot.slane %v2417_v39, 1  ;;  %v1386_v13 = vshrl.u32 %v1160_v3, 16  ;;  %v1389_v55 = vshll.u32 %v1160_v3, 16  ;;  %v1393_v29 = vshrl.u32 %v1161_v17, 16  ;;  %v8002_v15 = vld [vmem:[%s11586_s3 + $0xf8] sm:$0xff]   ;;  %4065 = vmatpush1.bf16.msra.mxu1 %v8001_v38 }
 0x115   : > { %v1396_v61 = vshll.u32 %v1161_v17, 16  ;;  %v2426_v46 = vshrl.u32 %v9193_v24, 16  ;;  %v2432_v12 = vrot.slane %v2430_v30, 1  ;;  %v2424_v2 = vrot.slane %v2422_v22, 1  ;;  %4713 = vmatpush1.bf16.msra.mxu0 %v8002_v15  ;;  %4066 = vmatprep.subr.bf16.mxu1 %v11823_v25 }
 0x116   : > { %v2420_v39 = vor.u32 %v2419_v52, %v2415_v54  ;;  %v1388_v32 = vrot.slane %v1386_v13, 7  ;;  %v11868_v3 = vrot.slane %v8478_v43, 1  ;;  %v1395_v17 = vrot.slane %v1393_v29, 7  ;;  %4714 = vmatprep.subr.bf16.mxu0 %v11823_v25 }
 0x117   : > { %v2767_v30 = vrot.slane %v8503_v37, 1  ;;  %v7812_v62 = vunpack.c.l.bf16 %v7913_v8  ;;  %v7813_v60 = vunpack.c.h.bf16 %v7913_v8  ;;  %v2428_v54 = vor.u32 %v2426_v46, %v2424_v2 }
 0x118   : > { %v9215_v11 = vsel %vm2738_vm4, %v11868_v3, %v2847_v34  ;;  %v2425_v26 = vsel %vm1853_vm2, %v2420_v39, %v2424_v2  ;;  %v1391_v16 = vor.u32 %v1389_v55, %v1388_v32  ;;  %v7816_v52 = vunpack.c.l.bf16 %v7914_v31  ;;  %v7881_v3 = vld [vmem:[%s8140_s18 + $0xc0] sm:$0xff]  }
 0x119   : > { %11869 = vst [vmem:[#allocation48_spill] sm:$0xff] %v9215_v11  ;;  %7126 = vmatprep.mubr.msk.bf16.mxu1 %vm2909_vm5, %v9215_v11  ;;  %2646 = vrot.lane.b32.xlu0 %v2425_v26, %s8047_s14  ;;  %v1398_v43 = vor.u32 %v1396_v61, %v1395_v17  ;;  %v9225_v34 = vsel %vm8189_vm3, %v1395_v17, 0  ;;  %v9228_v37 = vsel %vm2738_vm4, %v2765_v57, %v2767_v30  ;;  %v7817_v22 = vunpack.c.h.bf16 %v7914_v31  ;;  %v2557_v31 = vpop.permute.xlu1 %2556  ;;  %v7916_v11 = vld [vmem:[%s8140_s18 + $0x1d8] sm:$0xff]  }
 0x11a   : > { %3788 = vmatmul.mubr.bf16.gmra.mrb[36].mxu1 %v9200_v23  ;;  %11870 = vst [vmem:[#allocation49_spill] sm:$0xff] %v9228_v37  ;;  %v9233_v2 = vsel %vm8189_vm3, 0, %v1391_v16  ;;  %v2433_v13 = vsel %vm1853_vm2, %v2428_v54, %v2432_v12  ;;  %v2110_v55 = vshll.u32 %v9225_v34, 16  ;;  %7094 = vmatprep.mubr.msk.bf16.mxu0 %vm2909_vm5, %v9228_v37  ;;  %v791_v26 = vmul.f32 %v8916_v35, %v7812_v62 }
 0x11b   : > { %v9242_v57 = vsel %vm1204_vm0, %v1388_v32, %v1398_v43  ;;  %v2095_v8 = vshrl.u32 %v9233_v2, 16  ;;  %v2097_v16 = vshll.u32 %v9233_v2, 16  ;;  %v792_v29 = vmul.f32 %v8916_v35, %v7813_v60 }
 0x11c   : > { %v2102_v61 = vshll.u32 %v9242_v57, 16  ;;  %v2106_v46 = vshrl.u32 %v9242_v57, 16  ;;  %v2112_v12 = vrot.slane %v2110_v55, 1  ;;  %v793_v62 = vmul.f32 %v8916_v35, %v7816_v52 }
 0x11d   : > { %v2099_v38 = vrot.slane %v2097_v16, 1  ;;  %2648 = vrot.lane.b32.xlu0 %v2433_v13, %s8047_s14  ;;  %v794_v32 = vmul.f32 %v8916_v35, %v7817_v22  ;;  %v926_v15 = vadd.f32 %v9014_v50, %v791_v26  ;;  %v927_v39 = vadd.f32 %v9014_v50, %v792_v29  ;;  %v7882_v22 = vld [vmem:[%s8140_s18 + $0xc8] sm:$0xff]   ;;  %v8003_v26 = vld [vmem:[%s11586_s3 + $0x40] sm:$0xff]  }
 0x11e   : > { %v2104_v17 = vrot.slane %v2102_v61, 1  ;;  %v928_v60 = vadd.f32 %v9014_v50, %v793_v62  ;;  %v9258_v30 = vsel %vm2909_vm5, %v8514_v48, %v2557_v31  ;;  %v2849_v54 = vrot.slane %v8537_v56, 1  ;;  %v8004_v16 = vld [vmem:[%s11586_s3 + $0x100] sm:$0xff]   ;;  %4067 = vmatpush1.bf16.msra.mxu1 %v8003_v26 }
 0x11f   : > { %11871 = vst [vmem:[#allocation50_spill] sm:$0xff] %v9258_v30  ;;  %v2100_v52 = vor.u32 %v2099_v38, %v2095_v8  ;;  %v929_v43 = vadd.f32 %v9014_v50, %v794_v32  ;;  %v1054_v13 = vmax.f32 %v926_v15, 0.0  ;;  %v1055_v55 = vmax.f32 %v927_v39, 0.0  ;;  %3532 = vmatmul.mubr.bf16.gmra.mrb[36].mxu0 %v9258_v30  ;;  %v2623_v32 = vpop.permute.xlu0 %2622  ;;  %4068 = vmatprep.subr.bf16.mxu1 %v11823_v25 }
 0x120   : > { %v2108_v48 = vor.u32 %v2106_v46, %v2104_v17  ;;  %v1056_v31 = vmax.f32 %v928_v60, 0.0  ;;  %v11682_v29 = vrot.slane %v8547_v33, 1  ;;  %v7684_v8 = vunpack.c.l.bf16 %v7881_v3  ;;  %4715 = vmatpush1.bf16.msra.mxu0 %v8004_v16 }
 0x121   : > { %v2105_v61 = vsel %vm1853_vm2, %v2100_v52, %v2104_v17  ;;  %v1057_v62 = vmax.f32 %v929_v43, 0.0  ;;  %v1194_v38 = vpack.c.bf16 %v1055_v55, %v1054_v13  ;;  %v7685_v15 = vunpack.c.h.bf16 %v7881_v3  ;;  %4716 = vmatprep.subr.bf16.mxu0 %v11823_v25 }
 0x122   : > { %2582 = vrot.lane.b32.xlu1 %v2105_v61, %s8047_s14  ;;  %v2113_v39 = vsel %vm1853_vm2, %v2108_v48, %v2112_v12  ;;  %v9277_v46 = vsel %vm2738_vm4, %v2849_v54, %v11682_v29  ;;  %v7688_v60 = vunpack.c.l.bf16 %v7882_v22  ;;  %v7689_v23 = vunpack.c.h.bf16 %v7882_v22 }
 0x123   : > { %11872 = vst [vmem:[#allocation51_spill] sm:$0xff] %v9277_v46  ;;  %v1195_v17 = vpack.c.bf16 %v1057_v62, %v1056_v31  ;;  %v1641_v52 = vshrl.u32 %v1194_v38, 16  ;;  %v1644_v43 = vshll.u32 %v1194_v38, 16  ;;  %7127 = vmatprep.mubr.msk.bf16.mxu1 %vm2909_vm5, %v9277_v46  ;;  %v727_v3 = vmul.f32 %v8916_v35, %v7684_v8  ;;  %v2559_v31 = vpop.permute.xlu1 %2558  ;;  %v11874_v62 = vld [vmem:[#allocation3_spill] sm:$0xff] }
 0x124   : > { %v728_v12 = vmul.f32 %v8916_v35, %v7685_v15  ;;  %v729_v13 = vmul.f32 %v8916_v35, %v7688_v60  ;;  %v730_v54 = vmul.f32 %v8916_v35, %v7689_v23  ;;  %v9289_v55 = vsel %vm2909_vm5, %v8537_v56, %v2623_v32  ;;  %v11875_v60 = vld [vmem:[#allocation5_spill] sm:$0xff] }
 0x125   : > { %11873 = vst [vmem:[#allocation52_spill] sm:$0xff] %v9289_v55  ;;  %v1643_v22 = vrot.slane %v1641_v52, 7  ;;  %v1648_v26 = vshrl.u32 %v1195_v17, 16  ;;  %v1651_v16 = vshll.u32 %v1195_v17, 16  ;;  %v862_v48 = vadd.f32 %v9014_v50, %v727_v3  ;;  %3796 = vmatmul.mubr.bf16.gmra.mrb[40].mxu1 %v9289_v55 }
 0x126   : > { %2584 = vrot.lane.b32.xlu1 %v2113_v39, %s8047_s14  ;;  %v863_v8 = vadd.f32 %v9014_v50, %v728_v12  ;;  %v864_v61 = vadd.f32 %v9014_v50, %v729_v13  ;;  %v865_v23 = vadd.f32 %v9014_v50, %v730_v54  ;;  %v2769_v38 = vrot.slane %v11874_v62, 1  ;;  %v2625_v39 = vpop.permute.xlu0 %2624 }
 0x127   : > { %v1646_v56 = vor.u32 %v1644_v43, %v1643_v22  ;;  %v1650_v32 = vrot.slane %v1648_v26, 7  ;;  %v990_v15 = vmax.f32 %v862_v48, 0.0  ;;  %v2770_v17 = vrot.slane %v11875_v60, 1 }
 0x128   : > { %v991_v52 = vmax.f32 %v863_v8, 0.0  ;;  %v992_v3 = vmax.f32 %v864_v61, 0.0  ;;  %v993_v29 = vmax.f32 %v865_v23, 0.0  ;;  %v9301_v55 = vsel %vm2909_vm5, %v11874_v62, %v2559_v31  ;;  %v11881_v23 = vld [vmem:[#allocation2_spill] sm:$0xff] }
 0x129   : > { %11876 = vst [vmem:[#allocation3_spill] sm:$0xff] %v9301_v55  ;;  %v1653_v12 = vor.u32 %v1651_v16, %v1650_v32  ;;  %v9305_v13 = vsel %vm8189_vm3, 0, %v1646_v56  ;;  %v9308_v54 = vsel %vm2738_vm4, %v2769_v38, %v2770_v17  ;;  %v9312_v43 = vsel %vm8189_vm3, %v1650_v32, 0 }
 0x12a   : > { %11877 = vst [vmem:[#allocation5_spill] sm:$0xff] %v9305_v13  ;;  %11878 = vst [vmem:[#allocation53_spill] sm:$0xff] %v9308_v54  ;;  %v2435_v26 = vshrl.u32 %v9305_v13, 16  ;;  %v2437_v48 = vshll.u32 %v9305_v13, 16  ;;  %v1162_v31 = vpack.c.bf16 %v991_v52, %v990_v15  ;;  %v1163_v8 = vpack.c.bf16 %v993_v29, %v992_v3  ;;  %7095 = vmatprep.mubr.msk.bf16.mxu0 %vm2909_vm5, %v9308_v54  ;;  %v7915_v52 = vld [vmem:[%s8140_s18 + $0x1d0] sm:$0xff]  }
 0x12b   : > { %11879 = vst [vmem:[#allocation54_spill] sm:$0xff] %v9312_v43  ;;  %v9319_v16 = vsel %vm1204_vm0, %v1643_v22, %v1653_v12  ;;  %v2450_v61 = vshll.u32 %v9312_v43, 16  ;;  %3540 = vmatmul.mubr.bf16.gmra.mrb[40].mxu0 %v9301_v55  ;;  %v2852_v62 = vrot.slane %v11881_v23, 1  ;;  %v9326_v38 = vsel %vm2909_vm5, %v8547_v33, %v2625_v39 }
 0x12c   : > { %11880 = vst [vmem:[#allocation55_spill] sm:$0xff] %v9319_v16  ;;  %11882 = vst [vmem:[#allocation2_spill] sm:$0xff] %v9326_v38  ;;  %v2439_v56 = vrot.slane %v2437_v48, 1  ;;  %v2442_v29 = vshll.u32 %v9319_v16, 16  ;;  %v1401_v32 = vshrl.u32 %v1162_v31, 16  ;;  %v1404_v15 = vshll.u32 %v1162_v31, 16 }
 0x12d   : > { %v1408_v3 = vshrl.u32 %v1163_v8, 16  ;;  %v1411_v46 = vshll.u32 %v1163_v8, 16  ;;  %v2446_v22 = vshrl.u32 %v9319_v16, 16  ;;  %v2452_v12 = vrot.slane %v2450_v61, 1  ;;  %v11885_v31 = vld [vmem:[#allocation4_spill] sm:$0xff] }
 0x12e   : > { %v2440_v54 = vor.u32 %v2439_v56, %v2435_v26  ;;  %v2444_v55 = vrot.slane %v2442_v29, 1  ;;  %v1403_v30 = vrot.slane %v1401_v32, 7  ;;  %v11883_v23 = vrot.slane %v8547_v33, 1 }
 0x12f   : > { %v1410_v48 = vrot.slane %v1408_v3, 7  ;;  %v2772_v37 = vrot.slane %v11885_v31, 1  ;;  %v7820_v43 = vunpack.c.l.bf16 %v7915_v52  ;;  %v7821_v8 = vunpack.c.h.bf16 %v7915_v52  ;;  %v7883_v31 = vld [vmem:[%s8140_s18 + $0xd0] sm:$0xff]  }
 0x130   : > { %v9335_v39 = vsel %vm2738_vm4, %v11883_v23, %v2852_v62  ;;  %v2445_v16 = vsel %vm1853_vm2, %v2440_v54, %v2444_v55  ;;  %v1406_v61 = vor.u32 %v1404_v15, %v1403_v30  ;;  %v2448_v13 = vor.u32 %v2446_v22, %v2444_v55 }
 0x131   : > { %11884 = vst [vmem:[#allocation56_spill] sm:$0xff] %v9335_v39  ;;  %7128 = vmatprep.mubr.msk.bf16.mxu1 %vm2909_vm5, %v9335_v39  ;;  %v7824_v26 = vunpack.c.l.bf16 %v7916_v11  ;;  %2650 = vrot.lane.b32.xlu0 %v2445_v16, %s8047_s14  ;;  %v1413_v33 = vor.u32 %v1411_v46, %v1410_v48  ;;  %v9345_v62 = vsel %vm8189_vm3, %v1410_v48, 0  ;;  %v9348_v56 = vsel %vm2738_vm4, %v2770_v17, %v2772_v37  ;;  %v2561_v17 = vpop.permute.xlu1 %2560 }
 0x132   : > { %3804 = vmatmul.mubr.bf16.gmra.mrb[44].mxu1 %v9326_v38  ;;  %11886 = vst [vmem:[#allocation4_spill] sm:$0xff] %v9348_v56  ;;  %v7825_v29 = vunpack.c.h.bf16 %v7916_v11  ;;  %v9352_v32 = vsel %vm8189_vm3, 0, %v1406_v61  ;;  %v2453_v55 = vsel %vm1853_vm2, %v2448_v13, %v2452_v12  ;;  %v2130_v54 = vshll.u32 %v9345_v62, 16  ;;  %7096 = vmatprep.mubr.msk.bf16.mxu0 %vm2909_vm5, %v9348_v56 }
 0x133   : > { %v795_v46 = vmul.f32 %v8916_v35, %v7820_v43  ;;  %v9360_v16 = vsel %vm1204_vm0, %v1403_v30, %v1413_v33  ;;  %v2115_v37 = vshrl.u32 %v9352_v32, 16  ;;  %v2117_v11 = vshll.u32 %v9352_v32, 16  ;;  %v8005_v43 = vld [vmem:[%s11586_s3 + $0x48] sm:$0xff]   ;;  %v11888_v33 = vld [vmem:[#allocation6_spill] sm:$0xff] }
 0x134   : > { %v796_v15 = vmul.f32 %v8916_v35, %v7821_v8  ;;  %v2122_v13 = vshll.u32 %v9360_v16, 16  ;;  %v2126_v52 = vshrl.u32 %v9360_v16, 16  ;;  %v2132_v3 = vrot.slane %v2130_v54, 1  ;;  %4069 = vmatpush1.bf16.msra.mxu1 %v8005_v43 }
 0x135   : > { %v797_v22 = vmul.f32 %v8916_v35, %v7824_v26  ;;  %v2119_v30 = vrot.slane %v2117_v11, 1  ;;  %2652 = vrot.lane.b32.xlu0 %v2453_v55, %s8047_s14  ;;  %v798_v12 = vmul.f32 %v8916_v35, %v7825_v29  ;;  %v930_v23 = vadd.f32 %v9014_v50, %v795_v46  ;;  %v7884_v46 = vld [vmem:[%s8140_s18 + $0xd8] sm:$0xff]   ;;  %4070 = vmatprep.subr.bf16.mxu1 %v11823_v25 }
 0x136   : > { %v931_v48 = vadd.f32 %v9014_v50, %v796_v15  ;;  %v2124_v8 = vrot.slane %v2122_v13, 1  ;;  %v9379_v26 = vsel %vm2909_vm5, %v11875_v60, %v2561_v17  ;;  %v2854_v54 = vrot.slane %v11888_v33, 1  ;;  %v8006_v15 = vld [vmem:[%s11586_s3 + $0x108] sm:$0xff]  }
 0x137   : > { %v932_v61 = vadd.f32 %v9014_v50, %v797_v22  ;;  %11887 = vst [vmem:[#allocation57_spill] sm:$0xff] %v9379_v26  ;;  %v2120_v11 = vor.u32 %v2119_v30, %v2115_v37  ;;  %v933_v55 = vadd.f32 %v9014_v50, %v798_v12  ;;  %v1058_v38 = vmax.f32 %v930_v23, 0.0  ;;  %3548 = vmatmul.mubr.bf16.gmra.mrb[44].mxu0 %v9379_v26  ;;  %v2627_v12 = vpop.permute.xlu0 %2626 }
 0x138   : > { %v1059_v29 = vmax.f32 %v931_v48, 0.0  ;;  %v2128_v13 = vor.u32 %v2126_v52, %v2124_v8  ;;  %v11708_v17 = vrot.slane %v8601_v42, 1  ;;  %v7692_v22 = vunpack.c.l.bf16 %v7883_v31  ;;  %4717 = vmatpush1.bf16.msra.mxu0 %v8006_v15 }
 0x139   : > { %v1060_v60 = vmax.f32 %v932_v61, 0.0  ;;  %v2125_v37 = vsel %vm1853_vm2, %v2120_v11, %v2124_v8  ;;  %v1061_v43 = vmax.f32 %v933_v55, 0.0  ;;  %v7693_v23 = vunpack.c.h.bf16 %v7883_v31  ;;  %4718 = vmatprep.subr.bf16.mxu0 %v11823_v25 }
 0x13a   : > { %v1196_v30 = vpack.c.bf16 %v1059_v29, %v1058_v38  ;;  %2586 = vrot.lane.b32.xlu1 %v2125_v37, %s8047_s14  ;;  %v2133_v48 = vsel %vm1853_vm2, %v2128_v13, %v2132_v3  ;;  %v9396_v39 = vsel %vm2738_vm4, %v2854_v54, %v11708_v17  ;;  %v7696_v52 = vunpack.c.l.bf16 %v7884_v46 }
 0x13b   : > { %11889 = vst [vmem:[#allocation6_spill] sm:$0xff] %v9396_v39  ;;  %v7697_v61 = vunpack.c.h.bf16 %v7884_v46  ;;  %v1197_v26 = vpack.c.bf16 %v1061_v43, %v1060_v60  ;;  %7129 = vmatprep.mubr.msk.bf16.mxu1 %vm2909_vm5, %v9396_v39  ;;  %v731_v38 = vmul.f32 %v8916_v35, %v7692_v22  ;;  %v732_v31 = vmul.f32 %v8916_v35, %v7693_v23  ;;  %v2563_v60 = vpop.permute.xlu1 %2562 }
 0x13c   : > { %v1656_v8 = vshrl.u32 %v1196_v30, 16  ;;  %v1659_v11 = vshll.u32 %v1196_v30, 16  ;;  %v733_v3 = vmul.f32 %v8916_v35, %v7696_v52  ;;  %v9407_v54 = vsel %vm2909_vm5, %v11888_v33, %v2627_v12 }
 0x13d   : > { %v734_v55 = vmul.f32 %v8916_v35, %v7697_v61  ;;  %11890 = vst [vmem:[#allocation58_spill] sm:$0xff] %v9407_v54  ;;  %v1663_v46 = vshrl.u32 %v1197_v26, 16  ;;  %v1666_v15 = vshll.u32 %v1197_v26, 16  ;;  %v866_v13 = vadd.f32 %v9014_v50, %v731_v38  ;;  %3812 = vmatmul.mubr.bf16.gmra.mrb[48].mxu1 %v9407_v54 }
 0x13e   : > { %v1658_v29 = vrot.slane %v1656_v8, 7  ;;  %2588 = vrot.lane.b32.xlu1 %v2133_v48, %s8047_s14  ;;  %v867_v22 = vadd.f32 %v9014_v50, %v732_v31  ;;  %v868_v37 = vadd.f32 %v9014_v50, %v733_v3  ;;  %v2774_v43 = vrot.slane %v8628_v44, 1  ;;  %v2629_v48 = vpop.permute.xlu0 %2628 }
 0x13f   : > { %v869_v35 = vadd.f32 %v9014_v50, %v734_v55  ;;  %v1665_v30 = vrot.slane %v1663_v46, 7  ;;  %v994_v12 = vmax.f32 %v866_v13, 0.0  ;;  %v2775_v26 = vrot.slane %v8633_v49, 1 }
 0x140   : > { %v1661_v33 = vor.u32 %v1659_v11, %v1658_v29  ;;  %v995_v23 = vmax.f32 %v867_v22, 0.0  ;;  %v996_v52 = vmax.f32 %v868_v37, 0.0  ;;  %v9419_v8 = vsel %vm2909_vm5, %v8628_v44, %v2563_v60 }
 0x141   : > { %v997_v61 = vmax.f32 %v869_v35, 0.0  ;;  %11891 = vst [vmem:[#allocation59_spill] sm:$0xff] %v9419_v8  ;;  %v1668_v38 = vor.u32 %v1666_v15, %v1665_v30  ;;  %v9426_v3 = vsel %vm2738_vm4, %v2774_v43, %v2775_v26  ;;  %v9430_v11 = vsel %vm8189_vm3, %v1665_v30, 0 }
 0x142   : > { %v9423_v31 = vsel %vm8189_vm3, 0, %v1661_v33  ;;  %11892 = vst [vmem:[#allocation60_spill] sm:$0xff] %v9426_v3  ;;  %v1164_v44 = vpack.c.bf16 %v995_v23, %v994_v12  ;;  %7097 = vmatprep.mubr.msk.bf16.mxu0 %vm2909_vm5, %v9426_v3  ;;  %v2470_v60 = vshll.u32 %v9430_v11, 16  ;;  %v2857_v22 = vrot.slane %v8596_v0, 1  ;;  %v7917_v12 = vld [vmem:[%s8140_s18 + $0x1e0] sm:$0xff]  }
 0x143   : > { %v2455_v55 = vshrl.u32 %v9423_v31, 16  ;;  %v2457_v46 = vshll.u32 %v9423_v31, 16  ;;  %v1165_v13 = vpack.c.bf16 %v997_v61, %v996_v52  ;;  %v9437_v15 = vsel %vm1204_vm0, %v1658_v29, %v1668_v38  ;;  %3556 = vmatmul.mubr.bf16.gmra.mrb[48].mxu0 %v9419_v8  ;;  %v7918_v38 = vld [vmem:[%s8140_s18 + $0x1e8] sm:$0xff]  }
 0x144   : > { %v9444_v37 = vsel %vm2909_vm5, %v8601_v42, %v2629_v48  ;;  %v2462_v43 = vshll.u32 %v9437_v15, 16  ;;  %v1416_v33 = vshrl.u32 %v1164_v44, 16  ;;  %v1419_v30 = vshll.u32 %v1164_v44, 16 }
 0x145   : > { %11893 = vst [vmem:[#allocation61_spill] sm:$0xff] %v9444_v37  ;;  %v2459_v35 = vrot.slane %v2457_v46, 1  ;;  %v1423_v23 = vshrl.u32 %v1165_v13, 16  ;;  %v1426_v52 = vshll.u32 %v1165_v13, 16  ;;  %v2466_v29 = vshrl.u32 %v9437_v15, 16 }
 0x146   : > { %v2472_v61 = vrot.slane %v2470_v60, 1  ;;  %v2464_v54 = vrot.slane %v2462_v43, 1  ;;  %v1418_v39 = vrot.slane %v1416_v33, 7  ;;  %v11894_v0 = vrot.slane %v8601_v42, 1 }
 0x147   : > { %v2460_v17 = vor.u32 %v2459_v35, %v2455_v55  ;;  %v1425_v46 = vrot.slane %v1423_v23, 7  ;;  %v2777_v44 = vrot.slane %v8622_v63, 1  ;;  %v7828_v8 = vunpack.c.l.bf16 %v7917_v12 }
 0x148   : > { %v9453_v48 = vsel %vm2738_vm4, %v11894_v0, %v2857_v22  ;;  %v7829_v13 = vunpack.c.h.bf16 %v7917_v12  ;;  %v1421_v3 = vor.u32 %v1419_v30, %v1418_v39  ;;  %v2468_v55 = vor.u32 %v2466_v29, %v2464_v54  ;;  %v9477_v30 = vld [vmem:[%s8118_s9] ss:$0 sm:$0xff] }
 0x149   : > { %11895 = vst [vmem:[#allocation62_spill] sm:$0xff] %v9453_v48  ;;  %7130 = vmatprep.mubr.msk.bf16.mxu1 %vm2909_vm5, %v9453_v48  ;;  %v2465_v60 = vsel %vm1853_vm2, %v2460_v17, %v2464_v54  ;;  %v7832_v35 = vunpack.c.l.bf16 %v7918_v38  ;;  %v1428_v42 = vor.u32 %v1426_v52, %v1425_v46  ;;  %v9463_v22 = vsel %vm8189_vm3, %v1425_v46, 0  ;;  %v2565_v52 = vpop.permute.xlu1 %2564 }
 0x14a   : > { %3820 = vmatmul.mubr.bf16.gmra.mrb[52].mxu1 %v9444_v37  ;;  %2654 = vrot.lane.b32.xlu0 %v2465_v60, %s8047_s14  ;;  %11896 = vst [vmem:[#allocation63_spill] sm:$0xff] %v9463_v22  ;;  %v9466_v43 = vsel %vm2738_vm4, %v2775_v26, %v2777_v44  ;;  %v7833_v63 = vunpack.c.h.bf16 %v7918_v38  ;;  %v9470_v33 = vsel %vm8189_vm3, 0, %v1421_v3  ;;  %v2473_v17 = vsel %vm1853_vm2, %v2468_v55, %v2472_v61 }
 0x14b   : > { %11897 = vst [vmem:[#allocation64_spill] sm:$0xff] %v9466_v43  ;;  %v2150_v54 = vshll.u32 %v9463_v22, 16  ;;  %7098 = vmatprep.mubr.msk.bf16.mxu0 %vm2909_vm5, %v9466_v43  ;;  %v799_v12 = vmul.f32 %v9477_v30, %v7828_v8  ;;  %v9481_v23 = vsel %vm1204_vm0, %v1418_v39, %v1428_v42  ;;  %v2135_v26 = vshrl.u32 %v9470_v33, 16  ;;  %v8007_v39 = vld [vmem:[%s11586_s3 + $0x50] sm:$0xff]   ;;  %v7885_v42 = vld [vmem:[%s8140_s18 + $0xe0] sm:$0xff]  }
 0x14c   : > { %v2137_v3 = vshll.u32 %v9470_v33, 16  ;;  %v800_v29 = vmul.f32 %v9477_v30, %v7829_v13  ;;  %v2142_v61 = vshll.u32 %v9481_v23, 16  ;;  %v2146_v38 = vshrl.u32 %v9481_v23, 16  ;;  %v8008_v8 = vld [vmem:[%s11586_s3 + $0x110] sm:$0xff]   ;;  %4071 = vmatpush1.bf16.msra.mxu1 %v8007_v39 }
 0x14d   : > { %v2152_v0 = vrot.slane %v2150_v54, 1  ;;  %v801_v46 = vmul.f32 %v9477_v30, %v7832_v35  ;;  %v802_v13 = vmul.f32 %v9477_v30, %v7833_v63  ;;  %v934_v60 = vadd.f32 %v9014_v50, %v799_v12  ;;  %4719 = vmatpush1.bf16.msra.mxu0 %v8008_v8  ;;  %v7886_v12 = vld [vmem:[%s8140_s18 + $0xe8] sm:$0xff]   ;;  %4072 = vmatprep.subr.bf16.mxu1 %v11823_v25  ;;  %v2631_v8 = vpop.permute.xlu0 %2630 }
 0x14e   : > { %v2139_v44 = vrot.slane %v2137_v3, 1  ;;  %2656 = vrot.lane.b32.xlu0 %v2473_v17, %s8047_s14  ;;  %v935_v55 = vadd.f32 %v9014_v50, %v800_v29  ;;  %v2144_v35 = vrot.slane %v2142_v61, 1  ;;  %v9503_v37 = vsel %vm2909_vm5, %v8633_v49, %v2565_v52  ;;  %4720 = vmatprep.subr.bf16.mxu0 %v11823_v25 }
 0x14f   : > { %v936_v54 = vadd.f32 %v9014_v50, %v801_v46  ;;  %11898 = vst [vmem:[#allocation65_spill] sm:$0xff] %v9503_v37  ;;  %v2859_v48 = vrot.slane %v8674_v51, 1  ;;  %v937_v3 = vadd.f32 %v9014_v50, %v802_v13  ;;  %v1062_v63 = vmax.f32 %v934_v60, 0.0  ;;  %3564 = vmatmul.mubr.bf16.gmra.mrb[52].mxu0 %v9503_v37  ;;  %v11899_v46 = vld [vmem:[#allocation10_spill] sm:$0xff] }
 0x150   : > { %v2140_v17 = vor.u32 %v2139_v44, %v2135_v26  ;;  %v1063_v43 = vmax.f32 %v935_v55, 0.0  ;;  %v2148_v29 = vor.u32 %v2146_v38, %v2144_v35  ;;  %v11725_v56 = vrot.slane %v11899_v46, 1 }
 0x151   : > { %v1064_v61 = vmax.f32 %v936_v54, 0.0  ;;  %v7700_v49 = vunpack.c.l.bf16 %v7885_v42  ;;  %v1065_v39 = vmax.f32 %v937_v3, 0.0  ;;  %v7701_v50 = vunpack.c.h.bf16 %v7885_v42 }
 0x152   : > { %v2145_v52 = vsel %vm1853_vm2, %v2140_v17, %v2144_v35  ;;  %v1198_v26 = vpack.c.bf16 %v1063_v43, %v1062_v63  ;;  %v2153_v44 = vsel %vm1853_vm2, %v2148_v29, %v2152_v0  ;;  %v9518_v38 = vsel %vm2738_vm4, %v2859_v48, %v11725_v56 }
 0x153   : > { %2590 = vrot.lane.b32.xlu1 %v2145_v52, %s8047_s14  ;;  %11900 = vst [vmem:[#allocation10_spill] sm:$0xff] %v9518_v38  ;;  %v7704_v13 = vunpack.c.l.bf16 %v7886_v12  ;;  %v7705_v60 = vunpack.c.h.bf16 %v7886_v12  ;;  %v1199_v55 = vpack.c.bf16 %v1065_v39, %v1064_v61  ;;  %7131 = vmatprep.mubr.msk.bf16.mxu1 %vm2909_vm5, %v9518_v38  ;;  %v735_v43 = vmul.f32 %v9477_v30, %v7700_v49  ;;  %v9531_v12 = vld [vmem:[%s8133_s15] ss:$0 sm:$0xff]  ;;  %v2567_v61 = vpop.permute.xlu1 %2566  ;;  %v7920_v38 = vld [vmem:[%s8140_s18 + $0x1f8] sm:$0xff]  }
 0x154   : > { %v1671_v25 = vshrl.u32 %v1198_v26, 16  ;;  %v1674_v54 = vshll.u32 %v1198_v26, 16  ;;  %v736_v42 = vmul.f32 %v9477_v30, %v7701_v50  ;;  %v9528_v48 = vsel %vm2909_vm5, %v8674_v51, %v2631_v8 }
 0x155   : > { %v737_v0 = vmul.f32 %v9477_v30, %v7704_v13  ;;  %v738_v35 = vmul.f32 %v9477_v30, %v7705_v60  ;;  %11901 = vst [vmem:[#allocation66_spill] sm:$0xff] %v9528_v48  ;;  %v1678_v3 = vshrl.u32 %v1199_v55, 16  ;;  %v1681_v63 = vshll.u32 %v1199_v55, 16  ;;  %3828 = vmatmul.mubr.bf16.gmra.mrb[56].mxu1 %v9528_v48  ;;  %v11902_v13 = vld [vmem:[#allocation18_spill] sm:$0xff] }
 0x156   : > { %v1673_v17 = vrot.slane %v1671_v25, 7  ;;  %v870_v29 = vadd.f32 %v9531_v12, %v735_v43  ;;  %v871_v49 = vadd.f32 %v9531_v12, %v736_v42  ;;  %v2779_v51 = vrot.slane %v8767_v19, 1 }
 0x157   : > { %2592 = vrot.lane.b32.xlu1 %v2153_v44, %s8047_s14  ;;  %v872_v52 = vadd.f32 %v9531_v12, %v737_v0  ;;  %v873_v39 = vadd.f32 %v9531_v12, %v738_v35  ;;  %v1680_v8 = vrot.slane %v1678_v3, 7  ;;  %v2780_v60 = vrot.slane %v11902_v13, 1  ;;  %v2633_v44 = vpop.permute.xlu0 %2632 }
 0x158   : > { %v1676_v26 = vor.u32 %v1674_v54, %v1673_v17  ;;  %v998_v50 = vmax.f32 %v870_v29, 0.0  ;;  %v999_v55 = vmax.f32 %v871_v49, 0.0  ;;  %v9543_v56 = vsel %vm2909_vm5, %v8767_v19, %v2567_v61 }
 0x159   : > { %v1000_v25 = vmax.f32 %v872_v52, 0.0  ;;  %v1001_v43 = vmax.f32 %v873_v39, 0.0  ;;  %11903 = vst [vmem:[#allocation18_spill] sm:$0xff] %v9543_v56  ;;  %v1683_v42 = vor.u32 %v1681_v63, %v1680_v8  ;;  %v9550_v35 = vsel %vm2738_vm4, %v2779_v51, %v2780_v60  ;;  %v11908_v52 = vld [vmem:[#allocation9_spill] sm:$0xff] }
 0x15a   : > { %v9547_v0 = vsel %vm8189_vm3, 0, %v1676_v26  ;;  %11905 = vst [vmem:[#allocation68_spill] sm:$0xff] %v9550_v35  ;;  %v9554_v54 = vsel %vm8189_vm3, %v1680_v8, 0  ;;  %v1166_v19 = vpack.c.bf16 %v999_v55, %v998_v50  ;;  %7099 = vmatprep.mubr.msk.bf16.mxu0 %vm2909_vm5, %v9550_v35  ;;  %v2862_v39 = vrot.slane %v11908_v52, 1 }
 0x15b   : > { %11904 = vst [vmem:[#allocation67_spill] sm:$0xff] %v9547_v0  ;;  %11906 = vst [vmem:[#allocation69_spill] sm:$0xff] %v9554_v54  ;;  %v2475_v3 = vshrl.u32 %v9547_v0, 16  ;;  %v2477_v29 = vshll.u32 %v9547_v0, 16  ;;  %v1167_v61 = vpack.c.bf16 %v1001_v43, %v1000_v25  ;;  %v9561_v63 = vsel %vm1204_vm0, %v1673_v17, %v1683_v42  ;;  %3572 = vmatmul.mubr.bf16.gmra.mrb[56].mxu0 %v9543_v56  ;;  %v7919_v25 = vld [vmem:[%s8140_s18 + $0x1f0] sm:$0xff]  }
 0x15c   : > { %11907 = vst [vmem:[#allocation70_spill] sm:$0xff] %v9561_v63  ;;  %v2490_v49 = vshll.u32 %v9554_v54, 16  ;;  %v9568_v51 = vsel %vm2909_vm5, %v11899_v46, %v2633_v44  ;;  %v2482_v8 = vshll.u32 %v9561_v63, 16  ;;  %v1431_v50 = vshrl.u32 %v1166_v19, 16 }
 0x15d   : > { %11909 = vst [vmem:[#allocation9_spill] sm:$0xff] %v9568_v51  ;;  %v2479_v26 = vrot.slane %v2477_v29, 1  ;;  %v1434_v55 = vshll.u32 %v1166_v19, 16  ;;  %v1438_v43 = vshrl.u32 %v1167_v61, 16  ;;  %v1441_v48 = vshll.u32 %v1167_v61, 16  ;;  %v11912_v19 = vld [vmem:[#allocation17_spill] sm:$0xff] }
 0x15e   : > { %v2486_v17 = vshrl.u32 %v9561_v63, 16  ;;  %v2492_v42 = vrot.slane %v2490_v49, 1  ;;  %v2484_v56 = vrot.slane %v2482_v8, 1  ;;  %v1433_v37 = vrot.slane %v1431_v50, 7 }
 0x15f   : > { %v2480_v35 = vor.u32 %v2479_v26, %v2475_v3  ;;  %v11910_v52 = vrot.slane %v11899_v46, 1  ;;  %v1440_v29 = vrot.slane %v1438_v43, 7  ;;  %v2782_v54 = vrot.slane %v11912_v19, 1 }
 0x160   : > { %v7836_v0 = vunpack.c.l.bf16 %v7919_v25  ;;  %v7837_v61 = vunpack.c.h.bf16 %v7919_v25  ;;  %v1436_v49 = vor.u32 %v1434_v55, %v1433_v37  ;;  %v2488_v22 = vor.u32 %v2486_v17, %v2484_v56 }
 0x161   : > { %v9577_v44 = vsel %vm2738_vm4, %v11910_v52, %v2862_v39  ;;  %v2485_v63 = vsel %vm1853_vm2, %v2480_v35, %v2484_v56  ;;  %v7840_v3 = vunpack.c.l.bf16 %v7920_v38  ;;  %v1443_v46 = vor.u32 %v1441_v48, %v1440_v29 }
 0x162   : > { %11911 = vst [vmem:[#allocation71_spill] sm:$0xff] %v9577_v44  ;;  %7132 = vmatprep.mubr.msk.bf16.mxu1 %vm2909_vm5, %v9577_v44  ;;  %2658 = vrot.lane.b32.xlu0 %v2485_v63, %s8047_s14  ;;  %v9587_v39 = vsel %vm8189_vm3, %v1440_v29, 0  ;;  %v9590_v26 = vsel %vm2738_vm4, %v2780_v60, %v2782_v54  ;;  %v7841_v8 = vunpack.c.h.bf16 %v7920_v38  ;;  %v9594_v50 = vsel %vm8189_vm3, 0, %v1436_v49  ;;  %v2569_v54 = vpop.permute.xlu1 %2568  ;;  %v7887_v29 = vld [vmem:[%s8140_s18 + $0xf0] sm:$0xff]  }
 0x163   : > { %3836 = vmatmul.mubr.bf16.gmra.mrb[60].mxu1 %v9568_v51  ;;  %11913 = vst [vmem:[#allocation17_spill] sm:$0xff] %v9587_v39  ;;  %11914 = vst [vmem:[#allocation72_spill] sm:$0xff] %v9590_v26  ;;  %v2493_v56 = vsel %vm1853_vm2, %v2488_v22, %v2492_v42  ;;  %v2170_v35 = vshll.u32 %v9587_v39, 16  ;;  %7100 = vmatprep.mubr.msk.bf16.mxu0 %vm2909_vm5, %v9590_v26  ;;  %v803_v48 = vmul.f32 %v9477_v30, %v7836_v0  ;;  %v2635_v26 = vpop.permute.xlu0 %2634 }
 0x164   : > { %v9602_v63 = vsel %vm1204_vm0, %v1433_v37, %v1443_v46  ;;  %v2155_v60 = vshrl.u32 %v9594_v50, 16  ;;  %v2157_v38 = vshll.u32 %v9594_v50, 16  ;;  %v804_v55 = vmul.f32 %v9477_v30, %v7837_v61  ;;  %v8009_v46 = vld [vmem:[%s11586_s3 + $0x58] sm:$0xff]  }
 0x165   : > { %v2162_v22 = vshll.u32 %v9602_v63, 16  ;;  %v2166_v25 = vshrl.u32 %v9602_v63, 16  ;;  %v2172_v43 = vrot.slane %v2170_v35, 1  ;;  %v805_v17 = vmul.f32 %v9477_v30, %v7840_v3  ;;  %4073 = vmatpush1.bf16.msra.mxu1 %v8009_v46 }
 0x166   : > { %v2159_v42 = vrot.slane %v2157_v38, 1  ;;  %2660 = vrot.lane.b32.xlu0 %v2493_v56, %s8047_s14  ;;  %v806_v37 = vmul.f32 %v9477_v30, %v7841_v8  ;;  %v938_v0 = vadd.f32 %v9531_v12, %v803_v48  ;;  %v939_v52 = vadd.f32 %v9531_v12, %v804_v55  ;;  %v7888_v38 = vld [vmem:[%s8140_s18 + $0xf8] sm:$0xff]  }
 0x167   : > { %v2164_v19 = vrot.slane %v2162_v22, 1  ;;  %v940_v61 = vadd.f32 %v9531_v12, %v805_v17  ;;  %v9618_v49 = vsel %vm2909_vm5, %v11902_v13, %v2569_v54  ;;  %v2864_v3 = vrot.slane %v8830_v58, 1 }
 0x168   : > { %v2160_v56 = vor.u32 %v2159_v42, %v2155_v60  ;;  %v941_v8 = vadd.f32 %v9531_v12, %v806_v37  ;;  %v1066_v35 = vmax.f32 %v938_v0, 0.0  ;;  %v1067_v48 = vmax.f32 %v939_v52, 0.0  ;;  %3580 = vmatmul.mubr.bf16.gmra.mrb[60].mxu0 %v9618_v49 }
 0x169   : > { %v2168_v55 = vor.u32 %v2166_v25, %v2164_v19  ;;  %v1068_v22 = vmax.f32 %v940_v61, 0.0  ;;  %v11749_v17 = vrot.slane %v8826_v59, 1  ;;  %v7708_v13 = vunpack.c.l.bf16 %v7887_v29 }
 0x16a   : > { %v2165_v54 = vsel %vm1853_vm2, %v2160_v56, %v2164_v19  ;;  %v1069_v51 = vmax.f32 %v941_v8, 0.0  ;;  %v1200_v44 = vpack.c.bf16 %v1067_v48, %v1066_v35  ;;  %v7709_v39 = vunpack.c.h.bf16 %v7887_v29  ;;  %v8010_v29 = vld [vmem:[%s11586_s3 + $0x118] sm:$0xff]   ;;  %v2571_v48 = vpop.permute.xlu1 %2570 }
 0x16b   : > { %2594 = vrot.lane.b32.xlu1 %v2165_v54, %s8047_s14  ;;  %v2173_v60 = vsel %vm1853_vm2, %v2168_v55, %v2172_v43  ;;  %v9634_v42 = vsel %vm2738_vm4, %v2864_v3, %v11749_v17  ;;  %v7712_v25 = vunpack.c.l.bf16 %v7888_v38  ;;  %v7713_v37 = vunpack.c.h.bf16 %v7888_v38  ;;  %4721 = vmatpush1.bf16.msra.mxu0 %v8010_v29 }
 0x16c   : > { %11915 = vst [vmem:[#allocation73_spill] sm:$0xff] %v9634_v42  ;;  %v1201_v0 = vpack.c.bf16 %v1069_v51, %v1068_v22  ;;  %v1686_v52 = vshrl.u32 %v1200_v44, 16  ;;  %v1689_v61 = vshll.u32 %v1200_v44, 16  ;;  %7133 = vmatprep.mubr.msk.bf16.mxu1 %vm2909_vm5, %v9634_v42  ;;  %v739_v19 = vmul.f32 %v9477_v30, %v7708_v13 }
 0x16d   : > { %v740_v43 = vmul.f32 %v9477_v30, %v7709_v39  ;;  %v741_v46 = vmul.f32 %v9477_v30, %v7712_v25  ;;  %v742_v3 = vmul.f32 %v9477_v30, %v7713_v37  ;;  %v9647_v51 = vsel %vm2909_vm5, %v8830_v58, %v2635_v26 }
 0x16e   : > { %11916 = vst [vmem:[#allocation74_spill] sm:$0xff] %v9647_v51  ;;  %v1688_v44 = vrot.slane %v1686_v52, 7  ;;  %v1693_v56 = vshrl.u32 %v1201_v0, 16  ;;  %v1696_v8 = vshll.u32 %v1201_v0, 16  ;;  %v874_v35 = vadd.f32 %v9531_v12, %v739_v19  ;;  %3844 = vmatmul.mubr.bf16.gmra.mrb[64].mxu1 %v9647_v51 }
 0x16f   : > { %2596 = vrot.lane.b32.xlu1 %v2173_v60, %s8047_s14  ;;  %v875_v39 = vadd.f32 %v9531_v12, %v740_v43  ;;  %v876_v38 = vadd.f32 %v9531_v12, %v741_v46  ;;  %v877_v55 = vadd.f32 %v9531_v12, %v742_v3  ;;  %v2784_v58 = vrot.slane %v8875_v1, 1  ;;  %v2637_v60 = vpop.permute.xlu0 %2636 }
 0x170   : > { %v1691_v26 = vor.u32 %v1689_v61, %v1688_v44  ;;  %v1695_v22 = vrot.slane %v1693_v56, 7  ;;  %v1002_v13 = vmax.f32 %v874_v35, 0.0  ;;  %v2785_v54 = vrot.slane %v8882_v28, 1 }
 0x171   : > { %v1003_v25 = vmax.f32 %v875_v39, 0.0  ;;  %v1004_v37 = vmax.f32 %v876_v38, 0.0  ;;  %v1005_v0 = vmax.f32 %v877_v55, 0.0  ;;  %v9659_v52 = vsel %vm2909_vm5, %v8875_v1, %v2571_v48 }
 0x172   : > { %11917 = vst [vmem:[#allocation75_spill] sm:$0xff] %v9659_v52  ;;  %v1698_v19 = vor.u32 %v1696_v8, %v1695_v22  ;;  %v9663_v29 = vsel %vm8189_vm3, 0, %v1691_v26  ;;  %v9666_v43 = vsel %vm2738_vm4, %v2784_v58, %v2785_v54  ;;  %v9670_v61 = vsel %vm8189_vm3, %v1695_v22, 0  ;;  %v7843_v22 = vld [vmem:[%s8140_s18] sm:$0xff]  }
 0x173   : > { %11918 = vst [vmem:[#allocation76_spill] sm:$0xff] %v9666_v43  ;;  %v2495_v46 = vshrl.u32 %v9663_v29, 16  ;;  %v2497_v3 = vshll.u32 %v9663_v29, 16  ;;  %v1168_v1 = vpack.c.bf16 %v1003_v25, %v1002_v13  ;;  %v1169_v56 = vpack.c.bf16 %v1005_v0, %v1004_v37  ;;  %7101 = vmatprep.mubr.msk.bf16.mxu0 %vm2909_vm5, %v9666_v43  ;;  %v7921_v0 = vld [vmem:[%s8140_s18 + $0x8] sm:$0xff]  }
 0x174   : > { %v9677_v8 = vsel %vm1204_vm0, %v1688_v44, %v1698_v19  ;;  %v2510_v35 = vshll.u32 %v9670_v61, 16  ;;  %3588 = vmatmul.mubr.bf16.gmra.mrb[64].mxu0 %v9659_v52  ;;  %v2867_v48 = vrot.slane %v8823_v40, 1  ;;  %v9684_v39 = vsel %vm2909_vm5, %v8826_v59, %v2637_v60 }
 0x175   : > { %11919 = vst [vmem:[#allocation77_spill] sm:$0xff] %v9684_v39  ;;  %v2499_v38 = vrot.slane %v2497_v3, 1  ;;  %v2502_v55 = vshll.u32 %v9677_v8, 16  ;;  %v1446_v58 = vshrl.u32 %v1168_v1, 16  ;;  %v1449_v26 = vshll.u32 %v1168_v1, 16 }
 0x176   : > { %v1453_v13 = vshrl.u32 %v1169_v56, 16  ;;  %v1456_v25 = vshll.u32 %v1169_v56, 16  ;;  %v2506_v44 = vshrl.u32 %v9677_v8, 16  ;;  %v2512_v37 = vrot.slane %v2510_v35, 1 }
 0x177   : > { %v2500_v19 = vor.u32 %v2499_v38, %v2495_v46  ;;  %v2504_v17 = vrot.slane %v2502_v55, 1  ;;  %v1448_v51 = vrot.slane %v1446_v58, 7  ;;  %v11920_v40 = vrot.slane %v8826_v59, 1 }
 0x178   : > { %v1455_v3 = vrot.slane %v1453_v13, 7  ;;  %v2787_v1 = vrot.slane %v8867_v47, 1  ;;  %v7844_v42 = vunpack.c.l.bf16 %v7843_v22  ;;  %v7845_v56 = vunpack.c.h.bf16 %v7843_v22  ;;  %v2573_v13 = vpop.permute.xlu1 %2572 }
 0x179   : > { %v9693_v60 = vsel %vm2738_vm4, %v11920_v40, %v2867_v48  ;;  %v2505_v52 = vsel %vm1853_vm2, %v2500_v19, %v2504_v17  ;;  %v1451_v35 = vor.u32 %v1449_v26, %v1448_v51  ;;  %v2508_v43 = vor.u32 %v2506_v44, %v2504_v17 }
 0x17a   : > { %11921 = vst [vmem:[#allocation78_spill] sm:$0xff] %v9693_v60  ;;  %7134 = vmatprep.mubr.msk.bf16.mxu1 %vm2909_vm5, %v9693_v60  ;;  %v7848_v46 = vunpack.c.l.bf16 %v7921_v0  ;;  %2662 = vrot.lane.b32.xlu0 %v2505_v52, %s8047_s14  ;;  %v1458_v59 = vor.u32 %v1456_v25, %v1455_v3  ;;  %v9703_v48 = vsel %vm8189_vm3, %v1455_v3, 0  ;;  %v9706_v38 = vsel %vm2738_vm4, %v2785_v54, %v2787_v1  ;;  %v2639_v3 = vpop.permute.xlu0 %2638 }
 0x17b   : > { %3852 = vmatmul.mubr.bf16.gmra.mrb[68].mxu1 %v9684_v39  ;;  %v7849_v47 = vunpack.c.h.bf16 %v7921_v0  ;;  %v9710_v55 = vsel %vm8189_vm3, 0, %v1451_v35  ;;  %v2513_v17 = vsel %vm1853_vm2, %v2508_v43, %v2512_v37  ;;  %v2190_v58 = vshll.u32 %v9703_v48, 16  ;;  %7102 = vmatprep.mubr.msk.bf16.mxu0 %vm2909_vm5, %v9706_v38 }
 0x17c   : > { %v1084_v52 = vmul.f32 %v9477_v30, %v7844_v42  ;;  %v9718_v26 = vsel %vm1204_vm0, %v1448_v51, %v1458_v59  ;;  %v2175_v54 = vshrl.u32 %v9710_v55, 16  ;;  %v2177_v22 = vshll.u32 %v9710_v55, 16 }
 0x17d   : > { %v1085_v25 = vmul.f32 %v9477_v30, %v7845_v56  ;;  %v2182_v44 = vshll.u32 %v9718_v26, 16  ;;  %v2186_v43 = vshrl.u32 %v9718_v26, 16  ;;  %v2192_v37 = vrot.slane %v2190_v58, 1 }
 0x17e   : > { %v1086_v0 = vmul.f32 %v9477_v30, %v7848_v46  ;;  %v2179_v19 = vrot.slane %v2177_v22, 1  ;;  %2664 = vrot.lane.b32.xlu0 %v2513_v17, %s8047_s14  ;;  %v1087_v42 = vmul.f32 %v9477_v30, %v7849_v47  ;;  %v1088_v51 = vadd.f32 %v9531_v12, %v1084_v52  ;;  %v9738_v30 = vpop.f32.mrb[0].mxu1 }
 0x17f   : > { %v1089_v40 = vadd.f32 %v9531_v12, %v1085_v25  ;;  %v2184_v1 = vrot.slane %v2182_v44, 1  ;;  %v9733_v35 = vsel %vm2909_vm5, %v8882_v28, %v2573_v13  ;;  %v2869_v59 = vrot.slane %v8940_v9, 1  ;;  %11922 = vst [vmem:[#allocation79_spill] sm:$0xff] %v9738_v30  ;;  %v3719_v28 = vpop.f32.mrb[1].mxu1 }
 0x180   : > { %v1090_v56 = vadd.f32 %v9531_v12, %v1086_v0  ;;  %v2180_v46 = vor.u32 %v2179_v19, %v2175_v54  ;;  %v1091_v58 = vadd.f32 %v9531_v12, %v1087_v42  ;;  %v1092_v17 = vmax.f32 %v1088_v51, 0.0  ;;  %3596 = vmatmul.mubr.bf16.gmra.mrb[68].mxu0 %v9733_v35  ;;  %v2575_v19 = vpop.permute.xlu1 %2574  ;;  %v9746_v42 = vpop.f32.mrb[2].mxu1 }
 0x181   : > { %v1093_v22 = vmax.f32 %v1089_v40, 0.0  ;;  %v2188_v47 = vor.u32 %v2186_v43, %v2184_v1  ;;  %v2870_v25 = vrot.slane %v8960_v14, 1  ;;  %v9743_v44 = vsel %vm2909_vm5, %v8940_v9, %v2639_v3  ;;  %11924 = vst [vmem:[#allocation81_spill] sm:$0xff] %v9746_v42 }
 0x182   : > { %v1094_v52 = vmax.f32 %v1090_v56, 0.0  ;;  %11923 = vst [vmem:[#allocation80_spill] sm:$0xff] %v9743_v44  ;;  %v2185_v13 = vsel %vm1853_vm2, %v2180_v46, %v2184_v1  ;;  %v1095_v54 = vmax.f32 %v1091_v58, 0.0  ;;  %v1125_v0 = vmul.f32 0.0, %v1092_v17  ;;  %v3722_v56 = vpop.f32.mrb[3].mxu1 }
 0x183   : > { %v1126_v12 = vmul.f32 0.0, %v1093_v22  ;;  %2598 = vrot.lane.b32.xlu1 %v2185_v13, %s8047_s14  ;;  %v9750_v43 = vsel %vm2738_vm4, %v2869_v59, %v2870_v25  ;;  %v2789_v40 = vrot.slane %v8995_v10, 1  ;;  %v2193_v9 = vsel %vm1853_vm2, %v2188_v47, %v2192_v37 }
 0x184   : > { %v1127_v51 = vmul.f32 0.0, %v1094_v52  ;;  %11925 = vst [vmem:[#allocation82_spill] sm:$0xff] %v9750_v43  ;;  %v1128_v3 = vmul.f32 0.0, %v1095_v54  ;;  %7135 = vmatprep.mubr.msk.bf16.mxu1 %vm2909_vm5, %v9750_v43  ;;  %v2790_v1 = vrot.slane %v9003_v53, 1  ;;  %v9760_v46 = vsel %vm2909_vm5, %v8995_v10, %v2575_v19  ;;  %v2641_v52 = vpop.permute.xlu0 %2640 }
 0x185   : > { %v1136_v28 = vpack.c.bf16 %v1126_v12, %v1125_v0  ;;  %3860 = vmatmul.mubr.bf16.gmra.mrb[72].mxu1 %v9743_v44  ;;  %v2872_v59 = vrot.slane %v8947_v27, 1  ;;  %v2792_v58 = vrot.slane %v8988_v21, 1  ;;  %v2874_v27 = vrot.slane %v9061_v45, 1 }
 0x186   : > { %v1137_v17 = vpack.c.bf16 %v1128_v3, %v1127_v51  ;;  %v9765_v47 = vsel %vm2738_vm4, %v2789_v40, %v2790_v1  ;;  %v2875_v21 = vrot.slane %v9075_v7, 1  ;;  %v9781_v19 = vpop.f32.mrb[0].mxu0  ;;  %v2577_v51 = vpop.permute.xlu1 %2576  ;;  %v2794_v3 = vrot.slane %v9108_v41, 1 }
 0x187   : > { %v1206_v22 = vshrl.u32 %v1136_v28, 16  ;;  %v1209_v37 = vshll.u32 %v1136_v28, 16  ;;  %2600 = vrot.lane.b32.xlu1 %v2193_v9, %s8047_s14  ;;  %7103 = vmatprep.mubr.msk.bf16.mxu0 %vm2909_vm5, %v9765_v47  ;;  %v9771_v13 = vsel %vm2738_vm4, %v2870_v25, %v2872_v59  ;;  %v9774_v10 = vsel %vm2738_vm4, %v2790_v1, %v2792_v58  ;;  %v3463_v40 = vpop.f32.mrb[1].mxu0 }
 0x188   : > { %11926 = vst [vmem:[#allocation83_spill] sm:$0xff] %v9771_v13  ;;  %v1213_v0 = vshrl.u32 %v1137_v17, 16  ;;  %v1216_v12 = vshll.u32 %v1137_v17, 16  ;;  %3604 = vmatmul.mubr.bf16.gmra.mrb[72].mxu0 %v9760_v46  ;;  %7136 = vmatprep.mubr.msk.bf16.mxu1 %vm2909_vm5, %v9771_v13  ;;  %v9785_v25 = vsel %vm2909_vm5, %v8960_v14, %v2641_v52  ;;  %v2795_v28 = vrot.slane %v9122_v6, 1  ;;  %v9791_v1 = vpop.f32.mrb[2].mxu0  ;;  %v2643_v30 = vpop.permute.xlu0 %2642 }
 0x189   : > { %v1208_v54 = vrot.slane %v1206_v22, 7  ;;  %11927 = vst [vmem:[#allocation84_spill] sm:$0xff] %v9785_v25  ;;  %7104 = vmatprep.mubr.msk.bf16.mxu0 %vm2909_vm5, %v9774_v10  ;;  %v9796_v58 = vsel %vm2738_vm4, %v2874_v27, %v2875_v21  ;;  %v3466_v14 = vpop.f32.mrb[3].mxu0  ;;  %v2899_v60 = vrot.slane %v9663_v29, 1 }
 0x18a   : > { %v1215_v9 = vrot.slane %v1213_v0, 7  ;;  %v9793_v59 = vpop.f32.mrb[4].mxu1  ;;  %11929 = vst [vmem:[#allocation86_spill] sm:$0xff] %v9796_v58 }
 0x18b   : > { %v1211_v56 = vor.u32 %v1209_v37, %v1208_v54  ;;  %11928 = vst [vmem:[#allocation85_spill] sm:$0xff] %v9793_v59  ;;  %v3727_v17 = vpop.f32.mrb[5].mxu1 }
 0x18c   : > { %v1218_v22 = vor.u32 %v1216_v12, %v1215_v9  ;;  %v9804_v37 = vsel %vm8189_vm3, %v1215_v9, 0  ;;  %v9806_v0 = vpop.f32.mrb[6].mxu1  ;;  %v9814_v12 = vsel %vm2909_vm5, %v9003_v53, %v2577_v51  ;;  %v9822_v9 = vsel %vm2738_vm4, %v2794_v3, %v2795_v28 }
 0x18d   : > { %v9800_v52 = vsel %vm8189_vm3, 0, %v1211_v56  ;;  %11930 = vst [vmem:[#allocation87_spill] sm:$0xff] %v9806_v0  ;;  %v1870_v27 = vshll.u32 %v9804_v37, 16  ;;  %3868 = vmatmul.mubr.bf16.gmra.mrb[76].mxu1 %v9785_v25  ;;  %v3730_v56 = vpop.f32.mrb[7].mxu1  ;;  %v2877_v25 = vrot.slane %v9068_v20, 1 }
 0x18e   : > { %v1855_v40 = vshrl.u32 %v9800_v52, 16  ;;  %v1857_v59 = vshll.u32 %v9800_v52, 16  ;;  %v9817_v14 = vsel %vm1204_vm0, %v1208_v54, %v1218_v22  ;;  %7137 = vmatprep.mubr.msk.bf16.mxu1 %vm2909_vm5, %v9796_v58  ;;  %v9828_v53 = vpop.f32.mrb[4].mxu0  ;;  %v2579_v56 = vpop.permute.xlu1 %2578  ;;  %v2797_v58 = vrot.slane %v9101_v36, 1 }
 0x18f   : > { %v1862_v0 = vshll.u32 %v9817_v14, 16  ;;  %v1866_v42 = vshrl.u32 %v9817_v14, 16  ;;  %v1872_v22 = vrot.slane %v1870_v27, 1  ;;  %v3471_v3 = vpop.f32.mrb[5].mxu0 }
 0x190   : > { %v1859_v17 = vrot.slane %v1857_v59, 1  ;;  %3612 = vmatmul.mubr.bf16.gmra.mrb[76].mxu0 %v9814_v12  ;;  %v9834_v59 = vsel %vm2909_vm5, %v9061_v45, %v2643_v30  ;;  %v9837_v13 = vpop.f32.mrb[6].mxu0  ;;  %v9848_v45 = vsel %vm2909_vm5, %v9108_v41, %v2579_v56  ;;  %v9854_v36 = vsel %vm2738_vm4, %v2795_v28, %v2797_v58  ;;  %v2645_v30 = vpop.permute.xlu0 %2644 }
 0x191   : > { %v1864_v51 = vrot.slane %v1862_v0, 1  ;;  %7105 = vmatprep.mubr.msk.bf16.mxu0 %vm2909_vm5, %v9822_v9  ;;  %11931 = vst [vmem:[#allocation88_spill] sm:$0xff] %v9834_v59  ;;  %v3474_v0 = vpop.f32.mrb[7].mxu0  ;;  %v9863_v41 = vsel %vm2909_vm5, %v9075_v7, %v2645_v30  ;;  %v2800_v28 = vrot.slane %v9242_v57, 1 }
 0x192   : > { %v1860_v54 = vor.u32 %v1859_v17, %v1855_v40  ;;  %v9841_v40 = vsel %vm2738_vm4, %v2875_v21, %v2877_v25  ;;  %v2880_v21 = vrot.slane %v9193_v24, 1  ;;  %11933 = vst [vmem:[#allocation90_spill] sm:$0xff] %v9863_v41  ;;  %v2799_v25 = vrot.slane %v9233_v2, 1 }
 0x193   : > { %v1868_v44 = vor.u32 %v1866_v42, %v1864_v51  ;;  %11932 = vst [vmem:[#allocation89_spill] sm:$0xff] %v9841_v40  ;;  %v2879_v42 = vrot.slane %v9179_v4, 1 }
 0x194   : > { %v1865_v20 = vsel %vm1853_vm2, %v1860_v54, %v1864_v51  ;;  %v9882_v7 = vsel %vm2738_vm4, %v2799_v25, %v2800_v28  ;;  %v2647_v56 = vpop.permute.xlu0 %2646 }
 0x195   : > { %2534 = vrot.lane.b32.xlu0 %v1865_v20, %s8047_s14  ;;  %v1873_v27 = vsel %vm1853_vm2, %v1868_v44, %v1872_v22  ;;  %3876 = vmatmul.mubr.bf16.gmra.mrb[80].mxu1 %v9834_v59  ;;  %v2581_v44 = vpop.permute.xlu1 %2580  ;;  %v9868_v58 = vsel %vm2738_vm4, %v2879_v42, %v2880_v21  ;;  %v2882_v20 = vrot.slane %v9186_v18, 1 }
 0x196   : > { %2536 = vrot.lane.b32.xlu1 %v1873_v27, %s8047_s14  ;;  %7138 = vmatprep.mubr.msk.bf16.mxu1 %vm2909_vm5, %v9841_v40  ;;  %11934 = vst [vmem:[#allocation91_spill] sm:$0xff] %v9868_v58  ;;  %v9875_v51 = vsel %vm2909_vm5, %v9122_v6, %v2581_v44  ;;  %v9890_v6 = vsel %vm2909_vm5, %v9179_v4, %v2647_v56  ;;  %v2802_v27 = vrot.slane %v9225_v34, 1  ;;  %v11940_v56 = vld [vmem:[#allocation5_spill] sm:$0xff] }
 0x197   : > { %11937 = vst [vmem:[#allocation94_spill] sm:$0xff] %v9890_v6  ;;  %v9896_v42 = vsel %vm2738_vm4, %v2880_v21, %v2882_v20  ;;  %v2884_v20 = vrot.slane %v11940_v56, 1 }
 0x198   : > { %3620 = vmatmul.mubr.bf16.gmra.mrb[80].mxu0 %v9848_v45  ;;  %11938 = vst [vmem:[#allocation95_spill] sm:$0xff] %v9896_v42  ;;  %v9910_v34 = vsel %vm2738_vm4, %v2800_v28, %v2802_v27  ;;  %v2804_v27 = vrot.slane %v9352_v32, 1 }
 0x199   : > { %7106 = vmatprep.mubr.msk.bf16.mxu0 %vm2909_vm5, %v9854_v36  ;;  %v9870_v17 = vpop.f32.mrb[8].mxu1  ;;  %v2583_v0 = vpop.permute.xlu1 %2582 }
 0x19a   : > { %11935 = vst [vmem:[#allocation92_spill] sm:$0xff] %v9870_v17  ;;  %v3735_v54 = vpop.f32.mrb[9].mxu1  ;;  %v9903_v18 = vsel %vm2909_vm5, %v9233_v2, %v2583_v0 }
 0x19b   : > { %v9877_v22 = vpop.f32.mrb[10].mxu1 }
 0x19c   : > { %11936 = vst [vmem:[#allocation93_spill] sm:$0xff] %v9877_v22  ;;  %v3738_v3 = vpop.f32.mrb[11].mxu1 }
 0x19d   : > { %3884 = vmatmul.mubr.bf16.gmra.mrb[84].mxu1 %v9863_v41  ;;  %v2649_v3 = vpop.permute.xlu0 %2648  ;;  %v2585_v28 = vpop.permute.xlu1 %2584 }
 0x19e   : > { %7139 = vmatprep.mubr.msk.bf16.mxu1 %vm2909_vm5, %v9868_v58  ;;  %v9921_v0 = vsel %vm2909_vm5, %v9193_v24, %v2649_v3 }
 0x1a0   : > { %3628 = vmatmul.mubr.bf16.gmra.mrb[84].mxu0 %v9875_v51  ;;  %v9893_v30 = vpop.f32.mrb[8].mxu0 }
 0x1a1   : > { %7107 = vmatprep.mubr.msk.bf16.mxu0 %vm2909_vm5, %v9882_v7  ;;  %v3479_v44 = vpop.f32.mrb[9].mxu0 }
 0x1a2   : > { %v9898_v25 = vpop.f32.mrb[10].mxu0  ;;  %v11941_v44 = vld [vmem:[#allocation55_spill] sm:$0xff] }
 0x1a3   : > { %v3482_v54 = vpop.f32.mrb[11].mxu0  ;;  %v2885_v22 = vrot.slane %v11941_v44, 1  ;;  %11943 = vst [vmem:[#allocation55_spill] sm:$0xff] %v9921_v0 }
 0x1a4   : > { %v2805_v54 = vrot.slane %v9360_v16, 1 }
 0x1a5   : > { %3892 = vmatmul.mubr.bf16.gmra.mrb[88].mxu1 %v9890_v6  ;;  %v9905_v4 = vpop.f32.mrb[12].mxu1  ;;  %v11945_v6 = vld [vmem:[#allocation54_spill] sm:$0xff] }
 0x1a6   : > { %11939 = vst [vmem:[#allocation96_spill] sm:$0xff] %v9905_v4  ;;  %7140 = vmatprep.mubr.msk.bf16.mxu1 %vm2909_vm5, %v9896_v42  ;;  %v3743_v21 = vpop.f32.mrb[13].mxu1  ;;  %v9940_v24 = vsel %vm2738_vm4, %v2804_v27, %v2805_v54  ;;  %v2887_v58 = vrot.slane %v11945_v6, 1 }
 0x1a7   : > { %v9914_v17 = vpop.f32.mrb[14].mxu1  ;;  %v9926_v21 = vsel %vm2738_vm4, %v2884_v20, %v2885_v22  ;;  %v2651_v20 = vpop.permute.xlu0 %2650 }
 0x1a8   : > { %11942 = vst [vmem:[#allocation5_spill] sm:$0xff] %v9914_v17  ;;  %3636 = vmatmul.mubr.bf16.gmra.mrb[88].mxu0 %v9903_v18  ;;  %v3746_v2 = vpop.f32.mrb[15].mxu1  ;;  %11944 = vst [vmem:[#allocation97_spill] sm:$0xff] %v9926_v21 }
 0x1a9   : > { %7108 = vmatprep.mubr.msk.bf16.mxu0 %vm2909_vm5, %v9910_v34  ;;  %v9928_v4 = vpop.f32.mrb[12].mxu0  ;;  %v9933_v2 = vsel %vm2909_vm5, %v9242_v57, %v2585_v28  ;;  %v9950_v57 = vsel %vm2909_vm5, %v11940_v56, %v2651_v20  ;;  %v2889_v20 = vrot.slane %v9423_v31, 1 }
 0x1aa   : > { %v3487_v17 = vpop.f32.mrb[13].mxu0  ;;  %11947 = vst [vmem:[#allocation98_spill] sm:$0xff] %v9950_v57 }
 0x1ab   : > { %v9935_v42 = vpop.f32.mrb[14].mxu0 }
 0x1ac   : > { %v3490_v3 = vpop.f32.mrb[15].mxu0  ;;  %v2587_v28 = vpop.permute.xlu1 %2586 }
 0x1ad   : > { %3900 = vmatmul.mubr.bf16.gmra.mrb[92].mxu1 %v9921_v0  ;;  %v9954_v3 = vsel %vm2738_vm4, %v2885_v22, %v2887_v58  ;;  %v9961_v41 = vsel %vm2909_vm5, %v9352_v32, %v2587_v28  ;;  %v2890_v58 = vrot.slane %v9437_v15, 1 }
 0x1ae   : > { %7141 = vmatprep.mubr.msk.bf16.mxu1 %vm2909_vm5, %v9926_v21  ;;  %v2807_v21 = vrot.slane %v9345_v62, 1  ;;  %11948 = vst [vmem:[#allocation99_spill] sm:$0xff] %v9954_v3  ;;  %v2653_v62 = vpop.permute.xlu0 %2652 }
 0x1af   : > { %v9946_v17 = vpop.f32.mrb[16].mxu1  ;;  %v9979_v28 = vsel %vm2909_vm5, %v11941_v44, %v2653_v62 }
 0x1b0   : > { %3644 = vmatmul.mubr.bf16.gmra.mrb[92].mxu0 %v9933_v2  ;;  %11946 = vst [vmem:[#allocation54_spill] sm:$0xff] %v9946_v17  ;;  %v3751_v27 = vpop.f32.mrb[17].mxu1  ;;  %v9966_v56 = vsel %vm2738_vm4, %v2805_v54, %v2807_v21  ;;  %11950 = vst [vmem:[#allocation101_spill] sm:$0xff] %v9979_v28  ;;  %v2589_v54 = vpop.permute.xlu1 %2588  ;;  %v2809_v21 = vrot.slane %v9470_v33, 1  ;;  %v9984_v17 = vsel %vm2738_vm4, %v2889_v20, %v2890_v58  ;;  %v2892_v20 = vrot.slane %v9430_v11, 1 }
 0x1b1   : > { %7109 = vmatprep.mubr.msk.bf16.mxu0 %vm2909_vm5, %v9940_v24  ;;  %v9956_v0 = vpop.f32.mrb[18].mxu1  ;;  %11951 = vst [vmem:[#allocation102_spill] sm:$0xff] %v9984_v17 }
 0x1b2   : > { %11949 = vst [vmem:[#allocation100_spill] sm:$0xff] %v9956_v0  ;;  %v3754_v6 = vpop.f32.mrb[19].mxu1 }
 0x1b3   : > { %v2810_v6 = vrot.slane %v9481_v23, 1 }
 0x1b5   : > { %3908 = vmatmul.mubr.bf16.gmra.mrb[96].mxu1 %v9950_v57  ;;  %v9970_v22 = vpop.f32.mrb[16].mxu0  ;;  %v9996_v44 = vsel %vm2738_vm4, %v2809_v21, %v2810_v6  ;;  %v10010_v21 = vsel %vm2738_vm4, %v2890_v58, %v2892_v20  ;;  %v11957_v20 = vld [vmem:[#allocation67_spill] sm:$0xff] }
 0x1b6   : > { %7142 = vmatprep.mubr.msk.bf16.mxu1 %vm2909_vm5, %v9954_v3  ;;  %v3495_v27 = vpop.f32.mrb[17].mxu0 }
 0x1b7   : > { %v9975_v32 = vpop.f32.mrb[18].mxu0  ;;  %v9991_v27 = vsel %vm2909_vm5, %v9360_v16, %v2589_v54 }
 0x1b8   : > { %3652 = vmatmul.mubr.bf16.gmra.mrb[96].mxu0 %v9961_v41  ;;  %v3498_v0 = vpop.f32.mrb[19].mxu0 }
 0x1b9   : > { %7110 = vmatprep.mubr.msk.bf16.mxu0 %vm2909_vm5, %v9966_v56 }
 0x1bc   : > { %v9986_v3 = vpop.f32.mrb[20].mxu1  ;;  %v2655_v0 = vpop.permute.xlu0 %2654 }
 0x1bd   : > { %11952 = vst [vmem:[#allocation103_spill] sm:$0xff] %v9986_v3  ;;  %3916 = vmatmul.mubr.bf16.gmra.mrb[100].mxu1 %v9979_v28  ;;  %v3759_v57 = vpop.f32.mrb[21].mxu1  ;;  %v10006_v16 = vsel %vm2909_vm5, %v9423_v31, %v2655_v0 }
 0x1be   : > { %7143 = vmatprep.mubr.msk.bf16.mxu1 %vm2909_vm5, %v9984_v17  ;;  %v9998_v62 = vpop.f32.mrb[22].mxu1  ;;  %11954 = vst [vmem:[#allocation105_spill] sm:$0xff] %v10006_v16  ;;  %v11955_v57 = vld [vmem:[#allocation63_spill] sm:$0xff] }
 0x1bf   : > { %11953 = vst [vmem:[#allocation104_spill] sm:$0xff] %v9998_v62  ;;  %v3762_v40 = vpop.f32.mrb[23].mxu1  ;;  %v2812_v54 = vrot.slane %v11955_v57, 1  ;;  %11956 = vst [vmem:[#allocation63_spill] sm:$0xff] %v10010_v21  ;;  %v2894_v57 = vrot.slane %v11957_v20, 1 }
 0x1c0   : > { %3660 = vmatmul.mubr.bf16.gmra.mrb[100].mxu0 %v9991_v27  ;;  %v2657_v0 = vpop.permute.xlu0 %2656 }
 0x1c1   : > { %7111 = vmatprep.mubr.msk.bf16.mxu0 %vm2909_vm5, %v9996_v44  ;;  %v10012_v3 = vpop.f32.mrb[20].mxu0  ;;  %v10024_v31 = vsel %vm2738_vm4, %v2810_v6, %v2812_v54  ;;  %v2814_v6 = vrot.slane %v9594_v50, 1  ;;  %v2815_v54 = vrot.slane %v9602_v63, 1 }
 0x1c2   : > { %v3503_v62 = vpop.f32.mrb[21].mxu0 }
 0x1c3   : > { %v10015_v40 = vpop.f32.mrb[22].mxu0  ;;  %v11958_v62 = vld [vmem:[#allocation70_spill] sm:$0xff] }
 0x1c4   : > { %v3506_v58 = vpop.f32.mrb[23].mxu0  ;;  %v2895_v28 = vrot.slane %v11958_v62, 1 }
 0x1c5   : > { %3924 = vmatmul.mubr.bf16.gmra.mrb[104].mxu1 %v10006_v16  ;;  %v2591_v11 = vpop.permute.xlu1 %2590 }
 0x1c6   : > { %v10019_v17 = vsel %vm2909_vm5, %v9470_v33, %v2591_v11  ;;  %7144 = vmatprep.mubr.msk.bf16.mxu1 %vm2909_vm5, %v10010_v21  ;;  %v10035_v33 = vsel %vm2909_vm5, %v9437_v15, %v2657_v0  ;;  %v10040_v21 = vsel %vm2738_vm4, %v2894_v57, %v2895_v28  ;;  %v10052_v15 = vsel %vm2738_vm4, %v2814_v6, %v2815_v54  ;;  %v11963_v57 = vld [vmem:[#allocation69_spill] sm:$0xff] }
 0x1c7   : > { %v10031_v16 = vpop.f32.mrb[24].mxu1  ;;  %11960 = vst [vmem:[#allocation70_spill] sm:$0xff] %v10035_v33  ;;  %11961 = vst [vmem:[#allocation106_spill] sm:$0xff] %v10040_v21 }
 0x1c8   : > { %3668 = vmatmul.mubr.bf16.gmra.mrb[104].mxu0 %v10019_v17  ;;  %11959 = vst [vmem:[#allocation67_spill] sm:$0xff] %v10031_v16  ;;  %v3767_v58 = vpop.f32.mrb[25].mxu1 }
 0x1c9   : > { %7112 = vmatprep.mubr.msk.bf16.mxu0 %vm2909_vm5, %v10024_v31  ;;  %v2593_v11 = vpop.permute.xlu1 %2592  ;;  %v10042_v59 = vpop.f32.mrb[26].mxu1  ;;  %v2897_v58 = vrot.slane %v11963_v57, 1 }
 0x1ca   : > { %11962 = vst [vmem:[#allocation107_spill] sm:$0xff] %v10042_v59  ;;  %v3770_v43 = vpop.f32.mrb[27].mxu1  ;;  %v10047_v16 = vsel %vm2909_vm5, %v9481_v23, %v2593_v11 }
 0x1cd   : > { %3932 = vmatmul.mubr.bf16.gmra.mrb[108].mxu1 %v10035_v33  ;;  %v10054_v0 = vpop.f32.mrb[24].mxu0  ;;  %v10063_v33 = vsel %vm2738_vm4, %v2895_v28, %v2897_v58  ;;  %v2900_v28 = vrot.slane %v9677_v8, 1  ;;  %v11969_v58 = vld [vmem:[#allocation17_spill] sm:$0xff] }
 0x1ce   : > { %7145 = vmatprep.mubr.msk.bf16.mxu1 %vm2909_vm5, %v10040_v21  ;;  %v3511_v59 = vpop.f32.mrb[25].mxu0  ;;  %11965 = vst [vmem:[#allocation108_spill] sm:$0xff] %v10063_v33 }
 0x1cf   : > { %v10060_v43 = vpop.f32.mrb[26].mxu0 }
 0x1d0   : > { %3676 = vmatmul.mubr.bf16.gmra.mrb[108].mxu0 %v10047_v16  ;;  %11964 = vst [vmem:[#allocation69_spill] sm:$0xff] %v10060_v43  ;;  %v3514_v23 = vpop.f32.mrb[27].mxu0 }
 0x1d1   : > { %7113 = vmatprep.mubr.msk.bf16.mxu0 %vm2909_vm5, %v10052_v15 }
 0x1d4   : > { %v2659_v11 = vpop.permute.xlu0 %2658 }
 0x1d5   : > { %v10065_v21 = vpop.f32.mrb[28].mxu1  ;;  %v10069_v6 = vsel %vm2909_vm5, %v11957_v20, %v2659_v11  ;;  %v10086_v11 = vsel %vm2738_vm4, %v2899_v60, %v2900_v28 }
 0x1d6   : > { %11966 = vst [vmem:[#allocation109_spill] sm:$0xff] %v10065_v21  ;;  %11967 = vst [vmem:[#allocation110_spill] sm:$0xff] %v10069_v6  ;;  %v3775_v39 = vpop.f32.mrb[29].mxu1  ;;  %3940 = vmatmul.mubr.bf16.gmra.mrb[112].mxu1 %v10069_v6  ;;  %v2817_v21 = vrot.slane %v11969_v58, 1 }
 0x1d7   : > { %v10072_v59 = vpop.f32.mrb[30].mxu1  ;;  %7146 = vmatprep.mubr.msk.bf16.mxu1 %vm2909_vm5, %v10063_v33  ;;  %11972 = vst [vmem:[#allocation113_spill] sm:$0xff] %v10086_v11 }
 0x1d8   : > { %11968 = vst [vmem:[#allocation111_spill] sm:$0xff] %v10072_v59  ;;  %v3778_v57 = vpop.f32.mrb[31].mxu1  ;;  %v2661_v23 = vpop.permute.xlu0 %2660 }
 0x1d9   : > { %v10081_v20 = vsel %vm2909_vm5, %v11958_v62, %v2661_v23  ;;  %v10089_v57 = vsel %vm2738_vm4, %v2815_v54, %v2817_v21  ;;  %v2819_v21 = vrot.slane %v9710_v55, 1  ;;  %v2820_v54 = vrot.slane %v9718_v26, 1 }
 0x1da   : > { %11970 = vst [vmem:[#allocation17_spill] sm:$0xff] %v10081_v20  ;;  %v10083_v39 = vpop.f32.mrb[28].mxu0 }
 0x1db   : > { %11971 = vst [vmem:[#allocation112_spill] sm:$0xff] %v10083_v39  ;;  %v3519_v59 = vpop.f32.mrb[29].mxu0  ;;  %v12048_v39 = vld [vmem:[#allocation65_spill] sm:$0xff] }
 0x1dc   : > { %v10091_v33 = vpop.f32.mrb[30].mxu0 }
 0x1dd   : > { %v2595_v6 = vpop.permute.xlu1 %2594  ;;  %11973 = vst [vmem:[#allocation114_spill] sm:$0xff] %v10091_v33  ;;  %v3522_v62 = vpop.f32.mrb[31].mxu0 }
 0x1de   : > { %v10095_v43 = vsel %vm2909_vm5, %v9594_v50, %v2595_v6  ;;  %3948 = vmatmul.mubr.bf16.gmra.mrb[116].mxu1 %v10081_v20  ;;  %v10114_v62 = vsel %vm2738_vm4, %v2819_v21, %v2820_v54 }
 0x1df   : > { %3684 = vmatmul.mubr.bf16.gmra.mrb[112].mxu0 %v10095_v43  ;;  %7147 = vmatprep.mubr.msk.bf16.mxu1 %vm2909_vm5, %v10086_v11 }
 0x1e0   : > { %7114 = vmatprep.mubr.msk.bf16.mxu0 %vm2909_vm5, %v10089_v57  ;;  %v10105_v59 = vpop.f32.mrb[32].mxu1 }
 0x1e1   : > { %v2597_v60 = vpop.permute.xlu1 %2596  ;;  %11974 = vst [vmem:[#allocation115_spill] sm:$0xff] %v10105_v59  ;;  %v3783_v50 = vpop.f32.mrb[33].mxu1  ;;  %v2902_v59 = vrot.slane %v9670_v61, 1 }
 0x1e2   : > { %v10107_v6 = vpop.f32.mrb[34].mxu1  ;;  %v10111_v23 = vsel %vm2909_vm5, %v9602_v63, %v2597_v60 }
 0x1e3   : > { %11975 = vst [vmem:[#allocation116_spill] sm:$0xff] %v10107_v6  ;;  %v3786_v58 = vpop.f32.mrb[35].mxu1  ;;  %v10125_v63 = vsel %vm2738_vm4, %v2900_v28, %v2902_v59  ;;  %v2740_v28 = vrot.slane %v9817_v14, 1  ;;  %v2822_v59 = vrot.slane %v9703_v48, 1 }
 0x1e4   : > { %11978 = vst [vmem:[#allocation119_spill] sm:$0xff] %v10125_v63 }
 0x1e6   : > { %v10117_v11 = vpop.f32.mrb[32].mxu0 }
 0x1e7   : > { %3692 = vmatmul.mubr.bf16.gmra.mrb[116].mxu0 %v10111_v23  ;;  %11976 = vst [vmem:[#allocation117_spill] sm:$0xff] %v10117_v11  ;;  %v3527_v50 = vpop.f32.mrb[33].mxu0 }
 0x1e8   : > { %7115 = vmatprep.mubr.msk.bf16.mxu0 %vm2909_vm5, %v10114_v62  ;;  %v10122_v20 = vpop.f32.mrb[34].mxu0  ;;  %v2739_v50 = vrot.slane %v9800_v52, 1 }
 0x1e9   : > { %11977 = vst [vmem:[#allocation118_spill] sm:$0xff] %v10122_v20  ;;  %v3530_v6 = vpop.f32.mrb[35].mxu0  ;;  %v12010_v20 = vld [vmem:[#allocation16_spill] sm:$0xff] }
 0x1ec   : > { %v2663_v33 = vpop.permute.xlu0 %2662 }
 0x1ed   : > { %v10127_v60 = vpop.f32.mrb[36].mxu1  ;;  %v10131_v21 = vsel %vm2909_vm5, %v9663_v29, %v2663_v33 }
 0x1ee   : > { %11979 = vst [vmem:[#allocation120_spill] sm:$0xff] %v10127_v60  ;;  %11980 = vst [vmem:[#allocation121_spill] sm:$0xff] %v10131_v21  ;;  %v3791_v58 = vpop.f32.mrb[37].mxu1  ;;  %3956 = vmatmul.mubr.bf16.gmra.mrb[120].mxu1 %v10131_v21 }
 0x1ef   : > { %v10134_v11 = vpop.f32.mrb[38].mxu1  ;;  %7148 = vmatprep.mubr.msk.bf16.mxu1 %vm2909_vm5, %v10125_v63  ;;  %v2741_v58 = vsel %vm2738_vm4, %v2739_v50, %v2740_v28  ;;  %v10149_v63 = vsel %vm2738_vm4, %v2820_v54, %v2822_v59  ;;  %v11988_v59 = vld [vmem:[#allocation21_spill] sm:$0xff] }
 0x1f0   : > { %11981 = vst [vmem:[#allocation122_spill] sm:$0xff] %v10134_v11  ;;  %v3794_v61 = vpop.f32.mrb[39].mxu1  ;;  %v2665_v6 = vpop.permute.xlu0 %2664 }
 0x1f1   : > { %v10143_v29 = vsel %vm2909_vm5, %v9677_v8, %v2665_v6 }
 0x1f2   : > { %11982 = vst [vmem:[#allocation123_spill] sm:$0xff] %v10143_v29  ;;  %v10145_v33 = vpop.f32.mrb[36].mxu0 }
 0x1f3   : > { %11983 = vst [vmem:[#allocation124_spill] sm:$0xff] %v10145_v33  ;;  %v3535_v11 = vpop.f32.mrb[37].mxu0 }
 0x1f4   : > { %v10151_v61 = vpop.f32.mrb[38].mxu0 }
 0x1f5   : > { %v2599_v60 = vpop.permute.xlu1 %2598  ;;  %11984 = vst [vmem:[#allocation125_spill] sm:$0xff] %v10151_v61  ;;  %v3538_v48 = vpop.f32.mrb[39].mxu0 }
 0x1f6   : > { %v10155_v21 = vsel %vm2909_vm5, %v9710_v55, %v2599_v60  ;;  %3964 = vmatmul.mubr.bf16.gmra.mrb[124].mxu1 %v10143_v29 }
 0x1f7   : > { %3700 = vmatmul.mubr.bf16.gmra.mrb[120].mxu0 %v10155_v21  ;;  %7161 = vmatprep.mubr.msk.bf16.mxu1 %vm2909_vm5, %v2741_v58 }
 0x1f8   : > { %7116 = vmatprep.mubr.msk.bf16.mxu0 %vm2909_vm5, %v10149_v63  ;;  %v10162_v11 = vpop.f32.mrb[40].mxu1 }
 0x1f9   : > { %v2601_v8 = vpop.permute.xlu1 %2600  ;;  %11985 = vst [vmem:[#allocation126_spill] sm:$0xff] %v10162_v11  ;;  %v3799_v54 = vpop.f32.mrb[41].mxu1  ;;  %v2742_v11 = vrot.slane %v9804_v37, 1 }
 0x1fa   : > { %v10164_v6 = vpop.f32.mrb[42].mxu1  ;;  %v10168_v55 = vsel %vm2909_vm5, %v9718_v26, %v2601_v8 }
 0x1fb   : > { %11986 = vst [vmem:[#allocation127_spill] sm:$0xff] %v10164_v6  ;;  %v3802_v60 = vpop.f32.mrb[43].mxu1  ;;  %v2743_v26 = vsel %vm2738_vm4, %v2740_v28, %v2742_v11 }
 0x1fe   : > { %v10171_v50 = vpop.f32.mrb[40].mxu0 }
 0x1ff   : > { %3708 = vmatmul.mubr.bf16.gmra.mrb[124].mxu0 %v10168_v55  ;;  %11987 = vst [vmem:[#allocation128_spill] sm:$0xff] %v10171_v50  ;;  %v3543_v58 = vpop.f32.mrb[41].mxu0  ;;  %v11992_v50 = vld [vmem:[#allocation22_spill] sm:$0xff] }
 0x200   : > { %7261 = vmatprep.mubr.msk.bf16.mxu0 %vm2909_vm5, %v11988_v59  ;;  %v10175_v48 = vpop.f32.mrb[42].mxu0  ;;  %v11993_v58 = vld [vmem:[#allocation25_spill] sm:$0xff] }
 0x201   : > { %11989 = vst [vmem:[#allocation21_spill] sm:$0xff] %v10175_v48  ;;  %v3546_v54 = vpop.f32.mrb[43].mxu0  ;;  %v12009_v48 = vld [vmem:[#allocation34_spill] sm:$0xff] }
 0x205   : > { %v10178_v29 = vpop.f32.mrb[44].mxu1 }
 0x206   : > { %11990 = vst [vmem:[#allocation129_spill] sm:$0xff] %v10178_v29  ;;  %v3807_v6 = vpop.f32.mrb[45].mxu1 }
 0x207   : > { %v2535_v61 = vpop.permute.xlu0 %2534  ;;  %v10181_v8 = vpop.f32.mrb[46].mxu1  ;;  %4731 = vmatmul.mubr.bf16.vlgmr.msra.gmra.mrb[128].mxu0 %v11992_v50 }
 0x208   : > { %11991 = vst [vmem:[#allocation130_spill] sm:$0xff] %v10181_v8  ;;  %v2911_v60 = vsel %vm2909_vm5, %v9800_v52, %v2535_v61  ;;  %v3810_v33 = vpop.f32.mrb[47].mxu1  ;;  %7262 = vmatprep.mubr.msk.bf16.mxu0 %vm2909_vm5, %v11993_v58  ;;  %v2537_v37 = vpop.permute.xlu1 %2536  ;;  %v11996_v52 = vld [vmem:[#allocation26_spill] sm:$0xff]  ;;  %v11998_v61 = vld [vmem:[#allocation11_spill] sm:$0xff] }
 0x209   : > { %4083 = vmatmul.mubr.bf16.vlgmr.msra.gmra.mrb[128].mxu1 %v2911_v60  ;;  %v2914_v28 = vsel %vm2909_vm5, %v9817_v14, %v2537_v37  ;;  %v11997_v33 = vld [vmem:[#allocation30_spill] sm:$0xff]  ;;  %v12004_v37 = vld [vmem:[#allocation33_spill] sm:$0xff] }
 0x20a   : > { %7162 = vmatprep.mubr.msk.bf16.mxu1 %vm2909_vm5, %v2743_v26  ;;  %v10189_v54 = vpop.f32.mrb[44].mxu0 }
 0x20b   : > { %11994 = vst [vmem:[#allocation22_spill] sm:$0xff] %v10189_v54  ;;  %v3551_v6 = vpop.f32.mrb[45].mxu0  ;;  %v12001_v54 = vld [vmem:[#allocation29_spill] sm:$0xff] }
 0x20c   : > { %v10193_v11 = vpop.f32.mrb[46].mxu0 }
 0x20d   : > { %11995 = vst [vmem:[#allocation25_spill] sm:$0xff] %v10193_v11  ;;  %v3554_v8 = vpop.f32.mrb[47].mxu0  ;;  %v12005_v11 = vld [vmem:[#allocation15_spill] sm:$0xff] }
 0x20e   : > { %v12003_v8 = vld [vmem:[#allocation12_spill] sm:$0xff] }
 0x20f   : > { %4739 = vmatmul.mubr.bf16.gmra.mrb[132].mxu0 %v11996_v52 }
 0x210   : > { %7263 = vmatprep.mubr.msk.bf16.mxu0 %vm2909_vm5, %v11997_v33  ;;  %v10200_v26 = vpop.f32.mrb[48].mxu1 }
 0x211   : > { %4091 = vmatmul.mubr.bf16.gmra.mrb[132].mxu1 %v2914_v28  ;;  %11999 = vst [vmem:[#allocation26_spill] sm:$0xff] %v10200_v26  ;;  %v3815_v60 = vpop.f32.mrb[49].mxu1 }
 0x212   : > { %7163 = vmatprep.mubr.msk.bf16.mxu1 %vm2909_vm5, %v11998_v61  ;;  %v10202_v29 = vpop.f32.mrb[50].mxu1 }
 0x213   : > { %12000 = vst [vmem:[#allocation30_spill] sm:$0xff] %v10202_v29  ;;  %v3818_v6 = vpop.f32.mrb[51].mxu1 }
 0x216   : > { %v10205_v14 = vpop.f32.mrb[48].mxu0 }
 0x217   : > { %4747 = vmatmul.mubr.bf16.gmra.mrb[136].mxu0 %v12001_v54  ;;  %12002 = vst [vmem:[#allocation11_spill] sm:$0xff] %v10205_v14  ;;  %v3559_v28 = vpop.f32.mrb[49].mxu0 }
 0x218   : > { %7264 = vmatprep.mubr.msk.bf16.mxu0 %vm2909_vm5, %v12004_v37  ;;  %v10212_v61 = vpop.f32.mrb[50].mxu0 }
 0x219   : > { %4099 = vmatmul.mubr.bf16.gmra.mrb[136].mxu1 %v12003_v8  ;;  %12006 = vst [vmem:[#allocation29_spill] sm:$0xff] %v10212_v61  ;;  %v3562_v26 = vpop.f32.mrb[51].mxu0  ;;  %v12011_v8 = vld [vmem:[#allocation38_spill] sm:$0xff]  ;;  %v12024_v61 = vld [vmem:[#allocation45_spill] sm:$0xff] }
 0x21a   : > { %7164 = vmatprep.mubr.msk.bf16.mxu1 %vm2909_vm5, %v12005_v11 }
 0x21d   : > { %v10214_v60 = vpop.f32.mrb[52].mxu1 }
 0x21e   : > { %12007 = vst [vmem:[#allocation12_spill] sm:$0xff] %v10214_v60  ;;  %v3823_v29 = vpop.f32.mrb[53].mxu1 }
 0x21f   : > { %v10216_v6 = vpop.f32.mrb[54].mxu1  ;;  %4755 = vmatmul.mubr.bf16.gmra.mrb[140].mxu0 %v12009_v48  ;;  %v12014_v29 = vld [vmem:[#allocation37_spill] sm:$0xff] }
 0x220   : > { %12008 = vst [vmem:[#allocation33_spill] sm:$0xff] %v10216_v6  ;;  %v3826_v14 = vpop.f32.mrb[55].mxu1  ;;  %7265 = vmatprep.mubr.msk.bf16.mxu0 %vm2909_vm5, %v12011_v8  ;;  %v12015_v6 = vld [vmem:[#allocation41_spill] sm:$0xff] }
 0x221   : > { %4107 = vmatmul.mubr.bf16.gmra.mrb[140].mxu1 %v12010_v20 }
 0x222   : > { %7165 = vmatprep.mubr.msk.bf16.mxu1 %vm2909_vm5, %v11988_v59  ;;  %v10224_v11 = vpop.f32.mrb[52].mxu0 }
 0x223   : > { %12012 = vst [vmem:[#allocation15_spill] sm:$0xff] %v10224_v11  ;;  %v3567_v28 = vpop.f32.mrb[53].mxu0 }
 0x224   : > { %v10226_v26 = vpop.f32.mrb[54].mxu0  ;;  %v12018_v28 = vld [vmem:[#allocation42_spill] sm:$0xff] }
 0x225   : > { %12013 = vst [vmem:[#allocation34_spill] sm:$0xff] %v10226_v26  ;;  %v3570_v60 = vpop.f32.mrb[55].mxu0 }
 0x226   : > { %v12020_v60 = vld [vmem:[#allocation46_spill] sm:$0xff] }
 0x227   : > { %4763 = vmatmul.mubr.bf16.gmra.mrb[144].mxu0 %v12014_v29 }
 0x228   : > { %7266 = vmatprep.mubr.msk.bf16.mxu0 %vm2909_vm5, %v12015_v6  ;;  %v10234_v20 = vpop.f32.mrb[56].mxu1 }
 0x229   : > { %4115 = vmatmul.mubr.bf16.gmra.mrb[144].mxu1 %v11992_v50  ;;  %12016 = vst [vmem:[#allocation16_spill] sm:$0xff] %v10234_v20  ;;  %v3831_v14 = vpop.f32.mrb[57].mxu1 }
 0x22a   : > { %7166 = vmatprep.mubr.msk.bf16.mxu1 %vm2909_vm5, %v11993_v58  ;;  %v10236_v59 = vpop.f32.mrb[58].mxu1 }
 0x22b   : > { %12017 = vst [vmem:[#allocation38_spill] sm:$0xff] %v10236_v59  ;;  %v3834_v11 = vpop.f32.mrb[59].mxu1 }
 0x22e   : > { %v10239_v26 = vpop.f32.mrb[56].mxu0 }
 0x22f   : > { %4771 = vmatmul.mubr.bf16.gmra.mrb[148].mxu0 %v12018_v28  ;;  %12019 = vst [vmem:[#allocation37_spill] sm:$0xff] %v10239_v26  ;;  %v3575_v50 = vpop.f32.mrb[57].mxu0 }
 0x230   : > { %7267 = vmatprep.mubr.msk.bf16.mxu0 %vm2909_vm5, %v12020_v60  ;;  %v10246_v58 = vpop.f32.mrb[58].mxu0 }
 0x231   : > { %4123 = vmatmul.mubr.bf16.gmra.mrb[148].mxu1 %v11996_v52  ;;  %12021 = vst [vmem:[#allocation41_spill] sm:$0xff] %v10246_v58  ;;  %v3578_v20 = vpop.f32.mrb[59].mxu0  ;;  %v12025_v52 = vld [vmem:[#allocation49_spill] sm:$0xff] }
 0x232   : > { %7167 = vmatprep.mubr.msk.bf16.mxu1 %vm2909_vm5, %v11997_v33  ;;  %v12038_v58 = vld [vmem:[#allocation57_spill] sm:$0xff] }
 0x236   : > { %v10248_v14 = vpop.f32.mrb[60].mxu1 }
 0x237   : > { %12022 = vst [vmem:[#allocation42_spill] sm:$0xff] %v10248_v14  ;;  %v3839_v59 = vpop.f32.mrb[61].mxu1  ;;  %4779 = vmatmul.mubr.bf16.gmra.mrb[152].mxu0 %v12024_v61 }
 0x238   : > { %v10250_v11 = vpop.f32.mrb[62].mxu1  ;;  %7268 = vmatprep.mubr.msk.bf16.mxu0 %vm2909_vm5, %v12025_v52  ;;  %v12028_v59 = vld [vmem:[#allocation50_spill] sm:$0xff] }
 0x239   : > { %12023 = vst [vmem:[#allocation46_spill] sm:$0xff] %v10250_v11  ;;  %v3842_v26 = vpop.f32.mrb[63].mxu1  ;;  %4131 = vmatmul.mubr.bf16.gmra.mrb[152].mxu1 %v12001_v54  ;;  %v12029_v11 = vld [vmem:[#allocation53_spill] sm:$0xff] }
 0x23a   : > { %7168 = vmatprep.mubr.msk.bf16.mxu1 %vm2909_vm5, %v12004_v37 }
 0x23b   : > { %v10258_v33 = vpop.f32.mrb[60].mxu0 }
 0x23c   : > { %12026 = vst [vmem:[#allocation45_spill] sm:$0xff] %v10258_v33  ;;  %v3583_v50 = vpop.f32.mrb[61].mxu0 }
 0x23d   : > { %v10260_v20 = vpop.f32.mrb[62].mxu0  ;;  %v12032_v50 = vld [vmem:[#allocation3_spill] sm:$0xff] }
 0x23e   : > { %12027 = vst [vmem:[#allocation49_spill] sm:$0xff] %v10260_v20  ;;  %v3586_v14 = vpop.f32.mrb[63].mxu0 }
 0x23f   : > { %4787 = vmatmul.mubr.bf16.gmra.mrb[156].mxu0 %v12028_v59  ;;  %v12034_v14 = vld [vmem:[#allocation4_spill] sm:$0xff] }
 0x240   : > { %7269 = vmatprep.mubr.msk.bf16.mxu0 %vm2909_vm5, %v12029_v11 }
 0x241   : > { %4139 = vmatmul.mubr.bf16.gmra.mrb[156].mxu1 %v12009_v48  ;;  %v10268_v54 = vpop.f32.mrb[64].mxu1 }
 0x242   : > { %7169 = vmatprep.mubr.msk.bf16.mxu1 %vm2909_vm5, %v12011_v8  ;;  %12030 = vst [vmem:[#allocation50_spill] sm:$0xff] %v10268_v54  ;;  %v3847_v26 = vpop.f32.mrb[65].mxu1 }
 0x243   : > { %v10270_v37 = vpop.f32.mrb[66].mxu1 }
 0x244   : > { %12031 = vst [vmem:[#allocation53_spill] sm:$0xff] %v10270_v37  ;;  %v3850_v33 = vpop.f32.mrb[67].mxu1 }
 0x247   : > { %4795 = vmatmul.mubr.bf16.gmra.mrb[160].mxu0 %v12032_v50  ;;  %v10273_v20 = vpop.f32.mrb[64].mxu0 }
 0x248   : > { %12033 = vst [vmem:[#allocation3_spill] sm:$0xff] %v10273_v20  ;;  %7270 = vmatprep.mubr.msk.bf16.mxu0 %vm2909_vm5, %v12034_v14  ;;  %v3591_v48 = vpop.f32.mrb[65].mxu0 }
 0x249   : > { %4147 = vmatmul.mubr.bf16.gmra.mrb[160].mxu1 %v12014_v29  ;;  %v10280_v8 = vpop.f32.mrb[66].mxu0  ;;  %v12039_v29 = vld [vmem:[#allocation60_spill] sm:$0xff] }
 0x24a   : > { %7170 = vmatprep.mubr.msk.bf16.mxu1 %vm2909_vm5, %v12015_v6  ;;  %12035 = vst [vmem:[#allocation4_spill] sm:$0xff] %v10280_v8  ;;  %v3594_v54 = vpop.f32.mrb[67].mxu0 }
 0x24e   : > { %v10282_v26 = vpop.f32.mrb[68].mxu1 }
 0x24f   : > { %12036 = vst [vmem:[#allocation131_spill] sm:$0xff] %v10282_v26  ;;  %v3855_v37 = vpop.f32.mrb[69].mxu1  ;;  %4803 = vmatmul.mubr.bf16.gmra.mrb[164].mxu0 %v12038_v58 }
 0x250   : > { %v10284_v33 = vpop.f32.mrb[70].mxu1  ;;  %7271 = vmatprep.mubr.msk.bf16.mxu0 %vm2909_vm5, %v12039_v29  ;;  %v12042_v37 = vld [vmem:[#allocation59_spill] sm:$0xff] }
 0x251   : > { %12037 = vst [vmem:[#allocation132_spill] sm:$0xff] %v10284_v33  ;;  %v3858_v20 = vpop.f32.mrb[71].mxu1  ;;  %4155 = vmatmul.mubr.bf16.gmra.mrb[164].mxu1 %v12018_v28  ;;  %v12043_v33 = vld [vmem:[#allocation64_spill] sm:$0xff] }
 0x252   : > { %7171 = vmatprep.mubr.msk.bf16.mxu1 %vm2909_vm5, %v12020_v60 }
 0x253   : > { %v10292_v6 = vpop.f32.mrb[68].mxu0 }
 0x254   : > { %12040 = vst [vmem:[#allocation57_spill] sm:$0xff] %v10292_v6  ;;  %v3599_v48 = vpop.f32.mrb[69].mxu0 }
 0x255   : > { %v10294_v54 = vpop.f32.mrb[70].mxu0 }
 0x256   : > { %12041 = vst [vmem:[#allocation60_spill] sm:$0xff] %v10294_v54  ;;  %v3602_v26 = vpop.f32.mrb[71].mxu0 }
 0x257   : > { %4811 = vmatmul.mubr.bf16.gmra.mrb[168].mxu0 %v12042_v37 }
 0x258   : > { %7272 = vmatprep.mubr.msk.bf16.mxu0 %vm2909_vm5, %v12043_v33  ;;  %v10300_v28 = vpop.f32.mrb[72].mxu1 }
 0x259   : > { %4163 = vmatmul.mubr.bf16.gmra.mrb[168].mxu1 %v12024_v61  ;;  %12044 = vst [vmem:[#allocation59_spill] sm:$0xff] %v10300_v28  ;;  %v3863_v20 = vpop.f32.mrb[73].mxu1  ;;  %v12049_v61 = vld [vmem:[#allocation68_spill] sm:$0xff] }
 0x25a   : > { %7172 = vmatprep.mubr.msk.bf16.mxu1 %vm2909_vm5, %v12025_v52  ;;  %v10304_v60 = vpop.f32.mrb[74].mxu1 }
 0x25b   : > { %12045 = vst [vmem:[#allocation64_spill] sm:$0xff] %v10304_v60  ;;  %v3866_v6 = vpop.f32.mrb[75].mxu1  ;;  %v10306_v48 = vpop.f32.mrb[72].mxu0 }
 0x25c   : > { %12046 = vst [vmem:[#allocation133_spill] sm:$0xff] %v10306_v48  ;;  %v3607_v54 = vpop.f32.mrb[73].mxu0  ;;  %v12053_v48 = vld [vmem:[#allocation18_spill] sm:$0xff] }
 0x25d   : > { %v10308_v26 = vpop.f32.mrb[74].mxu0 }
 0x25e   : > { %12047 = vst [vmem:[#allocation134_spill] sm:$0xff] %v10308_v26  ;;  %v3610_v8 = vpop.f32.mrb[75].mxu0 }
 0x25f   : > { %4819 = vmatmul.mubr.bf16.gmra.mrb[172].mxu0 %v12048_v39 }
 0x260   : > { %7273 = vmatprep.mubr.msk.bf16.mxu0 %vm2909_vm5, %v12049_v61  ;;  %v10314_v28 = vpop.f32.mrb[76].mxu1 }
 0x261   : > { %4171 = vmatmul.mubr.bf16.gmra.mrb[172].mxu1 %v12028_v59  ;;  %12050 = vst [vmem:[#allocation65_spill] sm:$0xff] %v10314_v28  ;;  %v3871_v52 = vpop.f32.mrb[77].mxu1  ;;  %v12054_v59 = vld [vmem:[#allocation72_spill] sm:$0xff] }
 0x262   : > { %7173 = vmatprep.mubr.msk.bf16.mxu1 %vm2909_vm5, %v12029_v11  ;;  %v10318_v6 = vpop.f32.mrb[78].mxu1 }
 0x263   : > { %12051 = vst [vmem:[#allocation68_spill] sm:$0xff] %v10318_v6  ;;  %v3874_v20 = vpop.f32.mrb[79].mxu1  ;;  %v10320_v54 = vpop.f32.mrb[76].mxu0 }
 0x264   : > { %v3615_v60 = vpop.f32.mrb[77].mxu0 }
 0x265   : > { %v10322_v8 = vpop.f32.mrb[78].mxu0 }
 0x266   : > { %12052 = vst [vmem:[#allocation135_spill] sm:$0xff] %v10322_v8  ;;  %v3618_v26 = vpop.f32.mrb[79].mxu0 }
 0x267   : > { %4827 = vmatmul.mubr.bf16.gmra.mrb[176].mxu0 %v12053_v48 }
 0x268   : > { %7274 = vmatprep.mubr.msk.bf16.mxu0 %vm2909_vm5, %v12054_v59  ;;  %v10328_v28 = vpop.f32.mrb[80].mxu1 }
 0x269   : > { %4179 = vmatmul.mubr.bf16.gmra.mrb[176].mxu1 %v12032_v50  ;;  %12055 = vst [vmem:[#allocation18_spill] sm:$0xff] %v10328_v28  ;;  %v3879_v11 = vpop.f32.mrb[81].mxu1  ;;  %v12059_v50 = vld [vmem:[#allocation76_spill] sm:$0xff] }
 0x26a   : > { %7174 = vmatprep.mubr.msk.bf16.mxu1 %vm2909_vm5, %v12034_v14  ;;  %v10332_v52 = vpop.f32.mrb[82].mxu1 }
 0x26b   : > { %12056 = vst [vmem:[#allocation72_spill] sm:$0xff] %v10332_v52  ;;  %v3882_v20 = vpop.f32.mrb[83].mxu1  ;;  %v10334_v60 = vpop.f32.mrb[80].mxu0 }
 0x26c   : > { %12057 = vst [vmem:[#allocation136_spill] sm:$0xff] %v10334_v60  ;;  %v3623_v6 = vpop.f32.mrb[81].mxu0  ;;  %v12062_v60 = vld [vmem:[#allocation75_spill] sm:$0xff] }
 0x26d   : > { %v10336_v26 = vpop.f32.mrb[82].mxu0 }
 0x26e   : > { %12058 = vst [vmem:[#allocation137_spill] sm:$0xff] %v10336_v26  ;;  %v3626_v8 = vpop.f32.mrb[83].mxu0 }
 0x26f   : > { %4835 = vmatmul.mubr.bf16.gmra.mrb[180].mxu0 %v9618_v49 }
 0x270   : > { %7275 = vmatprep.mubr.msk.bf16.mxu0 %vm2909_vm5, %v12059_v50  ;;  %v10342_v28 = vpop.f32.mrb[84].mxu1 }
 0x271   : > { %4187 = vmatmul.mubr.bf16.gmra.mrb[180].mxu1 %v12038_v58  ;;  %12060 = vst [vmem:[#allocation76_spill] sm:$0xff] %v10342_v28  ;;  %v3887_v14 = vpop.f32.mrb[85].mxu1 }
 0x272   : > { %7175 = vmatprep.mubr.msk.bf16.mxu1 %vm2909_vm5, %v12039_v29  ;;  %v10346_v11 = vpop.f32.mrb[86].mxu1 }
 0x273   : > { %12061 = vst [vmem:[#allocation138_spill] sm:$0xff] %v10346_v11  ;;  %v3890_v20 = vpop.f32.mrb[87].mxu1  ;;  %v10348_v6 = vpop.f32.mrb[84].mxu0 }
 0x274   : > { %v3631_v52 = vpop.f32.mrb[85].mxu0 }
 0x275   : > { %v10350_v8 = vpop.f32.mrb[86].mxu0 }
 0x276   : > { %v3634_v26 = vpop.f32.mrb[87].mxu0 }
 0x277   : > { %4843 = vmatmul.mubr.bf16.gmra.mrb[184].mxu0 %v12062_v60 }
 0x278   : > { %7276 = vmatprep.mubr.msk.bf16.mxu0 %vm2909_vm5, %v9706_v38  ;;  %v10356_v58 = vpop.f32.mrb[88].mxu1 }
 0x279   : > { %4195 = vmatmul.mubr.bf16.gmra.mrb[184].mxu1 %v12042_v37  ;;  %12063 = vst [vmem:[#allocation75_spill] sm:$0xff] %v10356_v58  ;;  %v3895_v29 = vpop.f32.mrb[89].mxu1 }
 0x27a   : > { %7176 = vmatprep.mubr.msk.bf16.mxu1 %vm2909_vm5, %v12043_v33  ;;  %v10360_v14 = vpop.f32.mrb[90].mxu1 }
 0x27b   : > { %12064 = vst [vmem:[#allocation139_spill] sm:$0xff] %v10360_v14  ;;  %v3898_v20 = vpop.f32.mrb[91].mxu1  ;;  %v10362_v52 = vpop.f32.mrb[88].mxu0 }
 0x27c   : > { %v3639_v11 = vpop.f32.mrb[89].mxu0 }
 0x27d   : > { %v10364_v26 = vpop.f32.mrb[90].mxu0 }
 0x27e   : > { %v3642_v28 = vpop.f32.mrb[91].mxu0 }
 0x27f   : > { %4851 = vmatmul.mubr.bf16.gmra.mrb[188].mxu0 %v9733_v35 }
 0x280   : > { %7277 = vmatprep.mubr.msk.bf16.mxu0 %vm2909_vm5, %v9765_v47  ;;  %v10370_v37 = vpop.f32.mrb[92].mxu1 }
 0x281   : > { %4203 = vmatmul.mubr.bf16.gmra.mrb[188].mxu1 %v12048_v39  ;;  %12065 = vst [vmem:[#allocation140_spill] sm:$0xff] %v10370_v37  ;;  %v3903_v33 = vpop.f32.mrb[93].mxu1 }
 0x282   : > { %7177 = vmatprep.mubr.msk.bf16.mxu1 %vm2909_vm5, %v12049_v61  ;;  %v10374_v29 = vpop.f32.mrb[94].mxu1 }
 0x283   : > { %12066 = vst [vmem:[#allocation141_spill] sm:$0xff] %v10374_v29  ;;  %v3906_v20 = vpop.f32.mrb[95].mxu1  ;;  %v10376_v11 = vpop.f32.mrb[92].mxu0 }
 0x284   : > { %v3647_v14 = vpop.f32.mrb[93].mxu0 }
 0x285   : > { %v10378_v28 = vpop.f32.mrb[94].mxu0 }
 0x286   : > { %v3650_v58 = vpop.f32.mrb[95].mxu0 }
 0x287   : > { %4859 = vmatmul.mubr.bf16.gmra.mrb[192].mxu0 %v9760_v46 }
 0x288   : > { %7278 = vmatprep.mubr.msk.bf16.mxu0 %vm2909_vm5, %v9774_v10  ;;  %v10384_v39 = vpop.f32.mrb[96].mxu1 }
 0x289   : > { %4211 = vmatmul.mubr.bf16.gmra.mrb[192].mxu1 %v12053_v48  ;;  %12067 = vst [vmem:[#allocation142_spill] sm:$0xff] %v10384_v39  ;;  %v3911_v61 = vpop.f32.mrb[97].mxu1 }
 0x28a   : > { %7178 = vmatprep.mubr.msk.bf16.mxu1 %vm2909_vm5, %v12054_v59  ;;  %v10388_v33 = vpop.f32.mrb[98].mxu1 }
 0x28b   : > { %12068 = vst [vmem:[#allocation143_spill] sm:$0xff] %v10388_v33  ;;  %v3914_v20 = vpop.f32.mrb[99].mxu1  ;;  %v10390_v14 = vpop.f32.mrb[96].mxu0 }
 0x28c   : > { %v3655_v29 = vpop.f32.mrb[97].mxu0 }
 0x28d   : > { %v10392_v58 = vpop.f32.mrb[98].mxu0 }
 0x28e   : > { %v3658_v37 = vpop.f32.mrb[99].mxu0 }
 0x28f   : > { %4867 = vmatmul.mubr.bf16.gmra.mrb[196].mxu0 %v9814_v12 }
 0x290   : > { %7279 = vmatprep.mubr.msk.bf16.mxu0 %vm2909_vm5, %v9822_v9  ;;  %v10398_v48 = vpop.f32.mrb[100].mxu1 }
 0x291   : > { %4219 = vmatmul.mubr.bf16.gmra.mrb[196].mxu1 %v9618_v49  ;;  %12069 = vst [vmem:[#allocation144_spill] sm:$0xff] %v10398_v48  ;;  %v3919_v59 = vpop.f32.mrb[101].mxu1 }
 0x292   : > { %7179 = vmatprep.mubr.msk.bf16.mxu1 %vm2909_vm5, %v12059_v50  ;;  %v10402_v61 = vpop.f32.mrb[102].mxu1 }
 0x293   : > { %12070 = vst [vmem:[#allocation145_spill] sm:$0xff] %v10402_v61  ;;  %v3922_v20 = vpop.f32.mrb[103].mxu1  ;;  %v10404_v29 = vpop.f32.mrb[100].mxu0 }
 0x294   : > { %v3663_v33 = vpop.f32.mrb[101].mxu0 }
 0x295   : > { %v10406_v37 = vpop.f32.mrb[102].mxu0 }
 0x296   : > { %v3666_v39 = vpop.f32.mrb[103].mxu0 }
 0x297   : > { %4875 = vmatmul.mubr.bf16.gmra.mrb[200].mxu0 %v9848_v45 }
 0x298   : > { %7280 = vmatprep.mubr.msk.bf16.mxu0 %vm2909_vm5, %v9854_v36  ;;  %v10412_v49 = vpop.f32.mrb[104].mxu1 }
 0x299   : > { %4227 = vmatmul.mubr.bf16.gmra.mrb[200].mxu1 %v12062_v60  ;;  %12071 = vst [vmem:[#allocation146_spill] sm:$0xff] %v10412_v49  ;;  %v3927_v50 = vpop.f32.mrb[105].mxu1 }
 0x29a   : > { %7180 = vmatprep.mubr.msk.bf16.mxu1 %vm2909_vm5, %v9706_v38  ;;  %v10416_v59 = vpop.f32.mrb[106].mxu1 }
 0x29b   : > { %12072 = vst [vmem:[#allocation147_spill] sm:$0xff] %v10416_v59  ;;  %v3930_v20 = vpop.f32.mrb[107].mxu1  ;;  %v10418_v33 = vpop.f32.mrb[104].mxu0 }
 0x29c   : > { %v3671_v61 = vpop.f32.mrb[105].mxu0 }
 0x29d   : > { %v10420_v39 = vpop.f32.mrb[106].mxu0 }
 0x29e   : > { %v3674_v48 = vpop.f32.mrb[107].mxu0 }
 0x29f   : > { %4883 = vmatmul.mubr.bf16.gmra.mrb[204].mxu0 %v9875_v51 }
 0x2a0   : > { %7281 = vmatprep.mubr.msk.bf16.mxu0 %vm2909_vm5, %v9882_v7  ;;  %v10426_v60 = vpop.f32.mrb[108].mxu1 }
 0x2a1   : > { %4235 = vmatmul.mubr.bf16.gmra.mrb[204].mxu1 %v9733_v35  ;;  %12073 = vst [vmem:[#allocation148_spill] sm:$0xff] %v10426_v60  ;;  %v3935_v38 = vpop.f32.mrb[109].mxu1 }
 0x2a2   : > { %7181 = vmatprep.mubr.msk.bf16.mxu1 %vm2909_vm5, %v9765_v47  ;;  %v10430_v50 = vpop.f32.mrb[110].mxu1 }
 0x2a3   : > { %12074 = vst [vmem:[#allocation149_spill] sm:$0xff] %v10430_v50  ;;  %v3938_v20 = vpop.f32.mrb[111].mxu1  ;;  %v10432_v61 = vpop.f32.mrb[108].mxu0 }
 0x2a4   : > { %v3679_v59 = vpop.f32.mrb[109].mxu0 }
 0x2a5   : > { %v10434_v48 = vpop.f32.mrb[110].mxu0 }
 0x2a6   : > { %v3682_v49 = vpop.f32.mrb[111].mxu0 }
 0x2a7   : > { %4891 = vmatmul.mubr.bf16.gmra.mrb[208].mxu0 %v9903_v18 }
 0x2a8   : > { %7282 = vmatprep.mubr.msk.bf16.mxu0 %vm2909_vm5, %v9910_v34 }
 0x2a9   : > { %4243 = vmatmul.mubr.bf16.gmra.mrb[208].mxu1 %v9760_v46  ;;  %v10442_v35 = vpop.f32.mrb[112].mxu1 }
 0x2aa   : > { %7182 = vmatprep.mubr.msk.bf16.mxu1 %vm2909_vm5, %v9774_v10  ;;  %12075 = vst [vmem:[#allocation150_spill] sm:$0xff] %v10442_v35  ;;  %v3943_v47 = vpop.f32.mrb[113].mxu1 }
 0x2ab   : > { %v10444_v38 = vpop.f32.mrb[114].mxu1 }
 0x2ac   : > { %12076 = vst [vmem:[#allocation151_spill] sm:$0xff] %v10444_v38  ;;  %v3946_v20 = vpop.f32.mrb[115].mxu1 }
 0x2af   : > { %4899 = vmatmul.mubr.bf16.gmra.mrb[212].mxu0 %v9933_v2 }
 0x2b0   : > { %7283 = vmatprep.mubr.msk.bf16.mxu0 %vm2909_vm5, %v9940_v24 }
 0x2b1   : > { %4251 = vmatmul.mubr.bf16.gmra.mrb[212].mxu1 %v9814_v12  ;;  %v10452_v46 = vpop.f32.mrb[116].mxu1 }
 0x2b2   : > { %7183 = vmatprep.mubr.msk.bf16.mxu1 %vm2909_vm5, %v9822_v9  ;;  %12077 = vst [vmem:[#allocation152_spill] sm:$0xff] %v10452_v46  ;;  %v10454_v49 = vpop.f32.mrb[112].mxu0  ;;  %v3951_v10 = vpop.f32.mrb[117].mxu1 }
 0x2b3   : > { %v3687_v59 = vpop.f32.mrb[113].mxu0  ;;  %v10456_v47 = vpop.f32.mrb[118].mxu1 }
 0x2b4   : > { %12078 = vst [vmem:[#allocation153_spill] sm:$0xff] %v10456_v47  ;;  %v10458_v38 = vpop.f32.mrb[114].mxu0  ;;  %v3954_v20 = vpop.f32.mrb[119].mxu1 }
 0x2b5   : > { %v3690_v35 = vpop.f32.mrb[115].mxu0 }
 0x2b7   : > { %4907 = vmatmul.mubr.bf16.gmra.mrb[216].mxu0 %v9961_v41 }
 0x2b8   : > { %7284 = vmatprep.mubr.msk.bf16.mxu0 %vm2909_vm5, %v9966_v56 }
 0x2b9   : > { %4259 = vmatmul.mubr.bf16.gmra.mrb[216].mxu1 %v9848_v45 }
 0x2ba   : > { %7184 = vmatprep.mubr.msk.bf16.mxu1 %vm2909_vm5, %v9854_v36  ;;  %v10466_v12 = vpop.f32.mrb[116].mxu0 }
 0x2bb   : > { %v3695_v9 = vpop.f32.mrb[117].mxu0 }
 0x2bc   : > { %v10468_v10 = vpop.f32.mrb[118].mxu0 }
 0x2bd   : > { %12079 = vst [vmem:[#allocation154_spill] sm:$0xff] %v10468_v10  ;;  %v3698_v59 = vpop.f32.mrb[119].mxu0 }
 0x2bf   : > { %4915 = vmatmul.mubr.bf16.gmra.mrb[220].mxu0 %v9991_v27 }
 0x2c0   : > { %7285 = vmatprep.mubr.msk.bf16.mxu0 %vm2909_vm5, %v9996_v44 }
 0x2c1   : > { %4267 = vmatmul.mubr.bf16.gmra.mrb[220].mxu1 %v9875_v51  ;;  %v10476_v45 = vpop.f32.mrb[120].mxu1 }
 0x2c2   : > { %7185 = vmatprep.mubr.msk.bf16.mxu1 %vm2909_vm5, %v9882_v7  ;;  %12080 = vst [vmem:[#allocation155_spill] sm:$0xff] %v10476_v45  ;;  %v3959_v35 = vpop.f32.mrb[121].mxu1 }
 0x2c3   : > { %v10478_v36 = vpop.f32.mrb[122].mxu1 }
 0x2c4   : > { %12081 = vst [vmem:[#allocation156_spill] sm:$0xff] %v10478_v36  ;;  %v3962_v20 = vpop.f32.mrb[123].mxu1 }
 0x2c7   : > { %4923 = vmatmul.mubr.bf16.gmra.mrb[224].mxu0 %v10019_v17 }
 0x2c8   : > { %7286 = vmatprep.mubr.msk.bf16.mxu0 %vm2909_vm5, %v10024_v31 }
 0x2c9   : > { %4275 = vmatmul.mubr.bf16.gmra.mrb[224].mxu1 %v9903_v18  ;;  %v10486_v51 = vpop.f32.mrb[124].mxu1 }
 0x2ca   : > { %7186 = vmatprep.mubr.msk.bf16.mxu1 %vm2909_vm5, %v9910_v34  ;;  %12082 = vst [vmem:[#allocation157_spill] sm:$0xff] %v10486_v51  ;;  %v10488_v9 = vpop.f32.mrb[120].mxu0  ;;  %v3967_v7 = vpop.f32.mrb[125].mxu1 }
 0x2cb   : > { %12083 = vst [vmem:[#allocation158_spill] sm:$0xff] %v10488_v9  ;;  %v3703_v59 = vpop.f32.mrb[121].mxu0  ;;  %v10490_v35 = vpop.f32.mrb[126].mxu1 }
 0x2cc   : > { %12084 = vst [vmem:[#allocation159_spill] sm:$0xff] %v10490_v35  ;;  %v10492_v36 = vpop.f32.mrb[122].mxu0  ;;  %v3970_v20 = vpop.f32.mrb[127].mxu1 }
 0x2cd   : > { %12085 = vst [vmem:[#allocation160_spill] sm:$0xff] %v10492_v36  ;;  %v3706_v45 = vpop.f32.mrb[123].mxu0 }
 0x2cf   : > { %4931 = vmatmul.mubr.bf16.gmra.mrb[228].mxu0 %v10047_v16 }
 0x2d0   : > { %7287 = vmatprep.mubr.msk.bf16.mxu0 %vm2909_vm5, %v10052_v15 }
 0x2d1   : > { %4283 = vmatmul.mubr.bf16.gmra.mrb[228].mxu1 %v9933_v2 }
 0x2d2   : > { %7187 = vmatprep.mubr.msk.bf16.mxu1 %vm2909_vm5, %v9940_v24  ;;  %v10500_v18 = vpop.f32.mrb[124].mxu0 }
 0x2d3   : > { %12086 = vst [vmem:[#allocation161_spill] sm:$0xff] %v10500_v18  ;;  %v3711_v34 = vpop.f32.mrb[125].mxu0 }
 0x2d4   : > { %v10502_v7 = vpop.f32.mrb[126].mxu0 }
 0x2d5   : > { %12087 = vst [vmem:[#allocation162_spill] sm:$0xff] %v10502_v7  ;;  %v3714_v59 = vpop.f32.mrb[127].mxu0 }
 0x2d6   : > { %v10514_v59 = vld [vmem:[%s11587_s4] ss:$0 sm:$0xff] }
 0x2d7   : > { %4939 = vmatmul.mubr.bf16.gmra.mrb[232].mxu0 %v10095_v43 }
 0x2d8   : > { %7288 = vmatprep.mubr.msk.bf16.mxu0 %vm2909_vm5, %v10089_v57 }
 0x2d9   : > { %4291 = vmatmul.mubr.bf16.gmra.mrb[232].mxu1 %v9961_v41 }
 0x2da   : > { %7188 = vmatprep.mubr.msk.bf16.mxu1 %vm2909_vm5, %v9966_v56  ;;  %v4732_v2 = vpop.f32.mrb[128].mxu0 }
 0x2db   : > { %v4734_v24 = vpop.f32.mrb[129].mxu0 }
 0x2dc   : > { %v4084_v45 = vpop.f32.mrb[128].mxu1  ;;  %v4735_v35 = vpop.f32.mrb[130].mxu0 }
 0x2dd   : > { %v4085_v20 = vadd.f32 %v4084_v45, %v9781_v19  ;;  %v4086_v34 = vpop.f32.mrb[129].mxu1  ;;  %v4737_v41 = vpop.f32.mrb[131].mxu0 }
 0x2de   : > { %v4087_v51 = vpop.f32.mrb[130].mxu1 }
 0x2df   : > { %v4088_v47 = vadd.f32 %v4087_v51, %v9791_v1  ;;  %v4089_v46 = vpop.f32.mrb[131].mxu1  ;;  %v5243_v50 = vadd.f32 %v4732_v2, %v4085_v20  ;;  %4947 = vmatmul.mubr.bf16.gmra.mrb[236].mxu0 %v10111_v23 }
 0x2e0   : > { %7289 = vmatprep.mubr.msk.bf16.mxu0 %vm2909_vm5, %v10114_v62 }
 0x2e1   : > { %v5378_v56 = vadd.f32 %v10514_v59, %v5243_v50  ;;  %4299 = vmatmul.mubr.bf16.gmra.mrb[236].mxu1 %v9991_v27  ;;  %v5244_v19 = vadd.f32 %v4735_v35, %v4088_v47 }
 0x2e2   : > { %7189 = vmatprep.mubr.msk.bf16.mxu1 %vm2909_vm5, %v9996_v44  ;;  %v4740_v27 = vpop.f32.mrb[132].mxu0 }
 0x2e3   : > { %v5779_v1 = vmul.f32 %v5378_v56, %v5378_v56  ;;  %v7458_v46 = vpack.c.bf16 %v5378_v56, %v5378_v56  ;;  %v5379_v50 = vadd.f32 %v10514_v59, %v5244_v19  ;;  %v4742_v51 = vpop.f32.mrb[133].mxu0  ;;  %v5514_v35 = vsel %vm2909_vm5, %v5378_v56, 0.0 }
 0x2e4   : > { %v4092_v47 = vpop.f32.mrb[132].mxu1  ;;  %v4743_v34 = vpop.f32.mrb[134].mxu0 }
 0x2e5   : > { %6683 = vst.msk [vmem:[%s10527_s21] sm:$0xf] %vm6682_vm6, %v7458_v46  ;;  %v5515_v2 = vsel %vm2909_vm5, %v5379_v50, 0.0  ;;  %v5780_v45 = vmul.f32 %v5379_v50, %v5379_v50  ;;  %v7459_v24 = vpack.c.bf16 %v5379_v50, %v5379_v50  ;;  %v4094_v20 = vpop.f32.mrb[133].mxu1  ;;  %v4093_v44 = vadd.f32 %v4092_v47, %v9828_v53  ;;  %v4745_v7 = vpop.f32.mrb[135].mxu0 }
 0x2e6   : > { %v5516_v41 = vadd.f32 %v5515_v2, %v5514_v35  ;;  %v4095_v60 = vpop.f32.mrb[134].mxu1  ;;  %v5907_v19 = vsel %vm2909_vm5, %v5779_v1, 0.0 }
 0x2e7   : > { %v5908_v18 = vsel %vm2909_vm5, %v5780_v45, 0.0  ;;  %6684 = vst.msk [vmem:[%s10527_s21 + $0x4] sm:$0xf] %vm6682_vm6, %v7459_v24  ;;  %v4096_v56 = vadd.f32 %v4095_v60, %v9837_v13  ;;  %v4097_v46 = vpop.f32.mrb[135].mxu1  ;;  %v5245_v36 = vadd.f32 %v4740_v27, %v4093_v44  ;;  %4955 = vmatmul.mubr.bf16.gmra.mrb[240].mxu0 %v10155_v21 }
 0x2e8   : > { %v5909_v51 = vadd.f32 %v5908_v18, %v5907_v19  ;;  %7290 = vmatprep.mubr.msk.bf16.mxu0 %vm2909_vm5, %v10149_v63 }
 0x2e9   : > { %4307 = vmatmul.mubr.bf16.gmra.mrb[240].mxu1 %v10019_v17  ;;  %v5246_v50 = vadd.f32 %v4743_v34, %v4096_v56  ;;  %v5380_v53 = vadd.f32 %v10514_v59, %v5245_v36 }
 0x2ea   : > { %7190 = vmatprep.mubr.msk.bf16.mxu1 %vm2909_vm5, %v10024_v31  ;;  %v4748_v13 = vpop.f32.mrb[136].mxu0 }
 0x2eb   : > { %v5381_v7 = vadd.f32 %v10514_v59, %v5246_v50  ;;  %v5517_v60 = vsel %vm2909_vm5, %v5380_v53, 0.0  ;;  %v5781_v18 = vmul.f32 %v5380_v53, %v5380_v53  ;;  %v7460_v1 = vpack.c.bf16 %v5380_v53, %v5380_v53  ;;  %v4750_v17 = vpop.f32.mrb[137].mxu0  ;;  %v7922_v53 = vld [vmem:[%s8140_s18 + $0x1f0] sm:$0xff]  }
 0x2ec   : > { %v4100_v27 = vpop.f32.mrb[136].mxu1  ;;  %v5518_v47 = vadd.f32 %v5517_v60, %v5516_v41  ;;  %v4751_v24 = vpop.f32.mrb[138].mxu0  ;;  %v7852_v60 = vunpack.c.l.bf16 %v7922_v53 }
 0x2ed   : > { %v5519_v35 = vsel %vm2909_vm5, %v5381_v7, 0.0  ;;  %v5782_v2 = vmul.f32 %v5381_v7, %v5381_v7  ;;  %v7461_v36 = vpack.c.bf16 %v5381_v7, %v5381_v7  ;;  %v4102_v45 = vpop.f32.mrb[137].mxu1  ;;  %v5910_v31 = vsel %vm2909_vm5, %v5781_v18, 0.0  ;;  %6685 = vst.msk [vmem:[%s10527_s21 + $0x8] sm:$0xf] %vm6682_vm6, %v7460_v1  ;;  %v4753_v44 = vpop.f32.mrb[139].mxu0 }
 0x2ee   : > { %v4101_v20 = vadd.f32 %v4100_v27, %v9893_v30  ;;  %v4103_v34 = vpop.f32.mrb[138].mxu1  ;;  %v5911_v19 = vadd.f32 %v5910_v31, %v5909_v51  ;;  %v5520_v56 = vadd.f32 %v5519_v35, %v5518_v47  ;;  %v7853_v18 = vunpack.c.h.bf16 %v7922_v53  ;;  %v12088_v51 = vld [vmem:[#allocation7_spill] sm:$0xff]  ;;  %v7923_v27 = vld [vmem:[%s8140_s18 + $0x1f8] sm:$0xff]  }
 0x2ef   : > { %v5912_v41 = vsel %vm2909_vm5, %v5782_v2, 0.0  ;;  %6686 = vst.msk [vmem:[%s10527_s21 + $0xc] sm:$0xf] %vm6682_vm6, %v7461_v36  ;;  %v4104_v46 = vadd.f32 %v4103_v34, %v9898_v25  ;;  %v4105_v50 = vpop.f32.mrb[139].mxu1  ;;  %4963 = vmatmul.mubr.bf16.gmra.mrb[244].mxu0 %v10168_v55  ;;  %v7856_v25 = vunpack.c.l.bf16 %v7923_v27  ;;  %v7857_v47 = vunpack.c.h.bf16 %v7923_v27 }
 0x2f0   : > { %v5247_v7 = vadd.f32 %v4748_v13, %v4101_v20  ;;  %v5913_v30 = vadd.f32 %v5912_v41, %v5911_v19  ;;  %7291 = vmatprep.mubr.msk.bf16.mxu0 %vm2909_vm5, %v12088_v51  ;;  %v8017_v13 = vld [vmem:[%s8118_s9] ss:$0 sm:$0xff] }
 0x2f1   : > { %4315 = vmatmul.mubr.bf16.gmra.mrb[244].mxu1 %v10047_v16  ;;  %v5248_v1 = vadd.f32 %v4751_v24, %v4104_v46  ;;  %v1110_v35 = vmul.f32 %v8017_v13, %v7852_v60  ;;  %v1111_v45 = vmul.f32 %v8017_v13, %v7853_v18  ;;  %v1112_v44 = vmul.f32 %v8017_v13, %v7856_v25 }
 0x2f2   : > { %v5382_v17 = vadd.f32 %v10514_v59, %v5247_v7  ;;  %7191 = vmatprep.mubr.msk.bf16.mxu1 %vm2909_vm5, %v10052_v15  ;;  %v4756_v36 = vpop.f32.mrb[140].mxu0  ;;  %v1113_v27 = vmul.f32 %v8017_v13, %v7857_v47  ;;  %v12090_v13 = vld [vmem:[#allocation13_spill] sm:$0xff] }
 0x2f3   : > { %v5383_v2 = vadd.f32 %v10514_v59, %v5248_v1  ;;  %v4758_v34 = vpop.f32.mrb[141].mxu0 }
 0x2f4   : > { %v5521_v16 = vsel %vm2909_vm5, %v5382_v17, 0.0  ;;  %v5783_v24 = vmul.f32 %v5382_v17, %v5382_v17  ;;  %v7462_v31 = vpack.c.bf16 %v5382_v17, %v5382_v17  ;;  %v4108_v20 = vpop.f32.mrb[140].mxu1  ;;  %v4759_v53 = vpop.f32.mrb[142].mxu0  ;;  %v8018_v17 = vld [vmem:[%s8133_s15] ss:$0 sm:$0xff] }
 0x2f5   : > { %v5522_v19 = vadd.f32 %v5521_v16, %v5520_v56  ;;  %v5523_v15 = vsel %vm2909_vm5, %v5383_v2, 0.0  ;;  %v5784_v41 = vmul.f32 %v5383_v2, %v5383_v2  ;;  %v7463_v46 = vpack.c.bf16 %v5383_v2, %v5383_v2  ;;  %v4110_v50 = vpop.f32.mrb[141].mxu1  ;;  %v4761_v1 = vpop.f32.mrb[143].mxu0 }
 0x2f6   : > { %v5914_v7 = vsel %vm2909_vm5, %v5783_v24, 0.0  ;;  %6687 = vst.msk [vmem:[%s10527_s21 + $0x10] sm:$0xf] %vm6682_vm6, %v7462_v31  ;;  %v4109_v60 = vadd.f32 %v4108_v20, %v9928_v4  ;;  %v4111_v18 = vpop.f32.mrb[142].mxu1  ;;  %v1114_v34 = vadd.f32 %v8018_v17, %v1110_v35  ;;  %v12089_v24 = vld [vmem:[#allocation8_spill] sm:$0xff]  ;;  %v1115_v31 = vadd.f32 %v8018_v17, %v1111_v45 }
 0x2f7   : > { %v5915_v25 = vadd.f32 %v5914_v7, %v5913_v30  ;;  %v5524_v56 = vadd.f32 %v5523_v15, %v5522_v19  ;;  %v5916_v16 = vsel %vm2909_vm5, %v5784_v41, 0.0  ;;  %6688 = vst.msk [vmem:[%s10527_s21 + $0x14] sm:$0xf] %vm6682_vm6, %v7463_v46  ;;  %v4112_v2 = vadd.f32 %v4111_v18, %v9935_v42  ;;  %v4113_v50 = vpop.f32.mrb[143].mxu1  ;;  %4971 = vmatmul.mubr.bf16.gmra.mrb[248].mxu0 %v12089_v24 }
 0x2f8   : > { %v5249_v9 = vadd.f32 %v4756_v36, %v4109_v60  ;;  %v1116_v10 = vadd.f32 %v8018_v17, %v1112_v44  ;;  %v1117_v4 = vadd.f32 %v8018_v17, %v1113_v27  ;;  %7292 = vmatprep.mubr.msk.bf16.mxu0 %vm2909_vm5, %v12090_v13  ;;  %v1118_v30 = vmax.f32 %v1114_v34, 0.0 }
 0x2f9   : > { %v5917_v20 = vadd.f32 %v5916_v16, %v5915_v25  ;;  %4323 = vmatmul.mubr.bf16.gmra.mrb[248].mxu1 %v10095_v43  ;;  %v5250_v47 = vadd.f32 %v4759_v53, %v4112_v2  ;;  %v1119_v42 = vmax.f32 %v1115_v31, 0.0 }
 0x2fa   : > { %v5384_v35 = vadd.f32 %v10514_v59, %v5249_v9  ;;  %7192 = vmatprep.mubr.msk.bf16.mxu1 %vm2909_vm5, %v10089_v57  ;;  %v1120_v36 = vmax.f32 %v1116_v10, 0.0  ;;  %v1121_v19 = vmax.f32 %v1117_v4, 0.0  ;;  %v4764_v44 = vpop.f32.mrb[144].mxu0  ;;  %v1132_v15 = vmul.f32 0.0, %v1118_v30 }
 0x2fb   : > { %v5385_v45 = vadd.f32 %v10514_v59, %v5250_v47  ;;  %v4766_v7 = vpop.f32.mrb[145].mxu0  ;;  %v1133_v60 = vmul.f32 0.0, %v1119_v42  ;;  %v12091_v42 = vld [vmem:[#allocation14_spill] sm:$0xff] }
 0x2fc   : > { %v5525_v43 = vsel %vm2909_vm5, %v5384_v35, 0.0  ;;  %v5785_v41 = vmul.f32 %v5384_v35, %v5384_v35  ;;  %v7464_v46 = vpack.c.bf16 %v5384_v35, %v5384_v35  ;;  %v4116_v53 = vpop.f32.mrb[144].mxu1  ;;  %v4767_v27 = vpop.f32.mrb[146].mxu0  ;;  %v1134_v2 = vmul.f32 0.0, %v1120_v36  ;;  %v12092_v36 = vld [vmem:[#allocation19_spill] sm:$0xff] }
 0x2fd   : > { %v5526_v18 = vadd.f32 %v5525_v43, %v5524_v56  ;;  %v5527_v9 = vsel %vm2909_vm5, %v5385_v45, 0.0  ;;  %v5786_v57 = vmul.f32 %v5385_v45, %v5385_v45  ;;  %v7465_v1 = vpack.c.bf16 %v5385_v45, %v5385_v45  ;;  %v4118_v10 = vpop.f32.mrb[145].mxu1  ;;  %v4769_v16 = vpop.f32.mrb[147].mxu0 }
 0x2fe   : > { %v5918_v17 = vsel %vm2909_vm5, %v5785_v41, 0.0  ;;  %6689 = vst.msk [vmem:[%s10527_s21 + $0x18] sm:$0xf] %vm6682_vm6, %v7464_v46  ;;  %v4117_v34 = vadd.f32 %v4116_v53, %v9970_v22  ;;  %v4119_v25 = vpop.f32.mrb[146].mxu1  ;;  %v1135_v50 = vmul.f32 0.0, %v1121_v19  ;;  %v1202_v45 = vpack.c.bf16 %v1133_v60, %v1132_v15 }
 0x2ff   : > { %v5919_v31 = vadd.f32 %v5918_v17, %v5917_v20  ;;  %v5528_v4 = vadd.f32 %v5527_v9, %v5526_v18  ;;  %v5920_v56 = vsel %vm2909_vm5, %v5786_v57, 0.0  ;;  %6690 = vst.msk [vmem:[%s10527_s21 + $0x1c] sm:$0xf] %vm6682_vm6, %v7465_v1  ;;  %v4120_v47 = vadd.f32 %v4119_v25, %v9975_v32  ;;  %v4121_v30 = vpop.f32.mrb[147].mxu1  ;;  %4979 = vmatmul.mubr.bf16.gmra.mrb[252].mxu0 %v12091_v42 }
 0x300   : > { %v5251_v35 = vadd.f32 %v4764_v44, %v4117_v34  ;;  %v1203_v43 = vpack.c.bf16 %v1135_v50, %v1134_v2  ;;  %7293 = vmatprep.mubr.msk.bf16.mxu0 %vm2909_vm5, %v12092_v36  ;;  %v1701_v19 = vshrl.u32 %v1202_v45, 16  ;;  %v1704_v32 = vshll.u32 %v1202_v45, 16 }
 0x301   : > { %v5921_v41 = vadd.f32 %v5920_v56, %v5919_v31  ;;  %4331 = vmatmul.mubr.bf16.gmra.mrb[252].mxu1 %v10111_v23  ;;  %v5252_v22 = vadd.f32 %v4767_v27, %v4120_v47 }
 0x302   : > { %v5386_v20 = vadd.f32 %v10514_v59, %v5251_v35  ;;  %7193 = vmatprep.mubr.msk.bf16.mxu1 %vm2909_vm5, %v10114_v62  ;;  %v1708_v46 = vshrl.u32 %v1203_v43, 16  ;;  %v4772_v15 = vpop.f32.mrb[148].mxu0  ;;  %v1711_v53 = vshll.u32 %v1203_v43, 16  ;;  %v1703_v57 = vrot.slane %v1701_v19, 7 }
 0x303   : > { %v5387_v44 = vadd.f32 %v10514_v59, %v5252_v22  ;;  %v4774_v9 = vpop.f32.mrb[149].mxu0  ;;  %v12093_v22 = vld [vmem:[#allocation20_spill] sm:$0xff] }
 0x304   : > { %v5529_v7 = vsel %vm2909_vm5, %v5386_v20, 0.0  ;;  %v5787_v23 = vmul.f32 %v5386_v20, %v5386_v20  ;;  %v7466_v60 = vpack.c.bf16 %v5386_v20, %v5386_v20  ;;  %v4124_v18 = vpop.f32.mrb[148].mxu1  ;;  %v4775_v34 = vpop.f32.mrb[150].mxu0  ;;  %v1706_v31 = vor.u32 %v1704_v32, %v1703_v57  ;;  %v12094_v32 = vld [vmem:[#allocation24_spill] sm:$0xff] }
 0x305   : > { %v5530_v1 = vadd.f32 %v5529_v7, %v5528_v4  ;;  %v5531_v10 = vsel %vm2909_vm5, %v5387_v44, 0.0  ;;  %v5788_v62 = vmul.f32 %v5387_v44, %v5387_v44  ;;  %v7467_v27 = vpack.c.bf16 %v5387_v44, %v5387_v44  ;;  %v4126_v17 = vpop.f32.mrb[149].mxu1  ;;  %v4777_v50 = vpop.f32.mrb[151].mxu0 }
 0x306   : > { %v5922_v25 = vsel %vm2909_vm5, %v5787_v23, 0.0  ;;  %6691 = vst.msk [vmem:[%s10527_s21 + $0x20] sm:$0xf] %vm6682_vm6, %v7466_v60  ;;  %v4125_v16 = vadd.f32 %v4124_v18, %v10012_v3  ;;  %v4127_v2 = vpop.f32.mrb[150].mxu1  ;;  %v1710_v56 = vrot.slane %v1708_v46, 7  ;;  %v10621_v3 = vsel %vm8189_vm3, 0, %v1706_v31 }
 0x307   : > { %v5923_v47 = vadd.f32 %v5922_v25, %v5921_v41  ;;  %v5532_v30 = vadd.f32 %v5531_v10, %v5530_v1  ;;  %v5924_v4 = vsel %vm2909_vm5, %v5788_v62, 0.0  ;;  %6692 = vst.msk [vmem:[%s10527_s21 + $0x24] sm:$0xf] %vm6682_vm6, %v7467_v27  ;;  %v4128_v35 = vadd.f32 %v4127_v2, %v10015_v40  ;;  %v4129_v45 = vpop.f32.mrb[151].mxu1  ;;  %4987 = vmatmul.mubr.bf16.gmra.mrb[0].mxu0 %v12093_v22 }
 0x308   : > { %v5253_v43 = vadd.f32 %v4772_v15, %v4125_v16  ;;  %v1713_v20 = vor.u32 %v1711_v53, %v1710_v56  ;;  %7294 = vmatprep.mubr.msk.bf16.mxu0 %vm2909_vm5, %v12094_v32  ;;  %v2517_v46 = vshll.u32 %v10621_v3, 16  ;;  %v2515_v15 = vshrl.u32 %v10621_v3, 16 }
 0x309   : > { %v5925_v19 = vadd.f32 %v5924_v4, %v5923_v47  ;;  %4339 = vmatmul.mubr.bf16.gmra.mrb[0].mxu1 %v10155_v21  ;;  %v5254_v41 = vadd.f32 %v4775_v34, %v4128_v35  ;;  %v12095_v35 = vld [vmem:[#allocation69_spill] sm:$0xff] }
 0x30a   : > { %v5388_v40 = vadd.f32 %v10514_v59, %v5253_v43  ;;  %7194 = vmatprep.mubr.msk.bf16.mxu1 %vm2909_vm5, %v10149_v63  ;;  %v10631_v44 = vsel %vm1204_vm0, %v1703_v57, %v1713_v20  ;;  %v4780_v7 = vpop.f32.mrb[152].mxu0  ;;  %v2519_v21 = vrot.slane %v2517_v46, 1  ;;  %v10639_v63 = vsel %vm8189_vm3, %v1710_v56, 0 }
 0x30b   : > { %v5389_v53 = vadd.f32 %v10514_v59, %v5254_v41  ;;  %v2522_v23 = vshll.u32 %v10631_v44, 16  ;;  %v4782_v10 = vpop.f32.mrb[153].mxu0  ;;  %v12096_v41 = vld [vmem:[#allocation23_spill] sm:$0xff] }
 0x30c   : > { %v5533_v60 = vsel %vm2909_vm5, %v5388_v40, 0.0  ;;  %v5789_v18 = vmul.f32 %v5388_v40, %v5388_v40  ;;  %v7468_v9 = vpack.c.bf16 %v5388_v40, %v5388_v40  ;;  %v4132_v1 = vpop.f32.mrb[152].mxu1  ;;  %v4783_v25 = vpop.f32.mrb[154].mxu0  ;;  %v2520_v47 = vor.u32 %v2519_v21, %v2515_v15 }
 0x30d   : > { %v5534_v57 = vadd.f32 %v5533_v60, %v5532_v30  ;;  %v5535_v62 = vsel %vm2909_vm5, %v5389_v53, 0.0  ;;  %v5790_v27 = vmul.f32 %v5389_v53, %v5389_v53  ;;  %v7469_v17 = vpack.c.bf16 %v5389_v53, %v5389_v53  ;;  %v4134_v34 = vpop.f32.mrb[153].mxu1  ;;  %v4785_v31 = vpop.f32.mrb[155].mxu0  ;;  %v12097_v53 = vld [vmem:[#allocation27_spill] sm:$0xff] }
 0x30e   : > { %v5926_v16 = vsel %vm2909_vm5, %v5789_v18, 0.0  ;;  %6693 = vst.msk [vmem:[%s10527_s21 + $0x28] sm:$0xf] %vm6682_vm6, %v7468_v9  ;;  %v4133_v2 = vadd.f32 %v4132_v1, %v10054_v0  ;;  %v4135_v50 = vpop.f32.mrb[154].mxu1  ;;  %v2524_v5 = vrot.slane %v2522_v23, 1  ;;  %v2526_v0 = vshrl.u32 %v10631_v44, 16 }
 0x30f   : > { %v5927_v56 = vadd.f32 %v5926_v16, %v5925_v19  ;;  %v5536_v4 = vadd.f32 %v5535_v62, %v5534_v57  ;;  %v5928_v30 = vsel %vm2909_vm5, %v5790_v27, 0.0  ;;  %6694 = vst.msk [vmem:[%s10527_s21 + $0x2c] sm:$0xf] %vm6682_vm6, %v7469_v17  ;;  %v4136_v45 = vadd.f32 %v4135_v50, %v12095_v35  ;;  %v4137_v43 = vpop.f32.mrb[155].mxu1  ;;  %4995 = vmatmul.mubr.bf16.gmra.mrb[4].mxu0 %v12096_v41  ;;  %v12098_v50 = vld [vmem:[#allocation112_spill] sm:$0xff]  ;;  %v12099_v35 = vld [vmem:[#allocation114_spill] sm:$0xff] }
 0x310   : > { %v5255_v20 = vadd.f32 %v4780_v7, %v4133_v2  ;;  %v2525_v46 = vsel %vm1853_vm2, %v2520_v47, %v2524_v5  ;;  %v2530_v40 = vshll.u32 %v10639_v63, 16  ;;  %7295 = vmatprep.mubr.msk.bf16.mxu0 %vm2909_vm5, %v12097_v53  ;;  %v2528_v7 = vor.u32 %v2526_v0, %v2524_v5 }
 0x311   : > { %v5929_v15 = vadd.f32 %v5928_v30, %v5927_v56  ;;  %4347 = vmatmul.mubr.bf16.gmra.mrb[4].mxu1 %v10168_v55  ;;  %v5256_v19 = vadd.f32 %v4783_v25, %v4136_v45  ;;  %2666 = vrot.lane.b32.xlu0 %v2525_v46, %s8047_s14  ;;  %v12100_v46 = vld [vmem:[#allocation28_spill] sm:$0xff] }
 0x312   : > { %v5390_v21 = vadd.f32 %v10514_v59, %v5255_v20  ;;  %7195 = vmatprep.mubr.msk.bf16.mxu1 %vm2909_vm5, %v12088_v51  ;;  %v2532_v23 = vrot.slane %v2530_v40, 1  ;;  %v4788_v18 = vpop.f32.mrb[156].mxu0 }
 0x313   : > { %v5391_v60 = vadd.f32 %v10514_v59, %v5256_v19  ;;  %v4790_v57 = vpop.f32.mrb[157].mxu0  ;;  %v12101_v19 = vld [vmem:[#allocation32_spill] sm:$0xff] }
 0x314   : > { %v5537_v9 = vsel %vm2909_vm5, %v5390_v21, 0.0  ;;  %v5791_v55 = vmul.f32 %v5390_v21, %v5390_v21  ;;  %v7470_v1 = vpack.c.bf16 %v5390_v21, %v5390_v21  ;;  %v4140_v10 = vpop.f32.mrb[156].mxu1  ;;  %v2533_v62 = vsel %vm1853_vm2, %v2528_v7, %v2532_v23  ;;  %v4791_v16 = vpop.f32.mrb[158].mxu0 }
 0x315   : > { %v5538_v27 = vadd.f32 %v5537_v9, %v5536_v4  ;;  %v5539_v51 = vsel %vm2909_vm5, %v5391_v60, 0.0  ;;  %v5792_v17 = vmul.f32 %v5391_v60, %v5391_v60  ;;  %v7471_v34 = vpack.c.bf16 %v5391_v60, %v5391_v60  ;;  %v4142_v25 = vpop.f32.mrb[157].mxu1  ;;  %2668 = vrot.lane.b32.xlu1 %v2533_v62, %s8047_s14  ;;  %v4793_v5 = vpop.f32.mrb[159].mxu0 }
 0x316   : > { %v5930_v2 = vsel %vm2909_vm5, %v5791_v55, 0.0  ;;  %6695 = vst.msk [vmem:[%s10527_s21 + $0x30] sm:$0xf] %vm6682_vm6, %v7470_v1  ;;  %v4141_v31 = vadd.f32 %v4140_v10, %v12098_v50  ;;  %v4143_v47 = vpop.f32.mrb[158].mxu1 }
 0x317   : > { %v5931_v56 = vadd.f32 %v5930_v2, %v5929_v15  ;;  %v5540_v30 = vadd.f32 %v5539_v51, %v5538_v27  ;;  %v5932_v4 = vsel %vm2909_vm5, %v5792_v17, 0.0  ;;  %6696 = vst.msk [vmem:[%s10527_s21 + $0x34] sm:$0xf] %vm6682_vm6, %v7471_v34  ;;  %v4144_v45 = vadd.f32 %v4143_v47, %v12099_v35  ;;  %v4145_v43 = vpop.f32.mrb[159].mxu1  ;;  %5003 = vmatmul.mubr.bf16.gmra.mrb[8].mxu0 %v12100_v46 }
 0x318   : > { %v5257_v20 = vadd.f32 %v4788_v18, %v4141_v31  ;;  %7296 = vmatprep.mubr.msk.bf16.mxu0 %vm2909_vm5, %v12101_v19  ;;  %v12103_v31 = vld [vmem:[#allocation118_spill] sm:$0xff] }
 0x319   : > { %v5933_v0 = vadd.f32 %v5932_v4, %v5931_v56  ;;  %4355 = vmatmul.mubr.bf16.gmra.mrb[8].mxu1 %v12089_v24  ;;  %v5258_v40 = vadd.f32 %v4791_v16, %v4144_v45  ;;  %v12105_v45 = vld [vmem:[#allocation35_spill] sm:$0xff] }
 0x31a   : > { %v5392_v15 = vadd.f32 %v10514_v59, %v5257_v20  ;;  %7196 = vmatprep.mubr.msk.bf16.mxu1 %vm2909_vm5, %v12090_v13  ;;  %v4796_v7 = vpop.f32.mrb[160].mxu0  ;;  %v12102_v13 = vld [vmem:[#allocation117_spill] sm:$0xff] }
 0x31b   : > { %v5393_v21 = vadd.f32 %v10514_v59, %v5258_v40  ;;  %v4798_v24 = vpop.f32.mrb[161].mxu0 }
 0x31c   : > { %v5541_v23 = vsel %vm2909_vm5, %v5392_v15, 0.0  ;;  %v5793_v60 = vmul.f32 %v5392_v15, %v5392_v15  ;;  %v7472_v18 = vpack.c.bf16 %v5392_v15, %v5392_v15  ;;  %v4148_v9 = vpop.f32.mrb[160].mxu1  ;;  %v4799_v27 = vpop.f32.mrb[162].mxu0 }
 0x31d   : > { %v5542_v55 = vadd.f32 %v5541_v23, %v5540_v30  ;;  %v5543_v1 = vsel %vm2909_vm5, %v5393_v21, 0.0  ;;  %v5794_v10 = vmul.f32 %v5393_v21, %v5393_v21  ;;  %v7473_v57 = vpack.c.bf16 %v5393_v21, %v5393_v21  ;;  %v4150_v62 = vpop.f32.mrb[161].mxu1  ;;  %v4801_v25 = vpop.f32.mrb[163].mxu0  ;;  %v12104_v30 = vld [vmem:[#allocation31_spill] sm:$0xff] }
 0x31e   : > { %v5934_v51 = vsel %vm2909_vm5, %v5793_v60, 0.0  ;;  %6697 = vst.msk [vmem:[%s10527_s21 + $0x38] sm:$0xf] %vm6682_vm6, %v7472_v18  ;;  %v4149_v17 = vadd.f32 %v4148_v9, %v12102_v13  ;;  %v4151_v34 = vpop.f32.mrb[162].mxu1 }
 0x31f   : > { %v5935_v16 = vadd.f32 %v5934_v51, %v5933_v0  ;;  %v5544_v2 = vadd.f32 %v5543_v1, %v5542_v55  ;;  %v5936_v50 = vsel %vm2909_vm5, %v5794_v10, 0.0  ;;  %6698 = vst.msk [vmem:[%s10527_s21 + $0x3c] sm:$0xf] %vm6682_vm6, %v7473_v57  ;;  %v4152_v47 = vadd.f32 %v4151_v34, %v12103_v31  ;;  %v4153_v5 = vpop.f32.mrb[163].mxu1  ;;  %5011 = vmatmul.mubr.bf16.gmra.mrb[12].mxu0 %v12104_v30 }
 0x320   : > { %v5259_v56 = vadd.f32 %v4796_v7, %v4149_v17  ;;  %7297 = vmatprep.mubr.msk.bf16.mxu0 %vm2909_vm5, %v12105_v45  ;;  %v12107_v17 = vld [vmem:[#allocation125_spill] sm:$0xff] }
 0x321   : > { %v5937_v4 = vadd.f32 %v5936_v50, %v5935_v16  ;;  %4363 = vmatmul.mubr.bf16.gmra.mrb[12].mxu1 %v12091_v42  ;;  %v5260_v35 = vadd.f32 %v4799_v27, %v4152_v47  ;;  %v12109_v47 = vld [vmem:[#allocation40_spill] sm:$0xff] }
 0x322   : > { %v5394_v43 = vadd.f32 %v10514_v59, %v5259_v56  ;;  %7197 = vmatprep.mubr.msk.bf16.mxu1 %vm2909_vm5, %v12092_v36  ;;  %v4804_v0 = vpop.f32.mrb[164].mxu0  ;;  %v12106_v36 = vld [vmem:[#allocation124_spill] sm:$0xff] }
 0x323   : > { %v5395_v20 = vadd.f32 %v10514_v59, %v5260_v35  ;;  %v4806_v42 = vpop.f32.mrb[165].mxu0 }
 0x324   : > { %v5545_v40 = vsel %vm2909_vm5, %v5394_v43, 0.0  ;;  %v5795_v15 = vmul.f32 %v5394_v43, %v5394_v43  ;;  %v7474_v21 = vpack.c.bf16 %v5394_v43, %v5394_v43  ;;  %v4156_v7 = vpop.f32.mrb[164].mxu1  ;;  %v4807_v55 = vpop.f32.mrb[166].mxu0 }
 0x325   : > { %v5546_v23 = vadd.f32 %v5545_v40, %v5544_v2  ;;  %v5547_v60 = vsel %vm2909_vm5, %v5395_v20, 0.0  ;;  %v5796_v18 = vmul.f32 %v5395_v20, %v5395_v20  ;;  %v7475_v9 = vpack.c.bf16 %v5395_v20, %v5395_v20  ;;  %v4158_v24 = vpop.f32.mrb[165].mxu1  ;;  %v4809_v62 = vpop.f32.mrb[167].mxu0  ;;  %v12108_v2 = vld [vmem:[#allocation36_spill] sm:$0xff] }
 0x326   : > { %v5938_v1 = vsel %vm2909_vm5, %v5795_v15, 0.0  ;;  %6699 = vst.msk [vmem:[%s10527_s21 + $0x40] sm:$0xf] %vm6682_vm6, %v7474_v21  ;;  %v4157_v10 = vadd.f32 %v4156_v7, %v12106_v36  ;;  %v4159_v57 = vpop.f32.mrb[166].mxu1 }
 0x327   : > { %v5939_v27 = vadd.f32 %v5938_v1, %v5937_v4  ;;  %v5548_v51 = vadd.f32 %v5547_v60, %v5546_v23  ;;  %v5940_v13 = vsel %vm2909_vm5, %v5796_v18, 0.0  ;;  %6700 = vst.msk [vmem:[%s10527_s21 + $0x44] sm:$0xf] %vm6682_vm6, %v7475_v9  ;;  %v4160_v34 = vadd.f32 %v4159_v57, %v12107_v17  ;;  %v4161_v25 = vpop.f32.mrb[167].mxu1  ;;  %5019 = vmatmul.mubr.bf16.gmra.mrb[16].mxu0 %v12108_v2 }
 0x328   : > { %v5261_v16 = vadd.f32 %v4804_v0, %v4157_v10  ;;  %7298 = vmatprep.mubr.msk.bf16.mxu0 %vm2909_vm5, %v12109_v47  ;;  %v12111_v10 = vld [vmem:[#allocation21_spill] sm:$0xff] }
 0x329   : > { %v5941_v50 = vadd.f32 %v5940_v13, %v5939_v27  ;;  %4371 = vmatmul.mubr.bf16.gmra.mrb[16].mxu1 %v12093_v22  ;;  %v5262_v31 = vadd.f32 %v4807_v55, %v4160_v34  ;;  %v12113_v34 = vld [vmem:[#allocation43_spill] sm:$0xff] }
 0x32a   : > { %v5396_v5 = vadd.f32 %v10514_v59, %v5261_v16  ;;  %7198 = vmatprep.mubr.msk.bf16.mxu1 %vm2909_vm5, %v12094_v32  ;;  %v4812_v4 = vpop.f32.mrb[168].mxu0  ;;  %v12110_v32 = vld [vmem:[#allocation128_spill] sm:$0xff] }
 0x32b   : > { %v5397_v56 = vadd.f32 %v10514_v59, %v5262_v31  ;;  %v4814_v22 = vpop.f32.mrb[169].mxu0 }
 0x32c   : > { %v5549_v35 = vsel %vm2909_vm5, %v5396_v5, 0.0  ;;  %v5797_v43 = vmul.f32 %v5396_v5, %v5396_v5  ;;  %v7476_v20 = vpack.c.bf16 %v5396_v5, %v5396_v5  ;;  %v4164_v0 = vpop.f32.mrb[168].mxu1  ;;  %v4815_v23 = vpop.f32.mrb[170].mxu0 }
 0x32d   : > { %v5550_v40 = vadd.f32 %v5549_v35, %v5548_v51  ;;  %v5551_v15 = vsel %vm2909_vm5, %v5397_v56, 0.0  ;;  %v5798_v21 = vmul.f32 %v5397_v56, %v5397_v56  ;;  %v7477_v7 = vpack.c.bf16 %v5397_v56, %v5397_v56  ;;  %v4166_v42 = vpop.f32.mrb[169].mxu1  ;;  %v4817_v24 = vpop.f32.mrb[171].mxu0  ;;  %v12112_v51 = vld [vmem:[#allocation39_spill] sm:$0xff] }
 0x32e   : > { %v5942_v60 = vsel %vm2909_vm5, %v5797_v43, 0.0  ;;  %6701 = vst.msk [vmem:[%s10527_s21 + $0x48] sm:$0xf] %vm6682_vm6, %v7476_v20  ;;  %v4165_v18 = vadd.f32 %v4164_v0, %v12110_v32  ;;  %v4167_v9 = vpop.f32.mrb[170].mxu1 }
 0x32f   : > { %v5943_v55 = vadd.f32 %v5942_v60, %v5941_v50  ;;  %v5552_v1 = vadd.f32 %v5551_v15, %v5550_v40  ;;  %v5944_v36 = vsel %vm2909_vm5, %v5798_v21, 0.0  ;;  %6702 = vst.msk [vmem:[%s10527_s21 + $0x4c] sm:$0xf] %vm6682_vm6, %v7477_v7  ;;  %v4168_v57 = vadd.f32 %v4167_v9, %v12111_v10  ;;  %v4169_v62 = vpop.f32.mrb[171].mxu1  ;;  %5027 = vmatmul.mubr.bf16.gmra.mrb[20].mxu0 %v12112_v51 }
 0x330   : > { %v5263_v27 = vadd.f32 %v4812_v4, %v4165_v18  ;;  %7299 = vmatprep.mubr.msk.bf16.mxu0 %vm2909_vm5, %v12113_v34  ;;  %v12115_v18 = vld [vmem:[#allocation25_spill] sm:$0xff] }
 0x331   : > { %v5945_v13 = vadd.f32 %v5944_v36, %v5943_v55  ;;  %4379 = vmatmul.mubr.bf16.gmra.mrb[20].mxu1 %v12096_v41  ;;  %v5264_v17 = vadd.f32 %v4815_v23, %v4168_v57  ;;  %v12117_v57 = vld [vmem:[#allocation48_spill] sm:$0xff] }
 0x332   : > { %v5398_v25 = vadd.f32 %v10514_v59, %v5263_v27  ;;  %7199 = vmatprep.mubr.msk.bf16.mxu1 %vm2909_vm5, %v12097_v53  ;;  %v4820_v50 = vpop.f32.mrb[172].mxu0  ;;  %v12114_v53 = vld [vmem:[#allocation22_spill] sm:$0xff] }
 0x333   : > { %v5399_v16 = vadd.f32 %v10514_v59, %v5264_v17  ;;  %v4822_v41 = vpop.f32.mrb[173].mxu0 }
 0x334   : > { %v5553_v31 = vsel %vm2909_vm5, %v5398_v25, 0.0  ;;  %v5799_v5 = vmul.f32 %v5398_v25, %v5398_v25  ;;  %v7478_v56 = vpack.c.bf16 %v5398_v25, %v5398_v25  ;;  %v4172_v4 = vpop.f32.mrb[172].mxu1  ;;  %v4823_v40 = vpop.f32.mrb[174].mxu0 }
 0x335   : > { %v5554_v35 = vadd.f32 %v5553_v31, %v5552_v1  ;;  %v5555_v43 = vsel %vm2909_vm5, %v5399_v16, 0.0  ;;  %v5800_v20 = vmul.f32 %v5399_v16, %v5399_v16  ;;  %v7479_v0 = vpack.c.bf16 %v5399_v16, %v5399_v16  ;;  %v4174_v22 = vpop.f32.mrb[173].mxu1  ;;  %v4825_v42 = vpop.f32.mrb[175].mxu0  ;;  %v12116_v1 = vld [vmem:[#allocation44_spill] sm:$0xff] }
 0x336   : > { %v5946_v15 = vsel %vm2909_vm5, %v5799_v5, 0.0  ;;  %6703 = vst.msk [vmem:[%s10527_s21 + $0x50] sm:$0xf] %vm6682_vm6, %v7478_v56  ;;  %v4173_v21 = vadd.f32 %v4172_v4, %v12114_v53  ;;  %v4175_v7 = vpop.f32.mrb[174].mxu1 }
 0x337   : > { %v5947_v23 = vadd.f32 %v5946_v15, %v5945_v13  ;;  %v5556_v60 = vadd.f32 %v5555_v43, %v5554_v35  ;;  %v5948_v32 = vsel %vm2909_vm5, %v5800_v20, 0.0  ;;  %6704 = vst.msk [vmem:[%s10527_s21 + $0x54] sm:$0xf] %vm6682_vm6, %v7479_v0  ;;  %v4176_v9 = vadd.f32 %v4175_v7, %v12115_v18  ;;  %v4177_v24 = vpop.f32.mrb[175].mxu1  ;;  %5035 = vmatmul.mubr.bf16.gmra.mrb[24].mxu0 %v12116_v1 }
 0x338   : > { %v5265_v55 = vadd.f32 %v4820_v50, %v4173_v21  ;;  %7300 = vmatprep.mubr.msk.bf16.mxu0 %vm2909_vm5, %v12117_v57  ;;  %v12119_v21 = vld [vmem:[#allocation29_spill] sm:$0xff] }
 0x339   : > { %v5949_v36 = vadd.f32 %v5948_v32, %v5947_v23  ;;  %4387 = vmatmul.mubr.bf16.gmra.mrb[24].mxu1 %v12100_v46  ;;  %v5266_v10 = vadd.f32 %v4823_v40, %v4176_v9  ;;  %v12121_v9 = vld [vmem:[#allocation51_spill] sm:$0xff] }
 0x33a   : > { %v5400_v62 = vadd.f32 %v10514_v59, %v5265_v55  ;;  %7200 = vmatprep.mubr.msk.bf16.mxu1 %vm2909_vm5, %v12101_v19  ;;  %v4828_v13 = vpop.f32.mrb[176].mxu0  ;;  %v12118_v19 = vld [vmem:[#allocation11_spill] sm:$0xff] }
 0x33b   : > { %v5401_v27 = vadd.f32 %v10514_v59, %v5266_v10  ;;  %v4830_v46 = vpop.f32.mrb[177].mxu0 }
 0x33c   : > { %v5557_v17 = vsel %vm2909_vm5, %v5400_v62, 0.0  ;;  %v5801_v25 = vmul.f32 %v5400_v62, %v5400_v62  ;;  %v7480_v16 = vpack.c.bf16 %v5400_v62, %v5400_v62  ;;  %v4180_v50 = vpop.f32.mrb[176].mxu1  ;;  %v4831_v35 = vpop.f32.mrb[178].mxu0 }
 0x33d   : > { %v5558_v31 = vadd.f32 %v5557_v17, %v5556_v60  ;;  %v5559_v5 = vsel %vm2909_vm5, %v5401_v27, 0.0  ;;  %v5802_v56 = vmul.f32 %v5401_v27, %v5401_v27  ;;  %v7481_v4 = vpack.c.bf16 %v5401_v27, %v5401_v27  ;;  %v4182_v41 = vpop.f32.mrb[177].mxu1  ;;  %v4833_v22 = vpop.f32.mrb[179].mxu0  ;;  %v12120_v60 = vld [vmem:[#allocation47_spill] sm:$0xff] }
 0x33e   : > { %v5950_v43 = vsel %vm2909_vm5, %v5801_v25, 0.0  ;;  %6705 = vst.msk [vmem:[%s10527_s21 + $0x58] sm:$0xf] %vm6682_vm6, %v7480_v16  ;;  %v4181_v20 = vadd.f32 %v4180_v50, %v12118_v19  ;;  %v4183_v0 = vpop.f32.mrb[178].mxu1 }
 0x33f   : > { %v5951_v40 = vadd.f32 %v5950_v43, %v5949_v36  ;;  %v5560_v15 = vadd.f32 %v5559_v5, %v5558_v31  ;;  %v5952_v53 = vsel %vm2909_vm5, %v5802_v56, 0.0  ;;  %6706 = vst.msk [vmem:[%s10527_s21 + $0x5c] sm:$0xf] %vm6682_vm6, %v7481_v4  ;;  %v4184_v7 = vadd.f32 %v4183_v0, %v12119_v21  ;;  %v4185_v42 = vpop.f32.mrb[179].mxu1  ;;  %5043 = vmatmul.mubr.bf16.gmra.mrb[28].mxu0 %v12120_v60 }
 0x340   : > { %v5267_v23 = vadd.f32 %v4828_v13, %v4181_v20  ;;  %7301 = vmatprep.mubr.msk.bf16.mxu0 %vm2909_vm5, %v12121_v9  ;;  %v12123_v20 = vld [vmem:[#allocation34_spill] sm:$0xff] }
 0x341   : > { %v5953_v32 = vadd.f32 %v5952_v53, %v5951_v40  ;;  %4395 = vmatmul.mubr.bf16.gmra.mrb[28].mxu1 %v12104_v30  ;;  %v5268_v18 = vadd.f32 %v4831_v35, %v4184_v7  ;;  %v12125_v7 = vld [vmem:[#allocation56_spill] sm:$0xff] }
 0x342   : > { %v5402_v24 = vadd.f32 %v10514_v59, %v5267_v23  ;;  %7201 = vmatprep.mubr.msk.bf16.mxu1 %vm2909_vm5, %v12105_v45  ;;  %v4836_v36 = vpop.f32.mrb[180].mxu0  ;;  %v12122_v45 = vld [vmem:[#allocation15_spill] sm:$0xff] }
 0x343   : > { %v5403_v55 = vadd.f32 %v10514_v59, %v5268_v18  ;;  %v4838_v30 = vpop.f32.mrb[181].mxu0 }
 0x344   : > { %v5561_v10 = vsel %vm2909_vm5, %v5402_v24, 0.0  ;;  %v5803_v62 = vmul.f32 %v5402_v24, %v5402_v24  ;;  %v7482_v27 = vpack.c.bf16 %v5402_v24, %v5402_v24  ;;  %v4188_v13 = vpop.f32.mrb[180].mxu1  ;;  %v4839_v31 = vpop.f32.mrb[182].mxu0 }
 0x345   : > { %v5562_v17 = vadd.f32 %v5561_v10, %v5560_v15  ;;  %v5563_v25 = vsel %vm2909_vm5, %v5403_v55, 0.0  ;;  %v5804_v16 = vmul.f32 %v5403_v55, %v5403_v55  ;;  %v7483_v50 = vpack.c.bf16 %v5403_v55, %v5403_v55  ;;  %v4190_v46 = vpop.f32.mrb[181].mxu1  ;;  %v4841_v41 = vpop.f32.mrb[183].mxu0  ;;  %v12124_v15 = vld [vmem:[#allocation52_spill] sm:$0xff] }
 0x346   : > { %v5954_v5 = vsel %vm2909_vm5, %v5803_v62, 0.0  ;;  %6707 = vst.msk [vmem:[%s10527_s21 + $0x60] sm:$0xf] %vm6682_vm6, %v7482_v27  ;;  %v4189_v56 = vadd.f32 %v4188_v13, %v12122_v45  ;;  %v4191_v4 = vpop.f32.mrb[182].mxu1 }
 0x347   : > { %v5955_v35 = vadd.f32 %v5954_v5, %v5953_v32  ;;  %v5564_v43 = vadd.f32 %v5563_v25, %v5562_v17  ;;  %v5956_v19 = vsel %vm2909_vm5, %v5804_v16, 0.0  ;;  %6708 = vst.msk [vmem:[%s10527_s21 + $0x64] sm:$0xf] %vm6682_vm6, %v7483_v50  ;;  %v4192_v0 = vadd.f32 %v4191_v4, %v12123_v20  ;;  %v4193_v22 = vpop.f32.mrb[183].mxu1  ;;  %5051 = vmatmul.mubr.bf16.gmra.mrb[32].mxu0 %v12124_v15 }
 0x348   : > { %v5269_v40 = vadd.f32 %v4836_v36, %v4189_v56  ;;  %7302 = vmatprep.mubr.msk.bf16.mxu0 %vm2909_vm5, %v12125_v7  ;;  %v12127_v56 = vld [vmem:[#allocation41_spill] sm:$0xff] }
 0x349   : > { %v5957_v53 = vadd.f32 %v5956_v19, %v5955_v35  ;;  %4403 = vmatmul.mubr.bf16.gmra.mrb[32].mxu1 %v12108_v2  ;;  %v5270_v21 = vadd.f32 %v4839_v31, %v4192_v0  ;;  %v12129_v0 = vld [vmem:[#allocation6_spill] sm:$0xff] }
 0x34a   : > { %v5404_v42 = vadd.f32 %v10514_v59, %v5269_v40  ;;  %7202 = vmatprep.mubr.msk.bf16.mxu1 %vm2909_vm5, %v12109_v47  ;;  %v4844_v32 = vpop.f32.mrb[184].mxu0  ;;  %v12126_v47 = vld [vmem:[#allocation37_spill] sm:$0xff] }
 0x34b   : > { %v5405_v23 = vadd.f32 %v10514_v59, %v5270_v21  ;;  %v4846_v2 = vpop.f32.mrb[185].mxu0 }
 0x34c   : > { %v5565_v18 = vsel %vm2909_vm5, %v5404_v42, 0.0  ;;  %v5805_v24 = vmul.f32 %v5404_v42, %v5404_v42  ;;  %v7484_v55 = vpack.c.bf16 %v5404_v42, %v5404_v42  ;;  %v4196_v36 = vpop.f32.mrb[184].mxu1  ;;  %v4847_v17 = vpop.f32.mrb[186].mxu0 }
 0x34d   : > { %v5566_v10 = vadd.f32 %v5565_v18, %v5564_v43  ;;  %v5567_v62 = vsel %vm2909_vm5, %v5405_v23, 0.0  ;;  %v5806_v27 = vmul.f32 %v5405_v23, %v5405_v23  ;;  %v7485_v13 = vpack.c.bf16 %v5405_v23, %v5405_v23  ;;  %v4198_v30 = vpop.f32.mrb[185].mxu1  ;;  %v4849_v46 = vpop.f32.mrb[187].mxu0  ;;  %v12128_v43 = vld [vmem:[#allocation2_spill] sm:$0xff] }
 0x34e   : > { %v5958_v25 = vsel %vm2909_vm5, %v5805_v24, 0.0  ;;  %6709 = vst.msk [vmem:[%s10527_s21 + $0x68] sm:$0xf] %vm6682_vm6, %v7484_v55  ;;  %v4197_v16 = vadd.f32 %v4196_v36, %v12126_v47  ;;  %v4199_v50 = vpop.f32.mrb[186].mxu1  ;;  %v12131_v47 = vld [vmem:[#allocation49_spill] sm:$0xff] }
 0x34f   : > { %v5959_v31 = vadd.f32 %v5958_v25, %v5957_v53  ;;  %v5568_v5 = vadd.f32 %v5567_v62, %v5566_v10  ;;  %v5960_v45 = vsel %vm2909_vm5, %v5806_v27, 0.0  ;;  %6710 = vst.msk [vmem:[%s10527_s21 + $0x6c] sm:$0xf] %vm6682_vm6, %v7485_v13  ;;  %v4200_v4 = vadd.f32 %v4199_v50, %v12127_v56  ;;  %v4201_v41 = vpop.f32.mrb[187].mxu1  ;;  %5059 = vmatmul.mubr.bf16.gmra.mrb[36].mxu0 %v12128_v43  ;;  %v12133_v56 = vld [vmem:[#allocation62_spill] sm:$0xff] }
 0x350   : > { %v5271_v35 = vadd.f32 %v4844_v32, %v4197_v16  ;;  %7303 = vmatprep.mubr.msk.bf16.mxu0 %vm2909_vm5, %v12129_v0 }
 0x351   : > { %v5961_v19 = vadd.f32 %v5960_v45, %v5959_v31  ;;  %4411 = vmatmul.mubr.bf16.gmra.mrb[36].mxu1 %v12112_v51  ;;  %v5272_v20 = vadd.f32 %v4847_v17, %v4200_v4  ;;  %v12132_v31 = vld [vmem:[#allocation58_spill] sm:$0xff] }
 0x352   : > { %v5406_v22 = vadd.f32 %v10514_v59, %v5271_v35  ;;  %7203 = vmatprep.mubr.msk.bf16.mxu1 %vm2909_vm5, %v12113_v34  ;;  %v4852_v53 = vpop.f32.mrb[188].mxu0  ;;  %v10825_v4 = vld [vmem:[%s11587_s4] ss:$0 sm:$0xff] }
 0x353   : > { %v5407_v40 = vadd.f32 %v10514_v59, %v5272_v20  ;;  %v4854_v51 = vpop.f32.mrb[189].mxu0  ;;  %v12130_v59 = vld [vmem:[#allocation45_spill] sm:$0xff] }
 0x354   : > { %v5569_v21 = vsel %vm2909_vm5, %v5406_v22, 0.0  ;;  %v5807_v42 = vmul.f32 %v5406_v22, %v5406_v22  ;;  %v7486_v23 = vpack.c.bf16 %v5406_v22, %v5406_v22  ;;  %v4204_v32 = vpop.f32.mrb[188].mxu1  ;;  %v4855_v10 = vpop.f32.mrb[190].mxu0 }
 0x355   : > { %v5570_v18 = vadd.f32 %v5569_v21, %v5568_v5  ;;  %v5571_v24 = vsel %vm2909_vm5, %v5407_v40, 0.0  ;;  %v5808_v55 = vmul.f32 %v5407_v40, %v5407_v40  ;;  %v7487_v36 = vpack.c.bf16 %v5407_v40, %v5407_v40  ;;  %v4206_v2 = vpop.f32.mrb[189].mxu1  ;;  %v4857_v13 = vpop.f32.mrb[191].mxu0 }
 0x356   : > { %v5962_v62 = vsel %vm2909_vm5, %v5807_v42, 0.0  ;;  %6711 = vst.msk [vmem:[%s10527_s21 + $0x70] sm:$0xf] %vm6682_vm6, %v7486_v23  ;;  %v4205_v34 = vadd.f32 %v4204_v32, %v12130_v59  ;;  %v4207_v27 = vpop.f32.mrb[190].mxu1 }
 0x357   : > { %v5963_v30 = vadd.f32 %v5962_v62, %v5961_v19  ;;  %v5572_v17 = vadd.f32 %v5571_v24, %v5570_v18  ;;  %v5964_v25 = vsel %vm2909_vm5, %v5808_v55, 0.0  ;;  %6712 = vst.msk [vmem:[%s10527_s21 + $0x74] sm:$0xf] %vm6682_vm6, %v7487_v36  ;;  %v4208_v16 = vadd.f32 %v4207_v27, %v12131_v47  ;;  %v4209_v50 = vpop.f32.mrb[191].mxu1  ;;  %5067 = vmatmul.mubr.bf16.gmra.mrb[40].mxu0 %v12132_v31 }
 0x358   : > { %v5273_v46 = vadd.f32 %v4852_v53, %v4205_v34  ;;  %7304 = vmatprep.mubr.msk.bf16.mxu0 %vm2909_vm5, %v12133_v56  ;;  %v12135_v34 = vld [vmem:[#allocation4_spill] sm:$0xff] }
 0x359   : > { %v5965_v5 = vadd.f32 %v5964_v25, %v5963_v30  ;;  %4419 = vmatmul.mubr.bf16.gmra.mrb[40].mxu1 %v12116_v1  ;;  %v5274_v45 = vadd.f32 %v4855_v10, %v4208_v16  ;;  %v12137_v16 = vld [vmem:[#allocation10_spill] sm:$0xff] }
 0x35a   : > { %v5408_v41 = vadd.f32 %v10825_v4, %v5273_v46  ;;  %7204 = vmatprep.mubr.msk.bf16.mxu1 %vm2909_vm5, %v12117_v57  ;;  %v4860_v19 = vpop.f32.mrb[192].mxu0  ;;  %v12134_v57 = vld [vmem:[#allocation3_spill] sm:$0xff] }
 0x35b   : > { %v5409_v35 = vadd.f32 %v10825_v4, %v5274_v45  ;;  %v4862_v53 = vpop.f32.mrb[193].mxu0 }
 0x35c   : > { %v5573_v1 = vsel %vm2909_vm5, %v5408_v41, 0.0  ;;  %v5809_v20 = vmul.f32 %v5408_v41, %v5408_v41  ;;  %v7488_v22 = vpack.c.bf16 %v5408_v41, %v5408_v41  ;;  %v4212_v40 = vpop.f32.mrb[192].mxu1  ;;  %v4863_v18 = vpop.f32.mrb[194].mxu0 }
 0x35d   : > { %v5574_v21 = vadd.f32 %v5573_v1, %v5572_v17  ;;  %v5575_v42 = vsel %vm2909_vm5, %v5409_v35, 0.0  ;;  %v5810_v23 = vmul.f32 %v5409_v35, %v5409_v35  ;;  %v7489_v32 = vpack.c.bf16 %v5409_v35, %v5409_v35  ;;  %v4214_v51 = vpop.f32.mrb[193].mxu1  ;;  %v4865_v2 = vpop.f32.mrb[195].mxu0  ;;  %v12136_v17 = vld [vmem:[#allocation61_spill] sm:$0xff] }
 0x35e   : > { %v5966_v24 = vsel %vm2909_vm5, %v5809_v20, 0.0  ;;  %6713 = vst.msk [vmem:[%s10527_s21 + $0x78] sm:$0xf] %vm6682_vm6, %v7488_v22  ;;  %v4213_v55 = vadd.f32 %v4212_v40, %v12134_v57  ;;  %v4215_v36 = vpop.f32.mrb[194].mxu1 }
 0x35f   : > { %v5967_v10 = vadd.f32 %v5966_v24, %v5965_v5  ;;  %v5576_v62 = vadd.f32 %v5575_v42, %v5574_v21  ;;  %v5968_v59 = vsel %vm2909_vm5, %v5810_v23, 0.0  ;;  %6714 = vst.msk [vmem:[%s10527_s21 + $0x7c] sm:$0xf] %vm6682_vm6, %v7489_v32  ;;  %v4216_v27 = vadd.f32 %v4215_v36, %v12135_v34  ;;  %v4217_v13 = vpop.f32.mrb[195].mxu1  ;;  %5075 = vmatmul.mubr.bf16.gmra.mrb[44].mxu0 %v12136_v17 }
 0x360   : > { %v5275_v30 = vadd.f32 %v4860_v19, %v4213_v55  ;;  %7305 = vmatprep.mubr.msk.bf16.mxu0 %vm2909_vm5, %v12137_v16  ;;  %v12139_v55 = vld [vmem:[#allocation60_spill] sm:$0xff] }
 0x361   : > { %v5969_v25 = vadd.f32 %v5968_v59, %v5967_v10  ;;  %4427 = vmatmul.mubr.bf16.gmra.mrb[44].mxu1 %v12120_v60  ;;  %v5276_v47 = vadd.f32 %v4863_v18, %v4216_v27  ;;  %v12141_v27 = vld [vmem:[#allocation71_spill] sm:$0xff] }
 0x362   : > { %v5410_v50 = vadd.f32 %v10825_v4, %v5275_v30  ;;  %7205 = vmatprep.mubr.msk.bf16.mxu1 %vm2909_vm5, %v12121_v9  ;;  %v4868_v5 = vpop.f32.mrb[196].mxu0  ;;  %v12138_v9 = vld [vmem:[#allocation57_spill] sm:$0xff] }
 0x363   : > { %v5411_v46 = vadd.f32 %v10825_v4, %v5276_v47  ;;  %v4870_v60 = vpop.f32.mrb[197].mxu0 }
 0x364   : > { %v5577_v45 = vsel %vm2909_vm5, %v5410_v50, 0.0  ;;  %v5811_v41 = vmul.f32 %v5410_v50, %v5410_v50  ;;  %v7490_v35 = vpack.c.bf16 %v5410_v50, %v5410_v50  ;;  %v4220_v19 = vpop.f32.mrb[196].mxu1  ;;  %v4871_v21 = vpop.f32.mrb[198].mxu0 }
 0x365   : > { %v5578_v1 = vadd.f32 %v5577_v45, %v5576_v62  ;;  %v5579_v20 = vsel %vm2909_vm5, %v5411_v46, 0.0  ;;  %v5812_v22 = vmul.f32 %v5411_v46, %v5411_v46  ;;  %v7491_v40 = vpack.c.bf16 %v5411_v46, %v5411_v46  ;;  %v4222_v53 = vpop.f32.mrb[197].mxu1  ;;  %v4873_v51 = vpop.f32.mrb[199].mxu0  ;;  %v12140_v62 = vld [vmem:[#allocation66_spill] sm:$0xff] }
 0x366   : > { %v5970_v42 = vsel %vm2909_vm5, %v5811_v41, 0.0  ;;  %6715 = vst.msk [vmem:[%s10527_s21 + $0x80] sm:$0xf] %vm6682_vm6, %v7490_v35  ;;  %v4221_v23 = vadd.f32 %v4220_v19, %v12138_v9  ;;  %v4223_v32 = vpop.f32.mrb[198].mxu1 }
 0x367   : > { %v5971_v18 = vadd.f32 %v5970_v42, %v5969_v25  ;;  %v5580_v24 = vadd.f32 %v5579_v20, %v5578_v1  ;;  %v5972_v57 = vsel %vm2909_vm5, %v5812_v22, 0.0  ;;  %6716 = vst.msk [vmem:[%s10527_s21 + $0x84] sm:$0xf] %vm6682_vm6, %v7491_v40  ;;  %v4224_v36 = vadd.f32 %v4223_v32, %v12139_v55  ;;  %v4225_v2 = vpop.f32.mrb[199].mxu1  ;;  %5083 = vmatmul.mubr.bf16.gmra.mrb[48].mxu0 %v12140_v62 }
 0x368   : > { %v5277_v10 = vadd.f32 %v4868_v5, %v4221_v23  ;;  %7306 = vmatprep.mubr.msk.bf16.mxu0 %vm2909_vm5, %v12141_v27  ;;  %v12143_v23 = vld [vmem:[#allocation134_spill] sm:$0xff] }
 0x369   : > { %v5973_v59 = vadd.f32 %v5972_v57, %v5971_v18  ;;  %4435 = vmatmul.mubr.bf16.gmra.mrb[48].mxu1 %v12124_v15  ;;  %v5278_v34 = vadd.f32 %v4871_v21, %v4224_v36  ;;  %v12145_v36 = vld [vmem:[#allocation73_spill] sm:$0xff] }
 0x36a   : > { %v5412_v13 = vadd.f32 %v10825_v4, %v5277_v10  ;;  %7206 = vmatprep.mubr.msk.bf16.mxu1 %vm2909_vm5, %v12125_v7  ;;  %v4876_v25 = vpop.f32.mrb[200].mxu0  ;;  %v12142_v7 = vld [vmem:[#allocation133_spill] sm:$0xff] }
 0x36b   : > { %v5413_v30 = vadd.f32 %v10825_v4, %v5278_v34  ;;  %v4878_v15 = vpop.f32.mrb[201].mxu0 }
 0x36c   : > { %v5581_v47 = vsel %vm2909_vm5, %v5412_v13, 0.0  ;;  %v5813_v50 = vmul.f32 %v5412_v13, %v5412_v13  ;;  %v7492_v46 = vpack.c.bf16 %v5412_v13, %v5412_v13  ;;  %v4228_v5 = vpop.f32.mrb[200].mxu1  ;;  %v4879_v1 = vpop.f32.mrb[202].mxu0 }
 0x36d   : > { %v5582_v45 = vadd.f32 %v5581_v47, %v5580_v24  ;;  %v5583_v41 = vsel %vm2909_vm5, %v5413_v30, 0.0  ;;  %v5814_v35 = vmul.f32 %v5413_v30, %v5413_v30  ;;  %v7493_v19 = vpack.c.bf16 %v5413_v30, %v5413_v30  ;;  %v4230_v60 = vpop.f32.mrb[201].mxu1  ;;  %v4881_v53 = vpop.f32.mrb[203].mxu0  ;;  %v12144_v24 = vld [vmem:[#allocation9_spill] sm:$0xff] }
 0x36e   : > { %v5974_v20 = vsel %vm2909_vm5, %v5813_v50, 0.0  ;;  %6717 = vst.msk [vmem:[%s10527_s21 + $0x88] sm:$0xf] %vm6682_vm6, %v7492_v46  ;;  %v4229_v22 = vadd.f32 %v4228_v5, %v12142_v7  ;;  %v4231_v40 = vpop.f32.mrb[202].mxu1  ;;  %v12146_v7 = vld [vmem:[#allocation135_spill] sm:$0xff] }
 0x36f   : > { %v5975_v21 = vadd.f32 %v5974_v20, %v5973_v59  ;;  %v5584_v42 = vadd.f32 %v5583_v41, %v5582_v45  ;;  %v5976_v9 = vsel %vm2909_vm5, %v5814_v35, 0.0  ;;  %6718 = vst.msk [vmem:[%s10527_s21 + $0x8c] sm:$0xf] %vm6682_vm6, %v7493_v19  ;;  %v4232_v32 = vadd.f32 %v4231_v40, %v12143_v23  ;;  %v4233_v51 = vpop.f32.mrb[203].mxu1  ;;  %5091 = vmatmul.mubr.bf16.gmra.mrb[52].mxu0 %v12144_v24  ;;  %v12148_v23 = vld [vmem:[#allocation78_spill] sm:$0xff] }
 0x370   : > { %v5279_v18 = vadd.f32 %v4876_v25, %v4229_v22  ;;  %7307 = vmatprep.mubr.msk.bf16.mxu0 %vm2909_vm5, %v12145_v36 }
 0x371   : > { %v5977_v57 = vadd.f32 %v5976_v9, %v5975_v21  ;;  %4443 = vmatmul.mubr.bf16.gmra.mrb[52].mxu1 %v12128_v43  ;;  %v5280_v55 = vadd.f32 %v4879_v1, %v4232_v32  ;;  %v12147_v21 = vld [vmem:[#allocation74_spill] sm:$0xff] }
 0x372   : > { %v5414_v2 = vadd.f32 %v10825_v4, %v5279_v18  ;;  %7207 = vmatprep.mubr.msk.bf16.mxu1 %vm2909_vm5, %v12129_v0  ;;  %v4884_v59 = vpop.f32.mrb[204].mxu0 }
 0x373   : > { %v5415_v10 = vadd.f32 %v10825_v4, %v5280_v55  ;;  %v4886_v43 = vpop.f32.mrb[205].mxu0 }
 0x374   : > { %v5585_v34 = vsel %vm2909_vm5, %v5414_v2, 0.0  ;;  %v5815_v13 = vmul.f32 %v5414_v2, %v5414_v2  ;;  %v7494_v30 = vpack.c.bf16 %v5414_v2, %v5414_v2  ;;  %v4236_v25 = vpop.f32.mrb[204].mxu1  ;;  %v4887_v45 = vpop.f32.mrb[206].mxu0 }
 0x375   : > { %v5586_v47 = vadd.f32 %v5585_v34, %v5584_v42  ;;  %v5587_v50 = vsel %vm2909_vm5, %v5415_v10, 0.0  ;;  %v5816_v46 = vmul.f32 %v5415_v10, %v5415_v10  ;;  %v7495_v5 = vpack.c.bf16 %v5415_v10, %v5415_v10  ;;  %v4238_v15 = vpop.f32.mrb[205].mxu1  ;;  %v4889_v19 = vpop.f32.mrb[207].mxu0 }
 0x376   : > { %v5978_v41 = vsel %vm2909_vm5, %v5815_v13, 0.0  ;;  %6719 = vst.msk [vmem:[%s10527_s21 + $0x90] sm:$0xf] %vm6682_vm6, %v7494_v30  ;;  %v4237_v0 = vadd.f32 %v4236_v25, %v10320_v54  ;;  %v4239_v35 = vpop.f32.mrb[206].mxu1 }
 0x377   : > { %v5979_v60 = vadd.f32 %v5978_v41, %v5977_v57  ;;  %v5588_v1 = vadd.f32 %v5587_v50, %v5586_v47  ;;  %v5980_v20 = vsel %vm2909_vm5, %v5816_v46, 0.0  ;;  %6720 = vst.msk [vmem:[%s10527_s21 + $0x94] sm:$0xf] %vm6682_vm6, %v7495_v5  ;;  %v4240_v22 = vadd.f32 %v4239_v35, %v12146_v7  ;;  %v4241_v40 = vpop.f32.mrb[207].mxu1  ;;  %5099 = vmatmul.mubr.bf16.gmra.mrb[56].mxu0 %v12147_v21  ;;  %v12150_v41 = vld [vmem:[#allocation137_spill] sm:$0xff]  ;;  %v12152_v7 = vld [vmem:[#allocation82_spill] sm:$0xff] }
 0x378   : > { %v5281_v53 = vadd.f32 %v4884_v59, %v4237_v0  ;;  %7308 = vmatprep.mubr.msk.bf16.mxu0 %vm2909_vm5, %v12148_v23 }
 0x379   : > { %v5981_v42 = vadd.f32 %v5980_v20, %v5979_v60  ;;  %4451 = vmatmul.mubr.bf16.gmra.mrb[56].mxu1 %v12132_v31  ;;  %v5282_v9 = vadd.f32 %v4887_v45, %v4240_v22  ;;  %v12151_v60 = vld [vmem:[#allocation77_spill] sm:$0xff] }
 0x37a   : > { %v5416_v54 = vadd.f32 %v10825_v4, %v5281_v53  ;;  %7208 = vmatprep.mubr.msk.bf16.mxu1 %vm2909_vm5, %v12133_v56  ;;  %v4892_v51 = vpop.f32.mrb[208].mxu0  ;;  %v12149_v56 = vld [vmem:[#allocation136_spill] sm:$0xff] }
 0x37b   : > { %v5417_v32 = vadd.f32 %v10825_v4, %v5282_v9  ;;  %v4894_v31 = vpop.f32.mrb[209].mxu0 }
 0x37c   : > { %v5589_v18 = vsel %vm2909_vm5, %v5416_v54, 0.0  ;;  %v5817_v57 = vmul.f32 %v5416_v54, %v5416_v54  ;;  %v7496_v55 = vpack.c.bf16 %v5416_v54, %v5416_v54  ;;  %v4244_v2 = vpop.f32.mrb[208].mxu1  ;;  %v4895_v25 = vpop.f32.mrb[210].mxu0 }
 0x37d   : > { %v5590_v10 = vadd.f32 %v5589_v18, %v5588_v1  ;;  %v5591_v59 = vsel %vm2909_vm5, %v5417_v32, 0.0  ;;  %v5818_v34 = vmul.f32 %v5417_v32, %v5417_v32  ;;  %v7497_v13 = vpack.c.bf16 %v5417_v32, %v5417_v32  ;;  %v4246_v30 = vpop.f32.mrb[209].mxu1  ;;  %v4897_v46 = vpop.f32.mrb[211].mxu0 }
 0x37e   : > { %v5982_v43 = vsel %vm2909_vm5, %v5817_v57, 0.0  ;;  %6721 = vst.msk [vmem:[%s10527_s21 + $0x98] sm:$0xf] %vm6682_vm6, %v7496_v55  ;;  %v4245_v47 = vadd.f32 %v4244_v2, %v12149_v56  ;;  %v4247_v50 = vpop.f32.mrb[210].mxu1 }
 0x37f   : > { %v5983_v5 = vadd.f32 %v5982_v43, %v5981_v42  ;;  %v5592_v15 = vadd.f32 %v5591_v59, %v5590_v10  ;;  %v5984_v45 = vsel %vm2909_vm5, %v5818_v34, 0.0  ;;  %6722 = vst.msk [vmem:[%s10527_s21 + $0x9c] sm:$0xf] %vm6682_vm6, %v7497_v13  ;;  %v4248_v0 = vadd.f32 %v4247_v50, %v12150_v41  ;;  %v4249_v35 = vpop.f32.mrb[211].mxu1  ;;  %5107 = vmatmul.mubr.bf16.gmra.mrb[60].mxu0 %v12151_v60  ;;  %v12153_v50 = vld [vmem:[#allocation80_spill] sm:$0xff] }
 0x380   : > { %v5283_v19 = vadd.f32 %v4892_v51, %v4245_v47  ;;  %7309 = vmatprep.mubr.msk.bf16.mxu0 %vm2909_vm5, %v12152_v7 }
 0x381   : > { %v5985_v1 = vadd.f32 %v5984_v45, %v5983_v5  ;;  %4459 = vmatmul.mubr.bf16.gmra.mrb[60].mxu1 %v12136_v17  ;;  %v5284_v20 = vadd.f32 %v4895_v25, %v4248_v0 }
 0x382   : > { %v5418_v22 = vadd.f32 %v10825_v4, %v5283_v19  ;;  %7209 = vmatprep.mubr.msk.bf16.mxu1 %vm2909_vm5, %v12137_v16  ;;  %v4900_v53 = vpop.f32.mrb[212].mxu0 }
 0x383   : > { %v5419_v40 = vadd.f32 %v10825_v4, %v5284_v20  ;;  %v4902_v17 = vpop.f32.mrb[213].mxu0 }
 0x384   : > { %v5593_v42 = vsel %vm2909_vm5, %v5418_v22, 0.0  ;;  %v5819_v9 = vmul.f32 %v5418_v22, %v5418_v22  ;;  %v7498_v54 = vpack.c.bf16 %v5418_v22, %v5418_v22  ;;  %v4252_v32 = vpop.f32.mrb[212].mxu1  ;;  %v4903_v31 = vpop.f32.mrb[214].mxu0 }
 0x385   : > { %v5594_v51 = vadd.f32 %v5593_v42, %v5592_v15  ;;  %v5595_v18 = vsel %vm2909_vm5, %v5419_v40, 0.0  ;;  %v5820_v57 = vmul.f32 %v5419_v40, %v5419_v40  ;;  %v7499_v55 = vpack.c.bf16 %v5419_v40, %v5419_v40  ;;  %v4254_v2 = vpop.f32.mrb[213].mxu1  ;;  %v4905_v34 = vpop.f32.mrb[215].mxu0  ;;  %v12154_v15 = vld [vmem:[#allocation83_spill] sm:$0xff] }
 0x386   : > { %v5986_v10 = vsel %vm2909_vm5, %v5819_v9, 0.0  ;;  %6723 = vst.msk [vmem:[%s10527_s21 + $0xa0] sm:$0xf] %vm6682_vm6, %v7498_v54  ;;  %v4253_v16 = vadd.f32 %v4252_v32, %v10348_v6  ;;  %v4255_v59 = vpop.f32.mrb[214].mxu1 }
 0x387   : > { %v5987_v13 = vadd.f32 %v5986_v10, %v5985_v1  ;;  %v5596_v30 = vadd.f32 %v5595_v18, %v5594_v51  ;;  %v5988_v25 = vsel %vm2909_vm5, %v5820_v57, 0.0  ;;  %6724 = vst.msk [vmem:[%s10527_s21 + $0xa4] sm:$0xf] %vm6682_vm6, %v7499_v55  ;;  %v4256_v43 = vadd.f32 %v4255_v59, %v10350_v8  ;;  %v4257_v56 = vpop.f32.mrb[215].mxu1  ;;  %5115 = vmatmul.mubr.bf16.gmra.mrb[64].mxu0 %v12153_v50  ;;  %v12156_v59 = vld [vmem:[#allocation86_spill] sm:$0xff] }
 0x388   : > { %v5285_v47 = vadd.f32 %v4900_v53, %v4253_v16  ;;  %7310 = vmatprep.mubr.msk.bf16.mxu0 %vm2909_vm5, %v12154_v15 }
 0x389   : > { %v5989_v46 = vadd.f32 %v5988_v25, %v5987_v13  ;;  %4467 = vmatmul.mubr.bf16.gmra.mrb[64].mxu1 %v12140_v62  ;;  %v5286_v5 = vadd.f32 %v4903_v31, %v4256_v43  ;;  %v12155_v31 = vld [vmem:[#allocation84_spill] sm:$0xff] }
 0x38a   : > { %v5420_v6 = vadd.f32 %v10825_v4, %v5285_v47  ;;  %7210 = vmatprep.mubr.msk.bf16.mxu1 %vm2909_vm5, %v12141_v27  ;;  %v4908_v8 = vpop.f32.mrb[216].mxu0 }
 0x38b   : > { %v5421_v45 = vadd.f32 %v10825_v4, %v5286_v5  ;;  %v4910_v62 = vpop.f32.mrb[217].mxu0 }
 0x38c   : > { %v5597_v41 = vsel %vm2909_vm5, %v5420_v6, 0.0  ;;  %v5821_v0 = vmul.f32 %v5420_v6, %v5420_v6  ;;  %v7500_v35 = vpack.c.bf16 %v5420_v6, %v5420_v6  ;;  %v4260_v19 = vpop.f32.mrb[216].mxu1  ;;  %v4911_v42 = vpop.f32.mrb[218].mxu0 }
 0x38d   : > { %v5598_v1 = vadd.f32 %v5597_v41, %v5596_v30  ;;  %v5599_v20 = vsel %vm2909_vm5, %v5421_v45, 0.0  ;;  %v5822_v22 = vmul.f32 %v5421_v45, %v5421_v45  ;;  %v7501_v40 = vpack.c.bf16 %v5421_v45, %v5421_v45  ;;  %v4262_v53 = vpop.f32.mrb[217].mxu1  ;;  %v4913_v32 = vpop.f32.mrb[219].mxu0 }
 0x38e   : > { %v5990_v9 = vsel %vm2909_vm5, %v5821_v0, 0.0  ;;  %6725 = vst.msk [vmem:[%s10527_s21 + $0xa8] sm:$0xf] %vm6682_vm6, %v7500_v35  ;;  %v4261_v27 = vadd.f32 %v4260_v19, %v10362_v52  ;;  %v4263_v54 = vpop.f32.mrb[218].mxu1 }
 0x38f   : > { %v5991_v17 = vadd.f32 %v5990_v9, %v5989_v46  ;;  %v5600_v51 = vadd.f32 %v5599_v20, %v5598_v1  ;;  %v5992_v18 = vsel %vm2909_vm5, %v5822_v22, 0.0  ;;  %6726 = vst.msk [vmem:[%s10527_s21 + $0xac] sm:$0xf] %vm6682_vm6, %v7501_v40  ;;  %v4264_v57 = vadd.f32 %v4263_v54, %v10364_v26  ;;  %v4265_v55 = vpop.f32.mrb[219].mxu1  ;;  %5123 = vmatmul.mubr.bf16.gmra.mrb[68].mxu0 %v12155_v31  ;;  %v12157_v40 = vld [vmem:[#allocation88_spill] sm:$0xff]  ;;  %v12158_v9 = vld [vmem:[#allocation89_spill] sm:$0xff] }
 0x390   : > { %v5287_v2 = vadd.f32 %v4908_v8, %v4261_v27  ;;  %7311 = vmatprep.mubr.msk.bf16.mxu0 %vm2909_vm5, %v12156_v59 }
 0x391   : > { %v5993_v10 = vadd.f32 %v5992_v18, %v5991_v17  ;;  %4475 = vmatmul.mubr.bf16.gmra.mrb[68].mxu1 %v12144_v24  ;;  %v5288_v16 = vadd.f32 %v4911_v42, %v4264_v57 }
 0x392   : > { %v5422_v52 = vadd.f32 %v10825_v4, %v5287_v2  ;;  %7211 = vmatprep.mubr.msk.bf16.mxu1 %vm2909_vm5, %v12145_v36  ;;  %v4916_v26 = vpop.f32.mrb[220].mxu0 }
 0x393   : > { %v5423_v34 = vadd.f32 %v10825_v4, %v5288_v16  ;;  %v4918_v24 = vpop.f32.mrb[221].mxu0 }
 0x394   : > { %v5601_v13 = vsel %vm2909_vm5, %v5422_v52, 0.0  ;;  %v5823_v30 = vmul.f32 %v5422_v52, %v5422_v52  ;;  %v7502_v25 = vpack.c.bf16 %v5422_v52, %v5422_v52  ;;  %v4268_v43 = vpop.f32.mrb[220].mxu1  ;;  %v4919_v45 = vpop.f32.mrb[222].mxu0 }
 0x395   : > { %v5602_v56 = vadd.f32 %v5601_v13, %v5600_v51  ;;  %v5603_v47 = vsel %vm2909_vm5, %v5423_v34, 0.0  ;;  %v5824_v46 = vmul.f32 %v5423_v34, %v5423_v34  ;;  %v7503_v5 = vpack.c.bf16 %v5423_v34, %v5423_v34  ;;  %v4270_v6 = vpop.f32.mrb[221].mxu1  ;;  %v4921_v0 = vpop.f32.mrb[223].mxu0 }
 0x396   : > { %v5994_v8 = vsel %vm2909_vm5, %v5823_v30, 0.0  ;;  %6727 = vst.msk [vmem:[%s10527_s21 + $0xb0] sm:$0xf] %vm6682_vm6, %v7502_v25  ;;  %v4269_v36 = vadd.f32 %v4268_v43, %v10376_v11  ;;  %v4271_v41 = vpop.f32.mrb[222].mxu1  ;;  %v12160_v6 = vld [vmem:[#allocation91_spill] sm:$0xff] }
 0x397   : > { %v5995_v35 = vadd.f32 %v5994_v8, %v5993_v10  ;;  %v5604_v19 = vadd.f32 %v5603_v47, %v5602_v56  ;;  %v5996_v62 = vsel %vm2909_vm5, %v5824_v46, 0.0  ;;  %6728 = vst.msk [vmem:[%s10527_s21 + $0xb4] sm:$0xf] %vm6682_vm6, %v7503_v5  ;;  %v4272_v1 = vadd.f32 %v4271_v41, %v10378_v28  ;;  %v4273_v20 = vpop.f32.mrb[223].mxu1  ;;  %5131 = vmatmul.mubr.bf16.gmra.mrb[72].mxu0 %v12157_v40  ;;  %v12159_v47 = vld [vmem:[#allocation90_spill] sm:$0xff] }
 0x398   : > { %v5289_v22 = vadd.f32 %v4916_v26, %v4269_v36  ;;  %7312 = vmatprep.mubr.msk.bf16.mxu0 %vm2909_vm5, %v12158_v9 }
 0x399   : > { %v5997_v53 = vadd.f32 %v5996_v62, %v5995_v35  ;;  %4483 = vmatmul.mubr.bf16.gmra.mrb[72].mxu1 %v12147_v21  ;;  %v5290_v42 = vadd.f32 %v4919_v45, %v4272_v1 }
 0x39a   : > { %v5424_v11 = vadd.f32 %v10825_v4, %v5289_v22  ;;  %7212 = vmatprep.mubr.msk.bf16.mxu1 %vm2909_vm5, %v12148_v23  ;;  %v4924_v28 = vpop.f32.mrb[224].mxu0 }
 0x39b   : > { %v5425_v27 = vadd.f32 %v10825_v4, %v5290_v42  ;;  %v4926_v21 = vpop.f32.mrb[225].mxu0 }
 0x39c   : > { %v5605_v54 = vsel %vm2909_vm5, %v5424_v11, 0.0  ;;  %v5825_v32 = vmul.f32 %v5424_v11, %v5424_v11  ;;  %v7504_v17 = vpack.c.bf16 %v5424_v11, %v5424_v11  ;;  %v4276_v51 = vpop.f32.mrb[224].mxu1  ;;  %v4927_v16 = vpop.f32.mrb[226].mxu0  ;;  %v12161_v21 = vld [vmem:[#allocation94_spill] sm:$0xff] }
 0x39d   : > { %v5606_v18 = vadd.f32 %v5605_v54, %v5604_v19  ;;  %v5607_v57 = vsel %vm2909_vm5, %v5425_v27, 0.0  ;;  %v5826_v55 = vmul.f32 %v5425_v27, %v5425_v27  ;;  %v7505_v2 = vpack.c.bf16 %v5425_v27, %v5425_v27  ;;  %v4278_v10 = vpop.f32.mrb[225].mxu1  ;;  %v4929_v26 = vpop.f32.mrb[227].mxu0 }
 0x39e   : > { %v5998_v52 = vsel %vm2909_vm5, %v5825_v32, 0.0  ;;  %6729 = vst.msk [vmem:[%s10527_s21 + $0xb8] sm:$0xf] %vm6682_vm6, %v7504_v17  ;;  %v4277_v23 = vadd.f32 %v4276_v51, %v10390_v14  ;;  %v4279_v34 = vpop.f32.mrb[226].mxu1 }
 0x39f   : > { %v5999_v13 = vadd.f32 %v5998_v52, %v5997_v53  ;;  %v5608_v30 = vadd.f32 %v5607_v57, %v5606_v18  ;;  %v6000_v25 = vsel %vm2909_vm5, %v5826_v55, 0.0  ;;  %6730 = vst.msk [vmem:[%s10527_s21 + $0xbc] sm:$0xf] %vm6682_vm6, %v7505_v2  ;;  %v4280_v43 = vadd.f32 %v4279_v34, %v10392_v58  ;;  %v4281_v24 = vpop.f32.mrb[227].mxu1  ;;  %5139 = vmatmul.mubr.bf16.gmra.mrb[76].mxu0 %v12159_v47  ;;  %v12162_v55 = vld [vmem:[#allocation95_spill] sm:$0xff] }
 0x3a0   : > { %v5291_v56 = vadd.f32 %v4924_v28, %v4277_v23  ;;  %7313 = vmatprep.mubr.msk.bf16.mxu0 %vm2909_vm5, %v12160_v6 }
 0x3a1   : > { %v6001_v46 = vadd.f32 %v6000_v25, %v5999_v13  ;;  %4491 = vmatmul.mubr.bf16.gmra.mrb[76].mxu1 %v12151_v60  ;;  %v5292_v5 = vadd.f32 %v4927_v16, %v4280_v43 }
 0x3a2   : > { %v5426_v14 = vadd.f32 %v10825_v4, %v5291_v56  ;;  %7213 = vmatprep.mubr.msk.bf16.mxu1 %vm2909_vm5, %v12152_v7  ;;  %v4932_v58 = vpop.f32.mrb[228].mxu0 }
 0x3a3   : > { %v5427_v45 = vadd.f32 %v10825_v4, %v5292_v5  ;;  %v4934_v60 = vpop.f32.mrb[229].mxu0 }
 0x3a4   : > { %v5609_v8 = vsel %vm2909_vm5, %v5426_v14, 0.0  ;;  %v5827_v36 = vmul.f32 %v5426_v14, %v5426_v14  ;;  %v7506_v41 = vpack.c.bf16 %v5426_v14, %v5426_v14  ;;  %v4284_v0 = vpop.f32.mrb[228].mxu1  ;;  %v4935_v22 = vpop.f32.mrb[230].mxu0 }
 0x3a5   : > { %v5610_v35 = vadd.f32 %v5609_v8, %v5608_v30  ;;  %v5611_v19 = vsel %vm2909_vm5, %v5427_v45, 0.0  ;;  %v5828_v62 = vmul.f32 %v5427_v45, %v5427_v45  ;;  %v7507_v1 = vpack.c.bf16 %v5427_v45, %v5427_v45  ;;  %v4286_v20 = vpop.f32.mrb[229].mxu1  ;;  %v4937_v11 = vpop.f32.mrb[231].mxu0 }
 0x3a6   : > { %v6002_v53 = vsel %vm2909_vm5, %v5827_v36, 0.0  ;;  %6731 = vst.msk [vmem:[%s10527_s21 + $0xc0] sm:$0xf] %vm6682_vm6, %v7506_v41  ;;  %v4285_v7 = vadd.f32 %v4284_v0, %v10404_v29  ;;  %v4287_v42 = vpop.f32.mrb[230].mxu1  ;;  %v12163_v41 = vld [vmem:[#allocation55_spill] sm:$0xff] }
 0x3a7   : > { %v6003_v27 = vadd.f32 %v6002_v53, %v6001_v46  ;;  %v5612_v28 = vadd.f32 %v5611_v19, %v5610_v35  ;;  %v6004_v54 = vsel %vm2909_vm5, %v5828_v62, 0.0  ;;  %6732 = vst.msk [vmem:[%s10527_s21 + $0xc4] sm:$0xf] %vm6682_vm6, %v7507_v1  ;;  %v4288_v32 = vadd.f32 %v4287_v42, %v10406_v37  ;;  %v4289_v17 = vpop.f32.mrb[231].mxu1  ;;  %5147 = vmatmul.mubr.bf16.gmra.mrb[80].mxu0 %v12161_v21  ;;  %v12164_v35 = vld [vmem:[#allocation97_spill] sm:$0xff] }
 0x3a8   : > { %v5293_v51 = vadd.f32 %v4932_v58, %v4285_v7  ;;  %7314 = vmatprep.mubr.msk.bf16.mxu0 %vm2909_vm5, %v12162_v55 }
 0x3a9   : > { %v6005_v18 = vadd.f32 %v6004_v54, %v6003_v27  ;;  %4499 = vmatmul.mubr.bf16.gmra.mrb[80].mxu1 %v12153_v50  ;;  %v5294_v57 = vadd.f32 %v4935_v22, %v4288_v32 }
 0x3aa   : > { %v5428_v29 = vadd.f32 %v10825_v4, %v5293_v51  ;;  %7214 = vmatprep.mubr.msk.bf16.mxu1 %vm2909_vm5, %v12154_v15  ;;  %v4940_v37 = vpop.f32.mrb[232].mxu0 }
 0x3ab   : > { %v5429_v2 = vadd.f32 %v10825_v4, %v5294_v57  ;;  %v4942_v50 = vpop.f32.mrb[233].mxu0 }
 0x3ac   : > { %v5613_v10 = vsel %vm2909_vm5, %v5428_v29, 0.0  ;;  %v5829_v16 = vmul.f32 %v5428_v29, %v5428_v29  ;;  %v7508_v52 = vpack.c.bf16 %v5428_v29, %v5428_v29  ;;  %v4292_v23 = vpop.f32.mrb[232].mxu1  ;;  %v4943_v43 = vpop.f32.mrb[234].mxu0 }
 0x3ad   : > { %v5614_v34 = vadd.f32 %v5613_v10, %v5612_v28  ;;  %v5615_v26 = vsel %vm2909_vm5, %v5429_v2, 0.0  ;;  %v5830_v13 = vmul.f32 %v5429_v2, %v5429_v2  ;;  %v7509_v30 = vpack.c.bf16 %v5429_v2, %v5429_v2  ;;  %v4294_v25 = vpop.f32.mrb[233].mxu1  ;;  %v4945_v46 = vpop.f32.mrb[235].mxu0  ;;  %v12165_v10 = vld [vmem:[#allocation98_spill] sm:$0xff] }
 0x3ae   : > { %v6006_v24 = vsel %vm2909_vm5, %v5829_v16, 0.0  ;;  %6733 = vst.msk [vmem:[%s10527_s21 + $0xc8] sm:$0xf] %vm6682_vm6, %v7508_v52  ;;  %v4293_v15 = vadd.f32 %v4292_v23, %v10418_v33  ;;  %v4295_v56 = vpop.f32.mrb[234].mxu1  ;;  %v12166_v23 = vld [vmem:[#allocation99_spill] sm:$0xff] }
 0x3af   : > { %v6007_v5 = vadd.f32 %v6006_v24, %v6005_v18  ;;  %v5616_v14 = vadd.f32 %v5615_v26, %v5614_v34  ;;  %v6008_v45 = vsel %vm2909_vm5, %v5830_v13, 0.0  ;;  %6734 = vst.msk [vmem:[%s10527_s21 + $0xcc] sm:$0xf] %vm6682_vm6, %v7509_v30  ;;  %v4296_v58 = vadd.f32 %v4295_v56, %v10420_v39  ;;  %v4297_v8 = vpop.f32.mrb[235].mxu1  ;;  %5155 = vmatmul.mubr.bf16.gmra.mrb[84].mxu0 %v12163_v41 }
 0x3b0   : > { %v5295_v36 = vadd.f32 %v4940_v37, %v4293_v15  ;;  %7315 = vmatprep.mubr.msk.bf16.mxu0 %vm2909_vm5, %v12164_v35 }
 0x3b1   : > { %v6009_v0 = vadd.f32 %v6008_v45, %v6007_v5  ;;  %4507 = vmatmul.mubr.bf16.gmra.mrb[84].mxu1 %v12155_v31  ;;  %v5296_v60 = vadd.f32 %v4943_v43, %v4296_v58 }
 0x3b2   : > { %v5430_v33 = vadd.f32 %v10825_v4, %v5295_v36  ;;  %7215 = vmatprep.mubr.msk.bf16.mxu1 %vm2909_vm5, %v12156_v59  ;;  %v4948_v39 = vpop.f32.mrb[236].mxu0 }
 0x3b3   : > { %v5431_v19 = vadd.f32 %v10825_v4, %v5296_v60  ;;  %v4950_v31 = vpop.f32.mrb[237].mxu0 }
 0x3b4   : > { %v5617_v62 = vsel %vm2909_vm5, %v5430_v33, 0.0  ;;  %v5831_v1 = vmul.f32 %v5430_v33, %v5430_v33  ;;  %v7510_v20 = vpack.c.bf16 %v5430_v33, %v5430_v33  ;;  %v4300_v22 = vpop.f32.mrb[236].mxu1  ;;  %v4951_v28 = vpop.f32.mrb[238].mxu0 }
 0x3b5   : > { %v5618_v53 = vadd.f32 %v5617_v62, %v5616_v14  ;;  %v5619_v7 = vsel %vm2909_vm5, %v5431_v19, 0.0  ;;  %v5832_v42 = vmul.f32 %v5431_v19, %v5431_v19  ;;  %v7511_v11 = vpack.c.bf16 %v5431_v19, %v5431_v19  ;;  %v4302_v27 = vpop.f32.mrb[237].mxu1  ;;  %v4953_v17 = vpop.f32.mrb[239].mxu0  ;;  %v12167_v19 = vld [vmem:[#allocation101_spill] sm:$0xff] }
 0x3b6   : > { %v6010_v54 = vsel %vm2909_vm5, %v5831_v1, 0.0  ;;  %6735 = vst.msk [vmem:[%s10527_s21 + $0xd0] sm:$0xf] %vm6682_vm6, %v7510_v20  ;;  %v4301_v59 = vadd.f32 %v4300_v22, %v10432_v61  ;;  %v4303_v32 = vpop.f32.mrb[238].mxu1  ;;  %v12168_v1 = vld [vmem:[#allocation102_spill] sm:$0xff] }
 0x3b7   : > { %v6011_v51 = vadd.f32 %v6010_v54, %v6009_v0  ;;  %v5620_v18 = vadd.f32 %v5619_v7, %v5618_v53  ;;  %v6012_v57 = vsel %vm2909_vm5, %v5832_v42, 0.0  ;;  %6736 = vst.msk [vmem:[%s10527_s21 + $0xd4] sm:$0xf] %vm6682_vm6, %v7511_v11  ;;  %v4304_v29 = vadd.f32 %v4303_v32, %v10434_v48  ;;  %v4305_v2 = vpop.f32.mrb[239].mxu1  ;;  %5163 = vmatmul.mubr.bf16.gmra.mrb[88].mxu0 %v12165_v10 }
 0x3b8   : > { %v5297_v37 = vadd.f32 %v4948_v39, %v4301_v59  ;;  %7316 = vmatprep.mubr.msk.bf16.mxu0 %vm2909_vm5, %v12166_v23  ;;  %v12169_v2 = vld [vmem:[#allocation154_spill] sm:$0xff] }
 0x3b9   : > { %v6013_v16 = vadd.f32 %v6012_v57, %v6011_v51  ;;  %4515 = vmatmul.mubr.bf16.gmra.mrb[88].mxu1 %v12157_v40  ;;  %v5298_v52 = vadd.f32 %v4951_v28, %v4304_v29 }
 0x3ba   : > { %v5432_v61 = vadd.f32 %v10825_v4, %v5297_v37  ;;  %7216 = vmatprep.mubr.msk.bf16.mxu1 %vm2909_vm5, %v12158_v9  ;;  %v4956_v48 = vpop.f32.mrb[240].mxu0 }
 0x3bb   : > { %v5433_v50 = vadd.f32 %v10825_v4, %v5298_v52  ;;  %v4958_v40 = vpop.f32.mrb[241].mxu0 }
 0x3bc   : > { %v5621_v34 = vsel %vm2909_vm5, %v5432_v61, 0.0  ;;  %v5833_v26 = vmul.f32 %v5432_v61, %v5432_v61  ;;  %v7512_v13 = vpack.c.bf16 %v5432_v61, %v5432_v61  ;;  %v4308_v30 = vpop.f32.mrb[240].mxu1  ;;  %v4959_v46 = vpop.f32.mrb[242].mxu0  ;;  %v12170_v61 = vld [vmem:[#allocation105_spill] sm:$0xff] }
 0x3bd   : > { %v5622_v25 = vadd.f32 %v5621_v34, %v5620_v18  ;;  %v5623_v43 = vsel %vm2909_vm5, %v5433_v50, 0.0  ;;  %v5834_v24 = vmul.f32 %v5433_v50, %v5433_v50  ;;  %v7513_v15 = vpack.c.bf16 %v5433_v50, %v5433_v50  ;;  %v4310_v56 = vpop.f32.mrb[241].mxu1  ;;  %v4961_v45 = vpop.f32.mrb[243].mxu0  ;;  %v12171_v34 = vld [vmem:[#allocation63_spill] sm:$0xff] }
 0x3be   : > { %v6014_v5 = vsel %vm2909_vm5, %v5833_v26, 0.0  ;;  %6737 = vst.msk [vmem:[%s10527_s21 + $0xd8] sm:$0xf] %vm6682_vm6, %v7512_v13  ;;  %v4309_v9 = vadd.f32 %v4308_v30, %v10454_v49  ;;  %v4311_v14 = vpop.f32.mrb[242].mxu1 }
 0x3bf   : > { %v6015_v58 = vadd.f32 %v6014_v5, %v6013_v16  ;;  %v5624_v8 = vadd.f32 %v5623_v43, %v5622_v25  ;;  %v6016_v36 = vsel %vm2909_vm5, %v5834_v24, 0.0  ;;  %6738 = vst.msk [vmem:[%s10527_s21 + $0xdc] sm:$0xf] %vm6682_vm6, %v7513_v15  ;;  %v4312_v0 = vadd.f32 %v4311_v14, %v10458_v38  ;;  %v4313_v60 = vpop.f32.mrb[243].mxu1  ;;  %5171 = vmatmul.mubr.bf16.gmra.mrb[92].mxu0 %v12167_v19 }
 0x3c0   : > { %v5299_v33 = vadd.f32 %v4956_v48, %v4309_v9  ;;  %7317 = vmatprep.mubr.msk.bf16.mxu0 %vm2909_vm5, %v12168_v1 }
 0x3c1   : > { %v6017_v39 = vadd.f32 %v6016_v36, %v6015_v58  ;;  %4523 = vmatmul.mubr.bf16.gmra.mrb[92].mxu1 %v12159_v47  ;;  %v5300_v62 = vadd.f32 %v4959_v46, %v4312_v0 }
 0x3c2   : > { %v5434_v49 = vadd.f32 %v10825_v4, %v5299_v33  ;;  %7217 = vmatprep.mubr.msk.bf16.mxu1 %vm2909_vm5, %v12160_v6  ;;  %v4964_v38 = vpop.f32.mrb[244].mxu0  ;;  %v12173_v33 = vld [vmem:[#allocation160_spill] sm:$0xff] }
 0x3c3   : > { %v5435_v20 = vadd.f32 %v10825_v4, %v5300_v62  ;;  %v4966_v47 = vpop.f32.mrb[245].mxu0 }
 0x3c4   : > { %v5625_v22 = vsel %vm2909_vm5, %v5434_v49, 0.0  ;;  %v5835_v31 = vmul.f32 %v5434_v49, %v5434_v49  ;;  %v7514_v53 = vpack.c.bf16 %v5434_v49, %v5434_v49  ;;  %v4316_v7 = vpop.f32.mrb[244].mxu1  ;;  %v4967_v59 = vpop.f32.mrb[246].mxu0 }
 0x3c5   : > { %v5626_v42 = vadd.f32 %v5625_v22, %v5624_v8  ;;  %v5627_v11 = vsel %vm2909_vm5, %v5435_v20, 0.0  ;;  %v5836_v27 = vmul.f32 %v5435_v20, %v5435_v20  ;;  %v7515_v28 = vpack.c.bf16 %v5435_v20, %v5435_v20  ;;  %v4318_v54 = vpop.f32.mrb[245].mxu1  ;;  %v4969_v51 = vpop.f32.mrb[247].mxu0  ;;  %v12174_v20 = vld [vmem:[#allocation70_spill] sm:$0xff] }
 0x3c6   : > { %v6018_v32 = vsel %vm2909_vm5, %v5835_v31, 0.0  ;;  %6739 = vst.msk [vmem:[%s10527_s21 + $0xe0] sm:$0xf] %vm6682_vm6, %v7514_v53  ;;  %v4317_v6 = vadd.f32 %v4316_v7, %v10466_v12  ;;  %v4319_v17 = vpop.f32.mrb[246].mxu1  ;;  %v12175_v31 = vld [vmem:[#allocation106_spill] sm:$0xff] }
 0x3c7   : > { %v6019_v18 = vadd.f32 %v6018_v32, %v6017_v39  ;;  %v5628_v57 = vadd.f32 %v5627_v11, %v5626_v42  ;;  %v6020_v29 = vsel %vm2909_vm5, %v5836_v27, 0.0  ;;  %6740 = vst.msk [vmem:[%s10527_s21 + $0xe4] sm:$0xf] %vm6682_vm6, %v7515_v28  ;;  %v4320_v37 = vadd.f32 %v4319_v17, %v12169_v2  ;;  %v4321_v16 = vpop.f32.mrb[247].mxu1  ;;  %5179 = vmatmul.mubr.bf16.gmra.mrb[96].mxu0 %v12170_v61 }
 0x3c8   : > { %v5301_v52 = vadd.f32 %v4964_v38, %v4317_v6  ;;  %7318 = vmatprep.mubr.msk.bf16.mxu0 %vm2909_vm5, %v12171_v34 }
 0x3c9   : > { %v6021_v50 = vadd.f32 %v6020_v29, %v6019_v18  ;;  %4531 = vmatmul.mubr.bf16.gmra.mrb[96].mxu1 %v12161_v21  ;;  %v5302_v48 = vadd.f32 %v4967_v59, %v4320_v37 }
 0x3ca   : > { %v5436_v12 = vadd.f32 %v10825_v4, %v5301_v52  ;;  %7218 = vmatprep.mubr.msk.bf16.mxu1 %vm2909_vm5, %v12162_v55  ;;  %v4972_v13 = vpop.f32.mrb[248].mxu0  ;;  %v12172_v55 = vld [vmem:[#allocation158_spill] sm:$0xff] }
 0x3cb   : > { %v5437_v26 = vadd.f32 %v10825_v4, %v5302_v48  ;;  %v4974_v21 = vpop.f32.mrb[249].mxu0  ;;  %v12177_v52 = vld [vmem:[#allocation162_spill] sm:$0xff] }
 0x3cc   : > { %v5629_v30 = vsel %vm2909_vm5, %v5436_v12, 0.0  ;;  %v5837_v40 = vmul.f32 %v5436_v12, %v5436_v12  ;;  %v7516_v25 = vpack.c.bf16 %v5436_v12, %v5436_v12  ;;  %v4324_v43 = vpop.f32.mrb[248].mxu1  ;;  %v4975_v9 = vpop.f32.mrb[250].mxu0 }
 0x3cd   : > { %v5630_v24 = vadd.f32 %v5629_v30, %v5628_v57  ;;  %v5631_v15 = vsel %vm2909_vm5, %v5437_v26, 0.0  ;;  %v5838_v56 = vmul.f32 %v5437_v26, %v5437_v26  ;;  %v7517_v46 = vpack.c.bf16 %v5437_v26, %v5437_v26  ;;  %v4326_v5 = vpop.f32.mrb[249].mxu1  ;;  %v4977_v8 = vpop.f32.mrb[251].mxu0  ;;  %v12178_v26 = vld [vmem:[#allocation110_spill] sm:$0xff] }
 0x3ce   : > { %v6022_v14 = vsel %vm2909_vm5, %v5837_v40, 0.0  ;;  %6741 = vst.msk [vmem:[%s10527_s21 + $0xe8] sm:$0xf] %vm6682_vm6, %v7516_v25  ;;  %v4325_v45 = vadd.f32 %v4324_v43, %v12172_v55  ;;  %v4327_v58 = vpop.f32.mrb[250].mxu1  ;;  %v12179_v40 = vld [vmem:[#allocation108_spill] sm:$0xff] }
 0x3cf   : > { %v6023_v36 = vadd.f32 %v6022_v14, %v6021_v50  ;;  %v5632_v0 = vadd.f32 %v5631_v15, %v5630_v24  ;;  %v6024_v60 = vsel %vm2909_vm5, %v5838_v56, 0.0  ;;  %6742 = vst.msk [vmem:[%s10527_s21 + $0xec] sm:$0xf] %vm6682_vm6, %v7517_v46  ;;  %v4328_v39 = vadd.f32 %v4327_v58, %v12173_v33  ;;  %v4329_v62 = vpop.f32.mrb[251].mxu1  ;;  %5187 = vmatmul.mubr.bf16.gmra.mrb[100].mxu0 %v12174_v20  ;;  %v11118_v25 = vld [vmem:[%s11587_s4] ss:$0 sm:$0xff] }
 0x3d0   : > { %v5303_v49 = vadd.f32 %v4972_v13, %v4325_v45  ;;  %7319 = vmatprep.mubr.msk.bf16.mxu0 %vm2909_vm5, %v12175_v31 }
 0x3d1   : > { %v6025_v38 = vadd.f32 %v6024_v60, %v6023_v36  ;;  %4539 = vmatmul.mubr.bf16.gmra.mrb[100].mxu1 %v12163_v41  ;;  %v5304_v22 = vadd.f32 %v4975_v9, %v4328_v39 }
 0x3d2   : > { %v5438_v53 = vadd.f32 %v10825_v4, %v5303_v49  ;;  %7219 = vmatprep.mubr.msk.bf16.mxu1 %vm2909_vm5, %v12164_v35  ;;  %v4980_v47 = vpop.f32.mrb[252].mxu0 }
 0x3d3   : > { %v5439_v7 = vadd.f32 %v10825_v4, %v5304_v22  ;;  %v4982_v41 = vpop.f32.mrb[253].mxu0  ;;  %v12176_v4 = vld [vmem:[#allocation161_spill] sm:$0xff] }
 0x3d4   : > { %v5633_v42 = vsel %vm2909_vm5, %v5438_v53, 0.0  ;;  %v5839_v11 = vmul.f32 %v5438_v53, %v5438_v53  ;;  %v7518_v27 = vpack.c.bf16 %v5438_v53, %v5438_v53  ;;  %v4332_v28 = vpop.f32.mrb[252].mxu1  ;;  %v4983_v51 = vpop.f32.mrb[254].mxu0 }
 0x3d5   : > { %v5634_v54 = vadd.f32 %v5633_v42, %v5632_v0  ;;  %v5635_v59 = vsel %vm2909_vm5, %v5439_v7, 0.0  ;;  %v5840_v32 = vmul.f32 %v5439_v7, %v5439_v7  ;;  %v7519_v6 = vpack.c.bf16 %v5439_v7, %v5439_v7  ;;  %v4334_v17 = vpop.f32.mrb[253].mxu1  ;;  %v4985_v29 = vpop.f32.mrb[255].mxu0 }
 0x3d6   : > { %v6026_v18 = vsel %vm2909_vm5, %v5839_v11, 0.0  ;;  %6743 = vst.msk [vmem:[%s10527_s21 + $0xf0] sm:$0xf] %vm6682_vm6, %v7518_v27  ;;  %v4333_v35 = vadd.f32 %v4332_v28, %v12176_v4  ;;  %v4335_v57 = vpop.f32.mrb[254].mxu1  ;;  %v12183_v27 = vld [vmem:[#allocation113_spill] sm:$0xff] }
 0x3d7   : > { %v6027_v2 = vadd.f32 %v6026_v18, %v6025_v38  ;;  %v5636_v37 = vadd.f32 %v5635_v59, %v5634_v54  ;;  %v6028_v16 = vsel %vm2909_vm5, %v5840_v32, 0.0  ;;  %6744 = vst.msk [vmem:[%s10527_s21 + $0xf4] sm:$0xf] %vm6682_vm6, %v7519_v6  ;;  %v4336_v50 = vadd.f32 %v4335_v57, %v12177_v52  ;;  %v4337_v48 = vpop.f32.mrb[255].mxu1  ;;  %5195 = vmatmul.mubr.bf16.gmra.mrb[104].mxu0 %v12178_v26  ;;  %v12181_v38 = vld [vmem:[#allocation81_spill] sm:$0xff] }
 0x3d8   : > { %v5305_v12 = vadd.f32 %v4980_v47, %v4333_v35  ;;  %7320 = vmatprep.mubr.msk.bf16.mxu0 %vm2909_vm5, %v12179_v40  ;;  %v12182_v47 = vld [vmem:[#allocation17_spill] sm:$0xff] }
 0x3d9   : > { %v6029_v13 = vadd.f32 %v6028_v16, %v6027_v2  ;;  %4547 = vmatmul.mubr.bf16.gmra.mrb[104].mxu1 %v12165_v10  ;;  %v5306_v30 = vadd.f32 %v4983_v51, %v4336_v50 }
 0x3da   : > { %v5440_v43 = vadd.f32 %v11118_v25, %v5305_v12  ;;  %7220 = vmatprep.mubr.msk.bf16.mxu1 %vm2909_vm5, %v12166_v23  ;;  %v4988_v24 = vpop.f32.mrb[0].mxu0  ;;  %v12180_v23 = vld [vmem:[#allocation79_spill] sm:$0xff] }
 0x3db   : > { %v5441_v21 = vadd.f32 %v11118_v25, %v5306_v30  ;;  %v4990_v5 = vpop.f32.mrb[1].mxu0 }
 0x3dc   : > { %v5637_v10 = vsel %vm2909_vm5, %v5440_v43, 0.0  ;;  %v5841_v15 = vmul.f32 %v5440_v43, %v5440_v43  ;;  %v7520_v56 = vpack.c.bf16 %v5440_v43, %v5440_v43  ;;  %v4340_v46 = vpop.f32.mrb[0].mxu1  ;;  %v4991_v8 = vpop.f32.mrb[2].mxu0  ;;  %v2904_v5 = vrot.slane %v10621_v3, 1 }
 0x3dd   : > { %v5638_v9 = vadd.f32 %v5637_v10, %v5636_v37  ;;  %v5639_v14 = vsel %vm2909_vm5, %v5441_v21, 0.0  ;;  %v5842_v55 = vmul.f32 %v5441_v21, %v5441_v21  ;;  %v7521_v45 = vpack.c.bf16 %v5441_v21, %v5441_v21  ;;  %v4342_v58 = vpop.f32.mrb[1].mxu1  ;;  %v4993_v33 = vpop.f32.mrb[3].mxu0 }
 0x3de   : > { %v6030_v36 = vsel %vm2909_vm5, %v5841_v15, 0.0  ;;  %6745 = vst.msk [vmem:[%s10527_s21 + $0xf8] sm:$0xf] %vm6682_vm6, %v7520_v56  ;;  %v4341_v0 = vadd.f32 %v4340_v46, %v12180_v23  ;;  %v4343_v60 = vpop.f32.mrb[2].mxu1  ;;  %v12187_v56 = vld [vmem:[#allocation119_spill] sm:$0xff] }
 0x3df   : > { %v6031_v39 = vadd.f32 %v6030_v36, %v6029_v13  ;;  %v5640_v62 = vadd.f32 %v5639_v14, %v5638_v9  ;;  %v6032_v49 = vsel %vm2909_vm5, %v5842_v55, 0.0  ;;  %6746 = vst.msk [vmem:[%s10527_s21 + $0xfc] sm:$0xf] %vm6682_vm6, %v7521_v45  ;;  %v4344_v22 = vadd.f32 %v4343_v60, %v12181_v38  ;;  %v4345_v53 = vpop.f32.mrb[3].mxu1  ;;  %5203 = vmatmul.mubr.bf16.gmra.mrb[108].mxu0 %v12182_v47  ;;  %v12185_v13 = vld [vmem:[#allocation87_spill] sm:$0xff] }
 0x3e0   : > { %v5307_v7 = vadd.f32 %v4988_v24, %v4341_v0  ;;  %7321 = vmatprep.mubr.msk.bf16.mxu0 %vm2909_vm5, %v12183_v27  ;;  %v12186_v24 = vld [vmem:[#allocation121_spill] sm:$0xff]  ;;  %v2905_v9 = vrot.slane %v10631_v44, 1 }
 0x3e1   : > { %v6033_v42 = vadd.f32 %v6032_v49, %v6031_v39  ;;  %4555 = vmatmul.mubr.bf16.gmra.mrb[108].mxu1 %v12167_v19  ;;  %v5308_v11 = vadd.f32 %v4991_v8, %v4344_v22  ;;  %v12188_v49 = vld [vmem:[#allocation92_spill] sm:$0xff] }
 0x3e2   : > { %v5442_v28 = vadd.f32 %v11118_v25, %v5307_v7  ;;  %7221 = vmatprep.mubr.msk.bf16.mxu1 %vm2909_vm5, %v12168_v1  ;;  %v4996_v54 = vpop.f32.mrb[4].mxu0  ;;  %v12184_v1 = vld [vmem:[#allocation85_spill] sm:$0xff]  ;;  %v2906_v7 = vsel %vm2738_vm4, %v2904_v5, %v2905_v9 }
 0x3e3   : > { %v5443_v41 = vadd.f32 %v11118_v25, %v5308_v11  ;;  %v4998_v19 = vpop.f32.mrb[5].mxu0 }
 0x3e4   : > { %v5641_v59 = vsel %vm2909_vm5, %v5442_v28, 0.0  ;;  %v5843_v32 = vmul.f32 %v5442_v28, %v5442_v28  ;;  %v7522_v6 = vpack.c.bf16 %v5442_v28, %v5442_v28  ;;  %v4348_v17 = vpop.f32.mrb[4].mxu1  ;;  %v4999_v29 = vpop.f32.mrb[6].mxu0  ;;  %v12189_v28 = vld [vmem:[#allocation93_spill] sm:$0xff] }
 0x3e5   : > { %v5642_v51 = vadd.f32 %v5641_v59, %v5640_v62  ;;  %v5643_v18 = vsel %vm2909_vm5, %v5443_v41, 0.0  ;;  %v5844_v4 = vmul.f32 %v5443_v41, %v5443_v41  ;;  %v7523_v35 = vpack.c.bf16 %v5443_v41, %v5443_v41  ;;  %v4350_v57 = vpop.f32.mrb[5].mxu1  ;;  %v5001_v52 = vpop.f32.mrb[7].mxu0 }
 0x3e6   : > { %v6034_v2 = vsel %vm2909_vm5, %v5843_v32, 0.0  ;;  %6747 = vst.msk [vmem:[%s10527_s21 + $0x100] sm:$0xf] %vm6682_vm6, %v7522_v6  ;;  %v4349_v37 = vadd.f32 %v4348_v17, %v12184_v1  ;;  %v4351_v16 = vpop.f32.mrb[6].mxu1  ;;  %v12190_v32 = vld [vmem:[#allocation123_spill] sm:$0xff]  ;;  %v2667_v19 = vpop.permute.xlu0 %2666 }
 0x3e7   : > { %v6035_v50 = vadd.f32 %v6034_v2, %v6033_v42  ;;  %v5644_v48 = vadd.f32 %v5643_v18, %v5642_v51  ;;  %v6036_v12 = vsel %vm2909_vm5, %v5844_v4, 0.0  ;;  %6748 = vst.msk [vmem:[%s10527_s21 + $0x104] sm:$0xf] %vm6682_vm6, %v7523_v35  ;;  %v4352_v30 = vadd.f32 %v4351_v16, %v12185_v13  ;;  %v4353_v43 = vpop.f32.mrb[7].mxu1  ;;  %5211 = vmatmul.mubr.bf16.gmra.mrb[112].mxu0 %v12186_v24  ;;  %v12191_v13 = vld [vmem:[#allocation96_spill] sm:$0xff] }
 0x3e8   : > { %v5309_v21 = vadd.f32 %v4996_v54, %v4349_v37  ;;  %7322 = vmatprep.mubr.msk.bf16.mxu0 %vm2909_vm5, %v12187_v56  ;;  %v2907_v18 = vrot.slane %v10639_v63, 1  ;;  %v3109_v37 = vsel %vm2909_vm5, %v10621_v3, %v2667_v19  ;;  %v12192_v56 = vld [vmem:[#allocation5_spill] sm:$0xff] }
 0x3e9   : > { %v6037_v10 = vadd.f32 %v6036_v12, %v6035_v50  ;;  %4563 = vmatmul.mubr.bf16.gmra.mrb[112].mxu1 %v12170_v61  ;;  %v5310_v15 = vadd.f32 %v4999_v29, %v4352_v30 }
 0x3ea   : > { %v5444_v46 = vadd.f32 %v11118_v25, %v5309_v21  ;;  %7222 = vmatprep.mubr.msk.bf16.mxu1 %vm2909_vm5, %v12171_v34  ;;  %v5004_v55 = vpop.f32.mrb[8].mxu0  ;;  %v2908_v24 = vsel %vm2738_vm4, %v2905_v9, %v2907_v18 }
 0x3eb   : > { %v5445_v14 = vadd.f32 %v11118_v25, %v5310_v15  ;;  %v5006_v36 = vpop.f32.mrb[9].mxu0 }
 0x3ec   : > { %v5645_v45 = vsel %vm2909_vm5, %v5444_v46, 0.0  ;;  %v5845_v61 = vmul.f32 %v5444_v46, %v5444_v46  ;;  %v7524_v58 = vpack.c.bf16 %v5444_v46, %v5444_v46  ;;  %v4356_v8 = vpop.f32.mrb[8].mxu1  ;;  %v5007_v39 = vpop.f32.mrb[10].mxu0 }
 0x3ed   : > { %v5646_v23 = vadd.f32 %v5645_v45, %v5644_v48  ;;  %v5647_v0 = vsel %vm2909_vm5, %v5445_v14, 0.0  ;;  %v5846_v60 = vmul.f32 %v5445_v14, %v5445_v14  ;;  %v7525_v34 = vpack.c.bf16 %v5445_v14, %v5445_v14  ;;  %v4358_v33 = vpop.f32.mrb[9].mxu1  ;;  %v5009_v53 = vpop.f32.mrb[11].mxu0 }
 0x3ee   : > { %v6038_v62 = vsel %vm2909_vm5, %v5845_v61, 0.0  ;;  %6749 = vst.msk [vmem:[%s10527_s21 + $0x108] sm:$0xf] %vm6682_vm6, %v7524_v58  ;;  %v4357_v38 = vadd.f32 %v4356_v8, %v12188_v49  ;;  %v4359_v22 = vpop.f32.mrb[10].mxu1  ;;  %v2669_v61 = vpop.permute.xlu1 %2668  ;;  %v12193_v53 = vld [vmem:[#allocation54_spill] sm:$0xff] }
 0x3ef   : > { %v6039_v42 = vadd.f32 %v6038_v62, %v6037_v10  ;;  %v5648_v11 = vadd.f32 %v5647_v0, %v5646_v23  ;;  %v6040_v27 = vsel %vm2909_vm5, %v5846_v60, 0.0  ;;  %6750 = vst.msk [vmem:[%s10527_s21 + $0x10c] sm:$0xf] %vm6682_vm6, %v7525_v34  ;;  %v4360_v41 = vadd.f32 %v4359_v22, %v12189_v28  ;;  %v4361_v54 = vpop.f32.mrb[11].mxu1  ;;  %5219 = vmatmul.mubr.bf16.gmra.mrb[116].mxu0 %v12190_v32 }
 0x3f0   : > { %v5311_v59 = vadd.f32 %v5004_v55, %v4357_v38  ;;  %7323 = vmatprep.mubr.msk.bf16.mxu0 %vm2909_vm5, %v2906_v7 }
 0x3f1   : > { %v6041_v6 = vadd.f32 %v6040_v27, %v6039_v42  ;;  %4571 = vmatmul.mubr.bf16.gmra.mrb[116].mxu1 %v12174_v20  ;;  %v5312_v17 = vadd.f32 %v5007_v39, %v4360_v41 }
 0x3f2   : > { %v5446_v51 = vadd.f32 %v11118_v25, %v5311_v59  ;;  %7223 = vmatprep.mubr.msk.bf16.mxu1 %vm2909_vm5, %v12175_v31  ;;  %v5012_v35 = vpop.f32.mrb[12].mxu0 }
 0x3f3   : > { %v5447_v4 = vadd.f32 %v11118_v25, %v5312_v17  ;;  %v5014_v1 = vpop.f32.mrb[13].mxu0 }
 0x3f4   : > { %v5649_v57 = vsel %vm2909_vm5, %v5446_v51, 0.0  ;;  %v5847_v29 = vmul.f32 %v5446_v51, %v5446_v51  ;;  %v7526_v2 = vpack.c.bf16 %v5446_v51, %v5446_v51  ;;  %v4364_v20 = vpop.f32.mrb[12].mxu1  ;;  %v5015_v48 = vpop.f32.mrb[14].mxu0 }
 0x3f5   : > { %v5650_v16 = vadd.f32 %v5649_v57, %v5648_v11  ;;  %v5651_v52 = vsel %vm2909_vm5, %v5447_v4, 0.0  ;;  %v5848_v31 = vmul.f32 %v5447_v4, %v5447_v4  ;;  %v7527_v50 = vpack.c.bf16 %v5447_v4, %v5447_v4  ;;  %v4366_v63 = vpop.f32.mrb[13].mxu1  ;;  %v5017_v21 = vpop.f32.mrb[15].mxu0 }
 0x3f6   : > { %v6042_v12 = vsel %vm2909_vm5, %v5847_v29, 0.0  ;;  %6751 = vst.msk [vmem:[%s10527_s21 + $0x110] sm:$0xf] %vm6682_vm6, %v7526_v2  ;;  %v4365_v30 = vadd.f32 %v4364_v20, %v12191_v13  ;;  %v4367_v43 = vpop.f32.mrb[14].mxu1  ;;  %v12196_v21 = vld [vmem:[#allocation104_spill] sm:$0xff] }
 0x3f7   : > { %v6043_v10 = vadd.f32 %v6042_v12, %v6041_v6  ;;  %v5652_v3 = vadd.f32 %v5651_v52, %v5650_v16  ;;  %v6044_v15 = vsel %vm2909_vm5, %v5848_v31, 0.0  ;;  %6752 = vst.msk [vmem:[%s10527_s21 + $0x114] sm:$0xf] %vm6682_vm6, %v7527_v50  ;;  %v4368_v46 = vadd.f32 %v4367_v43, %v12192_v56  ;;  %v4369_v5 = vpop.f32.mrb[15].mxu1  ;;  %5227 = vmatmul.mubr.bf16.gmra.mrb[120].mxu0 %v3109_v37  ;;  %v12195_v50 = vld [vmem:[#allocation103_spill] sm:$0xff] }
 0x3f8   : > { %v5313_v14 = vadd.f32 %v5012_v35, %v4365_v30  ;;  %7324 = vmatprep.mubr.msk.bf16.mxu0 %vm2909_vm5, %v2908_v24 }
 0x3f9   : > { %v6045_v55 = vadd.f32 %v6044_v15, %v6043_v10  ;;  %4579 = vmatmul.mubr.bf16.gmra.mrb[120].mxu1 %v12178_v26  ;;  %v5314_v45 = vadd.f32 %v5015_v48, %v4368_v46  ;;  %v3112_v26 = vsel %vm2909_vm5, %v10631_v44, %v2669_v61  ;;  %v12194_v44 = vld [vmem:[#allocation100_spill] sm:$0xff] }
 0x3fa   : > { %v5448_v9 = vadd.f32 %v11118_v25, %v5313_v14  ;;  %7224 = vmatprep.mubr.msk.bf16.mxu1 %vm2909_vm5, %v12179_v40  ;;  %v5020_v8 = vpop.f32.mrb[16].mxu0 }
 0x3fb   : > { %v5449_v58 = vadd.f32 %v11118_v25, %v5314_v45  ;;  %v5022_v34 = vpop.f32.mrb[17].mxu0 }
 0x3fc   : > { %v5653_v36 = vsel %vm2909_vm5, %v5448_v9, 0.0  ;;  %v5849_v23 = vmul.f32 %v5448_v9, %v5448_v9  ;;  %v7528_v0 = vpack.c.bf16 %v5448_v9, %v5448_v9  ;;  %v4372_v60 = vpop.f32.mrb[16].mxu1  ;;  %v5023_v38 = vpop.f32.mrb[18].mxu0 }
 0x3fd   : > { %v5654_v33 = vadd.f32 %v5653_v36, %v5652_v3  ;;  %v5655_v39 = vsel %vm2909_vm5, %v5449_v58, 0.0  ;;  %v5850_v62 = vmul.f32 %v5449_v58, %v5449_v58  ;;  %v7529_v49 = vpack.c.bf16 %v5449_v58, %v5449_v58  ;;  %v4374_v40 = vpop.f32.mrb[17].mxu1  ;;  %v5025_v11 = vpop.f32.mrb[19].mxu0 }
 0x3fe   : > { %v6046_v22 = vsel %vm2909_vm5, %v5849_v23, 0.0  ;;  %6753 = vst.msk [vmem:[%s10527_s21 + $0x118] sm:$0xf] %vm6682_vm6, %v7528_v0  ;;  %v4373_v7 = vadd.f32 %v4372_v60, %v12193_v53  ;;  %v4375_v42 = vpop.f32.mrb[18].mxu1  ;;  %v12198_v53 = vld [vmem:[#allocation107_spill] sm:$0xff] }
 0x3ff   : > { %v6047_v27 = vadd.f32 %v6046_v22, %v6045_v55  ;;  %v5656_v28 = vadd.f32 %v5655_v39, %v5654_v33  ;;  %v6048_v41 = vsel %vm2909_vm5, %v5850_v62, 0.0  ;;  %6754 = vst.msk [vmem:[%s10527_s21 + $0x11c] sm:$0xf] %vm6682_vm6, %v7529_v49  ;;  %v4376_v54 = vadd.f32 %v4375_v42, %v12194_v44  ;;  %v4377_v59 = vpop.f32.mrb[19].mxu1  ;;  %5235 = vmatmul.mubr.bf16.gmra.mrb[124].mxu0 %v3112_v26  ;;  %v12197_v33 = vld [vmem:[#allocation67_spill] sm:$0xff] }
 0x400   : > { %v5315_v32 = vadd.f32 %v5020_v8, %v4373_v7 }
 0x401   : > { %v6049_v6 = vadd.f32 %v6048_v41, %v6047_v27  ;;  %4587 = vmatmul.mubr.bf16.gmra.mrb[124].mxu1 %v12182_v47  ;;  %v5316_v17 = vadd.f32 %v5023_v38, %v4376_v54 }
 0x402   : > { %v5450_v19 = vadd.f32 %v11118_v25, %v5315_v32  ;;  %v5028_v18 = vpop.f32.mrb[20].mxu0 }
 0x403   : > { %v5451_v51 = vadd.f32 %v11118_v25, %v5316_v17  ;;  %v5030_v2 = vpop.f32.mrb[21].mxu0 }
 0x404   : > { %v5657_v4 = vsel %vm2909_vm5, %v5450_v19, 0.0  ;;  %v5851_v35 = vmul.f32 %v5450_v19, %v5450_v19  ;;  %v7530_v57 = vpack.c.bf16 %v5450_v19, %v5450_v19  ;;  %v4380_v29 = vpop.f32.mrb[20].mxu1  ;;  %v5031_v52 = vpop.f32.mrb[22].mxu0 }
 0x405   : > { %v5658_v20 = vadd.f32 %v5657_v4, %v5656_v28  ;;  %v5659_v1 = vsel %vm2909_vm5, %v5451_v51, 0.0  ;;  %v5852_v37 = vmul.f32 %v5451_v51, %v5451_v51  ;;  %v7531_v16 = vpack.c.bf16 %v5451_v51, %v5451_v51  ;;  %v4382_v47 = vpop.f32.mrb[21].mxu1  ;;  %v5033_v12 = vpop.f32.mrb[23].mxu0 }
 0x406   : > { %v6050_v31 = vsel %vm2909_vm5, %v5851_v35, 0.0  ;;  %6755 = vst.msk [vmem:[%s10527_s21 + $0x120] sm:$0xf] %vm6682_vm6, %v7530_v57  ;;  %v4381_v63 = vadd.f32 %v4380_v29, %v12195_v50  ;;  %v4383_v48 = vpop.f32.mrb[22].mxu1  ;;  %v12200_v50 = vld [vmem:[#allocation111_spill] sm:$0xff] }
 0x407   : > { %v6051_v13 = vadd.f32 %v6050_v31, %v6049_v6  ;;  %v5660_v30 = vadd.f32 %v5659_v1, %v5658_v20  ;;  %v6052_v43 = vsel %vm2909_vm5, %v5852_v37, 0.0  ;;  %6756 = vst.msk [vmem:[%s10527_s21 + $0x124] sm:$0xf] %vm6682_vm6, %v7531_v16  ;;  %v4384_v24 = vadd.f32 %v4383_v48, %v12196_v21  ;;  %v4385_v10 = vpop.f32.mrb[23].mxu1  ;;  %v12199_v20 = vld [vmem:[#allocation109_spill] sm:$0xff] }
 0x408   : > { %v5317_v3 = vadd.f32 %v5028_v18, %v4381_v63 }
 0x409   : > { %v6053_v15 = vadd.f32 %v6052_v43, %v6051_v13  ;;  %v5318_v56 = vadd.f32 %v5031_v52, %v4384_v24 }
 0x40a   : > { %v5452_v46 = vadd.f32 %v11118_v25, %v5317_v3  ;;  %v5036_v14 = vpop.f32.mrb[24].mxu0 }
 0x40b   : > { %v5453_v5 = vadd.f32 %v11118_v25, %v5318_v56  ;;  %v5038_v58 = vpop.f32.mrb[25].mxu0 }
 0x40c   : > { %v5661_v55 = vsel %vm2909_vm5, %v5452_v46, 0.0  ;;  %v5853_v45 = vmul.f32 %v5452_v46, %v5452_v46  ;;  %v7532_v61 = vpack.c.bf16 %v5452_v46, %v5452_v46  ;;  %v4388_v9 = vpop.f32.mrb[24].mxu1  ;;  %v5039_v34 = vpop.f32.mrb[26].mxu0 }
 0x40d   : > { %v5662_v8 = vadd.f32 %v5661_v55, %v5660_v30  ;;  %v5663_v36 = vsel %vm2909_vm5, %v5453_v5, 0.0  ;;  %v5854_v23 = vmul.f32 %v5453_v5, %v5453_v5  ;;  %v7533_v0 = vpack.c.bf16 %v5453_v5, %v5453_v5  ;;  %v4390_v60 = vpop.f32.mrb[25].mxu1  ;;  %v5041_v49 = vpop.f32.mrb[27].mxu0 }
 0x40e   : > { %v6054_v26 = vsel %vm2909_vm5, %v5853_v45, 0.0  ;;  %6757 = vst.msk [vmem:[%s10527_s21 + $0x128] sm:$0xf] %vm6682_vm6, %v7532_v61  ;;  %v4389_v39 = vadd.f32 %v4388_v9, %v12197_v33  ;;  %v4391_v62 = vpop.f32.mrb[26].mxu1  ;;  %v12202_v33 = vld [vmem:[#allocation116_spill] sm:$0xff] }
 0x40f   : > { %v6055_v40 = vadd.f32 %v6054_v26, %v6053_v15  ;;  %v5664_v38 = vadd.f32 %v5663_v36, %v5662_v8  ;;  %v6056_v22 = vsel %vm2909_vm5, %v5854_v23, 0.0  ;;  %6758 = vst.msk [vmem:[%s10527_s21 + $0x12c] sm:$0xf] %vm6682_vm6, %v7533_v0  ;;  %v4392_v7 = vadd.f32 %v4391_v62, %v12198_v53  ;;  %v4393_v42 = vpop.f32.mrb[27].mxu1  ;;  %v12201_v8 = vld [vmem:[#allocation115_spill] sm:$0xff] }
 0x410   : > { %v5319_v11 = vadd.f32 %v5036_v14, %v4389_v39 }
 0x411   : > { %v6057_v27 = vadd.f32 %v6056_v22, %v6055_v40  ;;  %v5320_v28 = vadd.f32 %v5039_v34, %v4392_v7 }
 0x412   : > { %v5454_v41 = vadd.f32 %v11118_v25, %v5319_v11  ;;  %v5044_v54 = vpop.f32.mrb[28].mxu0 }
 0x413   : > { %v5455_v44 = vadd.f32 %v11118_v25, %v5320_v28  ;;  %v5046_v19 = vpop.f32.mrb[29].mxu0 }
 0x414   : > { %v5665_v59 = vsel %vm2909_vm5, %v5454_v41, 0.0  ;;  %v5855_v32 = vmul.f32 %v5454_v41, %v5454_v41  ;;  %v7534_v6 = vpack.c.bf16 %v5454_v41, %v5454_v41  ;;  %v4396_v17 = vpop.f32.mrb[28].mxu1  ;;  %v5047_v29 = vpop.f32.mrb[30].mxu0 }
 0x415   : > { %v5666_v51 = vadd.f32 %v5665_v59, %v5664_v38  ;;  %v5667_v18 = vsel %vm2909_vm5, %v5455_v44, 0.0  ;;  %v5856_v4 = vmul.f32 %v5455_v44, %v5455_v44  ;;  %v7535_v35 = vpack.c.bf16 %v5455_v44, %v5455_v44  ;;  %v4398_v57 = vpop.f32.mrb[29].mxu1  ;;  %v5049_v16 = vpop.f32.mrb[31].mxu0 }
 0x416   : > { %v6058_v2 = vsel %vm2909_vm5, %v5855_v32, 0.0  ;;  %6759 = vst.msk [vmem:[%s10527_s21 + $0x130] sm:$0xf] %vm6682_vm6, %v7534_v6  ;;  %v4397_v1 = vadd.f32 %v4396_v17, %v12199_v20  ;;  %v4399_v37 = vpop.f32.mrb[30].mxu1  ;;  %v12204_v20 = vld [vmem:[#allocation122_spill] sm:$0xff] }
 0x417   : > { %v6059_v47 = vadd.f32 %v6058_v2, %v6057_v27  ;;  %v5668_v52 = vadd.f32 %v5667_v18, %v5666_v51  ;;  %v6060_v31 = vsel %vm2909_vm5, %v5856_v4, 0.0  ;;  %6760 = vst.msk [vmem:[%s10527_s21 + $0x134] sm:$0xf] %vm6682_vm6, %v7535_v35  ;;  %v4400_v63 = vadd.f32 %v4399_v37, %v12200_v50  ;;  %v4401_v48 = vpop.f32.mrb[31].mxu1  ;;  %v12203_v51 = vld [vmem:[#allocation120_spill] sm:$0xff] }
 0x418   : > { %v5321_v12 = vadd.f32 %v5044_v54, %v4397_v1 }
 0x419   : > { %v6061_v13 = vadd.f32 %v6060_v31, %v6059_v47  ;;  %v5322_v30 = vadd.f32 %v5047_v29, %v4400_v63 }
 0x41a   : > { %v5456_v43 = vadd.f32 %v11118_v25, %v5321_v12  ;;  %v5052_v24 = vpop.f32.mrb[32].mxu0 }
 0x41b   : > { %v5457_v21 = vadd.f32 %v11118_v25, %v5322_v30  ;;  %v5054_v46 = vpop.f32.mrb[33].mxu0 }
 0x41c   : > { %v5669_v10 = vsel %vm2909_vm5, %v5456_v43, 0.0  ;;  %v5857_v3 = vmul.f32 %v5456_v43, %v5456_v43  ;;  %v7536_v15 = vpack.c.bf16 %v5456_v43, %v5456_v43  ;;  %v4404_v56 = vpop.f32.mrb[32].mxu1  ;;  %v5055_v9 = vpop.f32.mrb[34].mxu0 }
 0x41d   : > { %v5670_v5 = vadd.f32 %v5669_v10, %v5668_v52  ;;  %v5671_v14 = vsel %vm2909_vm5, %v5457_v21, 0.0  ;;  %v5858_v55 = vmul.f32 %v5457_v21, %v5457_v21  ;;  %v7537_v45 = vpack.c.bf16 %v5457_v21, %v5457_v21  ;;  %v4406_v61 = vpop.f32.mrb[33].mxu1  ;;  %v5057_v0 = vpop.f32.mrb[35].mxu0 }
 0x41e   : > { %v6062_v58 = vsel %vm2909_vm5, %v5857_v3, 0.0  ;;  %6761 = vst.msk [vmem:[%s10527_s21 + $0x138] sm:$0xf] %vm6682_vm6, %v7536_v15  ;;  %v4405_v36 = vadd.f32 %v4404_v56, %v12201_v8  ;;  %v4407_v23 = vpop.f32.mrb[34].mxu1  ;;  %v12206_v8 = vld [vmem:[#allocation127_spill] sm:$0xff] }
 0x41f   : > { %v6063_v60 = vadd.f32 %v6062_v58, %v6061_v13  ;;  %v5672_v34 = vadd.f32 %v5671_v14, %v5670_v5  ;;  %v6064_v26 = vsel %vm2909_vm5, %v5858_v55, 0.0  ;;  %6762 = vst.msk [vmem:[%s10527_s21 + $0x13c] sm:$0xf] %vm6682_vm6, %v7537_v45  ;;  %v4408_v39 = vadd.f32 %v4407_v23, %v12202_v33  ;;  %v4409_v62 = vpop.f32.mrb[35].mxu1  ;;  %v12205_v5 = vld [vmem:[#allocation126_spill] sm:$0xff] }
 0x420   : > { %v5323_v49 = vadd.f32 %v5052_v24, %v4405_v36 }
 0x421   : > { %v6065_v40 = vadd.f32 %v6064_v26, %v6063_v60  ;;  %v5324_v38 = vadd.f32 %v5055_v9, %v4408_v39 }
 0x422   : > { %v5458_v22 = vadd.f32 %v11118_v25, %v5323_v49  ;;  %v5060_v7 = vpop.f32.mrb[36].mxu0 }
 0x423   : > { %v5459_v53 = vadd.f32 %v11118_v25, %v5324_v38  ;;  %v5062_v41 = vpop.f32.mrb[37].mxu0 }
 0x424   : > { %v5673_v42 = vsel %vm2909_vm5, %v5458_v22, 0.0  ;;  %v5859_v11 = vmul.f32 %v5458_v22, %v5458_v22  ;;  %v7538_v27 = vpack.c.bf16 %v5458_v22, %v5458_v22  ;;  %v4412_v28 = vpop.f32.mrb[36].mxu1  ;;  %v5063_v17 = vpop.f32.mrb[38].mxu0 }
 0x425   : > { %v5674_v44 = vadd.f32 %v5673_v42, %v5672_v34  ;;  %v5675_v54 = vsel %vm2909_vm5, %v5459_v53, 0.0  ;;  %v5860_v59 = vmul.f32 %v5459_v53, %v5459_v53  ;;  %v7539_v32 = vpack.c.bf16 %v5459_v53, %v5459_v53  ;;  %v4414_v6 = vpop.f32.mrb[37].mxu1  ;;  %v5065_v35 = vpop.f32.mrb[39].mxu0 }
 0x426   : > { %v6066_v19 = vsel %vm2909_vm5, %v5859_v11, 0.0  ;;  %6763 = vst.msk [vmem:[%s10527_s21 + $0x140] sm:$0xf] %vm6682_vm6, %v7538_v27  ;;  %v4413_v18 = vadd.f32 %v4412_v28, %v12203_v51  ;;  %v4415_v4 = vpop.f32.mrb[38].mxu1  ;;  %v12208_v51 = vld [vmem:[#allocation130_spill] sm:$0xff] }
 0x427   : > { %v6067_v57 = vadd.f32 %v6066_v19, %v6065_v40  ;;  %v5676_v29 = vadd.f32 %v5675_v54, %v5674_v44  ;;  %v6068_v2 = vsel %vm2909_vm5, %v5860_v59, 0.0  ;;  %6764 = vst.msk [vmem:[%s10527_s21 + $0x144] sm:$0xf] %vm6682_vm6, %v7539_v32  ;;  %v4416_v1 = vadd.f32 %v4415_v4, %v12204_v20  ;;  %v4417_v37 = vpop.f32.mrb[39].mxu1  ;;  %v12207_v44 = vld [vmem:[#allocation129_spill] sm:$0xff] }
 0x428   : > { %v5325_v16 = vadd.f32 %v5060_v7, %v4413_v18 }
 0x429   : > { %v6069_v47 = vadd.f32 %v6068_v2, %v6067_v57  ;;  %v5326_v52 = vadd.f32 %v5063_v17, %v4416_v1 }
 0x42a   : > { %v5460_v31 = vadd.f32 %v11118_v25, %v5325_v16  ;;  %v5068_v63 = vpop.f32.mrb[40].mxu0 }
 0x42b   : > { %v5461_v50 = vadd.f32 %v11118_v25, %v5326_v52  ;;  %v5070_v43 = vpop.f32.mrb[41].mxu0 }
 0x42c   : > { %v5677_v48 = vsel %vm2909_vm5, %v5460_v31, 0.0  ;;  %v5861_v12 = vmul.f32 %v5460_v31, %v5460_v31  ;;  %v7540_v13 = vpack.c.bf16 %v5460_v31, %v5460_v31  ;;  %v4420_v30 = vpop.f32.mrb[40].mxu1  ;;  %v5071_v56 = vpop.f32.mrb[42].mxu0 }
 0x42d   : > { %v5678_v21 = vadd.f32 %v5677_v48, %v5676_v29  ;;  %v5679_v24 = vsel %vm2909_vm5, %v5461_v50, 0.0  ;;  %v5862_v10 = vmul.f32 %v5461_v50, %v5461_v50  ;;  %v7541_v3 = vpack.c.bf16 %v5461_v50, %v5461_v50  ;;  %v4422_v15 = vpop.f32.mrb[41].mxu1  ;;  %v5073_v45 = vpop.f32.mrb[43].mxu0 }
 0x42e   : > { %v6070_v46 = vsel %vm2909_vm5, %v5861_v12, 0.0  ;;  %6765 = vst.msk [vmem:[%s10527_s21 + $0x148] sm:$0xf] %vm6682_vm6, %v7540_v13  ;;  %v4421_v14 = vadd.f32 %v4420_v30, %v12205_v5  ;;  %v4423_v55 = vpop.f32.mrb[42].mxu1  ;;  %v12210_v5 = vld [vmem:[#allocation30_spill] sm:$0xff] }
 0x42f   : > { %v6071_v61 = vadd.f32 %v6070_v46, %v6069_v47  ;;  %v5680_v9 = vadd.f32 %v5679_v24, %v5678_v21  ;;  %v6072_v58 = vsel %vm2909_vm5, %v5862_v10, 0.0  ;;  %6766 = vst.msk [vmem:[%s10527_s21 + $0x14c] sm:$0xf] %vm6682_vm6, %v7541_v3  ;;  %v4424_v36 = vadd.f32 %v4423_v55, %v12206_v8  ;;  %v4425_v23 = vpop.f32.mrb[43].mxu1  ;;  %v12209_v21 = vld [vmem:[#allocation26_spill] sm:$0xff] }
 0x430   : > { %v5327_v0 = vadd.f32 %v5068_v63, %v4421_v14 }
 0x431   : > { %v6073_v60 = vadd.f32 %v6072_v58, %v6071_v61  ;;  %v5328_v34 = vadd.f32 %v5071_v56, %v4424_v36 }
 0x432   : > { %v5462_v26 = vadd.f32 %v11118_v25, %v5327_v0  ;;  %v5076_v39 = vpop.f32.mrb[44].mxu0 }
 0x433   : > { %v5463_v33 = vadd.f32 %v11118_v25, %v5328_v34  ;;  %v5078_v22 = vpop.f32.mrb[45].mxu0 }
 0x434   : > { %v5681_v62 = vsel %vm2909_vm5, %v5462_v26, 0.0  ;;  %v5863_v49 = vmul.f32 %v5462_v26, %v5462_v26  ;;  %v7542_v40 = vpack.c.bf16 %v5462_v26, %v5462_v26  ;;  %v4428_v38 = vpop.f32.mrb[44].mxu1  ;;  %v5079_v28 = vpop.f32.mrb[46].mxu0 }
 0x435   : > { %v5682_v53 = vadd.f32 %v5681_v62, %v5680_v9  ;;  %v5683_v7 = vsel %vm2909_vm5, %v5463_v33, 0.0  ;;  %v5864_v42 = vmul.f32 %v5463_v33, %v5463_v33  ;;  %v7543_v11 = vpack.c.bf16 %v5463_v33, %v5463_v33  ;;  %v4430_v27 = vpop.f32.mrb[45].mxu1  ;;  %v5081_v32 = vpop.f32.mrb[47].mxu0 }
 0x436   : > { %v6074_v41 = vsel %vm2909_vm5, %v5863_v49, 0.0  ;;  %6767 = vst.msk [vmem:[%s10527_s21 + $0x150] sm:$0xf] %vm6682_vm6, %v7542_v40  ;;  %v4429_v54 = vadd.f32 %v4428_v38, %v12207_v44  ;;  %v4431_v59 = vpop.f32.mrb[46].mxu1  ;;  %v12212_v44 = vld [vmem:[#allocation33_spill] sm:$0xff] }
 0x437   : > { %v6075_v6 = vadd.f32 %v6074_v41, %v6073_v60  ;;  %v5684_v17 = vadd.f32 %v5683_v7, %v5682_v53  ;;  %v6076_v19 = vsel %vm2909_vm5, %v5864_v42, 0.0  ;;  %6768 = vst.msk [vmem:[%s10527_s21 + $0x154] sm:$0xf] %vm6682_vm6, %v7543_v11  ;;  %v4432_v18 = vadd.f32 %v4431_v59, %v12208_v51  ;;  %v4433_v4 = vpop.f32.mrb[47].mxu1  ;;  %v12211_v53 = vld [vmem:[#allocation12_spill] sm:$0xff] }
 0x438   : > { %v5329_v35 = vadd.f32 %v5076_v39, %v4429_v54 }
 0x439   : > { %v6077_v57 = vadd.f32 %v6076_v19, %v6075_v6  ;;  %v5330_v29 = vadd.f32 %v5079_v28, %v4432_v18 }
 0x43a   : > { %v5464_v2 = vadd.f32 %v11118_v25, %v5329_v35  ;;  %v5084_v1 = vpop.f32.mrb[48].mxu0 }
 0x43b   : > { %v5465_v20 = vadd.f32 %v11118_v25, %v5330_v29  ;;  %v5086_v31 = vpop.f32.mrb[49].mxu0 }
 0x43c   : > { %v5685_v37 = vsel %vm2909_vm5, %v5464_v2, 0.0  ;;  %v5865_v16 = vmul.f32 %v5464_v2, %v5464_v2  ;;  %v7544_v47 = vpack.c.bf16 %v5464_v2, %v5464_v2  ;;  %v4436_v52 = vpop.f32.mrb[48].mxu1  ;;  %v5087_v30 = vpop.f32.mrb[50].mxu0 }
 0x43d   : > { %v5686_v50 = vadd.f32 %v5685_v37, %v5684_v17  ;;  %v5687_v63 = vsel %vm2909_vm5, %v5465_v20, 0.0  ;;  %v5866_v48 = vmul.f32 %v5465_v20, %v5465_v20  ;;  %v7545_v12 = vpack.c.bf16 %v5465_v20, %v5465_v20  ;;  %v4438_v13 = vpop.f32.mrb[49].mxu1  ;;  %v5089_v3 = vpop.f32.mrb[51].mxu0 }
 0x43e   : > { %v6078_v43 = vsel %vm2909_vm5, %v5865_v16, 0.0  ;;  %6769 = vst.msk [vmem:[%s10527_s21 + $0x158] sm:$0xf] %vm6682_vm6, %v7544_v47  ;;  %v4437_v24 = vadd.f32 %v4436_v52, %v12209_v21  ;;  %v4439_v10 = vpop.f32.mrb[50].mxu1  ;;  %v12214_v21 = vld [vmem:[#allocation38_spill] sm:$0xff] }
 0x43f   : > { %v6079_v15 = vadd.f32 %v6078_v43, %v6077_v57  ;;  %v5688_v56 = vadd.f32 %v5687_v63, %v5686_v50  ;;  %v6080_v46 = vsel %vm2909_vm5, %v5866_v48, 0.0  ;;  %6770 = vst.msk [vmem:[%s10527_s21 + $0x15c] sm:$0xf] %vm6682_vm6, %v7545_v12  ;;  %v4440_v14 = vadd.f32 %v4439_v10, %v12210_v5  ;;  %v4441_v55 = vpop.f32.mrb[51].mxu1  ;;  %v12213_v50 = vld [vmem:[#allocation16_spill] sm:$0xff] }
 0x440   : > { %v5331_v45 = vadd.f32 %v5084_v1, %v4437_v24 }
 0x441   : > { %v6081_v61 = vadd.f32 %v6080_v46, %v6079_v15  ;;  %v5332_v9 = vadd.f32 %v5087_v30, %v4440_v14 }
 0x442   : > { %v5466_v58 = vadd.f32 %v11118_v25, %v5331_v45  ;;  %v5092_v36 = vpop.f32.mrb[52].mxu0 }
 0x443   : > { %v5467_v8 = vadd.f32 %v11118_v25, %v5332_v9  ;;  %v5094_v26 = vpop.f32.mrb[53].mxu0 }
 0x444   : > { %v5689_v23 = vsel %vm2909_vm5, %v5466_v58, 0.0  ;;  %v5867_v0 = vmul.f32 %v5466_v58, %v5466_v58  ;;  %v7546_v60 = vpack.c.bf16 %v5466_v58, %v5466_v58  ;;  %v4444_v34 = vpop.f32.mrb[52].mxu1  ;;  %v5095_v38 = vpop.f32.mrb[54].mxu0 }
 0x445   : > { %v5690_v33 = vadd.f32 %v5689_v23, %v5688_v56  ;;  %v5691_v39 = vsel %vm2909_vm5, %v5467_v8, 0.0  ;;  %v5868_v62 = vmul.f32 %v5467_v8, %v5467_v8  ;;  %v7547_v49 = vpack.c.bf16 %v5467_v8, %v5467_v8  ;;  %v4446_v40 = vpop.f32.mrb[53].mxu1  ;;  %v5097_v11 = vpop.f32.mrb[55].mxu0 }
 0x446   : > { %v6082_v22 = vsel %vm2909_vm5, %v5867_v0, 0.0  ;;  %6771 = vst.msk [vmem:[%s10527_s21 + $0x160] sm:$0xf] %vm6682_vm6, %v7546_v60  ;;  %v4445_v7 = vadd.f32 %v4444_v34, %v12211_v53  ;;  %v4447_v42 = vpop.f32.mrb[54].mxu1  ;;  %v12216_v53 = vld [vmem:[#allocation46_spill] sm:$0xff] }
 0x447   : > { %v6083_v27 = vadd.f32 %v6082_v22, %v6081_v61  ;;  %v5692_v28 = vadd.f32 %v5691_v39, %v5690_v33  ;;  %v6084_v41 = vsel %vm2909_vm5, %v5868_v62, 0.0  ;;  %6772 = vst.msk [vmem:[%s10527_s21 + $0x164] sm:$0xf] %vm6682_vm6, %v7547_v49  ;;  %v4448_v54 = vadd.f32 %v4447_v42, %v12212_v44  ;;  %v4449_v59 = vpop.f32.mrb[55].mxu1  ;;  %v12215_v33 = vld [vmem:[#allocation42_spill] sm:$0xff] }
 0x448   : > { %v5333_v32 = vadd.f32 %v5092_v36, %v4445_v7 }
 0x449   : > { %v6085_v6 = vadd.f32 %v6084_v41, %v6083_v27  ;;  %v5334_v17 = vadd.f32 %v5095_v38, %v4448_v54 }
 0x44a   : > { %v5468_v19 = vadd.f32 %v11118_v25, %v5333_v32  ;;  %v5100_v18 = vpop.f32.mrb[56].mxu0 }
 0x44b   : > { %v5469_v51 = vadd.f32 %v11118_v25, %v5334_v17  ;;  %v5102_v2 = vpop.f32.mrb[57].mxu0 }
 0x44c   : > { %v5693_v4 = vsel %vm2909_vm5, %v5468_v19, 0.0  ;;  %v5869_v35 = vmul.f32 %v5468_v19, %v5468_v19  ;;  %v7548_v57 = vpack.c.bf16 %v5468_v19, %v5468_v19  ;;  %v4452_v29 = vpop.f32.mrb[56].mxu1  ;;  %v5103_v52 = vpop.f32.mrb[58].mxu0 }
 0x44d   : > { %v5694_v20 = vadd.f32 %v5693_v4, %v5692_v28  ;;  %v5695_v1 = vsel %vm2909_vm5, %v5469_v51, 0.0  ;;  %v5870_v37 = vmul.f32 %v5469_v51, %v5469_v51  ;;  %v7549_v16 = vpack.c.bf16 %v5469_v51, %v5469_v51  ;;  %v4454_v47 = vpop.f32.mrb[57].mxu1  ;;  %v5105_v12 = vpop.f32.mrb[59].mxu0 }
 0x44e   : > { %v6086_v31 = vsel %vm2909_vm5, %v5869_v35, 0.0  ;;  %6773 = vst.msk [vmem:[%s10527_s21 + $0x168] sm:$0xf] %vm6682_vm6, %v7548_v57  ;;  %v4453_v63 = vadd.f32 %v4452_v29, %v12213_v50  ;;  %v4455_v48 = vpop.f32.mrb[58].mxu1  ;;  %v12218_v50 = vld [vmem:[#allocation53_spill] sm:$0xff] }
 0x44f   : > { %v6087_v13 = vadd.f32 %v6086_v31, %v6085_v6  ;;  %v5696_v30 = vadd.f32 %v5695_v1, %v5694_v20  ;;  %v6088_v43 = vsel %vm2909_vm5, %v5870_v37, 0.0  ;;  %6774 = vst.msk [vmem:[%s10527_s21 + $0x16c] sm:$0xf] %vm6682_vm6, %v7549_v16  ;;  %v4456_v24 = vadd.f32 %v4455_v48, %v12214_v21  ;;  %v4457_v10 = vpop.f32.mrb[59].mxu1  ;;  %v12217_v20 = vld [vmem:[#allocation50_spill] sm:$0xff] }
 0x450   : > { %v5335_v3 = vadd.f32 %v5100_v18, %v4453_v63 }
 0x451   : > { %v6089_v15 = vadd.f32 %v6088_v43, %v6087_v13  ;;  %v5336_v56 = vadd.f32 %v5103_v52, %v4456_v24  ;;  %v8048_v43 = vmov 0.0  }
 0x452   : > { %v5470_v46 = vadd.f32 %v11118_v25, %v5335_v3  ;;  %v5108_v14 = vpop.f32.mrb[60].mxu0  ;;  %5511 = vst.msk [vmem:[%s11361_s23] sm:$0x1] %vm5510_vm7, %v8048_v43  ;;  %5512 = vst.msk [vmem:[%s11367_s30] sm:$0x1] %vm5510_vm7, %v8048_v43 }
 0x453   : > { %v5471_v5 = vadd.f32 %v11118_v25, %v5336_v56  ;;  %v5110_v58 = vpop.f32.mrb[61].mxu0 }
 0x454   : > { %v5697_v55 = vsel %vm2909_vm5, %v5470_v46, 0.0  ;;  %v5871_v45 = vmul.f32 %v5470_v46, %v5470_v46  ;;  %v7550_v61 = vpack.c.bf16 %v5470_v46, %v5470_v46  ;;  %v4460_v9 = vpop.f32.mrb[60].mxu1  ;;  %v5111_v34 = vpop.f32.mrb[62].mxu0 }
 0x455   : > { %v5698_v8 = vadd.f32 %v5697_v55, %v5696_v30  ;;  %v5699_v36 = vsel %vm2909_vm5, %v5471_v5, 0.0  ;;  %v5872_v23 = vmul.f32 %v5471_v5, %v5471_v5  ;;  %v7551_v0 = vpack.c.bf16 %v5471_v5, %v5471_v5  ;;  %v4462_v60 = vpop.f32.mrb[61].mxu1  ;;  %v5113_v49 = vpop.f32.mrb[63].mxu0 }
 0x456   : > { %v6090_v26 = vsel %vm2909_vm5, %v5871_v45, 0.0  ;;  %6775 = vst.msk [vmem:[%s10527_s21 + $0x170] sm:$0xf] %vm6682_vm6, %v7550_v61  ;;  %v4461_v39 = vadd.f32 %v4460_v9, %v12215_v33  ;;  %v4463_v62 = vpop.f32.mrb[62].mxu1  ;;  %v12220_v33 = vld [vmem:[#allocation132_spill] sm:$0xff] }
 0x457   : > { %v6091_v40 = vadd.f32 %v6090_v26, %v6089_v15  ;;  %v5700_v38 = vadd.f32 %v5699_v36, %v5698_v8  ;;  %v6092_v22 = vsel %vm2909_vm5, %v5872_v23, 0.0  ;;  %6776 = vst.msk [vmem:[%s10527_s21 + $0x174] sm:$0xf] %vm6682_vm6, %v7551_v0  ;;  %v4464_v7 = vadd.f32 %v4463_v62, %v12216_v53  ;;  %v4465_v42 = vpop.f32.mrb[63].mxu1 }
 0x458   : > { %v5337_v11 = vadd.f32 %v5108_v14, %v4461_v39 }
 0x459   : > { %v6093_v27 = vadd.f32 %v6092_v22, %v6091_v40  ;;  %v5338_v28 = vadd.f32 %v5111_v34, %v4464_v7  ;;  %v11388_v22 = vld [vmem:[%s11587_s4] ss:$0 sm:$0xff] }
 0x45a   : > { %v5472_v41 = vadd.f32 %v11118_v25, %v5337_v11  ;;  %v5116_v54 = vpop.f32.mrb[64].mxu0 }
 0x45b   : > { %v5473_v44 = vadd.f32 %v11118_v25, %v5338_v28  ;;  %v5118_v19 = vpop.f32.mrb[65].mxu0 }
 0x45c   : > { %v5701_v59 = vsel %vm2909_vm5, %v5472_v41, 0.0  ;;  %v5873_v32 = vmul.f32 %v5472_v41, %v5472_v41  ;;  %v7552_v6 = vpack.c.bf16 %v5472_v41, %v5472_v41  ;;  %v4468_v17 = vpop.f32.mrb[64].mxu1  ;;  %v5119_v29 = vpop.f32.mrb[66].mxu0 }
 0x45d   : > { %v5702_v51 = vadd.f32 %v5701_v59, %v5700_v38  ;;  %v5703_v18 = vsel %vm2909_vm5, %v5473_v44, 0.0  ;;  %v5874_v4 = vmul.f32 %v5473_v44, %v5473_v44  ;;  %v7553_v35 = vpack.c.bf16 %v5473_v44, %v5473_v44  ;;  %v4470_v57 = vpop.f32.mrb[65].mxu1  ;;  %v5121_v16 = vpop.f32.mrb[67].mxu0 }
 0x45e   : > { %v6094_v2 = vsel %vm2909_vm5, %v5873_v32, 0.0  ;;  %6777 = vst.msk [vmem:[%s10527_s21 + $0x178] sm:$0xf] %vm6682_vm6, %v7552_v6  ;;  %v4469_v1 = vadd.f32 %v4468_v17, %v12217_v20  ;;  %v4471_v37 = vpop.f32.mrb[66].mxu1 }
 0x45f   : > { %v6095_v47 = vadd.f32 %v6094_v2, %v6093_v27  ;;  %v5704_v52 = vadd.f32 %v5703_v18, %v5702_v51  ;;  %v6096_v31 = vsel %vm2909_vm5, %v5874_v4, 0.0  ;;  %6778 = vst.msk [vmem:[%s10527_s21 + $0x17c] sm:$0xf] %vm6682_vm6, %v7553_v35  ;;  %v4472_v63 = vadd.f32 %v4471_v37, %v12218_v50  ;;  %v4473_v48 = vpop.f32.mrb[67].mxu1  ;;  %v12221_v18 = vld [vmem:[#allocation59_spill] sm:$0xff] }
 0x460   : > { %v5339_v12 = vadd.f32 %v5116_v54, %v4469_v1  ;;  %v12222_v1 = vld [vmem:[#allocation64_spill] sm:$0xff] }
 0x461   : > { %v6097_v13 = vadd.f32 %v6096_v31, %v6095_v47  ;;  %v5340_v30 = vadd.f32 %v5119_v29, %v4472_v63 }
 0x462   : > { %v5474_v21 = vadd.f32 %v11118_v25, %v5339_v12  ;;  %v5124_v10 = vpop.f32.mrb[68].mxu0 }
 0x463   : > { %v5475_v24 = vadd.f32 %v11118_v25, %v5340_v30  ;;  %v5126_v5 = vpop.f32.mrb[69].mxu0  ;;  %v12219_v25 = vld [vmem:[#allocation131_spill] sm:$0xff] }
 0x464   : > { %v5705_v3 = vsel %vm2909_vm5, %v5474_v21, 0.0  ;;  %v5875_v15 = vmul.f32 %v5474_v21, %v5474_v21  ;;  %v7554_v56 = vpack.c.bf16 %v5474_v21, %v5474_v21  ;;  %v4476_v46 = vpop.f32.mrb[68].mxu1  ;;  %v5127_v58 = vpop.f32.mrb[70].mxu0 }
 0x465   : > { %v5706_v14 = vadd.f32 %v5705_v3, %v5704_v52  ;;  %v5707_v55 = vsel %vm2909_vm5, %v5475_v24, 0.0  ;;  %v5876_v45 = vmul.f32 %v5475_v24, %v5475_v24  ;;  %v7555_v61 = vpack.c.bf16 %v5475_v24, %v5475_v24  ;;  %v4478_v9 = vpop.f32.mrb[69].mxu1  ;;  %v5129_v0 = vpop.f32.mrb[71].mxu0 }
 0x466   : > { %v6098_v8 = vsel %vm2909_vm5, %v5875_v15, 0.0  ;;  %6779 = vst.msk [vmem:[%s10527_s21 + $0x180] sm:$0xf] %vm6682_vm6, %v7554_v56  ;;  %v4477_v36 = vadd.f32 %v4476_v46, %v12219_v25  ;;  %v4479_v23 = vpop.f32.mrb[70].mxu1  ;;  %v12224_v25 = vld [vmem:[#allocation68_spill] sm:$0xff] }
 0x467   : > { %v6099_v60 = vadd.f32 %v6098_v8, %v6097_v13  ;;  %v5708_v34 = vadd.f32 %v5707_v55, %v5706_v14  ;;  %v6100_v26 = vsel %vm2909_vm5, %v5876_v45, 0.0  ;;  %6780 = vst.msk [vmem:[%s10527_s21 + $0x184] sm:$0xf] %vm6682_vm6, %v7555_v61  ;;  %v4480_v39 = vadd.f32 %v4479_v23, %v12220_v33  ;;  %v4481_v62 = vpop.f32.mrb[71].mxu1  ;;  %v12223_v14 = vld [vmem:[#allocation65_spill] sm:$0xff] }
 0x468   : > { %v5341_v49 = vadd.f32 %v5124_v10, %v4477_v36 }
 0x469   : > { %v6101_v40 = vadd.f32 %v6100_v26, %v6099_v60  ;;  %v5342_v38 = vadd.f32 %v5127_v58, %v4480_v39 }
 0x46a   : > { %v5476_v53 = vadd.f32 %v11388_v22, %v5341_v49  ;;  %v5132_v42 = vpop.f32.mrb[72].mxu0 }
 0x46b   : > { %v5477_v7 = vadd.f32 %v11388_v22, %v5342_v38  ;;  %v5134_v44 = vpop.f32.mrb[73].mxu0 }
 0x46c   : > { %v5709_v11 = vsel %vm2909_vm5, %v5476_v53, 0.0  ;;  %v5877_v27 = vmul.f32 %v5476_v53, %v5476_v53  ;;  %v7556_v28 = vpack.c.bf16 %v5476_v53, %v5476_v53  ;;  %v4484_v41 = vpop.f32.mrb[72].mxu1  ;;  %v5135_v19 = vpop.f32.mrb[74].mxu0 }
 0x46d   : > { %v5710_v54 = vadd.f32 %v5709_v11, %v5708_v34  ;;  %v5711_v59 = vsel %vm2909_vm5, %v5477_v7, 0.0  ;;  %v5878_v32 = vmul.f32 %v5477_v7, %v5477_v7  ;;  %v7557_v6 = vpack.c.bf16 %v5477_v7, %v5477_v7  ;;  %v4486_v17 = vpop.f32.mrb[73].mxu1  ;;  %v5137_v57 = vpop.f32.mrb[75].mxu0 }
 0x46e   : > { %v6102_v51 = vsel %vm2909_vm5, %v5877_v27, 0.0  ;;  %6781 = vst.msk [vmem:[%s10527_s21 + $0x188] sm:$0xf] %vm6682_vm6, %v7556_v28  ;;  %v4485_v4 = vadd.f32 %v4484_v41, %v12221_v18  ;;  %v4487_v35 = vpop.f32.mrb[74].mxu1  ;;  %v12226_v18 = vld [vmem:[#allocation72_spill] sm:$0xff] }
 0x46f   : > { %v6103_v29 = vadd.f32 %v6102_v51, %v6101_v40  ;;  %v5712_v2 = vadd.f32 %v5711_v59, %v5710_v54  ;;  %v6104_v20 = vsel %vm2909_vm5, %v5878_v32, 0.0  ;;  %6782 = vst.msk [vmem:[%s10527_s21 + $0x18c] sm:$0xf] %vm6682_vm6, %v7557_v6  ;;  %v4488_v37 = vadd.f32 %v4487_v35, %v12222_v1  ;;  %v4489_v16 = vpop.f32.mrb[75].mxu1  ;;  %v12225_v54 = vld [vmem:[#allocation18_spill] sm:$0xff] }
 0x470   : > { %v5343_v47 = vadd.f32 %v5132_v42, %v4485_v4 }
 0x471   : > { %v6105_v52 = vadd.f32 %v6104_v20, %v6103_v29  ;;  %v5344_v31 = vadd.f32 %v5135_v19, %v4488_v37 }
 0x472   : > { %v5478_v50 = vadd.f32 %v11388_v22, %v5343_v47  ;;  %v5140_v48 = vpop.f32.mrb[76].mxu0 }
 0x473   : > { %v5479_v63 = vadd.f32 %v11388_v22, %v5344_v31  ;;  %v5142_v21 = vpop.f32.mrb[77].mxu0 }
 0x474   : > { %v5713_v12 = vsel %vm2909_vm5, %v5478_v50, 0.0  ;;  %v5879_v13 = vmul.f32 %v5478_v50, %v5478_v50  ;;  %v7558_v30 = vpack.c.bf16 %v5478_v50, %v5478_v50  ;;  %v4492_v43 = vpop.f32.mrb[76].mxu1  ;;  %v5143_v46 = vpop.f32.mrb[78].mxu0 }
 0x475   : > { %v5714_v24 = vadd.f32 %v5713_v12, %v5712_v2  ;;  %v5715_v10 = vsel %vm2909_vm5, %v5479_v63, 0.0  ;;  %v5880_v3 = vmul.f32 %v5479_v63, %v5479_v63  ;;  %v7559_v15 = vpack.c.bf16 %v5479_v63, %v5479_v63  ;;  %v4494_v56 = vpop.f32.mrb[77].mxu1  ;;  %v5145_v61 = vpop.f32.mrb[79].mxu0 }
 0x476   : > { %v6106_v5 = vsel %vm2909_vm5, %v5879_v13, 0.0  ;;  %6783 = vst.msk [vmem:[%s10527_s21 + $0x190] sm:$0xf] %vm6682_vm6, %v7558_v30  ;;  %v4493_v55 = vadd.f32 %v4492_v43, %v12223_v14  ;;  %v4495_v45 = vpop.f32.mrb[78].mxu1  ;;  %v12228_v14 = vld [vmem:[#allocation138_spill] sm:$0xff] }
 0x477   : > { %v6107_v9 = vadd.f32 %v6106_v5, %v6105_v52  ;;  %v5716_v58 = vadd.f32 %v5715_v10, %v5714_v24  ;;  %v6108_v8 = vsel %vm2909_vm5, %v5880_v3, 0.0  ;;  %6784 = vst.msk [vmem:[%s10527_s21 + $0x194] sm:$0xf] %vm6682_vm6, %v7559_v15  ;;  %v4496_v36 = vadd.f32 %v4495_v45, %v12224_v25  ;;  %v4497_v23 = vpop.f32.mrb[79].mxu1  ;;  %v12227_v24 = vld [vmem:[#allocation76_spill] sm:$0xff] }
 0x478   : > { %v5345_v0 = vadd.f32 %v5140_v48, %v4493_v55 }
 0x479   : > { %v6109_v60 = vadd.f32 %v6108_v8, %v6107_v9  ;;  %v5346_v34 = vadd.f32 %v5143_v46, %v4496_v36 }
 0x47a   : > { %v5480_v26 = vadd.f32 %v11388_v22, %v5345_v0  ;;  %v5148_v39 = vpop.f32.mrb[80].mxu0 }
 0x47b   : > { %v5481_v33 = vadd.f32 %v11388_v22, %v5346_v34  ;;  %v5150_v53 = vpop.f32.mrb[81].mxu0 }
 0x47c   : > { %v5717_v62 = vsel %vm2909_vm5, %v5480_v26, 0.0  ;;  %v5881_v49 = vmul.f32 %v5480_v26, %v5480_v26  ;;  %v7560_v40 = vpack.c.bf16 %v5480_v26, %v5480_v26  ;;  %v4500_v38 = vpop.f32.mrb[80].mxu1  ;;  %v5151_v41 = vpop.f32.mrb[82].mxu0 }
 0x47d   : > { %v5718_v7 = vadd.f32 %v5717_v62, %v5716_v58  ;;  %v5719_v42 = vsel %vm2909_vm5, %v5481_v33, 0.0  ;;  %v5882_v11 = vmul.f32 %v5481_v33, %v5481_v33  ;;  %v7561_v27 = vpack.c.bf16 %v5481_v33, %v5481_v33  ;;  %v4502_v28 = vpop.f32.mrb[81].mxu1  ;;  %v5153_v6 = vpop.f32.mrb[83].mxu0 }
 0x47e   : > { %v6110_v44 = vsel %vm2909_vm5, %v5881_v49, 0.0  ;;  %6785 = vst.msk [vmem:[%s10527_s21 + $0x198] sm:$0xf] %vm6682_vm6, %v7560_v40  ;;  %v4501_v59 = vadd.f32 %v4500_v38, %v12225_v54  ;;  %v4503_v32 = vpop.f32.mrb[82].mxu1  ;;  %v12230_v54 = vld [vmem:[#allocation139_spill] sm:$0xff] }
 0x47f   : > { %v6111_v17 = vadd.f32 %v6110_v44, %v6109_v60  ;;  %v5720_v19 = vadd.f32 %v5719_v42, %v5718_v7  ;;  %v6112_v51 = vsel %vm2909_vm5, %v5882_v11, 0.0  ;;  %6786 = vst.msk [vmem:[%s10527_s21 + $0x19c] sm:$0xf] %vm6682_vm6, %v7561_v27  ;;  %v4504_v4 = vadd.f32 %v4503_v32, %v12226_v18  ;;  %v4505_v35 = vpop.f32.mrb[83].mxu1  ;;  %v12229_v7 = vld [vmem:[#allocation75_spill] sm:$0xff] }
 0x480   : > { %v5347_v57 = vadd.f32 %v5148_v39, %v4501_v59 }
 0x481   : > { %v6113_v29 = vadd.f32 %v6112_v51, %v6111_v17  ;;  %v5348_v2 = vadd.f32 %v5151_v41, %v4504_v4 }
 0x482   : > { %v5482_v20 = vadd.f32 %v11388_v22, %v5347_v57  ;;  %v5156_v37 = vpop.f32.mrb[84].mxu0 }
 0x483   : > { %v5483_v1 = vadd.f32 %v11388_v22, %v5348_v2  ;;  %v5158_v50 = vpop.f32.mrb[85].mxu0 }
 0x484   : > { %v5721_v16 = vsel %vm2909_vm5, %v5482_v20, 0.0  ;;  %v5883_v47 = vmul.f32 %v5482_v20, %v5482_v20  ;;  %v7562_v52 = vpack.c.bf16 %v5482_v20, %v5482_v20  ;;  %v4508_v31 = vpop.f32.mrb[84].mxu1  ;;  %v5159_v43 = vpop.f32.mrb[86].mxu0 }
 0x485   : > { %v5722_v63 = vadd.f32 %v5721_v16, %v5720_v19  ;;  %v5723_v48 = vsel %vm2909_vm5, %v5483_v1, 0.0  ;;  %v5884_v12 = vmul.f32 %v5483_v1, %v5483_v1  ;;  %v7563_v13 = vpack.c.bf16 %v5483_v1, %v5483_v1  ;;  %v4510_v30 = vpop.f32.mrb[85].mxu1  ;;  %v5161_v15 = vpop.f32.mrb[87].mxu0 }
 0x486   : > { %v6114_v21 = vsel %vm2909_vm5, %v5883_v47, 0.0  ;;  %6787 = vst.msk [vmem:[%s10527_s21 + $0x1a0] sm:$0xf] %vm6682_vm6, %v7562_v52  ;;  %v4509_v10 = vadd.f32 %v4508_v31, %v12227_v24  ;;  %v4511_v3 = vpop.f32.mrb[86].mxu1  ;;  %v12232_v24 = vld [vmem:[#allocation141_spill] sm:$0xff] }
 0x487   : > { %v6115_v56 = vadd.f32 %v6114_v21, %v6113_v29  ;;  %v5724_v46 = vadd.f32 %v5723_v48, %v5722_v63  ;;  %v6116_v5 = vsel %vm2909_vm5, %v5884_v12, 0.0  ;;  %6788 = vst.msk [vmem:[%s10527_s21 + $0x1a4] sm:$0xf] %vm6682_vm6, %v7563_v13  ;;  %v4512_v55 = vadd.f32 %v4511_v3, %v12228_v14  ;;  %v4513_v45 = vpop.f32.mrb[87].mxu1  ;;  %v12231_v63 = vld [vmem:[#allocation140_spill] sm:$0xff] }
 0x488   : > { %v5349_v61 = vadd.f32 %v5156_v37, %v4509_v10 }
 0x489   : > { %v6117_v9 = vadd.f32 %v6116_v5, %v6115_v56  ;;  %v5350_v58 = vadd.f32 %v5159_v43, %v4512_v55 }
 0x48a   : > { %v5484_v8 = vadd.f32 %v11388_v22, %v5349_v61  ;;  %v5164_v36 = vpop.f32.mrb[88].mxu0 }
 0x48b   : > { %v5485_v25 = vadd.f32 %v11388_v22, %v5350_v58  ;;  %v5166_v26 = vpop.f32.mrb[89].mxu0 }
 0x48c   : > { %v5725_v23 = vsel %vm2909_vm5, %v5484_v8, 0.0  ;;  %v5885_v0 = vmul.f32 %v5484_v8, %v5484_v8  ;;  %v7564_v60 = vpack.c.bf16 %v5484_v8, %v5484_v8  ;;  %v4516_v34 = vpop.f32.mrb[88].mxu1  ;;  %v5167_v38 = vpop.f32.mrb[90].mxu0 }
 0x48d   : > { %v5726_v33 = vadd.f32 %v5725_v23, %v5724_v46  ;;  %v5727_v39 = vsel %vm2909_vm5, %v5485_v25, 0.0  ;;  %v5886_v62 = vmul.f32 %v5485_v25, %v5485_v25  ;;  %v7565_v49 = vpack.c.bf16 %v5485_v25, %v5485_v25  ;;  %v4518_v40 = vpop.f32.mrb[89].mxu1  ;;  %v5169_v27 = vpop.f32.mrb[91].mxu0 }
 0x48e   : > { %v6118_v53 = vsel %vm2909_vm5, %v5885_v0, 0.0  ;;  %6789 = vst.msk [vmem:[%s10527_s21 + $0x1a8] sm:$0xf] %vm6682_vm6, %v7564_v60  ;;  %v4517_v42 = vadd.f32 %v4516_v34, %v12229_v7  ;;  %v4519_v11 = vpop.f32.mrb[90].mxu1  ;;  %v12234_v7 = vld [vmem:[#allocation143_spill] sm:$0xff] }
 0x48f   : > { %v6119_v28 = vadd.f32 %v6118_v53, %v6117_v9  ;;  %v5728_v41 = vadd.f32 %v5727_v39, %v5726_v33  ;;  %v6120_v44 = vsel %vm2909_vm5, %v5886_v62, 0.0  ;;  %6790 = vst.msk [vmem:[%s10527_s21 + $0x1ac] sm:$0xf] %vm6682_vm6, %v7565_v49  ;;  %v4520_v59 = vadd.f32 %v4519_v11, %v12230_v54  ;;  %v4521_v32 = vpop.f32.mrb[91].mxu1  ;;  %v12233_v33 = vld [vmem:[#allocation142_spill] sm:$0xff] }
 0x490   : > { %v5351_v6 = vadd.f32 %v5164_v36, %v4517_v42 }
 0x491   : > { %v6121_v17 = vadd.f32 %v6120_v44, %v6119_v28  ;;  %v5352_v19 = vadd.f32 %v5167_v38, %v4520_v59 }
 0x492   : > { %v5486_v51 = vadd.f32 %v11388_v22, %v5351_v6  ;;  %v5172_v4 = vpop.f32.mrb[92].mxu0 }
 0x493   : > { %v5487_v18 = vadd.f32 %v11388_v22, %v5352_v19  ;;  %v5174_v20 = vpop.f32.mrb[93].mxu0 }
 0x494   : > { %v5729_v35 = vsel %vm2909_vm5, %v5486_v51, 0.0  ;;  %v5887_v57 = vmul.f32 %v5486_v51, %v5486_v51  ;;  %v7566_v29 = vpack.c.bf16 %v5486_v51, %v5486_v51  ;;  %v4524_v2 = vpop.f32.mrb[92].mxu1  ;;  %v5175_v31 = vpop.f32.mrb[94].mxu0 }
 0x495   : > { %v5730_v1 = vadd.f32 %v5729_v35, %v5728_v41  ;;  %v5731_v37 = vsel %vm2909_vm5, %v5487_v18, 0.0  ;;  %v5888_v16 = vmul.f32 %v5487_v18, %v5487_v18  ;;  %v7567_v47 = vpack.c.bf16 %v5487_v18, %v5487_v18  ;;  %v4526_v52 = vpop.f32.mrb[93].mxu1  ;;  %v5177_v13 = vpop.f32.mrb[95].mxu0 }
 0x496   : > { %v6122_v50 = vsel %vm2909_vm5, %v5887_v57, 0.0  ;;  %6791 = vst.msk [vmem:[%s10527_s21 + $0x1b0] sm:$0xf] %vm6682_vm6, %v7566_v29  ;;  %v4525_v48 = vadd.f32 %v4524_v2, %v12231_v63  ;;  %v4527_v12 = vpop.f32.mrb[94].mxu1  ;;  %v12236_v63 = vld [vmem:[#allocation145_spill] sm:$0xff] }
 0x497   : > { %v6123_v30 = vadd.f32 %v6122_v50, %v6121_v17  ;;  %v5732_v43 = vadd.f32 %v5731_v37, %v5730_v1  ;;  %v6124_v21 = vsel %vm2909_vm5, %v5888_v16, 0.0  ;;  %6792 = vst.msk [vmem:[%s10527_s21 + $0x1b4] sm:$0xf] %vm6682_vm6, %v7567_v47  ;;  %v4528_v10 = vadd.f32 %v4527_v12, %v12232_v24  ;;  %v4529_v3 = vpop.f32.mrb[95].mxu1  ;;  %v12235_v1 = vld [vmem:[#allocation144_spill] sm:$0xff] }
 0x498   : > { %v5353_v15 = vadd.f32 %v5172_v4, %v4525_v48 }
 0x499   : > { %v6125_v56 = vadd.f32 %v6124_v21, %v6123_v30  ;;  %v5354_v46 = vadd.f32 %v5175_v31, %v4528_v10 }
 0x49a   : > { %v5488_v5 = vadd.f32 %v11388_v22, %v5353_v15  ;;  %v5180_v55 = vpop.f32.mrb[96].mxu0 }
 0x49b   : > { %v5489_v14 = vadd.f32 %v11388_v22, %v5354_v46  ;;  %v5182_v8 = vpop.f32.mrb[97].mxu0 }
 0x49c   : > { %v5733_v45 = vsel %vm2909_vm5, %v5488_v5, 0.0  ;;  %v5889_v61 = vmul.f32 %v5488_v5, %v5488_v5  ;;  %v7568_v9 = vpack.c.bf16 %v5488_v5, %v5488_v5  ;;  %v4532_v58 = vpop.f32.mrb[96].mxu1  ;;  %v5183_v34 = vpop.f32.mrb[98].mxu0 }
 0x49d   : > { %v5734_v25 = vadd.f32 %v5733_v45, %v5732_v43  ;;  %v5735_v36 = vsel %vm2909_vm5, %v5489_v14, 0.0  ;;  %v5890_v23 = vmul.f32 %v5489_v14, %v5489_v14  ;;  %v7569_v0 = vpack.c.bf16 %v5489_v14, %v5489_v14  ;;  %v4534_v60 = vpop.f32.mrb[97].mxu1  ;;  %v5185_v49 = vpop.f32.mrb[99].mxu0 }
 0x49e   : > { %v6126_v26 = vsel %vm2909_vm5, %v5889_v61, 0.0  ;;  %6793 = vst.msk [vmem:[%s10527_s21 + $0x1b8] sm:$0xf] %vm6682_vm6, %v7568_v9  ;;  %v4533_v39 = vadd.f32 %v4532_v58, %v12233_v33  ;;  %v4535_v62 = vpop.f32.mrb[98].mxu1  ;;  %v12238_v33 = vld [vmem:[#allocation147_spill] sm:$0xff] }
 0x49f   : > { %v6127_v40 = vadd.f32 %v6126_v26, %v6125_v56  ;;  %v5736_v38 = vadd.f32 %v5735_v36, %v5734_v25  ;;  %v6128_v53 = vsel %vm2909_vm5, %v5890_v23, 0.0  ;;  %6794 = vst.msk [vmem:[%s10527_s21 + $0x1bc] sm:$0xf] %vm6682_vm6, %v7569_v0  ;;  %v4536_v42 = vadd.f32 %v4535_v62, %v12234_v7  ;;  %v4537_v11 = vpop.f32.mrb[99].mxu1  ;;  %v12237_v25 = vld [vmem:[#allocation146_spill] sm:$0xff] }
 0x4a0   : > { %v5355_v27 = vadd.f32 %v5180_v55, %v4533_v39 }
 0x4a1   : > { %v6129_v28 = vadd.f32 %v6128_v53, %v6127_v40  ;;  %v5356_v41 = vadd.f32 %v5183_v34, %v4536_v42 }
 0x4a2   : > { %v5490_v44 = vadd.f32 %v11388_v22, %v5355_v27  ;;  %v5188_v59 = vpop.f32.mrb[100].mxu0 }
 0x4a3   : > { %v5491_v54 = vadd.f32 %v11388_v22, %v5356_v41  ;;  %v5190_v51 = vpop.f32.mrb[101].mxu0 }
 0x4a4   : > { %v5737_v32 = vsel %vm2909_vm5, %v5490_v44, 0.0  ;;  %v5891_v6 = vmul.f32 %v5490_v44, %v5490_v44  ;;  %v7570_v17 = vpack.c.bf16 %v5490_v44, %v5490_v44  ;;  %v4540_v19 = vpop.f32.mrb[100].mxu1  ;;  %v5191_v2 = vpop.f32.mrb[102].mxu0 }
 0x4a5   : > { %v5738_v18 = vadd.f32 %v5737_v32, %v5736_v38  ;;  %v5739_v4 = vsel %vm2909_vm5, %v5491_v54, 0.0  ;;  %v5892_v35 = vmul.f32 %v5491_v54, %v5491_v54  ;;  %v7571_v57 = vpack.c.bf16 %v5491_v54, %v5491_v54  ;;  %v4542_v29 = vpop.f32.mrb[101].mxu1  ;;  %v5193_v47 = vpop.f32.mrb[103].mxu0 }
 0x4a6   : > { %v6130_v20 = vsel %vm2909_vm5, %v5891_v6, 0.0  ;;  %6795 = vst.msk [vmem:[%s10527_s21 + $0x1c0] sm:$0xf] %vm6682_vm6, %v7570_v17  ;;  %v4541_v37 = vadd.f32 %v4540_v19, %v12235_v1  ;;  %v4543_v16 = vpop.f32.mrb[102].mxu1  ;;  %v12240_v1 = vld [vmem:[#allocation149_spill] sm:$0xff] }
 0x4a7   : > { %v6131_v52 = vadd.f32 %v6130_v20, %v6129_v28  ;;  %v5740_v31 = vadd.f32 %v5739_v4, %v5738_v18  ;;  %v6132_v50 = vsel %vm2909_vm5, %v5892_v35, 0.0  ;;  %6796 = vst.msk [vmem:[%s10527_s21 + $0x1c4] sm:$0xf] %vm6682_vm6, %v7571_v57  ;;  %v4544_v48 = vadd.f32 %v4543_v16, %v12236_v63  ;;  %v4545_v12 = vpop.f32.mrb[103].mxu1  ;;  %v12239_v18 = vld [vmem:[#allocation148_spill] sm:$0xff] }
 0x4a8   : > { %v5357_v13 = vadd.f32 %v5188_v59, %v4541_v37 }
 0x4a9   : > { %v6133_v30 = vadd.f32 %v6132_v50, %v6131_v52  ;;  %v5358_v43 = vadd.f32 %v5191_v2, %v4544_v48 }
 0x4aa   : > { %v5492_v21 = vadd.f32 %v11388_v22, %v5357_v13  ;;  %v5196_v10 = vpop.f32.mrb[104].mxu0 }
 0x4ab   : > { %v5493_v24 = vadd.f32 %v11388_v22, %v5358_v43  ;;  %v5198_v5 = vpop.f32.mrb[105].mxu0 }
 0x4ac   : > { %v5741_v3 = vsel %vm2909_vm5, %v5492_v21, 0.0  ;;  %v5893_v15 = vmul.f32 %v5492_v21, %v5492_v21  ;;  %v7572_v56 = vpack.c.bf16 %v5492_v21, %v5492_v21  ;;  %v4548_v46 = vpop.f32.mrb[104].mxu1  ;;  %v5199_v58 = vpop.f32.mrb[106].mxu0 }
 0x4ad   : > { %v5742_v14 = vadd.f32 %v5741_v3, %v5740_v31  ;;  %v5743_v55 = vsel %vm2909_vm5, %v5493_v24, 0.0  ;;  %v5894_v45 = vmul.f32 %v5493_v24, %v5493_v24  ;;  %v7573_v61 = vpack.c.bf16 %v5493_v24, %v5493_v24  ;;  %v4550_v9 = vpop.f32.mrb[105].mxu1  ;;  %v5201_v0 = vpop.f32.mrb[107].mxu0 }
 0x4ae   : > { %v6134_v8 = vsel %vm2909_vm5, %v5893_v15, 0.0  ;;  %6797 = vst.msk [vmem:[%s10527_s21 + $0x1c8] sm:$0xf] %vm6682_vm6, %v7572_v56  ;;  %v4549_v36 = vadd.f32 %v4548_v46, %v12237_v25  ;;  %v4551_v23 = vpop.f32.mrb[106].mxu1  ;;  %v12242_v25 = vld [vmem:[#allocation151_spill] sm:$0xff] }
 0x4af   : > { %v6135_v60 = vadd.f32 %v6134_v8, %v6133_v30  ;;  %v5744_v34 = vadd.f32 %v5743_v55, %v5742_v14  ;;  %v6136_v26 = vsel %vm2909_vm5, %v5894_v45, 0.0  ;;  %6798 = vst.msk [vmem:[%s10527_s21 + $0x1cc] sm:$0xf] %vm6682_vm6, %v7573_v61  ;;  %v4552_v39 = vadd.f32 %v4551_v23, %v12238_v33  ;;  %v4553_v62 = vpop.f32.mrb[107].mxu1  ;;  %v12241_v14 = vld [vmem:[#allocation150_spill] sm:$0xff] }
 0x4b0   : > { %v5359_v49 = vadd.f32 %v5196_v10, %v4549_v36 }
 0x4b1   : > { %v6137_v40 = vadd.f32 %v6136_v26, %v6135_v60  ;;  %v5360_v38 = vadd.f32 %v5199_v58, %v4552_v39 }
 0x4b2   : > { %v5494_v53 = vadd.f32 %v11388_v22, %v5359_v49  ;;  %v5204_v42 = vpop.f32.mrb[108].mxu0 }
 0x4b3   : > { %v5495_v7 = vadd.f32 %v11388_v22, %v5360_v38  ;;  %v5206_v44 = vpop.f32.mrb[109].mxu0 }
 0x4b4   : > { %v5745_v11 = vsel %vm2909_vm5, %v5494_v53, 0.0  ;;  %v5895_v27 = vmul.f32 %v5494_v53, %v5494_v53  ;;  %v7574_v28 = vpack.c.bf16 %v5494_v53, %v5494_v53  ;;  %v4556_v41 = vpop.f32.mrb[108].mxu1  ;;  %v5207_v19 = vpop.f32.mrb[110].mxu0 }
 0x4b5   : > { %v5746_v54 = vadd.f32 %v5745_v11, %v5744_v34  ;;  %v5747_v59 = vsel %vm2909_vm5, %v5495_v7, 0.0  ;;  %v5896_v32 = vmul.f32 %v5495_v7, %v5495_v7  ;;  %v7575_v6 = vpack.c.bf16 %v5495_v7, %v5495_v7  ;;  %v4558_v17 = vpop.f32.mrb[109].mxu1  ;;  %v5209_v57 = vpop.f32.mrb[111].mxu0 }
 0x4b6   : > { %v6138_v51 = vsel %vm2909_vm5, %v5895_v27, 0.0  ;;  %6799 = vst.msk [vmem:[%s10527_s21 + $0x1d0] sm:$0xf] %vm6682_vm6, %v7574_v28  ;;  %v4557_v4 = vadd.f32 %v4556_v41, %v12239_v18  ;;  %v4559_v35 = vpop.f32.mrb[110].mxu1  ;;  %v12244_v18 = vld [vmem:[#allocation153_spill] sm:$0xff] }
 0x4b7   : > { %v6139_v29 = vadd.f32 %v6138_v51, %v6137_v40  ;;  %v5748_v2 = vadd.f32 %v5747_v59, %v5746_v54  ;;  %v6140_v20 = vsel %vm2909_vm5, %v5896_v32, 0.0  ;;  %6800 = vst.msk [vmem:[%s10527_s21 + $0x1d4] sm:$0xf] %vm6682_vm6, %v7575_v6  ;;  %v4560_v37 = vadd.f32 %v4559_v35, %v12240_v1  ;;  %v4561_v16 = vpop.f32.mrb[111].mxu1  ;;  %v12243_v54 = vld [vmem:[#allocation152_spill] sm:$0xff] }
 0x4b8   : > { %v5361_v47 = vadd.f32 %v5204_v42, %v4557_v4 }
 0x4b9   : > { %v6141_v52 = vadd.f32 %v6140_v20, %v6139_v29  ;;  %v5362_v31 = vadd.f32 %v5207_v19, %v4560_v37 }
 0x4ba   : > { %v5496_v50 = vadd.f32 %v11388_v22, %v5361_v47  ;;  %v5212_v48 = vpop.f32.mrb[112].mxu0 }
 0x4bb   : > { %v5497_v63 = vadd.f32 %v11388_v22, %v5362_v31  ;;  %v5214_v21 = vpop.f32.mrb[113].mxu0 }
 0x4bc   : > { %v5749_v12 = vsel %vm2909_vm5, %v5496_v50, 0.0  ;;  %v5897_v13 = vmul.f32 %v5496_v50, %v5496_v50  ;;  %v7576_v30 = vpack.c.bf16 %v5496_v50, %v5496_v50  ;;  %v4564_v43 = vpop.f32.mrb[112].mxu1  ;;  %v5215_v46 = vpop.f32.mrb[114].mxu0 }
 0x4bd   : > { %v5750_v24 = vadd.f32 %v5749_v12, %v5748_v2  ;;  %v5751_v10 = vsel %vm2909_vm5, %v5497_v63, 0.0  ;;  %v5898_v3 = vmul.f32 %v5497_v63, %v5497_v63  ;;  %v7577_v15 = vpack.c.bf16 %v5497_v63, %v5497_v63  ;;  %v4566_v56 = vpop.f32.mrb[113].mxu1  ;;  %v5217_v61 = vpop.f32.mrb[115].mxu0 }
 0x4be   : > { %v6142_v5 = vsel %vm2909_vm5, %v5897_v13, 0.0  ;;  %6801 = vst.msk [vmem:[%s10527_s21 + $0x1d8] sm:$0xf] %vm6682_vm6, %v7576_v30  ;;  %v4565_v55 = vadd.f32 %v4564_v43, %v12241_v14  ;;  %v4567_v45 = vpop.f32.mrb[114].mxu1  ;;  %v12246_v14 = vld [vmem:[#allocation156_spill] sm:$0xff] }
 0x4bf   : > { %v6143_v9 = vadd.f32 %v6142_v5, %v6141_v52  ;;  %v5752_v58 = vadd.f32 %v5751_v10, %v5750_v24  ;;  %v6144_v8 = vsel %vm2909_vm5, %v5898_v3, 0.0  ;;  %6802 = vst.msk [vmem:[%s10527_s21 + $0x1dc] sm:$0xf] %vm6682_vm6, %v7577_v15  ;;  %v4568_v36 = vadd.f32 %v4567_v45, %v12242_v25  ;;  %v4569_v23 = vpop.f32.mrb[115].mxu1  ;;  %v12245_v24 = vld [vmem:[#allocation155_spill] sm:$0xff] }
 0x4c0   : > { %v5363_v0 = vadd.f32 %v5212_v48, %v4565_v55 }
 0x4c1   : > { %v6145_v60 = vadd.f32 %v6144_v8, %v6143_v9  ;;  %v5364_v34 = vadd.f32 %v5215_v46, %v4568_v36 }
 0x4c2   : > { %v5498_v26 = vadd.f32 %v11388_v22, %v5363_v0  ;;  %v5220_v39 = vpop.f32.mrb[116].mxu0 }
 0x4c3   : > { %v5499_v33 = vadd.f32 %v11388_v22, %v5364_v34  ;;  %v5222_v53 = vpop.f32.mrb[117].mxu0 }
 0x4c4   : > { %v5753_v62 = vsel %vm2909_vm5, %v5498_v26, 0.0  ;;  %v5899_v49 = vmul.f32 %v5498_v26, %v5498_v26  ;;  %v7578_v40 = vpack.c.bf16 %v5498_v26, %v5498_v26  ;;  %v4572_v38 = vpop.f32.mrb[116].mxu1  ;;  %v5223_v41 = vpop.f32.mrb[118].mxu0 }
 0x4c5   : > { %v5754_v7 = vadd.f32 %v5753_v62, %v5752_v58  ;;  %v5755_v42 = vsel %vm2909_vm5, %v5499_v33, 0.0  ;;  %v5900_v11 = vmul.f32 %v5499_v33, %v5499_v33  ;;  %v7579_v27 = vpack.c.bf16 %v5499_v33, %v5499_v33  ;;  %v4574_v28 = vpop.f32.mrb[117].mxu1  ;;  %v5225_v6 = vpop.f32.mrb[119].mxu0 }
 0x4c6   : > { %v6146_v44 = vsel %vm2909_vm5, %v5899_v49, 0.0  ;;  %6803 = vst.msk [vmem:[%s10527_s21 + $0x1e0] sm:$0xf] %vm6682_vm6, %v7578_v40  ;;  %v4573_v59 = vadd.f32 %v4572_v38, %v12243_v54  ;;  %v4575_v32 = vpop.f32.mrb[118].mxu1  ;;  %v12248_v54 = vld [vmem:[#allocation159_spill] sm:$0xff] }
 0x4c7   : > { %v6147_v17 = vadd.f32 %v6146_v44, %v6145_v60  ;;  %v5756_v19 = vadd.f32 %v5755_v42, %v5754_v7  ;;  %v6148_v51 = vsel %vm2909_vm5, %v5900_v11, 0.0  ;;  %6804 = vst.msk [vmem:[%s10527_s21 + $0x1e4] sm:$0xf] %vm6682_vm6, %v7579_v27  ;;  %v4576_v4 = vadd.f32 %v4575_v32, %v12244_v18  ;;  %v4577_v35 = vpop.f32.mrb[119].mxu1  ;;  %v12247_v7 = vld [vmem:[#allocation157_spill] sm:$0xff] }
 0x4c8   : > { %v5365_v57 = vadd.f32 %v5220_v39, %v4573_v59 }
 0x4c9   : > { %v6149_v29 = vadd.f32 %v6148_v51, %v6147_v17  ;;  %v5366_v2 = vadd.f32 %v5223_v41, %v4576_v4 }
 0x4ca   : > { %v5500_v20 = vadd.f32 %v11388_v22, %v5365_v57  ;;  %v5228_v37 = vpop.f32.mrb[120].mxu0 }
 0x4cb   : > { %v5501_v1 = vadd.f32 %v11388_v22, %v5366_v2  ;;  %v5230_v50 = vpop.f32.mrb[121].mxu0 }
 0x4cc   : > { %v5757_v16 = vsel %vm2909_vm5, %v5500_v20, 0.0  ;;  %v5901_v47 = vmul.f32 %v5500_v20, %v5500_v20  ;;  %v7580_v52 = vpack.c.bf16 %v5500_v20, %v5500_v20  ;;  %v4580_v31 = vpop.f32.mrb[120].mxu1  ;;  %v5231_v43 = vpop.f32.mrb[122].mxu0 }
 0x4cd   : > { %v5758_v63 = vadd.f32 %v5757_v16, %v5756_v19  ;;  %v5759_v48 = vsel %vm2909_vm5, %v5501_v1, 0.0  ;;  %v5902_v12 = vmul.f32 %v5501_v1, %v5501_v1  ;;  %v7581_v13 = vpack.c.bf16 %v5501_v1, %v5501_v1  ;;  %v4582_v30 = vpop.f32.mrb[121].mxu1  ;;  %v5233_v15 = vpop.f32.mrb[123].mxu0 }
 0x4ce   : > { %v6150_v21 = vsel %vm2909_vm5, %v5901_v47, 0.0  ;;  %6805 = vst.msk [vmem:[%s10527_s21 + $0x1e8] sm:$0xf] %vm6682_vm6, %v7580_v52  ;;  %v4581_v10 = vadd.f32 %v4580_v31, %v12245_v24  ;;  %v4583_v3 = vpop.f32.mrb[122].mxu1  ;;  %v5513_v24 = vld [vmem:[%s11361_s23] sm:$0x1] }
 0x4cf   : > { %v6151_v56 = vadd.f32 %v6150_v21, %v6149_v29  ;;  %v5760_v46 = vadd.f32 %v5759_v48, %v5758_v63  ;;  %v6152_v5 = vsel %vm2909_vm5, %v5902_v12, 0.0  ;;  %6806 = vst.msk [vmem:[%s10527_s21 + $0x1ec] sm:$0xf] %vm6682_vm6, %v7581_v13  ;;  %v4584_v55 = vadd.f32 %v4583_v3, %v12246_v14  ;;  %v4585_v45 = vpop.f32.mrb[123].mxu1  ;;  %v5778_v15 = vld [vmem:[%s11367_s30] sm:$0x1] }
 0x4d0   : > { %v5367_v61 = vadd.f32 %v5228_v37, %v4581_v10 }
 0x4d1   : > { %v6153_v9 = vadd.f32 %v6152_v5, %v6151_v56  ;;  %v5368_v58 = vadd.f32 %v5231_v43, %v4584_v55 }
 0x4d2   : > { %v5502_v8 = vadd.f32 %v11388_v22, %v5367_v61  ;;  %v5236_v36 = vpop.f32.mrb[124].mxu0 }
 0x4d3   : > { %v5503_v25 = vadd.f32 %v11388_v22, %v5368_v58  ;;  %v5238_v26 = vpop.f32.mrb[125].mxu0 }
 0x4d4   : > { %v5761_v23 = vsel %vm2909_vm5, %v5502_v8, 0.0  ;;  %v5903_v0 = vmul.f32 %v5502_v8, %v5502_v8  ;;  %v7582_v60 = vpack.c.bf16 %v5502_v8, %v5502_v8  ;;  %v4588_v34 = vpop.f32.mrb[124].mxu1  ;;  %v5239_v38 = vpop.f32.mrb[126].mxu0 }
 0x4d5   : > { %v5762_v33 = vadd.f32 %v5761_v23, %v5760_v46  ;;  %v5763_v39 = vsel %vm2909_vm5, %v5503_v25, 0.0  ;;  %v5904_v62 = vmul.f32 %v5503_v25, %v5503_v25  ;;  %v7583_v49 = vpack.c.bf16 %v5503_v25, %v5503_v25  ;;  %v4590_v40 = vpop.f32.mrb[125].mxu1  ;;  %v5241_v27 = vpop.f32.mrb[127].mxu0 }
 0x4d6   : > { %v6154_v53 = vsel %vm2909_vm5, %v5903_v0, 0.0  ;;  %6807 = vst.msk [vmem:[%s10527_s21 + $0x1f0] sm:$0xf] %vm6682_vm6, %v7582_v60  ;;  %v4589_v42 = vadd.f32 %v4588_v34, %v12247_v7  ;;  %v4591_v11 = vpop.f32.mrb[126].mxu1 }
 0x4d7   : > { %v6155_v28 = vadd.f32 %v6154_v53, %v6153_v9  ;;  %v5764_v41 = vadd.f32 %v5763_v39, %v5762_v33  ;;  %v6156_v44 = vsel %vm2909_vm5, %v5904_v62, 0.0  ;;  %6808 = vst.msk [vmem:[%s10527_s21 + $0x1f4] sm:$0xf] %vm6682_vm6, %v7583_v49  ;;  %v4592_v59 = vadd.f32 %v4591_v11, %v12248_v54  ;;  %v4593_v32 = vpop.f32.mrb[127].mxu1 }
 0x4d8   : > { %v5369_v6 = vadd.f32 %v5236_v36, %v4589_v42 }
 0x4d9   : > { %v6157_v17 = vadd.f32 %v6156_v44, %v6155_v28  ;;  %v5370_v19 = vadd.f32 %v5239_v38, %v4592_v59 }
 0x4da   : > { %v5504_v51 = vadd.f32 %v11388_v22, %v5369_v6 }
 0x4db   : > { %v5505_v18 = vadd.f32 %v11388_v22, %v5370_v19 }
 0x4dc   : > { %v5765_v4 = vsel %vm2909_vm5, %v5504_v51, 0.0  ;;  %v5905_v35 = vmul.f32 %v5504_v51, %v5504_v51  ;;  %v7584_v57 = vpack.c.bf16 %v5504_v51, %v5504_v51 }
 0x4dd   : > { %v5766_v29 = vadd.f32 %v5765_v4, %v5764_v41  ;;  %v5767_v2 = vsel %vm2909_vm5, %v5505_v18, 0.0  ;;  %v5906_v20 = vmul.f32 %v5505_v18, %v5505_v18  ;;  %v7585_v1 = vpack.c.bf16 %v5505_v18, %v5505_v18 }
 0x4de   : > { %v6158_v37 = vsel %vm2909_vm5, %v5905_v35, 0.0  ;;  %6809 = vst.msk [vmem:[%s10527_s21 + $0x1f8] sm:$0xf] %vm6682_vm6, %v7584_v57 }
 0x4df   : > { %v6159_v16 = vadd.f32 %v6158_v37, %v6157_v17  ;;  %v5768_v47 = vadd.f32 %v5767_v2, %v5766_v29  ;;  %v6160_v52 = vsel %vm2909_vm5, %v5906_v20, 0.0  ;;  %6810 = vst.msk [vmem:[%s10527_s21 + $0x1fc] sm:$0xf] %vm6682_vm6, %v7585_v1 }
 0x4e1   : > { %v5769_v22 = vrot.slane %v5768_v47, 4  ;;  %v6161_v31 = vadd.f32 %v6160_v52, %v6159_v16 }
 0x4e3   : > { %v5770_v50 = vadd.f32 %v5769_v22, %v5768_v47  ;;  %v6162_v63 = vrot.slane %v6161_v31, 4 }
 0x4e5   : > { %v5771_v48 = vrot.slane %v5770_v50, 2  ;;  %v6163_v12 = vadd.f32 %v6162_v63, %v6161_v31 }
 0x4e7   : > { %v5772_v13 = vadd.f32 %v5771_v48, %v5770_v50  ;;  %v6164_v30 = vrot.slane %v6163_v12, 2 }
 0x4e9   : > { %v5773_v43 = vrot.slane %v5772_v13, 1  ;;  %v6165_v21 = vadd.f32 %v6164_v30, %v6163_v12 }
 0x4eb   : > { %v5774_v10 = vadd.f32 %v5773_v43, %v5772_v13  ;;  %v6166_v3 = vrot.slane %v6165_v21, 1 }
 0x4ed   : > { %v5775_v56 = vadd.f32 %v5774_v10, %v5513_v24  ;;  %v6167_v46 = vadd.f32 %v6166_v3, %v6165_v21 }
 0x4ef   : > { %5777 = vst.msk [vmem:[%s11361_s23] sm:$0x1] %vm5510_vm7, %v5775_v56  ;;  %v6168_v5 = vadd.f32 %v6167_v46, %v5778_v15 }
 0x4f1   : > { %6169 = vst.msk [vmem:[%s11367_s30] sm:$0x1] %vm5510_vm7, %v6168_v5 }
 0x4f2 PF: > { %s18_s26 = sadd.s32 1, %s8044_s26   ;;  %s12249_s24 = smov %s8040_s25 }
 0x4f3   : > { %p15_p5 = scmp.ge.s32.totalorder %s18_s26, 4   ;;  %s12250_s25 = smov %s12252_s27 }
 0x4f5   :  { %17 = sbr.rel (!%p15_p5) target bundleno = 2 (0x2), region = 115 }

</bundles_post_ra>
